<compile_context>
chip_gen: v7x
topology: tpu7x:2x2x1
jax: 0.10.0
libtpu: 0.0.40
codegen_flags: <defaults>
</compile_context>

<pallas_src>
import functools
import math

import jax
import jax.numpy as jnp
from jax.experimental import pallas as pl
from jax.experimental.pallas import tpu as pltpu


# ----------------------------------------------------------------------------
# Pallas kernel: out = act(scale * (x @ w) + shift), tiled over (M, N, K)
# ----------------------------------------------------------------------------
def _fused_matmul_kernel(x_ref, w_ref, scale_ref, shift_ref, o_ref, acc_ref, *,
                         act):
    @pl.when(pl.program_id(2) == 0)
    def _init():
        acc_ref[...] = jnp.zeros_like(acc_ref)

    acc_ref[...] += jnp.dot(x_ref[...], w_ref[...],
                            preferred_element_type=jnp.float32)

    @pl.when(pl.program_id(2) == pl.num_programs(2) - 1)
    def _finalize():
        y = acc_ref[...] * scale_ref[...] + shift_ref[...]
        if act == "leaky":              # nn.LeakyReLU(0.2)
            y = jnp.where(y > 0, y, 0.2 * y)
        elif act == "relu":             # nn.ReLU
            y = jnp.maximum(y, 0.0)
        elif act == "tanh":             # final nn.Tanh()
            y = jnp.tanh(y)
        # act == "linear": nothing
        o_ref[...] = y.astype(o_ref.dtype)


def _round_up(x, m):
    return (x + m - 1) // m * m


def _pick_tile(padded, cap, align):
    """Largest multiple of `align` that is <= cap and divides `padded`."""
    t = min(padded, cap)
    t -= t % align
    while padded % t:
        t -= align
    return t


def fused_matmul_affine_act(x, w, scale, shift, act, out_dtype=jnp.bfloat16):
    """act(scale * (x @ w) + shift); x:(M,K) w:(K,N) scale/shift:(N,).

    x/w are fed to the MXU in bfloat16, accumulation is f32 in a VMEM scratch.
    """
    M, K = x.shape
    _, N = w.shape
    Mp = _round_up(M, 16)              # bf16 sublane tile = 16
    Kp = _round_up(K, 128)
    Np = _round_up(N, 128)             # lane-dense output (>=128)
    tm = _pick_tile(Mp, 512, 16)
    tk = _pick_tile(Kp, 512, 128)
    tn = _pick_tile(Np, 256, 128)

    xp = jnp.pad(x.astype(jnp.bfloat16), ((0, Mp - M), (0, Kp - K)))
    wp = jnp.pad(w.astype(jnp.bfloat16), ((0, Kp - K), (0, Np - N)))
    sp = jnp.pad(scale.astype(jnp.float32).reshape(1, N), ((0, 0), (0, Np - N)))
    bp = jnp.pad(shift.astype(jnp.float32).reshape(1, N), ((0, 0), (0, Np - N)))

    out = pl.pallas_call(
        functools.partial(_fused_matmul_kernel, act=act),
        out_shape=jax.ShapeDtypeStruct((Mp, Np), out_dtype),
        grid_spec=pltpu.PrefetchScalarGridSpec(
            num_scalar_prefetch=0,
            grid=(Mp // tm, Np // tn, Kp // tk),
            in_specs=[
                pl.BlockSpec((tm, tk), lambda i, j, k: (i, k)),
                pl.BlockSpec((tk, tn), lambda i, j, k: (k, j)),
                pl.BlockSpec((1, tn), lambda i, j, k: (0, j)),
                pl.BlockSpec((1, tn), lambda i, j, k: (0, j)),
            ],
            out_specs=pl.BlockSpec((tm, tn), lambda i, j, k: (i, j)),
            scratch_shapes=[pltpu.VMEM((tm, tn), jnp.float32)],
        ),
        compiler_params=pltpu.CompilerParams(
            dimension_semantics=("parallel", "parallel", "arbitrary")),
    )(xp, wp, sp, bp)
    return out[:M, :N]


# ----------------------------------------------------------------------------
# Convolution glue (im2col / reflection padding / sub-pixel transposed conv)
# ----------------------------------------------------------------------------
def _im2col(x, k, stride):
    """x: (B, Hp, Wp, C) already padded -> ((B*Ho*Wo, k*k*C), (B, Ho, Wo))."""
    B, Hp, Wp, C = x.shape
    Ho = (Hp - k) // stride + 1
    Wo = (Wp - k) // stride + 1
    cols = []
    for dy in range(k):
        for dx in range(k):
            cols.append(x[:, dy:dy + (Ho - 1) * stride + 1:stride,
                          dx:dx + (Wo - 1) * stride + 1:stride, :])
    cols = jnp.stack(cols, axis=3)                     # (B, Ho, Wo, k*k, C)
    return cols.reshape(B * Ho * Wo, k * k * C), (B, Ho, Wo)


def conv_layer(x, p, k, stride=1, pad=0, pad_mode="reflect", act="linear",
               out_dtype=jnp.bfloat16):
    """Conv2d(+folded BN)(+activation); x is NHWC bf16, weights pre-laid-out."""
    if pad > 0:
        x = jnp.pad(x, ((0, 0), (pad, pad), (pad, pad), (0, 0)), mode=pad_mode)
    cols, (B, Ho, Wo) = _im2col(x, k, stride)
    cout = p["wmat"].shape[1]
    out = fused_matmul_affine_act(cols, p["wmat"], p["scale"], p["shift"], act,
                                  out_dtype)
    return out.reshape(B, Ho, Wo, cout)


def conv_transpose_layer(x, p, act="relu", out_dtype=jnp.bfloat16):
    """nn.ConvTranspose2d(k=4, s=2, p=1) as a 4-phase sub-pixel convolution.

    Each output phase (py, px) is a stride-1 conv with 2x2 effective taps of
    the 4x4 kernel over the (appropriately shifted) input — no zero-upsampled
    intermediate, ~4x fewer FLOPs/bytes than the naive formulation.
    """
    B, H, W, _ = x.shape
    cout = p["wmats"][0].shape[1]
    phases = []
    for idx, (py, px) in enumerate(((0, 0), (0, 1), (1, 0), (1, 1))):
        xp = jnp.pad(x, ((0, 0), (1 - py, py), (1 - px, px), (0, 0)))
        cols, _ = _im2col(xp, 2, 1)
        y = fused_matmul_affine_act(cols, p["wmats"][idx], p["scale"],
                                    p["shift"], act, out_dtype)
        phases.append(y.reshape(B, H, W, cout))
    ph = jnp.stack(phases, axis=0).reshape(2, 2, B, H, W, cout)
    # interleave phases: out[b, 2h+py, 2w+px, c] = ph[py, px, b, h, w, c]
    return jnp.transpose(ph, (2, 3, 0, 4, 1, 5)).reshape(B, 2 * H, 2 * W, cout)


# ----------------------------------------------------------------------------
# Deterministic parameter construction (synthetic init, precomputed layouts)
# ----------------------------------------------------------------------------
class KeyGen:
    def __init__(self, seed):
        self._key = jax.random.PRNGKey(seed)

    def next(self):
        self._key, sub = jax.random.split(self._key)
        return sub


def _fold_bn(bias, has_norm, cout):
    """Fold conv bias + eval-mode BatchNorm2d into (scale, shift)."""
    if has_norm:
        inv_std = 1.0 / math.sqrt(1.0 + 1e-5)          # running_var=1, eps=1e-5
        gamma = jnp.ones((cout,), jnp.float32)         # BN default affine init
        beta = jnp.zeros((cout,), jnp.float32)
        scale = gamma * inv_std
        shift = scale * bias + beta                    # running_mean=0
    else:
        scale = jnp.ones((cout,), jnp.float32)
        shift = bias
    return scale, shift


def _init_conv_params(kg, cout, cin, k, bias, norm):
    fan_in = cin * k * k
    w = jax.random.normal(kg.next(), (cout, cin, k, k),
                          jnp.float32) / math.sqrt(fan_in)
    b = (0.1 * jax.random.normal(kg.next(), (cout,), jnp.float32)
         if bias else jnp.zeros((cout,), jnp.float32))
    scale, shift = _fold_bn(b, norm, cout)
    # (Cout,Cin,kH,kW) -> (kH,kW,Cin,Cout) -> (k*k*Cin, Cout), matches im2col.
    wmat = jnp.transpose(w, (2, 3, 1, 0)).reshape(k * k * cin,
                                                  cout).astype(jnp.bfloat16)
    return {"wmat": wmat, "scale": scale, "shift": shift}


def _init_tconv_params(kg, cout, cin, bias, norm):
    """ConvTranspose2d(k=4,s=2,p=1): precompute the 4 phase weight matrices."""
    k = 4
    fan_in = cin * k * k
    w = jax.random.normal(kg.next(), (cin, cout, k, k),
                          jnp.float32) / math.sqrt(fan_in)
    b = (0.1 * jax.random.normal(kg.next(), (cout,), jnp.float32)
         if bias else jnp.zeros((cout,), jnp.float32))
    scale, shift = _fold_bn(b, norm, cout)
    wmats = []
    for py in (0, 1):
        for px in (0, 1):
            taps = []
            for dy in (0, 1):
                for dx in (0, 1):
                    taps.append(w[:, :, 3 - py - 2 * dy, 3 - px - 2 * dx])
            wmats.append(jnp.stack(taps, axis=0)
                         .reshape(4 * cin, cout).astype(jnp.bfloat16))
    return {"wmats": wmats, "scale": scale, "shift": shift}


def _init_down_block(kg, in_ch, out_ch, norm):
    # DownBlock: [ReflPad(1), Conv3x3, (BN), LReLU(.2), (Drop)],
    #            [ReflPad(1), Conv4x4 s2, (BN), LReLU(.2), (Drop)]
    return {"prep": _init_conv_params(kg, in_ch, in_ch, 3, bias=not norm, norm=norm),
            "down": _init_conv_params(kg, out_ch, in_ch, 4, bias=not norm, norm=norm)}


def _init_up_block(kg, in_ch, out_ch, norm):
    # UpBlock: [ConvT4x4 s2 p1, (BN), ReLU, (Drop)], [Conv2dSame3x3, (BN), ReLU, (Drop)]
    return {"tconv": _init_tconv_params(kg, out_ch, in_ch, bias=not norm, norm=norm),
            "post": _init_conv_params(kg, out_ch, out_ch, 3, bias=not norm, norm=norm)}


def init_unet(kg, in_channels, out_channels, nf0, num_down, max_channels,
              outermost_linear):
    ch = lambda i: min(2 ** i * nf0, max_channels)
    params = {"in": _init_conv_params(kg, nf0, in_channels, 3, bias=False, norm=True)}
    blocks = []
    # innermost UnetSkipConnectionBlock (norm=None, no submodule)
    blocks.append({
        "down": _init_down_block(kg, ch(num_down - 1), ch(num_down - 1), norm=False),
        "up": _init_up_block(kg, ch(num_down - 1), ch(num_down - 1), norm=False),
    })
    for i in reversed(range(num_down - 1)):
        blocks.append({
            "down": _init_down_block(kg, ch(i), ch(i + 1), norm=True),
            "up": _init_up_block(kg, 2 * ch(i + 1), ch(i), norm=True),
        })
    params["blocks"] = blocks  # innermost first, outermost last
    params["out"] = _init_conv_params(kg, out_channels, 2 * nf0, 3,
                                      bias=outermost_linear,
                                      norm=not outermost_linear)
    return params


# ----------------------------------------------------------------------------
# Unet / DeepvoxelsRenderer forward
# ----------------------------------------------------------------------------
def down_block_fwd(x, p):
    x = conv_layer(x, p["prep"], k=3, stride=1, pad=1, act="leaky")
    x = conv_layer(x, p["down"], k=4, stride=2, pad=1, act="leaky")
    return x


def up_block_fwd(x, p):
    x = conv_transpose_layer(x, p["tconv"], act="relu")
    x = conv_layer(x, p["post"], k=3, stride=1, pad=1, act="relu")
    return x


def unet_fwd(x, params, final_act):
    # in_layer: Conv2dSame(3x3, bias=False) + BN + LeakyReLU(0.2) (+ Dropout=id)
    x = conv_layer(x, params["in"], k=3, stride=1, pad=1, act="leaky")
    blocks = params["blocks"]

    def run_block(idx, inp):
        b = blocks[idx]
        y = down_block_fwd(inp, b["down"])
        if idx > 0:
            y = run_block(idx - 1, y)
        y = up_block_fwd(y, b["up"])
        return jnp.concatenate([inp, y], axis=-1)      # torch.cat([x, fwd], dim=1)

    u = run_block(len(blocks) - 1, x)
    # out_layer: Conv2dSame(2*nf0 -> 3), outermost_linear=True, so the
    # DeepvoxelsRenderer's trailing nn.Tanh() is fused as the activation.
    return conv_layer(u, params["out"], k=3, stride=1, pad=1, act=final_act,
                      out_dtype=jnp.float32)


def num_divisible_by_2(number):
    n = 0
    while number > 0 and number % 2 == 0:
        number //= 2
        n += 1
    return n


class DeepvoxelsRendererPallas:
    def __init__(self, nf0, in_channels, input_resolution, img_sidelength, seed=0):
        self.nf0 = nf0
        self.in_channels = in_channels
        self.input_resolution = input_resolution
        self.img_sidelength = img_sidelength
        self.num_down_unet = num_divisible_by_2(input_resolution)
        self.num_upsampling = num_divisible_by_2(img_sidelength) - self.num_down_unet
        if self.num_upsampling > 0:
            # TODO(synk): num_upsampling > 0 branch (UpsamplingNet + Conv2dSame tail)
            # not implemented; use configs with input_resolution == img_sidelength.
            raise NotImplementedError("num_upsampling > 0 not supported")
        kg = KeyGen(seed)
        self.params = init_unet(
            kg,
            in_channels=in_channels,
            out_channels=3,
            nf0=nf0 * 2 ** max(self.num_upsampling, 0),
            num_down=self.num_down_unet,
            max_channels=8 * nf0,
            outermost_linear=True,
        )

        side = self.img_sidelength

        def fwd(params, inp):
            # inp: (B, img_sidelength**2, in_channels), as in the PyTorch forward.
            B, _, ch = inp.shape
            x = jnp.transpose(inp, (0, 2, 1)).reshape(B, ch, side, side)  # NCHW
            x = jnp.transpose(x, (0, 2, 3, 1)).astype(jnp.bfloat16)       # NHWC bf16
            out = unet_fwd(x, params, final_act="tanh")                   # (B,s,s,3) f32
            out = jnp.transpose(out, (0, 3, 1, 2))                        # NCHW
            return jnp.transpose(out.reshape(B, 3, -1), (0, 2, 1))        # (B, N, 3)

        self._fwd = jax.jit(fwd)

    def __call__(self, inp):
        return self._fwd(self.params, inp)


if __name__ == "__main__":
    B = 2
    in_channels = 4
    nf0 = 8
    side = 16  # input_resolution == img_sidelength -> num_upsampling == 0

    model = DeepvoxelsRendererPallas(nf0, in_channels, side, side, seed=0)
    x = jax.random.normal(jax.random.PRNGKey(0),
                          (B, side * side, in_channels), jnp.float32)
    out = jax.block_until_ready(model(x))
    assert out.shape == (B, side * side, 3), out.shape
    assert bool(jnp.all(jnp.isfinite(out)))
    assert bool(jnp.all(jnp.abs(out) <= 1.0))  # tanh output range
    print("KERNEL_OK")
</pallas_src>

<mosaic_0001>
module attributes {stable_mosaic.version = 11 : i64} {
  func.func @_fused_matmul_kernel(%arg0: i32, %arg1: i32, %arg2: i32, %arg3: memref<512x128xbf16, #tpu.memory_space<vmem>>, %arg4: memref<128x128xbf16, #tpu.memory_space<vmem>>, %arg5: memref<1x128xf32, #tpu.memory_space<vmem>>, %arg6: memref<1x128xf32, #tpu.memory_space<vmem>>, %arg7: memref<512x128xbf16, #tpu.memory_space<vmem>>, %arg8: memref<512x128xf32, #tpu.memory_space<vmem>>) attributes {dimension_semantics = [#tpu.dimension_semantics<parallel>, #tpu.dimension_semantics<parallel>, #tpu.dimension_semantics<arbitrary>], iteration_bounds = array<i64: 1, 1, 1>, scalar_prefetch = 0 : i64, scratch_operands = 1 : i64, tpu.core_type = #tpu.core_type<tc>, window_params = [{transform_indices = @transform_0, window_bounds = array<i64: 512, 128>}, {transform_indices = @transform_1, window_bounds = array<i64: 128, 128>}, {transform_indices = @transform_2, window_bounds = array<i64: 1, 128>}, {transform_indices = @transform_3, window_bounds = array<i64: 1, 128>}, {transform_indices = @transform_4, window_bounds = array<i64: 512, 128>}]} {
    %c0_i32 = arith.constant 0 : i32
    %0 = arith.cmpi eq, %arg2, %c0_i32 : i32
    %1 = arith.extui %0 : i1 to i32
    %c0_i32_0 = arith.constant 0 : i32
    %2 = arith.cmpi ne, %1, %c0_i32_0 : i32
    scf.if %2 {
      %cst_10 = arith.constant 0.000000e+00 : f32
      %12 = vector.broadcast %cst_10 : f32 to vector<512x128xf32>
      %c0_11 = arith.constant 0 : index
      %c0_12 = arith.constant 0 : index
      %13 = vector.load %arg8[%c0_11, %c0_12] : memref<512x128xf32, #tpu.memory_space<vmem>>, vector<512x128xf32>
      tpu.vector_store %arg8[%c0_11, %c0_12], %12 {strides = array<i32>} : memref<512x128xf32, #tpu.memory_space<vmem>>, vector<512x128xf32>,
    } else {
    }
    %c0 = arith.constant 0 : index
    %c0_1 = arith.constant 0 : index
    %3 = vector.load %arg8[%c0, %c0_1] : memref<512x128xf32, #tpu.memory_space<vmem>>, vector<512x128xf32>
    %c0_2 = arith.constant 0 : index
    %c0_3 = arith.constant 0 : index
    %4 = vector.load %arg3[%c0_2, %c0_3] : memref<512x128xbf16, #tpu.memory_space<vmem>>, vector<512x128xbf16>
    %c0_4 = arith.constant 0 : index
    %c0_5 = arith.constant 0 : index
    %5 = vector.load %arg4[%c0_4, %c0_5] : memref<128x128xbf16, #tpu.memory_space<vmem>>, vector<128x128xbf16>
    %cst = arith.constant dense<0.000000e+00> : vector<512x128xf32>
    %6 = tpu.matmul %4, %5, %cst {dimension_numbers = #tpu.dot_dimension_numbers<[1], [0], [0], [1], [0, 0, 1, 1], [], []>} : vector<512x128xbf16>, vector<128x128xbf16>, vector<512x128xf32> -> vector<512x128xf32>
    %7 = arith.addf %3, %6 : vector<512x128xf32>
    %c0_6 = arith.constant 0 : index
    %c0_7 = arith.constant 0 : index
    %8 = vector.load %arg8[%c0_6, %c0_7] : memref<512x128xf32, #tpu.memory_space<vmem>>, vector<512x128xf32>
    tpu.vector_store %arg8[%c0_6, %c0_7], %7 {strides = array<i32>} : memref<512x128xf32, #tpu.memory_space<vmem>>, vector<512x128xf32>,
    %c0_i32_8 = arith.constant 0 : i32
    %9 = arith.cmpi eq, %arg2, %c0_i32_8 : i32
    %10 = arith.extui %9 : i1 to i32
    %c0_i32_9 = arith.constant 0 : i32
    %11 = arith.cmpi ne, %10, %c0_i32_9 : i32
    scf.if %11 {
      %c0_10 = arith.constant 0 : index
      %c0_11 = arith.constant 0 : index
      %12 = vector.load %arg8[%c0_10, %c0_11] : memref<512x128xf32, #tpu.memory_space<vmem>>, vector<512x128xf32>
      %c0_12 = arith.constant 0 : index
      %c0_13 = arith.constant 0 : index
      %13 = vector.load %arg5[%c0_12, %c0_13] : memref<1x128xf32, #tpu.memory_space<vmem>>, vector<1x128xf32>
      %14 = vector.broadcast %13 : vector<1x128xf32> to vector<512x128xf32>
      %15 = arith.mulf %12, %14 : vector<512x128xf32>
      %c0_14 = arith.constant 0 : index
      %c0_15 = arith.constant 0 : index
      %16 = vector.load %arg6[%c0_14, %c0_15] : memref<1x128xf32, #tpu.memory_space<vmem>>, vector<1x128xf32>
      %17 = vector.broadcast %16 : vector<1x128xf32> to vector<512x128xf32>
      %18 = arith.addf %15, %17 : vector<512x128xf32>
      %cst_16 = arith.constant 0.000000e+00 : f32
      %19 = vector.broadcast %cst_16 : f32 to vector<512x128xf32>
      %20 = arith.cmpf ogt, %18, %19 : vector<512x128xf32>
      %cst_17 = arith.constant 2.000000e-01 : f32
      %21 = vector.broadcast %cst_17 : f32 to vector<512x128xf32>
      %22 = arith.mulf %21, %18 : vector<512x128xf32>
      %23 = arith.select %20, %18, %22 : vector<512x128xi1>, vector<512x128xf32>
      %24 = arith.truncf %23 : vector<512x128xf32> to vector<512x128xbf16>
      %c0_18 = arith.constant 0 : index
      %c0_19 = arith.constant 0 : index
      %25 = vector.load %arg7[%c0_18, %c0_19] : memref<512x128xbf16, #tpu.memory_space<vmem>>, vector<512x128xbf16>
      tpu.vector_store %arg7[%c0_18, %c0_19], %24 {strides = array<i32>} : memref<512x128xbf16, #tpu.memory_space<vmem>>, vector<512x128xbf16>,
    } else {
    }
    return
  }
  func.func @transform_0(%arg0: i32, %arg1: i32, %arg2: i32) -> (i32, i32) {
    %c0_i32 = arith.constant 0 : i32
    return %arg0, %arg2 : i32, i32
  }
  func.func @transform_1(%arg0: i32, %arg1: i32, %arg2: i32) -> (i32, i32) {
    %c0_i32 = arith.constant 0 : i32
    return %arg2, %arg1 : i32, i32
  }
  func.func @transform_2(%arg0: i32, %arg1: i32, %arg2: i32) -> (i32, i32) {
    %c0_i32 = arith.constant 0 : i32
    %c0_i32_0 = arith.constant 0 : i32
    return %c0_i32, %arg1 : i32, i32
  }
  func.func @transform_3(%arg0: i32, %arg1: i32, %arg2: i32) -> (i32, i32) {
    %c0_i32 = arith.constant 0 : i32
    %c0_i32_0 = arith.constant 0 : i32
    return %c0_i32, %arg1 : i32, i32
  }
  func.func @transform_4(%arg0: i32, %arg1: i32, %arg2: i32) -> (i32, i32) {
    %c0_i32 = arith.constant 0 : i32
    return %arg0, %arg1 : i32, i32
  }
}

module attributes {stable_mosaic.version = 11 : i64} {
  func.func @_fused_matmul_kernel(%arg0: i32, %arg1: i32, %arg2: i32, %arg3: memref<128x128xbf16, #tpu.memory_space<vmem>>, %arg4: memref<128x128xbf16, #tpu.memory_space<vmem>>, %arg5: memref<1x128xf32, #tpu.memory_space<vmem>>, %arg6: memref<1x128xf32, #tpu.memory_space<vmem>>, %arg7: memref<128x128xbf16, #tpu.memory_space<vmem>>, %arg8: memref<128x128xf32, #tpu.memory_space<vmem>>) attributes {dimension_semantics = [#tpu.dimension_semantics<parallel>, #tpu.dimension_semantics<parallel>, #tpu.dimension_semantics<arbitrary>], iteration_bounds = array<i64: 1, 1, 1>, scalar_prefetch = 0 : i64, scratch_operands = 1 : i64, tpu.core_type = #tpu.core_type<tc>, window_params = [{transform_indices = @transform_0, window_bounds = array<i64: 128, 128>}, {transform_indices = @transform_1, window_bounds = array<i64: 128, 128>}, {transform_indices = @transform_2, window_bounds = array<i64: 1, 128>}, {transform_indices = @transform_3, window_bounds = array<i64: 1, 128>}, {transform_indices = @transform_4, window_bounds = array<i64: 128, 128>}]} {
    %c0_i32 = arith.constant 0 : i32
    %0 = arith.cmpi eq, %arg2, %c0_i32 : i32
    %1 = arith.extui %0 : i1 to i32
    %c0_i32_0 = arith.constant 0 : i32
    %2 = arith.cmpi ne, %1, %c0_i32_0 : i32
    scf.if %2 {
      %cst_10 = arith.constant 0.000000e+00 : f32
      %12 = vector.broadcast %cst_10 : f32 to vector<128x128xf32>
      %c0_11 = arith.constant 0 : index
      %c0_12 = arith.constant 0 : index
      %13 = vector.load %arg8[%c0_11, %c0_12] : memref<128x128xf32, #tpu.memory_space<vmem>>, vector<128x128xf32>
      tpu.vector_store %arg8[%c0_11, %c0_12], %12 {strides = array<i32>} : memref<128x128xf32, #tpu.memory_space<vmem>>, vector<128x128xf32>,
    } else {
    }
    %c0 = arith.constant 0 : index
    %c0_1 = arith.constant 0 : index
    %3 = vector.load %arg8[%c0, %c0_1] : memref<128x128xf32, #tpu.memory_space<vmem>>, vector<128x128xf32>
    %c0_2 = arith.constant 0 : index
    %c0_3 = arith.constant 0 : index
    %4 = vector.load %arg3[%c0_2, %c0_3] : memref<128x128xbf16, #tpu.memory_space<vmem>>, vector<128x128xbf16>
    %c0_4 = arith.constant 0 : index
    %c0_5 = arith.constant 0 : index
    %5 = vector.load %arg4[%c0_4, %c0_5] : memref<128x128xbf16, #tpu.memory_space<vmem>>, vector<128x128xbf16>
    %cst = arith.constant dense<0.000000e+00> : vector<128x128xf32>
    %6 = tpu.matmul %4, %5, %cst {dimension_numbers = #tpu.dot_dimension_numbers<[1], [0], [0], [1], [0, 0, 1, 1], [], []>} : vector<128x128xbf16>, vector<128x128xbf16>, vector<128x128xf32> -> vector<128x128xf32>
    %7 = arith.addf %3, %6 : vector<128x128xf32>
    %c0_6 = arith.constant 0 : index
    %c0_7 = arith.constant 0 : index
    %8 = vector.load %arg8[%c0_6, %c0_7] : memref<128x128xf32, #tpu.memory_space<vmem>>, vector<128x128xf32>
    tpu.vector_store %arg8[%c0_6, %c0_7], %7 {strides = array<i32>} : memref<128x128xf32, #tpu.memory_space<vmem>>, vector<128x128xf32>,
    %c0_i32_8 = arith.constant 0 : i32
    %9 = arith.cmpi eq, %arg2, %c0_i32_8 : i32
    %10 = arith.extui %9 : i1 to i32
    %c0_i32_9 = arith.constant 0 : i32
    %11 = arith.cmpi ne, %10, %c0_i32_9 : i32
    scf.if %11 {
      %c0_10 = arith.constant 0 : index
      %c0_11 = arith.constant 0 : index
      %12 = vector.load %arg8[%c0_10, %c0_11] : memref<128x128xf32, #tpu.memory_space<vmem>>, vector<128x128xf32>
      %c0_12 = arith.constant 0 : index
      %c0_13 = arith.constant 0 : index
      %13 = vector.load %arg5[%c0_12, %c0_13] : memref<1x128xf32, #tpu.memory_space<vmem>>, vector<1x128xf32>
      %14 = vector.broadcast %13 : vector<1x128xf32> to vector<128x128xf32>
      %15 = arith.mulf %12, %14 : vector<128x128xf32>
      %c0_14 = arith.constant 0 : index
      %c0_15 = arith.constant 0 : index
      %16 = vector.load %arg6[%c0_14, %c0_15] : memref<1x128xf32, #tpu.memory_space<vmem>>, vector<1x128xf32>
      %17 = vector.broadcast %16 : vector<1x128xf32> to vector<128x128xf32>
      %18 = arith.addf %15, %17 : vector<128x128xf32>
      %cst_16 = arith.constant 0.000000e+00 : f32
      %19 = vector.broadcast %cst_16 : f32 to vector<128x128xf32>
      %20 = arith.cmpf ogt, %18, %19 : vector<128x128xf32>
      %cst_17 = arith.constant 2.000000e-01 : f32
      %21 = vector.broadcast %cst_17 : f32 to vector<128x128xf32>
      %22 = arith.mulf %21, %18 : vector<128x128xf32>
      %23 = arith.select %20, %18, %22 : vector<128x128xi1>, vector<128x128xf32>
      %24 = arith.truncf %23 : vector<128x128xf32> to vector<128x128xbf16>
      %c0_18 = arith.constant 0 : index
      %c0_19 = arith.constant 0 : index
      %25 = vector.load %arg7[%c0_18, %c0_19] : memref<128x128xbf16, #tpu.memory_space<vmem>>, vector<128x128xbf16>
      tpu.vector_store %arg7[%c0_18, %c0_19], %24 {strides = array<i32>} : memref<128x128xbf16, #tpu.memory_space<vmem>>, vector<128x128xbf16>,
    } else {
    }
    return
  }
  func.func @transform_0(%arg0: i32, %arg1: i32, %arg2: i32) -> (i32, i32) {
    %c0_i32 = arith.constant 0 : i32
    return %arg0, %arg2 : i32, i32
  }
  func.func @transform_1(%arg0: i32, %arg1: i32, %arg2: i32) -> (i32, i32) {
    %c0_i32 = arith.constant 0 : i32
    return %arg2, %arg1 : i32, i32
  }
  func.func @transform_2(%arg0: i32, %arg1: i32, %arg2: i32) -> (i32, i32) {
    %c0_i32 = arith.constant 0 : i32
    %c0_i32_0 = arith.constant 0 : i32
    return %c0_i32, %arg1 : i32, i32
  }
  func.func @transform_3(%arg0: i32, %arg1: i32, %arg2: i32) -> (i32, i32) {
    %c0_i32 = arith.constant 0 : i32
    %c0_i32_0 = arith.constant 0 : i32
    return %c0_i32, %arg1 : i32, i32
  }
  func.func @transform_4(%arg0: i32, %arg1: i32, %arg2: i32) -> (i32, i32) {
    %c0_i32 = arith.constant 0 : i32
    return %arg0, %arg1 : i32, i32
  }
}

module attributes {stable_mosaic.version = 11 : i64} {
  func.func @_fused_matmul_kernel(%arg0: i32, %arg1: i32, %arg2: i32, %arg3: memref<128x256xbf16, #tpu.memory_space<vmem>>, %arg4: memref<256x128xbf16, #tpu.memory_space<vmem>>, %arg5: memref<1x128xf32, #tpu.memory_space<vmem>>, %arg6: memref<1x128xf32, #tpu.memory_space<vmem>>, %arg7: memref<128x128xbf16, #tpu.memory_space<vmem>>, %arg8: memref<128x128xf32, #tpu.memory_space<vmem>>) attributes {dimension_semantics = [#tpu.dimension_semantics<parallel>, #tpu.dimension_semantics<parallel>, #tpu.dimension_semantics<arbitrary>], iteration_bounds = array<i64: 1, 1, 1>, scalar_prefetch = 0 : i64, scratch_operands = 1 : i64, tpu.core_type = #tpu.core_type<tc>, window_params = [{transform_indices = @transform_0, window_bounds = array<i64: 128, 256>}, {transform_indices = @transform_1, window_bounds = array<i64: 256, 128>}, {transform_indices = @transform_2, window_bounds = array<i64: 1, 128>}, {transform_indices = @transform_3, window_bounds = array<i64: 1, 128>}, {transform_indices = @transform_4, window_bounds = array<i64: 128, 128>}]} {
    %c0_i32 = arith.constant 0 : i32
    %0 = arith.cmpi eq, %arg2, %c0_i32 : i32
    %1 = arith.extui %0 : i1 to i32
    %c0_i32_0 = arith.constant 0 : i32
    %2 = arith.cmpi ne, %1, %c0_i32_0 : i32
    scf.if %2 {
      %cst_10 = arith.constant 0.000000e+00 : f32
      %12 = vector.broadcast %cst_10 : f32 to vector<128x128xf32>
      %c0_11 = arith.constant 0 : index
      %c0_12 = arith.constant 0 : index
      %13 = vector.load %arg8[%c0_11, %c0_12] : memref<128x128xf32, #tpu.memory_space<vmem>>, vector<128x128xf32>
      tpu.vector_store %arg8[%c0_11, %c0_12], %12 {strides = array<i32>} : memref<128x128xf32, #tpu.memory_space<vmem>>, vector<128x128xf32>,
    } else {
    }
    %c0 = arith.constant 0 : index
    %c0_1 = arith.constant 0 : index
    %3 = vector.load %arg8[%c0, %c0_1] : memref<128x128xf32, #tpu.memory_space<vmem>>, vector<128x128xf32>
    %c0_2 = arith.constant 0 : index
    %c0_3 = arith.constant 0 : index
    %4 = vector.load %arg3[%c0_2, %c0_3] : memref<128x256xbf16, #tpu.memory_space<vmem>>, vector<128x256xbf16>
    %c0_4 = arith.constant 0 : index
    %c0_5 = arith.constant 0 : index
    %5 = vector.load %arg4[%c0_4, %c0_5] : memref<256x128xbf16, #tpu.memory_space<vmem>>, vector<256x128xbf16>
    %cst = arith.constant dense<0.000000e+00> : vector<128x128xf32>
    %6 = tpu.matmul %4, %5, %cst {dimension_numbers = #tpu.dot_dimension_numbers<[1], [0], [0], [1], [0, 0, 1, 1], [], []>} : vector<128x256xbf16>, vector<256x128xbf16>, vector<128x128xf32> -> vector<128x128xf32>
    %7 = arith.addf %3, %6 : vector<128x128xf32>
    %c0_6 = arith.constant 0 : index
    %c0_7 = arith.constant 0 : index
    %8 = vector.load %arg8[%c0_6, %c0_7] : memref<128x128xf32, #tpu.memory_space<vmem>>, vector<128x128xf32>
    tpu.vector_store %arg8[%c0_6, %c0_7], %7 {strides = array<i32>} : memref<128x128xf32, #tpu.memory_space<vmem>>, vector<128x128xf32>,
    %c0_i32_8 = arith.constant 0 : i32
    %9 = arith.cmpi eq, %arg2, %c0_i32_8 : i32
    %10 = arith.extui %9 : i1 to i32
    %c0_i32_9 = arith.constant 0 : i32
    %11 = arith.cmpi ne, %10, %c0_i32_9 : i32
    scf.if %11 {
      %c0_10 = arith.constant 0 : index
      %c0_11 = arith.constant 0 : index
      %12 = vector.load %arg8[%c0_10, %c0_11] : memref<128x128xf32, #tpu.memory_space<vmem>>, vector<128x128xf32>
      %c0_12 = arith.constant 0 : index
      %c0_13 = arith.constant 0 : index
      %13 = vector.load %arg5[%c0_12, %c0_13] : memref<1x128xf32, #tpu.memory_space<vmem>>, vector<1x128xf32>
      %14 = vector.broadcast %13 : vector<1x128xf32> to vector<128x128xf32>
      %15 = arith.mulf %12, %14 : vector<128x128xf32>
      %c0_14 = arith.constant 0 : index
      %c0_15 = arith.constant 0 : index
      %16 = vector.load %arg6[%c0_14, %c0_15] : memref<1x128xf32, #tpu.memory_space<vmem>>, vector<1x128xf32>
      %17 = vector.broadcast %16 : vector<1x128xf32> to vector<128x128xf32>
      %18 = arith.addf %15, %17 : vector<128x128xf32>
      %cst_16 = arith.constant 0.000000e+00 : f32
      %19 = vector.broadcast %cst_16 : f32 to vector<128x128xf32>
      %20 = arith.cmpf ogt, %18, %19 : vector<128x128xf32>
      %cst_17 = arith.constant 2.000000e-01 : f32
      %21 = vector.broadcast %cst_17 : f32 to vector<128x128xf32>
      %22 = arith.mulf %21, %18 : vector<128x128xf32>
      %23 = arith.select %20, %18, %22 : vector<128x128xi1>, vector<128x128xf32>
      %24 = arith.truncf %23 : vector<128x128xf32> to vector<128x128xbf16>
      %c0_18 = arith.constant 0 : index
      %c0_19 = arith.constant 0 : index
      %25 = vector.load %arg7[%c0_18, %c0_19] : memref<128x128xbf16, #tpu.memory_space<vmem>>, vector<128x128xbf16>
      tpu.vector_store %arg7[%c0_18, %c0_19], %24 {strides = array<i32>} : memref<128x128xbf16, #tpu.memory_space<vmem>>, vector<128x128xbf16>,
    } else {
    }
    return
  }
  func.func @transform_0(%arg0: i32, %arg1: i32, %arg2: i32) -> (i32, i32) {
    %c0_i32 = arith.constant 0 : i32
    return %arg0, %arg2 : i32, i32
  }
  func.func @transform_1(%arg0: i32, %arg1: i32, %arg2: i32) -> (i32, i32) {
    %c0_i32 = arith.constant 0 : i32
    return %arg2, %arg1 : i32, i32
  }
  func.func @transform_2(%arg0: i32, %arg1: i32, %arg2: i32) -> (i32, i32) {
    %c0_i32 = arith.constant 0 : i32
    %c0_i32_0 = arith.constant 0 : i32
    return %c0_i32, %arg1 : i32, i32
  }
  func.func @transform_3(%arg0: i32, %arg1: i32, %arg2: i32) -> (i32, i32) {
    %c0_i32 = arith.constant 0 : i32
    %c0_i32_0 = arith.constant 0 : i32
    return %c0_i32, %arg1 : i32, i32
  }
  func.func @transform_4(%arg0: i32, %arg1: i32, %arg2: i32) -> (i32, i32) {
    %c0_i32 = arith.constant 0 : i32
    return %arg0, %arg1 : i32, i32
  }
}

module attributes {stable_mosaic.version = 11 : i64} {
  func.func @_fused_matmul_kernel(%arg0: i32, %arg1: i32, %arg2: i32, %arg3: memref<32x256xbf16, #tpu.memory_space<vmem>>, %arg4: memref<256x128xbf16, #tpu.memory_space<vmem>>, %arg5: memref<1x128xf32, #tpu.memory_space<vmem>>, %arg6: memref<1x128xf32, #tpu.memory_space<vmem>>, %arg7: memref<32x128xbf16, #tpu.memory_space<vmem>>, %arg8: memref<32x128xf32, #tpu.memory_space<vmem>>) attributes {dimension_semantics = [#tpu.dimension_semantics<parallel>, #tpu.dimension_semantics<parallel>, #tpu.dimension_semantics<arbitrary>], iteration_bounds = array<i64: 1, 1, 1>, scalar_prefetch = 0 : i64, scratch_operands = 1 : i64, tpu.core_type = #tpu.core_type<tc>, window_params = [{transform_indices = @transform_0, window_bounds = array<i64: 32, 256>}, {transform_indices = @transform_1, window_bounds = array<i64: 256, 128>}, {transform_indices = @transform_2, window_bounds = array<i64: 1, 128>}, {transform_indices = @transform_3, window_bounds = array<i64: 1, 128>}, {transform_indices = @transform_4, window_bounds = array<i64: 32, 128>}]} {
    %c0_i32 = arith.constant 0 : i32
    %0 = arith.cmpi eq, %arg2, %c0_i32 : i32
    %1 = arith.extui %0 : i1 to i32
    %c0_i32_0 = arith.constant 0 : i32
    %2 = arith.cmpi ne, %1, %c0_i32_0 : i32
    scf.if %2 {
      %cst_10 = arith.constant 0.000000e+00 : f32
      %12 = vector.broadcast %cst_10 : f32 to vector<32x128xf32>
      %c0_11 = arith.constant 0 : index
      %c0_12 = arith.constant 0 : index
      %13 = vector.load %arg8[%c0_11, %c0_12] : memref<32x128xf32, #tpu.memory_space<vmem>>, vector<32x128xf32>
      tpu.vector_store %arg8[%c0_11, %c0_12], %12 {strides = array<i32>} : memref<32x128xf32, #tpu.memory_space<vmem>>, vector<32x128xf32>,
    } else {
    }
    %c0 = arith.constant 0 : index
    %c0_1 = arith.constant 0 : index
    %3 = vector.load %arg8[%c0, %c0_1] : memref<32x128xf32, #tpu.memory_space<vmem>>, vector<32x128xf32>
    %c0_2 = arith.constant 0 : index
    %c0_3 = arith.constant 0 : index
    %4 = vector.load %arg3[%c0_2, %c0_3] : memref<32x256xbf16, #tpu.memory_space<vmem>>, vector<32x256xbf16>
    %c0_4 = arith.constant 0 : index
    %c0_5 = arith.constant 0 : index
    %5 = vector.load %arg4[%c0_4, %c0_5] : memref<256x128xbf16, #tpu.memory_space<vmem>>, vector<256x128xbf16>
    %cst = arith.constant dense<0.000000e+00> : vector<32x128xf32>
    %6 = tpu.matmul %4, %5, %cst {dimension_numbers = #tpu.dot_dimension_numbers<[1], [0], [0], [1], [0, 0, 1, 1], [], []>} : vector<32x256xbf16>, vector<256x128xbf16>, vector<32x128xf32> -> vector<32x128xf32>
    %7 = arith.addf %3, %6 : vector<32x128xf32>
    %c0_6 = arith.constant 0 : index
    %c0_7 = arith.constant 0 : index
    %8 = vector.load %arg8[%c0_6, %c0_7] : memref<32x128xf32, #tpu.memory_space<vmem>>, vector<32x128xf32>
    tpu.vector_store %arg8[%c0_6, %c0_7], %7 {strides = array<i32>} : memref<32x128xf32, #tpu.memory_space<vmem>>, vector<32x128xf32>,
    %c0_i32_8 = arith.constant 0 : i32
    %9 = arith.cmpi eq, %arg2, %c0_i32_8 : i32
    %10 = arith.extui %9 : i1 to i32
    %c0_i32_9 = arith.constant 0 : i32
    %11 = arith.cmpi ne, %10, %c0_i32_9 : i32
    scf.if %11 {
      %c0_10 = arith.constant 0 : index
      %c0_11 = arith.constant 0 : index
      %12 = vector.load %arg8[%c0_10, %c0_11] : memref<32x128xf32, #tpu.memory_space<vmem>>, vector<32x128xf32>
      %c0_12 = arith.constant 0 : index
      %c0_13 = arith.constant 0 : index
      %13 = vector.load %arg5[%c0_12, %c0_13] : memref<1x128xf32, #tpu.memory_space<vmem>>, vector<1x128xf32>
      %14 = vector.broadcast %13 : vector<1x128xf32> to vector<32x128xf32>
      %15 = arith.mulf %12, %14 : vector<32x128xf32>
      %c0_14 = arith.constant 0 : index
      %c0_15 = arith.constant 0 : index
      %16 = vector.load %arg6[%c0_14, %c0_15] : memref<1x128xf32, #tpu.memory_space<vmem>>, vector<1x128xf32>
      %17 = vector.broadcast %16 : vector<1x128xf32> to vector<32x128xf32>
      %18 = arith.addf %15, %17 : vector<32x128xf32>
      %cst_16 = arith.constant 0.000000e+00 : f32
      %19 = vector.broadcast %cst_16 : f32 to vector<32x128xf32>
      %20 = arith.cmpf ogt, %18, %19 : vector<32x128xf32>
      %cst_17 = arith.constant 2.000000e-01 : f32
      %21 = vector.broadcast %cst_17 : f32 to vector<32x128xf32>
      %22 = arith.mulf %21, %18 : vector<32x128xf32>
      %23 = arith.select %20, %18, %22 : vector<32x128xi1>, vector<32x128xf32>
      %24 = arith.truncf %23 : vector<32x128xf32> to vector<32x128xbf16>
      %c0_18 = arith.constant 0 : index
      %c0_19 = arith.constant 0 : index
      %25 = vector.load %arg7[%c0_18, %c0_19] : memref<32x128xbf16, #tpu.memory_space<vmem>>, vector<32x128xbf16>
      tpu.vector_store %arg7[%c0_18, %c0_19], %24 {strides = array<i32>} : memref<32x128xbf16, #tpu.memory_space<vmem>>, vector<32x128xbf16>,
    } else {
    }
    return
  }
  func.func @transform_0(%arg0: i32, %arg1: i32, %arg2: i32) -> (i32, i32) {
    %c0_i32 = arith.constant 0 : i32
    return %arg0, %arg2 : i32, i32
  }
  func.func @transform_1(%arg0: i32, %arg1: i32, %arg2: i32) -> (i32, i32) {
    %c0_i32 = arith.constant 0 : i32
    return %arg2, %arg1 : i32, i32
  }
  func.func @transform_2(%arg0: i32, %arg1: i32, %arg2: i32) -> (i32, i32) {
    %c0_i32 = arith.constant 0 : i32
    %c0_i32_0 = arith.constant 0 : i32
    return %c0_i32, %arg1 : i32, i32
  }
  func.func @transform_3(%arg0: i32, %arg1: i32, %arg2: i32) -> (i32, i32) {
    %c0_i32 = arith.constant 0 : i32
    %c0_i32_0 = arith.constant 0 : i32
    return %c0_i32, %arg1 : i32, i32
  }
  func.func @transform_4(%arg0: i32, %arg1: i32, %arg2: i32) -> (i32, i32) {
    %c0_i32 = arith.constant 0 : i32
    return %arg0, %arg1 : i32, i32
  }
}

module attributes {stable_mosaic.version = 11 : i64} {
  func.func @_fused_matmul_kernel(%arg0: i32, %arg1: i32, %arg2: i32, %arg3: memref<32x384xbf16, #tpu.memory_space<vmem>>, %arg4: memref<384x128xbf16, #tpu.memory_space<vmem>>, %arg5: memref<1x128xf32, #tpu.memory_space<vmem>>, %arg6: memref<1x128xf32, #tpu.memory_space<vmem>>, %arg7: memref<32x128xbf16, #tpu.memory_space<vmem>>, %arg8: memref<32x128xf32, #tpu.memory_space<vmem>>) attributes {dimension_semantics = [#tpu.dimension_semantics<parallel>, #tpu.dimension_semantics<parallel>, #tpu.dimension_semantics<arbitrary>], iteration_bounds = array<i64: 1, 1, 1>, scalar_prefetch = 0 : i64, scratch_operands = 1 : i64, tpu.core_type = #tpu.core_type<tc>, window_params = [{transform_indices = @transform_0, window_bounds = array<i64: 32, 384>}, {transform_indices = @transform_1, window_bounds = array<i64: 384, 128>}, {transform_indices = @transform_2, window_bounds = array<i64: 1, 128>}, {transform_indices = @transform_3, window_bounds = array<i64: 1, 128>}, {transform_indices = @transform_4, window_bounds = array<i64: 32, 128>}]} {
    %c0_i32 = arith.constant 0 : i32
    %0 = arith.cmpi eq, %arg2, %c0_i32 : i32
    %1 = arith.extui %0 : i1 to i32
    %c0_i32_0 = arith.constant 0 : i32
    %2 = arith.cmpi ne, %1, %c0_i32_0 : i32
    scf.if %2 {
      %cst_10 = arith.constant 0.000000e+00 : f32
      %12 = vector.broadcast %cst_10 : f32 to vector<32x128xf32>
      %c0_11 = arith.constant 0 : index
      %c0_12 = arith.constant 0 : index
      %13 = vector.load %arg8[%c0_11, %c0_12] : memref<32x128xf32, #tpu.memory_space<vmem>>, vector<32x128xf32>
      tpu.vector_store %arg8[%c0_11, %c0_12], %12 {strides = array<i32>} : memref<32x128xf32, #tpu.memory_space<vmem>>, vector<32x128xf32>,
    } else {
    }
    %c0 = arith.constant 0 : index
    %c0_1 = arith.constant 0 : index
    %3 = vector.load %arg8[%c0, %c0_1] : memref<32x128xf32, #tpu.memory_space<vmem>>, vector<32x128xf32>
    %c0_2 = arith.constant 0 : index
    %c0_3 = arith.constant 0 : index
    %4 = vector.load %arg3[%c0_2, %c0_3] : memref<32x384xbf16, #tpu.memory_space<vmem>>, vector<32x384xbf16>
    %c0_4 = arith.constant 0 : index
    %c0_5 = arith.constant 0 : index
    %5 = vector.load %arg4[%c0_4, %c0_5] : memref<384x128xbf16, #tpu.memory_space<vmem>>, vector<384x128xbf16>
    %cst = arith.constant dense<0.000000e+00> : vector<32x128xf32>
    %6 = tpu.matmul %4, %5, %cst {dimension_numbers = #tpu.dot_dimension_numbers<[1], [0], [0], [1], [0, 0, 1, 1], [], []>} : vector<32x384xbf16>, vector<384x128xbf16>, vector<32x128xf32> -> vector<32x128xf32>
    %7 = arith.addf %3, %6 : vector<32x128xf32>
    %c0_6 = arith.constant 0 : index
    %c0_7 = arith.constant 0 : index
    %8 = vector.load %arg8[%c0_6, %c0_7] : memref<32x128xf32, #tpu.memory_space<vmem>>, vector<32x128xf32>
    tpu.vector_store %arg8[%c0_6, %c0_7], %7 {strides = array<i32>} : memref<32x128xf32, #tpu.memory_space<vmem>>, vector<32x128xf32>,
    %c0_i32_8 = arith.constant 0 : i32
    %9 = arith.cmpi eq, %arg2, %c0_i32_8 : i32
    %10 = arith.extui %9 : i1 to i32
    %c0_i32_9 = arith.constant 0 : i32
    %11 = arith.cmpi ne, %10, %c0_i32_9 : i32
    scf.if %11 {
      %c0_10 = arith.constant 0 : index
      %c0_11 = arith.constant 0 : index
      %12 = vector.load %arg8[%c0_10, %c0_11] : memref<32x128xf32, #tpu.memory_space<vmem>>, vector<32x128xf32>
      %c0_12 = arith.constant 0 : index
      %c0_13 = arith.constant 0 : index
      %13 = vector.load %arg5[%c0_12, %c0_13] : memref<1x128xf32, #tpu.memory_space<vmem>>, vector<1x128xf32>
      %14 = vector.broadcast %13 : vector<1x128xf32> to vector<32x128xf32>
      %15 = arith.mulf %12, %14 : vector<32x128xf32>
      %c0_14 = arith.constant 0 : index
      %c0_15 = arith.constant 0 : index
      %16 = vector.load %arg6[%c0_14, %c0_15] : memref<1x128xf32, #tpu.memory_space<vmem>>, vector<1x128xf32>
      %17 = vector.broadcast %16 : vector<1x128xf32> to vector<32x128xf32>
      %18 = arith.addf %15, %17 : vector<32x128xf32>
      %cst_16 = arith.constant 0.000000e+00 : f32
      %19 = vector.broadcast %cst_16 : f32 to vector<32x128xf32>
      %20 = arith.cmpf ogt, %18, %19 : vector<32x128xf32>
      %cst_17 = arith.constant 2.000000e-01 : f32
      %21 = vector.broadcast %cst_17 : f32 to vector<32x128xf32>
      %22 = arith.mulf %21, %18 : vector<32x128xf32>
      %23 = arith.select %20, %18, %22 : vector<32x128xi1>, vector<32x128xf32>
      %24 = arith.truncf %23 : vector<32x128xf32> to vector<32x128xbf16>
      %c0_18 = arith.constant 0 : index
      %c0_19 = arith.constant 0 : index
      %25 = vector.load %arg7[%c0_18, %c0_19] : memref<32x128xbf16, #tpu.memory_space<vmem>>, vector<32x128xbf16>
      tpu.vector_store %arg7[%c0_18, %c0_19], %24 {strides = array<i32>} : memref<32x128xbf16, #tpu.memory_space<vmem>>, vector<32x128xbf16>,
    } else {
    }
    return
  }
  func.func @transform_0(%arg0: i32, %arg1: i32, %arg2: i32) -> (i32, i32) {
    %c0_i32 = arith.constant 0 : i32
    return %arg0, %arg2 : i32, i32
  }
  func.func @transform_1(%arg0: i32, %arg1: i32, %arg2: i32) -> (i32, i32) {
    %c0_i32 = arith.constant 0 : i32
    return %arg2, %arg1 : i32, i32
  }
  func.func @transform_2(%arg0: i32, %arg1: i32, %arg2: i32) -> (i32, i32) {
    %c0_i32 = arith.constant 0 : i32
    %c0_i32_0 = arith.constant 0 : i32
    return %c0_i32, %arg1 : i32, i32
  }
  func.func @transform_3(%arg0: i32, %arg1: i32, %arg2: i32) -> (i32, i32) {
    %c0_i32 = arith.constant 0 : i32
    %c0_i32_0 = arith.constant 0 : i32
    return %c0_i32, %arg1 : i32, i32
  }
  func.func @transform_4(%arg0: i32, %arg1: i32, %arg2: i32) -> (i32, i32) {
    %c0_i32 = arith.constant 0 : i32
    return %arg0, %arg1 : i32, i32
  }
}

module attributes {stable_mosaic.version = 11 : i64} {
  func.func @_fused_matmul_kernel(%arg0: i32, %arg1: i32, %arg2: i32, %arg3: memref<16x512xbf16, #tpu.memory_space<vmem>>, %arg4: memref<512x128xbf16, #tpu.memory_space<vmem>>, %arg5: memref<1x128xf32, #tpu.memory_space<vmem>>, %arg6: memref<1x128xf32, #tpu.memory_space<vmem>>, %arg7: memref<16x128xbf16, #tpu.memory_space<vmem>>, %arg8: memref<16x128xf32, #tpu.memory_space<vmem>>) attributes {dimension_semantics = [#tpu.dimension_semantics<parallel>, #tpu.dimension_semantics<parallel>, #tpu.dimension_semantics<arbitrary>], iteration_bounds = array<i64: 1, 1, 1>, scalar_prefetch = 0 : i64, scratch_operands = 1 : i64, tpu.core_type = #tpu.core_type<tc>, window_params = [{transform_indices = @transform_0, window_bounds = array<i64: 16, 512>}, {transform_indices = @transform_1, window_bounds = array<i64: 512, 128>}, {transform_indices = @transform_2, window_bounds = array<i64: 1, 128>}, {transform_indices = @transform_3, window_bounds = array<i64: 1, 128>}, {transform_indices = @transform_4, window_bounds = array<i64: 16, 128>}]} {
    %c0_i32 = arith.constant 0 : i32
    %0 = arith.cmpi eq, %arg2, %c0_i32 : i32
    %1 = arith.extui %0 : i1 to i32
    %c0_i32_0 = arith.constant 0 : i32
    %2 = arith.cmpi ne, %1, %c0_i32_0 : i32
    scf.if %2 {
      %cst_10 = arith.constant 0.000000e+00 : f32
      %12 = vector.broadcast %cst_10 : f32 to vector<16x128xf32>
      %c0_11 = arith.constant 0 : index
      %c0_12 = arith.constant 0 : index
      %13 = vector.load %arg8[%c0_11, %c0_12] : memref<16x128xf32, #tpu.memory_space<vmem>>, vector<16x128xf32>
      tpu.vector_store %arg8[%c0_11, %c0_12], %12 {strides = array<i32>} : memref<16x128xf32, #tpu.memory_space<vmem>>, vector<16x128xf32>,
    } else {
    }
    %c0 = arith.constant 0 : index
    %c0_1 = arith.constant 0 : index
    %3 = vector.load %arg8[%c0, %c0_1] : memref<16x128xf32, #tpu.memory_space<vmem>>, vector<16x128xf32>
    %c0_2 = arith.constant 0 : index
    %c0_3 = arith.constant 0 : index
    %4 = vector.load %arg3[%c0_2, %c0_3] : memref<16x512xbf16, #tpu.memory_space<vmem>>, vector<16x512xbf16>
    %c0_4 = arith.constant 0 : index
    %c0_5 = arith.constant 0 : index
    %5 = vector.load %arg4[%c0_4, %c0_5] : memref<512x128xbf16, #tpu.memory_space<vmem>>, vector<512x128xbf16>
    %cst = arith.constant dense<0.000000e+00> : vector<16x128xf32>
    %6 = tpu.matmul %4, %5, %cst {dimension_numbers = #tpu.dot_dimension_numbers<[1], [0], [0], [1], [0, 0, 1, 1], [], []>} : vector<16x512xbf16>, vector<512x128xbf16>, vector<16x128xf32> -> vector<16x128xf32>
    %7 = arith.addf %3, %6 : vector<16x128xf32>
    %c0_6 = arith.constant 0 : index
    %c0_7 = arith.constant 0 : index
    %8 = vector.load %arg8[%c0_6, %c0_7] : memref<16x128xf32, #tpu.memory_space<vmem>>, vector<16x128xf32>
    tpu.vector_store %arg8[%c0_6, %c0_7], %7 {strides = array<i32>} : memref<16x128xf32, #tpu.memory_space<vmem>>, vector<16x128xf32>,
    %c0_i32_8 = arith.constant 0 : i32
    %9 = arith.cmpi eq, %arg2, %c0_i32_8 : i32
    %10 = arith.extui %9 : i1 to i32
    %c0_i32_9 = arith.constant 0 : i32
    %11 = arith.cmpi ne, %10, %c0_i32_9 : i32
    scf.if %11 {
      %c0_10 = arith.constant 0 : index
      %c0_11 = arith.constant 0 : index
      %12 = vector.load %arg8[%c0_10, %c0_11] : memref<16x128xf32, #tpu.memory_space<vmem>>, vector<16x128xf32>
      %c0_12 = arith.constant 0 : index
      %c0_13 = arith.constant 0 : index
      %13 = vector.load %arg5[%c0_12, %c0_13] : memref<1x128xf32, #tpu.memory_space<vmem>>, vector<1x128xf32>
      %14 = vector.broadcast %13 : vector<1x128xf32> to vector<16x128xf32>
      %15 = arith.mulf %12, %14 : vector<16x128xf32>
      %c0_14 = arith.constant 0 : index
      %c0_15 = arith.constant 0 : index
      %16 = vector.load %arg6[%c0_14, %c0_15] : memref<1x128xf32, #tpu.memory_space<vmem>>, vector<1x128xf32>
      %17 = vector.broadcast %16 : vector<1x128xf32> to vector<16x128xf32>
      %18 = arith.addf %15, %17 : vector<16x128xf32>
      %cst_16 = arith.constant 0.000000e+00 : f32
      %19 = vector.broadcast %cst_16 : f32 to vector<16x128xf32>
      %20 = arith.cmpf ogt, %18, %19 : vector<16x128xf32>
      %cst_17 = arith.constant 2.000000e-01 : f32
      %21 = vector.broadcast %cst_17 : f32 to vector<16x128xf32>
      %22 = arith.mulf %21, %18 : vector<16x128xf32>
      %23 = arith.select %20, %18, %22 : vector<16x128xi1>, vector<16x128xf32>
      %24 = arith.truncf %23 : vector<16x128xf32> to vector<16x128xbf16>
      %c0_18 = arith.constant 0 : index
      %c0_19 = arith.constant 0 : index
      %25 = vector.load %arg7[%c0_18, %c0_19] : memref<16x128xbf16, #tpu.memory_space<vmem>>, vector<16x128xbf16>
      tpu.vector_store %arg7[%c0_18, %c0_19], %24 {strides = array<i32>} : memref<16x128xbf16, #tpu.memory_space<vmem>>, vector<16x128xbf16>,
    } else {
    }
    return
  }
  func.func @transform_0(%arg0: i32, %arg1: i32, %arg2: i32) -> (i32, i32) {
    %c0_i32 = arith.constant 0 : i32
    return %arg0, %arg2 : i32, i32
  }
  func.func @transform_1(%arg0: i32, %arg1: i32, %arg2: i32) -> (i32, i32) {
    %c0_i32 = arith.constant 0 : i32
    return %arg2, %arg1 : i32, i32
  }
  func.func @transform_2(%arg0: i32, %arg1: i32, %arg2: i32) -> (i32, i32) {
    %c0_i32 = arith.constant 0 : i32
    %c0_i32_0 = arith.constant 0 : i32
    return %c0_i32, %arg1 : i32, i32
  }
  func.func @transform_3(%arg0: i32, %arg1: i32, %arg2: i32) -> (i32, i32) {
    %c0_i32 = arith.constant 0 : i32
    %c0_i32_0 = arith.constant 0 : i32
    return %c0_i32, %arg1 : i32, i32
  }
  func.func @transform_4(%arg0: i32, %arg1: i32, %arg2: i32) -> (i32, i32) {
    %c0_i32 = arith.constant 0 : i32
    return %arg0, %arg1 : i32, i32
  }
}

module attributes {stable_mosaic.version = 11 : i64} {
  func.func @_fused_matmul_kernel(%arg0: i32, %arg1: i32, %arg2: i32, %arg3: memref<16x128xbf16, #tpu.memory_space<vmem>>, %arg4: memref<128x128xbf16, #tpu.memory_space<vmem>>, %arg5: memref<1x128xf32, #tpu.memory_space<vmem>>, %arg6: memref<1x128xf32, #tpu.memory_space<vmem>>, %arg7: memref<16x128xbf16, #tpu.memory_space<vmem>>, %arg8: memref<16x128xf32, #tpu.memory_space<vmem>>) attributes {dimension_semantics = [#tpu.dimension_semantics<parallel>, #tpu.dimension_semantics<parallel>, #tpu.dimension_semantics<arbitrary>], iteration_bounds = array<i64: 1, 1, 5>, scalar_prefetch = 0 : i64, scratch_operands = 1 : i64, tpu.core_type = #tpu.core_type<tc>, window_params = [{transform_indices = @transform_0, window_bounds = array<i64: 16, 128>}, {transform_indices = @transform_1, window_bounds = array<i64: 128, 128>}, {transform_indices = @transform_2, window_bounds = array<i64: 1, 128>}, {transform_indices = @transform_3, window_bounds = array<i64: 1, 128>}, {transform_indices = @transform_4, window_bounds = array<i64: 16, 128>}]} {
    %c0_i32 = arith.constant 0 : i32
    %0 = arith.cmpi eq, %arg2, %c0_i32 : i32
    %1 = arith.extui %0 : i1 to i32
    %c0_i32_0 = arith.constant 0 : i32
    %2 = arith.cmpi ne, %1, %c0_i32_0 : i32
    scf.if %2 {
      %cst_9 = arith.constant 0.000000e+00 : f32
      %12 = vector.broadcast %cst_9 : f32 to vector<16x128xf32>
      %c0_10 = arith.constant 0 : index
      %c0_11 = arith.constant 0 : index
      %13 = vector.load %arg8[%c0_10, %c0_11] : memref<16x128xf32, #tpu.memory_space<vmem>>, vector<16x128xf32>
      tpu.vector_store %arg8[%c0_10, %c0_11], %12 {strides = array<i32>} : memref<16x128xf32, #tpu.memory_space<vmem>>, vector<16x128xf32>,
    } else {
    }
    %c0 = arith.constant 0 : index
    %c0_1 = arith.constant 0 : index
    %3 = vector.load %arg8[%c0, %c0_1] : memref<16x128xf32, #tpu.memory_space<vmem>>, vector<16x128xf32>
    %c0_2 = arith.constant 0 : index
    %c0_3 = arith.constant 0 : index
    %4 = vector.load %arg3[%c0_2, %c0_3] : memref<16x128xbf16, #tpu.memory_space<vmem>>, vector<16x128xbf16>
    %c0_4 = arith.constant 0 : index
    %c0_5 = arith.constant 0 : index
    %5 = vector.load %arg4[%c0_4, %c0_5] : memref<128x128xbf16, #tpu.memory_space<vmem>>, vector<128x128xbf16>
    %cst = arith.constant dense<0.000000e+00> : vector<16x128xf32>
    %6 = tpu.matmul %4, %5, %cst {dimension_numbers = #tpu.dot_dimension_numbers<[1], [0], [0], [1], [0, 0, 1, 1], [], []>} : vector<16x128xbf16>, vector<128x128xbf16>, vector<16x128xf32> -> vector<16x128xf32>
    %7 = arith.addf %3, %6 : vector<16x128xf32>
    %c0_6 = arith.constant 0 : index
    %c0_7 = arith.constant 0 : index
    %8 = vector.load %arg8[%c0_6, %c0_7] : memref<16x128xf32, #tpu.memory_space<vmem>>, vector<16x128xf32>
    tpu.vector_store %arg8[%c0_6, %c0_7], %7 {strides = array<i32>} : memref<16x128xf32, #tpu.memory_space<vmem>>, vector<16x128xf32>,
    %c4_i32 = arith.constant 4 : i32
    %9 = arith.cmpi eq, %arg2, %c4_i32 : i32
    %10 = arith.extui %9 : i1 to i32
    %c0_i32_8 = arith.constant 0 : i32
    %11 = arith.cmpi ne, %10, %c0_i32_8 : i32
    scf.if %11 {
      %c0_9 = arith.constant 0 : index
      %c0_10 = arith.constant 0 : index
      %12 = vector.load %arg8[%c0_9, %c0_10] : memref<16x128xf32, #tpu.memory_space<vmem>>, vector<16x128xf32>
      %c0_11 = arith.constant 0 : index
      %c0_12 = arith.constant 0 : index
      %13 = vector.load %arg5[%c0_11, %c0_12] : memref<1x128xf32, #tpu.memory_space<vmem>>, vector<1x128xf32>
      %14 = vector.broadcast %13 : vector<1x128xf32> to vector<16x128xf32>
      %15 = arith.mulf %12, %14 : vector<16x128xf32>
      %c0_13 = arith.constant 0 : index
      %c0_14 = arith.constant 0 : index
      %16 = vector.load %arg6[%c0_13, %c0_14] : memref<1x128xf32, #tpu.memory_space<vmem>>, vector<1x128xf32>
      %17 = vector.broadcast %16 : vector<1x128xf32> to vector<16x128xf32>
      %18 = arith.addf %15, %17 : vector<16x128xf32>
      %cst_15 = arith.constant 0.000000e+00 : f32
      %19 = vector.broadcast %cst_15 : f32 to vector<16x128xf32>
      %20 = arith.cmpf ogt, %18, %19 : vector<16x128xf32>
      %cst_16 = arith.constant 2.000000e-01 : f32
      %21 = vector.broadcast %cst_16 : f32 to vector<16x128xf32>
      %22 = arith.mulf %21, %18 : vector<16x128xf32>
      %23 = arith.select %20, %18, %22 : vector<16x128xi1>, vector<16x128xf32>
      %24 = arith.truncf %23 : vector<16x128xf32> to vector<16x128xbf16>
      %c0_17 = arith.constant 0 : index
      %c0_18 = arith.constant 0 : index
      %25 = vector.load %arg7[%c0_17, %c0_18] : memref<16x128xbf16, #tpu.memory_space<vmem>>, vector<16x128xbf16>
      tpu.vector_store %arg7[%c0_17, %c0_18], %24 {strides = array<i32>} : memref<16x128xbf16, #tpu.memory_space<vmem>>, vector<16x128xbf16>,
    } else {
    }
    return
  }
  func.func @transform_0(%arg0: i32, %arg1: i32, %arg2: i32) -> (i32, i32) {
    %c0_i32 = arith.constant 0 : i32
    return %arg0, %arg2 : i32, i32
  }
  func.func @transform_1(%arg0: i32, %arg1: i32, %arg2: i32) -> (i32, i32) {
    %c0_i32 = arith.constant 0 : i32
    return %arg2, %arg1 : i32, i32
  }
  func.func @transform_2(%arg0: i32, %arg1: i32, %arg2: i32) -> (i32, i32) {
    %c0_i32 = arith.constant 0 : i32
    %c0_i32_0 = arith.constant 0 : i32
    return %c0_i32, %arg1 : i32, i32
  }
  func.func @transform_3(%arg0: i32, %arg1: i32, %arg2: i32) -> (i32, i32) {
    %c0_i32 = arith.constant 0 : i32
    %c0_i32_0 = arith.constant 0 : i32
    return %c0_i32, %arg1 : i32, i32
  }
  func.func @transform_4(%arg0: i32, %arg1: i32, %arg2: i32) -> (i32, i32) {
    %c0_i32 = arith.constant 0 : i32
    return %arg0, %arg1 : i32, i32
  }
}

module attributes {stable_mosaic.version = 11 : i64} {
  func.func @_fused_matmul_kernel(%arg0: i32, %arg1: i32, %arg2: i32, %arg3: memref<16x512xbf16, #tpu.memory_space<vmem>>, %arg4: memref<512x128xbf16, #tpu.memory_space<vmem>>, %arg5: memref<1x128xf32, #tpu.memory_space<vmem>>, %arg6: memref<1x128xf32, #tpu.memory_space<vmem>>, %arg7: memref<16x128xbf16, #tpu.memory_space<vmem>>, %arg8: memref<16x128xf32, #tpu.memory_space<vmem>>) attributes {dimension_semantics = [#tpu.dimension_semantics<parallel>, #tpu.dimension_semantics<parallel>, #tpu.dimension_semantics<arbitrary>], iteration_bounds = array<i64: 1, 1, 2>, scalar_prefetch = 0 : i64, scratch_operands = 1 : i64, tpu.core_type = #tpu.core_type<tc>, window_params = [{transform_indices = @transform_0, window_bounds = array<i64: 16, 512>}, {transform_indices = @transform_1, window_bounds = array<i64: 512, 128>}, {transform_indices = @transform_2, window_bounds = array<i64: 1, 128>}, {transform_indices = @transform_3, window_bounds = array<i64: 1, 128>}, {transform_indices = @transform_4, window_bounds = array<i64: 16, 128>}]} {
    %c0_i32 = arith.constant 0 : i32
    %0 = arith.cmpi eq, %arg2, %c0_i32 : i32
    %1 = arith.extui %0 : i1 to i32
    %c0_i32_0 = arith.constant 0 : i32
    %2 = arith.cmpi ne, %1, %c0_i32_0 : i32
    scf.if %2 {
      %cst_9 = arith.constant 0.000000e+00 : f32
      %12 = vector.broadcast %cst_9 : f32 to vector<16x128xf32>
      %c0_10 = arith.constant 0 : index
      %c0_11 = arith.constant 0 : index
      %13 = vector.load %arg8[%c0_10, %c0_11] : memref<16x128xf32, #tpu.memory_space<vmem>>, vector<16x128xf32>
      tpu.vector_store %arg8[%c0_10, %c0_11], %12 {strides = array<i32>} : memref<16x128xf32, #tpu.memory_space<vmem>>, vector<16x128xf32>,
    } else {
    }
    %c0 = arith.constant 0 : index
    %c0_1 = arith.constant 0 : index
    %3 = vector.load %arg8[%c0, %c0_1] : memref<16x128xf32, #tpu.memory_space<vmem>>, vector<16x128xf32>
    %c0_2 = arith.constant 0 : index
    %c0_3 = arith.constant 0 : index
    %4 = vector.load %arg3[%c0_2, %c0_3] : memref<16x512xbf16, #tpu.memory_space<vmem>>, vector<16x512xbf16>
    %c0_4 = arith.constant 0 : index
    %c0_5 = arith.constant 0 : index
    %5 = vector.load %arg4[%c0_4, %c0_5] : memref<512x128xbf16, #tpu.memory_space<vmem>>, vector<512x128xbf16>
    %cst = arith.constant dense<0.000000e+00> : vector<16x128xf32>
    %6 = tpu.matmul %4, %5, %cst {dimension_numbers = #tpu.dot_dimension_numbers<[1], [0], [0], [1], [0, 0, 1, 1], [], []>} : vector<16x512xbf16>, vector<512x128xbf16>, vector<16x128xf32> -> vector<16x128xf32>
    %7 = arith.addf %3, %6 : vector<16x128xf32>
    %c0_6 = arith.constant 0 : index
    %c0_7 = arith.constant 0 : index
    %8 = vector.load %arg8[%c0_6, %c0_7] : memref<16x128xf32, #tpu.memory_space<vmem>>, vector<16x128xf32>
    tpu.vector_store %arg8[%c0_6, %c0_7], %7 {strides = array<i32>} : memref<16x128xf32, #tpu.memory_space<vmem>>, vector<16x128xf32>,
    %c1_i32 = arith.constant 1 : i32
    %9 = arith.cmpi eq, %arg2, %c1_i32 : i32
    %10 = arith.extui %9 : i1 to i32
    %c0_i32_8 = arith.constant 0 : i32
    %11 = arith.cmpi ne, %10, %c0_i32_8 : i32
    scf.if %11 {
      %c0_9 = arith.constant 0 : index
      %c0_10 = arith.constant 0 : index
      %12 = vector.load %arg8[%c0_9, %c0_10] : memref<16x128xf32, #tpu.memory_space<vmem>>, vector<16x128xf32>
      %c0_11 = arith.constant 0 : index
      %c0_12 = arith.constant 0 : index
      %13 = vector.load %arg5[%c0_11, %c0_12] : memref<1x128xf32, #tpu.memory_space<vmem>>, vector<1x128xf32>
      %14 = vector.broadcast %13 : vector<1x128xf32> to vector<16x128xf32>
      %15 = arith.mulf %12, %14 : vector<16x128xf32>
      %c0_13 = arith.constant 0 : index
      %c0_14 = arith.constant 0 : index
      %16 = vector.load %arg6[%c0_13, %c0_14] : memref<1x128xf32, #tpu.memory_space<vmem>>, vector<1x128xf32>
      %17 = vector.broadcast %16 : vector<1x128xf32> to vector<16x128xf32>
      %18 = arith.addf %15, %17 : vector<16x128xf32>
      %cst_15 = arith.constant 0.000000e+00 : f32
      %19 = vector.broadcast %cst_15 : f32 to vector<16x128xf32>
      %20 = arith.cmpf ogt, %18, %19 : vector<16x128xf32>
      %cst_16 = arith.constant 2.000000e-01 : f32
      %21 = vector.broadcast %cst_16 : f32 to vector<16x128xf32>
      %22 = arith.mulf %21, %18 : vector<16x128xf32>
      %23 = arith.select %20, %18, %22 : vector<16x128xi1>, vector<16x128xf32>
      %24 = arith.truncf %23 : vector<16x128xf32> to vector<16x128xbf16>
      %c0_17 = arith.constant 0 : index
      %c0_18 = arith.constant 0 : index
      %25 = vector.load %arg7[%c0_17, %c0_18] : memref<16x128xbf16, #tpu.memory_space<vmem>>, vector<16x128xbf16>
      tpu.vector_store %arg7[%c0_17, %c0_18], %24 {strides = array<i32>} : memref<16x128xbf16, #tpu.memory_space<vmem>>, vector<16x128xbf16>,
    } else {
    }
    return
  }
  func.func @transform_0(%arg0: i32, %arg1: i32, %arg2: i32) -> (i32, i32) {
    %c0_i32 = arith.constant 0 : i32
    return %arg0, %arg2 : i32, i32
  }
  func.func @transform_1(%arg0: i32, %arg1: i32, %arg2: i32) -> (i32, i32) {
    %c0_i32 = arith.constant 0 : i32
    return %arg2, %arg1 : i32, i32
  }
  func.func @transform_2(%arg0: i32, %arg1: i32, %arg2: i32) -> (i32, i32) {
    %c0_i32 = arith.constant 0 : i32
    %c0_i32_0 = arith.constant 0 : i32
    return %c0_i32, %arg1 : i32, i32
  }
  func.func @transform_3(%arg0: i32, %arg1: i32, %arg2: i32) -> (i32, i32) {
    %c0_i32 = arith.constant 0 : i32
    %c0_i32_0 = arith.constant 0 : i32
    return %c0_i32, %arg1 : i32, i32
  }
  func.func @transform_4(%arg0: i32, %arg1: i32, %arg2: i32) -> (i32, i32) {
    %c0_i32 = arith.constant 0 : i32
    return %arg0, %arg1 : i32, i32
  }
}

module attributes {stable_mosaic.version = 11 : i64} {
  func.func @_fused_matmul_kernel(%arg0: i32, %arg1: i32, %arg2: i32, %arg3: memref<16x256xbf16, #tpu.memory_space<vmem>>, %arg4: memref<256x128xbf16, #tpu.memory_space<vmem>>, %arg5: memref<1x128xf32, #tpu.memory_space<vmem>>, %arg6: memref<1x128xf32, #tpu.memory_space<vmem>>, %arg7: memref<16x128xbf16, #tpu.memory_space<vmem>>, %arg8: memref<16x128xf32, #tpu.memory_space<vmem>>) attributes {dimension_semantics = [#tpu.dimension_semantics<parallel>, #tpu.dimension_semantics<parallel>, #tpu.dimension_semantics<arbitrary>], iteration_bounds = array<i64: 1, 1, 1>, scalar_prefetch = 0 : i64, scratch_operands = 1 : i64, tpu.core_type = #tpu.core_type<tc>, window_params = [{transform_indices = @transform_0, window_bounds = array<i64: 16, 256>}, {transform_indices = @transform_1, window_bounds = array<i64: 256, 128>}, {transform_indices = @transform_2, window_bounds = array<i64: 1, 128>}, {transform_indices = @transform_3, window_bounds = array<i64: 1, 128>}, {transform_indices = @transform_4, window_bounds = array<i64: 16, 128>}]} {
    %c0_i32 = arith.constant 0 : i32
    %0 = arith.cmpi eq, %arg2, %c0_i32 : i32
    %1 = arith.extui %0 : i1 to i32
    %c0_i32_0 = arith.constant 0 : i32
    %2 = arith.cmpi ne, %1, %c0_i32_0 : i32
    scf.if %2 {
      %cst_10 = arith.constant 0.000000e+00 : f32
      %12 = vector.broadcast %cst_10 : f32 to vector<16x128xf32>
      %c0_11 = arith.constant 0 : index
      %c0_12 = arith.constant 0 : index
      %13 = vector.load %arg8[%c0_11, %c0_12] : memref<16x128xf32, #tpu.memory_space<vmem>>, vector<16x128xf32>
      tpu.vector_store %arg8[%c0_11, %c0_12], %12 {strides = array<i32>} : memref<16x128xf32, #tpu.memory_space<vmem>>, vector<16x128xf32>,
    } else {
    }
    %c0 = arith.constant 0 : index
    %c0_1 = arith.constant 0 : index
    %3 = vector.load %arg8[%c0, %c0_1] : memref<16x128xf32, #tpu.memory_space<vmem>>, vector<16x128xf32>
    %c0_2 = arith.constant 0 : index
    %c0_3 = arith.constant 0 : index
    %4 = vector.load %arg3[%c0_2, %c0_3] : memref<16x256xbf16, #tpu.memory_space<vmem>>, vector<16x256xbf16>
    %c0_4 = arith.constant 0 : index
    %c0_5 = arith.constant 0 : index
    %5 = vector.load %arg4[%c0_4, %c0_5] : memref<256x128xbf16, #tpu.memory_space<vmem>>, vector<256x128xbf16>
    %cst = arith.constant dense<0.000000e+00> : vector<16x128xf32>
    %6 = tpu.matmul %4, %5, %cst {dimension_numbers = #tpu.dot_dimension_numbers<[1], [0], [0], [1], [0, 0, 1, 1], [], []>} : vector<16x256xbf16>, vector<256x128xbf16>, vector<16x128xf32> -> vector<16x128xf32>
    %7 = arith.addf %3, %6 : vector<16x128xf32>
    %c0_6 = arith.constant 0 : index
    %c0_7 = arith.constant 0 : index
    %8 = vector.load %arg8[%c0_6, %c0_7] : memref<16x128xf32, #tpu.memory_space<vmem>>, vector<16x128xf32>
    tpu.vector_store %arg8[%c0_6, %c0_7], %7 {strides = array<i32>} : memref<16x128xf32, #tpu.memory_space<vmem>>, vector<16x128xf32>,
    %c0_i32_8 = arith.constant 0 : i32
    %9 = arith.cmpi eq, %arg2, %c0_i32_8 : i32
    %10 = arith.extui %9 : i1 to i32
    %c0_i32_9 = arith.constant 0 : i32
    %11 = arith.cmpi ne, %10, %c0_i32_9 : i32
    scf.if %11 {
      %c0_10 = arith.constant 0 : index
      %c0_11 = arith.constant 0 : index
      %12 = vector.load %arg8[%c0_10, %c0_11] : memref<16x128xf32, #tpu.memory_space<vmem>>, vector<16x128xf32>
      %c0_12 = arith.constant 0 : index
      %c0_13 = arith.constant 0 : index
      %13 = vector.load %arg5[%c0_12, %c0_13] : memref<1x128xf32, #tpu.memory_space<vmem>>, vector<1x128xf32>
      %14 = vector.broadcast %13 : vector<1x128xf32> to vector<16x128xf32>
      %15 = arith.mulf %12, %14 : vector<16x128xf32>
      %c0_14 = arith.constant 0 : index
      %c0_15 = arith.constant 0 : index
      %16 = vector.load %arg6[%c0_14, %c0_15] : memref<1x128xf32, #tpu.memory_space<vmem>>, vector<1x128xf32>
      %17 = vector.broadcast %16 : vector<1x128xf32> to vector<16x128xf32>
      %18 = arith.addf %15, %17 : vector<16x128xf32>
      %cst_16 = arith.constant 0.000000e+00 : f32
      %19 = vector.broadcast %cst_16 : f32 to vector<16x128xf32>
      %20 = arith.maximumf %18, %19 : vector<16x128xf32>
      %21 = arith.truncf %20 : vector<16x128xf32> to vector<16x128xbf16>
      %c0_17 = arith.constant 0 : index
      %c0_18 = arith.constant 0 : index
      %22 = vector.load %arg7[%c0_17, %c0_18] : memref<16x128xbf16, #tpu.memory_space<vmem>>, vector<16x128xbf16>
      tpu.vector_store %arg7[%c0_17, %c0_18], %21 {strides = array<i32>} : memref<16x128xbf16, #tpu.memory_space<vmem>>, vector<16x128xbf16>,
    } else {
    }
    return
  }
  func.func @transform_0(%arg0: i32, %arg1: i32, %arg2: i32) -> (i32, i32) {
    %c0_i32 = arith.constant 0 : i32
    return %arg0, %arg2 : i32, i32
  }
  func.func @transform_1(%arg0: i32, %arg1: i32, %arg2: i32) -> (i32, i32) {
    %c0_i32 = arith.constant 0 : i32
    return %arg2, %arg1 : i32, i32
  }
  func.func @transform_2(%arg0: i32, %arg1: i32, %arg2: i32) -> (i32, i32) {
    %c0_i32 = arith.constant 0 : i32
    %c0_i32_0 = arith.constant 0 : i32
    return %c0_i32, %arg1 : i32, i32
  }
  func.func @transform_3(%arg0: i32, %arg1: i32, %arg2: i32) -> (i32, i32) {
    %c0_i32 = arith.constant 0 : i32
    %c0_i32_0 = arith.constant 0 : i32
    return %c0_i32, %arg1 : i32, i32
  }
  func.func @transform_4(%arg0: i32, %arg1: i32, %arg2: i32) -> (i32, i32) {
    %c0_i32 = arith.constant 0 : i32
    return %arg0, %arg1 : i32, i32
  }
}

module attributes {stable_mosaic.version = 11 : i64} {
  func.func @_fused_matmul_kernel(%arg0: i32, %arg1: i32, %arg2: i32, %arg3: memref<16x128xbf16, #tpu.memory_space<vmem>>, %arg4: memref<128x128xbf16, #tpu.memory_space<vmem>>, %arg5: memref<1x128xf32, #tpu.memory_space<vmem>>, %arg6: memref<1x128xf32, #tpu.memory_space<vmem>>, %arg7: memref<16x128xbf16, #tpu.memory_space<vmem>>, %arg8: memref<16x128xf32, #tpu.memory_space<vmem>>) attributes {dimension_semantics = [#tpu.dimension_semantics<parallel>, #tpu.dimension_semantics<parallel>, #tpu.dimension_semantics<arbitrary>], iteration_bounds = array<i64: 1, 1, 5>, scalar_prefetch = 0 : i64, scratch_operands = 1 : i64, tpu.core_type = #tpu.core_type<tc>, window_params = [{transform_indices = @transform_0, window_bounds = array<i64: 16, 128>}, {transform_indices = @transform_1, window_bounds = array<i64: 128, 128>}, {transform_indices = @transform_2, window_bounds = array<i64: 1, 128>}, {transform_indices = @transform_3, window_bounds = array<i64: 1, 128>}, {transform_indices = @transform_4, window_bounds = array<i64: 16, 128>}]} {
    %c0_i32 = arith.constant 0 : i32
    %0 = arith.cmpi eq, %arg2, %c0_i32 : i32
    %1 = arith.extui %0 : i1 to i32
    %c0_i32_0 = arith.constant 0 : i32
    %2 = arith.cmpi ne, %1, %c0_i32_0 : i32
    scf.if %2 {
      %cst_9 = arith.constant 0.000000e+00 : f32
      %12 = vector.broadcast %cst_9 : f32 to vector<16x128xf32>
      %c0_10 = arith.constant 0 : index
      %c0_11 = arith.constant 0 : index
      %13 = vector.load %arg8[%c0_10, %c0_11] : memref<16x128xf32, #tpu.memory_space<vmem>>, vector<16x128xf32>
      tpu.vector_store %arg8[%c0_10, %c0_11], %12 {strides = array<i32>} : memref<16x128xf32, #tpu.memory_space<vmem>>, vector<16x128xf32>,
    } else {
    }
    %c0 = arith.constant 0 : index
    %c0_1 = arith.constant 0 : index
    %3 = vector.load %arg8[%c0, %c0_1] : memref<16x128xf32, #tpu.memory_space<vmem>>, vector<16x128xf32>
    %c0_2 = arith.constant 0 : index
    %c0_3 = arith.constant 0 : index
    %4 = vector.load %arg3[%c0_2, %c0_3] : memref<16x128xbf16, #tpu.memory_space<vmem>>, vector<16x128xbf16>
    %c0_4 = arith.constant 0 : index
    %c0_5 = arith.constant 0 : index
    %5 = vector.load %arg4[%c0_4, %c0_5] : memref<128x128xbf16, #tpu.memory_space<vmem>>, vector<128x128xbf16>
    %cst = arith.constant dense<0.000000e+00> : vector<16x128xf32>
    %6 = tpu.matmul %4, %5, %cst {dimension_numbers = #tpu.dot_dimension_numbers<[1], [0], [0], [1], [0, 0, 1, 1], [], []>} : vector<16x128xbf16>, vector<128x128xbf16>, vector<16x128xf32> -> vector<16x128xf32>
    %7 = arith.addf %3, %6 : vector<16x128xf32>
    %c0_6 = arith.constant 0 : index
    %c0_7 = arith.constant 0 : index
    %8 = vector.load %arg8[%c0_6, %c0_7] : memref<16x128xf32, #tpu.memory_space<vmem>>, vector<16x128xf32>
    tpu.vector_store %arg8[%c0_6, %c0_7], %7 {strides = array<i32>} : memref<16x128xf32, #tpu.memory_space<vmem>>, vector<16x128xf32>,
    %c4_i32 = arith.constant 4 : i32
    %9 = arith.cmpi eq, %arg2, %c4_i32 : i32
    %10 = arith.extui %9 : i1 to i32
    %c0_i32_8 = arith.constant 0 : i32
    %11 = arith.cmpi ne, %10, %c0_i32_8 : i32
    scf.if %11 {
      %c0_9 = arith.constant 0 : index
      %c0_10 = arith.constant 0 : index
      %12 = vector.load %arg8[%c0_9, %c0_10] : memref<16x128xf32, #tpu.memory_space<vmem>>, vector<16x128xf32>
      %c0_11 = arith.constant 0 : index
      %c0_12 = arith.constant 0 : index
      %13 = vector.load %arg5[%c0_11, %c0_12] : memref<1x128xf32, #tpu.memory_space<vmem>>, vector<1x128xf32>
      %14 = vector.broadcast %13 : vector<1x128xf32> to vector<16x128xf32>
      %15 = arith.mulf %12, %14 : vector<16x128xf32>
      %c0_13 = arith.constant 0 : index
      %c0_14 = arith.constant 0 : index
      %16 = vector.load %arg6[%c0_13, %c0_14] : memref<1x128xf32, #tpu.memory_space<vmem>>, vector<1x128xf32>
      %17 = vector.broadcast %16 : vector<1x128xf32> to vector<16x128xf32>
      %18 = arith.addf %15, %17 : vector<16x128xf32>
      %cst_15 = arith.constant 0.000000e+00 : f32
      %19 = vector.broadcast %cst_15 : f32 to vector<16x128xf32>
      %20 = arith.maximumf %18, %19 : vector<16x128xf32>
      %21 = arith.truncf %20 : vector<16x128xf32> to vector<16x128xbf16>
      %c0_16 = arith.constant 0 : index
      %c0_17 = arith.constant 0 : index
      %22 = vector.load %arg7[%c0_16, %c0_17] : memref<16x128xbf16, #tpu.memory_space<vmem>>, vector<16x128xbf16>
      tpu.vector_store %arg7[%c0_16, %c0_17], %21 {strides = array<i32>} : memref<16x128xbf16, #tpu.memory_space<vmem>>, vector<16x128xbf16>,
    } else {
    }
    return
  }
  func.func @transform_0(%arg0: i32, %arg1: i32, %arg2: i32) -> (i32, i32) {
    %c0_i32 = arith.constant 0 : i32
    return %arg0, %arg2 : i32, i32
  }
  func.func @transform_1(%arg0: i32, %arg1: i32, %arg2: i32) -> (i32, i32) {
    %c0_i32 = arith.constant 0 : i32
    return %arg2, %arg1 : i32, i32
  }
  func.func @transform_2(%arg0: i32, %arg1: i32, %arg2: i32) -> (i32, i32) {
    %c0_i32 = arith.constant 0 : i32
    %c0_i32_0 = arith.constant 0 : i32
    return %c0_i32, %arg1 : i32, i32
  }
  func.func @transform_3(%arg0: i32, %arg1: i32, %arg2: i32) -> (i32, i32) {
    %c0_i32 = arith.constant 0 : i32
    %c0_i32_0 = arith.constant 0 : i32
    return %c0_i32, %arg1 : i32, i32
  }
  func.func @transform_4(%arg0: i32, %arg1: i32, %arg2: i32) -> (i32, i32) {
    %c0_i32 = arith.constant 0 : i32
    return %arg0, %arg1 : i32, i32
  }
}

module attributes {stable_mosaic.version = 11 : i64} {
  func.func @_fused_matmul_kernel(%arg0: i32, %arg1: i32, %arg2: i32, %arg3: memref<16x512xbf16, #tpu.memory_space<vmem>>, %arg4: memref<512x128xbf16, #tpu.memory_space<vmem>>, %arg5: memref<1x128xf32, #tpu.memory_space<vmem>>, %arg6: memref<1x128xf32, #tpu.memory_space<vmem>>, %arg7: memref<16x128xbf16, #tpu.memory_space<vmem>>, %arg8: memref<16x128xf32, #tpu.memory_space<vmem>>) attributes {dimension_semantics = [#tpu.dimension_semantics<parallel>, #tpu.dimension_semantics<parallel>, #tpu.dimension_semantics<arbitrary>], iteration_bounds = array<i64: 1, 1, 1>, scalar_prefetch = 0 : i64, scratch_operands = 1 : i64, tpu.core_type = #tpu.core_type<tc>, window_params = [{transform_indices = @transform_0, window_bounds = array<i64: 16, 512>}, {transform_indices = @transform_1, window_bounds = array<i64: 512, 128>}, {transform_indices = @transform_2, window_bounds = array<i64: 1, 128>}, {transform_indices = @transform_3, window_bounds = array<i64: 1, 128>}, {transform_indices = @transform_4, window_bounds = array<i64: 16, 128>}]} {
    %c0_i32 = arith.constant 0 : i32
    %0 = arith.cmpi eq, %arg2, %c0_i32 : i32
    %1 = arith.extui %0 : i1 to i32
    %c0_i32_0 = arith.constant 0 : i32
    %2 = arith.cmpi ne, %1, %c0_i32_0 : i32
    scf.if %2 {
      %cst_10 = arith.constant 0.000000e+00 : f32
      %12 = vector.broadcast %cst_10 : f32 to vector<16x128xf32>
      %c0_11 = arith.constant 0 : index
      %c0_12 = arith.constant 0 : index
      %13 = vector.load %arg8[%c0_11, %c0_12] : memref<16x128xf32, #tpu.memory_space<vmem>>, vector<16x128xf32>
      tpu.vector_store %arg8[%c0_11, %c0_12], %12 {strides = array<i32>} : memref<16x128xf32, #tpu.memory_space<vmem>>, vector<16x128xf32>,
    } else {
    }
    %c0 = arith.constant 0 : index
    %c0_1 = arith.constant 0 : index
    %3 = vector.load %arg8[%c0, %c0_1] : memref<16x128xf32, #tpu.memory_space<vmem>>, vector<16x128xf32>
    %c0_2 = arith.constant 0 : index
    %c0_3 = arith.constant 0 : index
    %4 = vector.load %arg3[%c0_2, %c0_3] : memref<16x512xbf16, #tpu.memory_space<vmem>>, vector<16x512xbf16>
    %c0_4 = arith.constant 0 : index
    %c0_5 = arith.constant 0 : index
    %5 = vector.load %arg4[%c0_4, %c0_5] : memref<512x128xbf16, #tpu.memory_space<vmem>>, vector<512x128xbf16>
    %cst = arith.constant dense<0.000000e+00> : vector<16x128xf32>
    %6 = tpu.matmul %4, %5, %cst {dimension_numbers = #tpu.dot_dimension_numbers<[1], [0], [0], [1], [0, 0, 1, 1], [], []>} : vector<16x512xbf16>, vector<512x128xbf16>, vector<16x128xf32> -> vector<16x128xf32>
    %7 = arith.addf %3, %6 : vector<16x128xf32>
    %c0_6 = arith.constant 0 : index
    %c0_7 = arith.constant 0 : index
    %8 = vector.load %arg8[%c0_6, %c0_7] : memref<16x128xf32, #tpu.memory_space<vmem>>, vector<16x128xf32>
    tpu.vector_store %arg8[%c0_6, %c0_7], %7 {strides = array<i32>} : memref<16x128xf32, #tpu.memory_space<vmem>>, vector<16x128xf32>,
    %c0_i32_8 = arith.constant 0 : i32
    %9 = arith.cmpi eq, %arg2, %c0_i32_8 : i32
    %10 = arith.extui %9 : i1 to i32
    %c0_i32_9 = arith.constant 0 : i32
    %11 = arith.cmpi ne, %10, %c0_i32_9 : i32
    scf.if %11 {
      %c0_10 = arith.constant 0 : index
      %c0_11 = arith.constant 0 : index
      %12 = vector.load %arg8[%c0_10, %c0_11] : memref<16x128xf32, #tpu.memory_space<vmem>>, vector<16x128xf32>
      %c0_12 = arith.constant 0 : index
      %c0_13 = arith.constant 0 : index
      %13 = vector.load %arg5[%c0_12, %c0_13] : memref<1x128xf32, #tpu.memory_space<vmem>>, vector<1x128xf32>
      %14 = vector.broadcast %13 : vector<1x128xf32> to vector<16x128xf32>
      %15 = arith.mulf %12, %14 : vector<16x128xf32>
      %c0_14 = arith.constant 0 : index
      %c0_15 = arith.constant 0 : index
      %16 = vector.load %arg6[%c0_14, %c0_15] : memref<1x128xf32, #tpu.memory_space<vmem>>, vector<1x128xf32>
      %17 = vector.broadcast %16 : vector<1x128xf32> to vector<16x128xf32>
      %18 = arith.addf %15, %17 : vector<16x128xf32>
      %cst_16 = arith.constant 0.000000e+00 : f32
      %19 = vector.broadcast %cst_16 : f32 to vector<16x128xf32>
      %20 = arith.maximumf %18, %19 : vector<16x128xf32>
      %21 = arith.truncf %20 : vector<16x128xf32> to vector<16x128xbf16>
      %c0_17 = arith.constant 0 : index
      %c0_18 = arith.constant 0 : index
      %22 = vector.load %arg7[%c0_17, %c0_18] : memref<16x128xbf16, #tpu.memory_space<vmem>>, vector<16x128xbf16>
      tpu.vector_store %arg7[%c0_17, %c0_18], %21 {strides = array<i32>} : memref<16x128xbf16, #tpu.memory_space<vmem>>, vector<16x128xbf16>,
    } else {
    }
    return
  }
  func.func @transform_0(%arg0: i32, %arg1: i32, %arg2: i32) -> (i32, i32) {
    %c0_i32 = arith.constant 0 : i32
    return %arg0, %arg2 : i32, i32
  }
  func.func @transform_1(%arg0: i32, %arg1: i32, %arg2: i32) -> (i32, i32) {
    %c0_i32 = arith.constant 0 : i32
    return %arg2, %arg1 : i32, i32
  }
  func.func @transform_2(%arg0: i32, %arg1: i32, %arg2: i32) -> (i32, i32) {
    %c0_i32 = arith.constant 0 : i32
    %c0_i32_0 = arith.constant 0 : i32
    return %c0_i32, %arg1 : i32, i32
  }
  func.func @transform_3(%arg0: i32, %arg1: i32, %arg2: i32) -> (i32, i32) {
    %c0_i32 = arith.constant 0 : i32
    %c0_i32_0 = arith.constant 0 : i32
    return %c0_i32, %arg1 : i32, i32
  }
  func.func @transform_4(%arg0: i32, %arg1: i32, %arg2: i32) -> (i32, i32) {
    %c0_i32 = arith.constant 0 : i32
    return %arg0, %arg1 : i32, i32
  }
}

module attributes {stable_mosaic.version = 11 : i64} {
  func.func @_fused_matmul_kernel(%arg0: i32, %arg1: i32, %arg2: i32, %arg3: memref<32x384xbf16, #tpu.memory_space<vmem>>, %arg4: memref<384x128xbf16, #tpu.memory_space<vmem>>, %arg5: memref<1x128xf32, #tpu.memory_space<vmem>>, %arg6: memref<1x128xf32, #tpu.memory_space<vmem>>, %arg7: memref<32x128xbf16, #tpu.memory_space<vmem>>, %arg8: memref<32x128xf32, #tpu.memory_space<vmem>>) attributes {dimension_semantics = [#tpu.dimension_semantics<parallel>, #tpu.dimension_semantics<parallel>, #tpu.dimension_semantics<arbitrary>], iteration_bounds = array<i64: 1, 1, 1>, scalar_prefetch = 0 : i64, scratch_operands = 1 : i64, tpu.core_type = #tpu.core_type<tc>, window_params = [{transform_indices = @transform_0, window_bounds = array<i64: 32, 384>}, {transform_indices = @transform_1, window_bounds = array<i64: 384, 128>}, {transform_indices = @transform_2, window_bounds = array<i64: 1, 128>}, {transform_indices = @transform_3, window_bounds = array<i64: 1, 128>}, {transform_indices = @transform_4, window_bounds = array<i64: 32, 128>}]} {
    %c0_i32 = arith.constant 0 : i32
    %0 = arith.cmpi eq, %arg2, %c0_i32 : i32
    %1 = arith.extui %0 : i1 to i32
    %c0_i32_0 = arith.constant 0 : i32
    %2 = arith.cmpi ne, %1, %c0_i32_0 : i32
    scf.if %2 {
      %cst_10 = arith.constant 0.000000e+00 : f32
      %12 = vector.broadcast %cst_10 : f32 to vector<32x128xf32>
      %c0_11 = arith.constant 0 : index
      %c0_12 = arith.constant 0 : index
      %13 = vector.load %arg8[%c0_11, %c0_12] : memref<32x128xf32, #tpu.memory_space<vmem>>, vector<32x128xf32>
      tpu.vector_store %arg8[%c0_11, %c0_12], %12 {strides = array<i32>} : memref<32x128xf32, #tpu.memory_space<vmem>>, vector<32x128xf32>,
    } else {
    }
    %c0 = arith.constant 0 : index
    %c0_1 = arith.constant 0 : index
    %3 = vector.load %arg8[%c0, %c0_1] : memref<32x128xf32, #tpu.memory_space<vmem>>, vector<32x128xf32>
    %c0_2 = arith.constant 0 : index
    %c0_3 = arith.constant 0 : index
    %4 = vector.load %arg3[%c0_2, %c0_3] : memref<32x384xbf16, #tpu.memory_space<vmem>>, vector<32x384xbf16>
    %c0_4 = arith.constant 0 : index
    %c0_5 = arith.constant 0 : index
    %5 = vector.load %arg4[%c0_4, %c0_5] : memref<384x128xbf16, #tpu.memory_space<vmem>>, vector<384x128xbf16>
    %cst = arith.constant dense<0.000000e+00> : vector<32x128xf32>
    %6 = tpu.matmul %4, %5, %cst {dimension_numbers = #tpu.dot_dimension_numbers<[1], [0], [0], [1], [0, 0, 1, 1], [], []>} : vector<32x384xbf16>, vector<384x128xbf16>, vector<32x128xf32> -> vector<32x128xf32>
    %7 = arith.addf %3, %6 : vector<32x128xf32>
    %c0_6 = arith.constant 0 : index
    %c0_7 = arith.constant 0 : index
    %8 = vector.load %arg8[%c0_6, %c0_7] : memref<32x128xf32, #tpu.memory_space<vmem>>, vector<32x128xf32>
    tpu.vector_store %arg8[%c0_6, %c0_7], %7 {strides = array<i32>} : memref<32x128xf32, #tpu.memory_space<vmem>>, vector<32x128xf32>,
    %c0_i32_8 = arith.constant 0 : i32
    %9 = arith.cmpi eq, %arg2, %c0_i32_8 : i32
    %10 = arith.extui %9 : i1 to i32
    %c0_i32_9 = arith.constant 0 : i32
    %11 = arith.cmpi ne, %10, %c0_i32_9 : i32
    scf.if %11 {
      %c0_10 = arith.constant 0 : index
      %c0_11 = arith.constant 0 : index
      %12 = vector.load %arg8[%c0_10, %c0_11] : memref<32x128xf32, #tpu.memory_space<vmem>>, vector<32x128xf32>
      %c0_12 = arith.constant 0 : index
      %c0_13 = arith.constant 0 : index
      %13 = vector.load %arg5[%c0_12, %c0_13] : memref<1x128xf32, #tpu.memory_space<vmem>>, vector<1x128xf32>
      %14 = vector.broadcast %13 : vector<1x128xf32> to vector<32x128xf32>
      %15 = arith.mulf %12, %14 : vector<32x128xf32>
      %c0_14 = arith.constant 0 : index
      %c0_15 = arith.constant 0 : index
      %16 = vector.load %arg6[%c0_14, %c0_15] : memref<1x128xf32, #tpu.memory_space<vmem>>, vector<1x128xf32>
      %17 = vector.broadcast %16 : vector<1x128xf32> to vector<32x128xf32>
      %18 = arith.addf %15, %17 : vector<32x128xf32>
      %cst_16 = arith.constant 0.000000e+00 : f32
      %19 = vector.broadcast %cst_16 : f32 to vector<32x128xf32>
      %20 = arith.maximumf %18, %19 : vector<32x128xf32>
      %21 = arith.truncf %20 : vector<32x128xf32> to vector<32x128xbf16>
      %c0_17 = arith.constant 0 : index
      %c0_18 = arith.constant 0 : index
      %22 = vector.load %arg7[%c0_17, %c0_18] : memref<32x128xbf16, #tpu.memory_space<vmem>>, vector<32x128xbf16>
      tpu.vector_store %arg7[%c0_17, %c0_18], %21 {strides = array<i32>} : memref<32x128xbf16, #tpu.memory_space<vmem>>, vector<32x128xbf16>,
    } else {
    }
    return
  }
  func.func @transform_0(%arg0: i32, %arg1: i32, %arg2: i32) -> (i32, i32) {
    %c0_i32 = arith.constant 0 : i32
    return %arg0, %arg2 : i32, i32
  }
  func.func @transform_1(%arg0: i32, %arg1: i32, %arg2: i32) -> (i32, i32) {
    %c0_i32 = arith.constant 0 : i32
    return %arg2, %arg1 : i32, i32
  }
  func.func @transform_2(%arg0: i32, %arg1: i32, %arg2: i32) -> (i32, i32) {
    %c0_i32 = arith.constant 0 : i32
    %c0_i32_0 = arith.constant 0 : i32
    return %c0_i32, %arg1 : i32, i32
  }
  func.func @transform_3(%arg0: i32, %arg1: i32, %arg2: i32) -> (i32, i32) {
    %c0_i32 = arith.constant 0 : i32
    %c0_i32_0 = arith.constant 0 : i32
    return %c0_i32, %arg1 : i32, i32
  }
  func.func @transform_4(%arg0: i32, %arg1: i32, %arg2: i32) -> (i32, i32) {
    %c0_i32 = arith.constant 0 : i32
    return %arg0, %arg1 : i32, i32
  }
}

module attributes {stable_mosaic.version = 11 : i64} {
  func.func @_fused_matmul_kernel(%arg0: i32, %arg1: i32, %arg2: i32, %arg3: memref<32x256xbf16, #tpu.memory_space<vmem>>, %arg4: memref<256x128xbf16, #tpu.memory_space<vmem>>, %arg5: memref<1x128xf32, #tpu.memory_space<vmem>>, %arg6: memref<1x128xf32, #tpu.memory_space<vmem>>, %arg7: memref<32x128xbf16, #tpu.memory_space<vmem>>, %arg8: memref<32x128xf32, #tpu.memory_space<vmem>>) attributes {dimension_semantics = [#tpu.dimension_semantics<parallel>, #tpu.dimension_semantics<parallel>, #tpu.dimension_semantics<arbitrary>], iteration_bounds = array<i64: 1, 1, 1>, scalar_prefetch = 0 : i64, scratch_operands = 1 : i64, tpu.core_type = #tpu.core_type<tc>, window_params = [{transform_indices = @transform_0, window_bounds = array<i64: 32, 256>}, {transform_indices = @transform_1, window_bounds = array<i64: 256, 128>}, {transform_indices = @transform_2, window_bounds = array<i64: 1, 128>}, {transform_indices = @transform_3, window_bounds = array<i64: 1, 128>}, {transform_indices = @transform_4, window_bounds = array<i64: 32, 128>}]} {
    %c0_i32 = arith.constant 0 : i32
    %0 = arith.cmpi eq, %arg2, %c0_i32 : i32
    %1 = arith.extui %0 : i1 to i32
    %c0_i32_0 = arith.constant 0 : i32
    %2 = arith.cmpi ne, %1, %c0_i32_0 : i32
    scf.if %2 {
      %cst_10 = arith.constant 0.000000e+00 : f32
      %12 = vector.broadcast %cst_10 : f32 to vector<32x128xf32>
      %c0_11 = arith.constant 0 : index
      %c0_12 = arith.constant 0 : index
      %13 = vector.load %arg8[%c0_11, %c0_12] : memref<32x128xf32, #tpu.memory_space<vmem>>, vector<32x128xf32>
      tpu.vector_store %arg8[%c0_11, %c0_12], %12 {strides = array<i32>} : memref<32x128xf32, #tpu.memory_space<vmem>>, vector<32x128xf32>,
    } else {
    }
    %c0 = arith.constant 0 : index
    %c0_1 = arith.constant 0 : index
    %3 = vector.load %arg8[%c0, %c0_1] : memref<32x128xf32, #tpu.memory_space<vmem>>, vector<32x128xf32>
    %c0_2 = arith.constant 0 : index
    %c0_3 = arith.constant 0 : index
    %4 = vector.load %arg3[%c0_2, %c0_3] : memref<32x256xbf16, #tpu.memory_space<vmem>>, vector<32x256xbf16>
    %c0_4 = arith.constant 0 : index
    %c0_5 = arith.constant 0 : index
    %5 = vector.load %arg4[%c0_4, %c0_5] : memref<256x128xbf16, #tpu.memory_space<vmem>>, vector<256x128xbf16>
    %cst = arith.constant dense<0.000000e+00> : vector<32x128xf32>
    %6 = tpu.matmul %4, %5, %cst {dimension_numbers = #tpu.dot_dimension_numbers<[1], [0], [0], [1], [0, 0, 1, 1], [], []>} : vector<32x256xbf16>, vector<256x128xbf16>, vector<32x128xf32> -> vector<32x128xf32>
    %7 = arith.addf %3, %6 : vector<32x128xf32>
    %c0_6 = arith.constant 0 : index
    %c0_7 = arith.constant 0 : index
    %8 = vector.load %arg8[%c0_6, %c0_7] : memref<32x128xf32, #tpu.memory_space<vmem>>, vector<32x128xf32>
    tpu.vector_store %arg8[%c0_6, %c0_7], %7 {strides = array<i32>} : memref<32x128xf32, #tpu.memory_space<vmem>>, vector<32x128xf32>,
    %c0_i32_8 = arith.constant 0 : i32
    %9 = arith.cmpi eq, %arg2, %c0_i32_8 : i32
    %10 = arith.extui %9 : i1 to i32
    %c0_i32_9 = arith.constant 0 : i32
    %11 = arith.cmpi ne, %10, %c0_i32_9 : i32
    scf.if %11 {
      %c0_10 = arith.constant 0 : index
      %c0_11 = arith.constant 0 : index
      %12 = vector.load %arg8[%c0_10, %c0_11] : memref<32x128xf32, #tpu.memory_space<vmem>>, vector<32x128xf32>
      %c0_12 = arith.constant 0 : index
      %c0_13 = arith.constant 0 : index
      %13 = vector.load %arg5[%c0_12, %c0_13] : memref<1x128xf32, #tpu.memory_space<vmem>>, vector<1x128xf32>
      %14 = vector.broadcast %13 : vector<1x128xf32> to vector<32x128xf32>
      %15 = arith.mulf %12, %14 : vector<32x128xf32>
      %c0_14 = arith.constant 0 : index
      %c0_15 = arith.constant 0 : index
      %16 = vector.load %arg6[%c0_14, %c0_15] : memref<1x128xf32, #tpu.memory_space<vmem>>, vector<1x128xf32>
      %17 = vector.broadcast %16 : vector<1x128xf32> to vector<32x128xf32>
      %18 = arith.addf %15, %17 : vector<32x128xf32>
      %cst_16 = arith.constant 0.000000e+00 : f32
      %19 = vector.broadcast %cst_16 : f32 to vector<32x128xf32>
      %20 = arith.maximumf %18, %19 : vector<32x128xf32>
      %21 = arith.truncf %20 : vector<32x128xf32> to vector<32x128xbf16>
      %c0_17 = arith.constant 0 : index
      %c0_18 = arith.constant 0 : index
      %22 = vector.load %arg7[%c0_17, %c0_18] : memref<32x128xbf16, #tpu.memory_space<vmem>>, vector<32x128xbf16>
      tpu.vector_store %arg7[%c0_17, %c0_18], %21 {strides = array<i32>} : memref<32x128xbf16, #tpu.memory_space<vmem>>, vector<32x128xbf16>,
    } else {
    }
    return
  }
  func.func @transform_0(%arg0: i32, %arg1: i32, %arg2: i32) -> (i32, i32) {
    %c0_i32 = arith.constant 0 : i32
    return %arg0, %arg2 : i32, i32
  }
  func.func @transform_1(%arg0: i32, %arg1: i32, %arg2: i32) -> (i32, i32) {
    %c0_i32 = arith.constant 0 : i32
    return %arg2, %arg1 : i32, i32
  }
  func.func @transform_2(%arg0: i32, %arg1: i32, %arg2: i32) -> (i32, i32) {
    %c0_i32 = arith.constant 0 : i32
    %c0_i32_0 = arith.constant 0 : i32
    return %c0_i32, %arg1 : i32, i32
  }
  func.func @transform_3(%arg0: i32, %arg1: i32, %arg2: i32) -> (i32, i32) {
    %c0_i32 = arith.constant 0 : i32
    %c0_i32_0 = arith.constant 0 : i32
    return %c0_i32, %arg1 : i32, i32
  }
  func.func @transform_4(%arg0: i32, %arg1: i32, %arg2: i32) -> (i32, i32) {
    %c0_i32 = arith.constant 0 : i32
    return %arg0, %arg1 : i32, i32
  }
}

module attributes {stable_mosaic.version = 11 : i64} {
  func.func @_fused_matmul_kernel(%arg0: i32, %arg1: i32, %arg2: i32, %arg3: memref<128x256xbf16, #tpu.memory_space<vmem>>, %arg4: memref<256x128xbf16, #tpu.memory_space<vmem>>, %arg5: memref<1x128xf32, #tpu.memory_space<vmem>>, %arg6: memref<1x128xf32, #tpu.memory_space<vmem>>, %arg7: memref<128x128xbf16, #tpu.memory_space<vmem>>, %arg8: memref<128x128xf32, #tpu.memory_space<vmem>>) attributes {dimension_semantics = [#tpu.dimension_semantics<parallel>, #tpu.dimension_semantics<parallel>, #tpu.dimension_semantics<arbitrary>], iteration_bounds = array<i64: 1, 1, 1>, scalar_prefetch = 0 : i64, scratch_operands = 1 : i64, tpu.core_type = #tpu.core_type<tc>, window_params = [{transform_indices = @transform_0, window_bounds = array<i64: 128, 256>}, {transform_indices = @transform_1, window_bounds = array<i64: 256, 128>}, {transform_indices = @transform_2, window_bounds = array<i64: 1, 128>}, {transform_indices = @transform_3, window_bounds = array<i64: 1, 128>}, {transform_indices = @transform_4, window_bounds = array<i64: 128, 128>}]} {
    %c0_i32 = arith.constant 0 : i32
    %0 = arith.cmpi eq, %arg2, %c0_i32 : i32
    %1 = arith.extui %0 : i1 to i32
    %c0_i32_0 = arith.constant 0 : i32
    %2 = arith.cmpi ne, %1, %c0_i32_0 : i32
    scf.if %2 {
      %cst_10 = arith.constant 0.000000e+00 : f32
      %12 = vector.broadcast %cst_10 : f32 to vector<128x128xf32>
      %c0_11 = arith.constant 0 : index
      %c0_12 = arith.constant 0 : index
      %13 = vector.load %arg8[%c0_11, %c0_12] : memref<128x128xf32, #tpu.memory_space<vmem>>, vector<128x128xf32>
      tpu.vector_store %arg8[%c0_11, %c0_12], %12 {strides = array<i32>} : memref<128x128xf32, #tpu.memory_space<vmem>>, vector<128x128xf32>,
    } else {
    }
    %c0 = arith.constant 0 : index
    %c0_1 = arith.constant 0 : index
    %3 = vector.load %arg8[%c0, %c0_1] : memref<128x128xf32, #tpu.memory_space<vmem>>, vector<128x128xf32>
    %c0_2 = arith.constant 0 : index
    %c0_3 = arith.constant 0 : index
    %4 = vector.load %arg3[%c0_2, %c0_3] : memref<128x256xbf16, #tpu.memory_space<vmem>>, vector<128x256xbf16>
    %c0_4 = arith.constant 0 : index
    %c0_5 = arith.constant 0 : index
    %5 = vector.load %arg4[%c0_4, %c0_5] : memref<256x128xbf16, #tpu.memory_space<vmem>>, vector<256x128xbf16>
    %cst = arith.constant dense<0.000000e+00> : vector<128x128xf32>
    %6 = tpu.matmul %4, %5, %cst {dimension_numbers = #tpu.dot_dimension_numbers<[1], [0], [0], [1], [0, 0, 1, 1], [], []>} : vector<128x256xbf16>, vector<256x128xbf16>, vector<128x128xf32> -> vector<128x128xf32>
    %7 = arith.addf %3, %6 : vector<128x128xf32>
    %c0_6 = arith.constant 0 : index
    %c0_7 = arith.constant 0 : index
    %8 = vector.load %arg8[%c0_6, %c0_7] : memref<128x128xf32, #tpu.memory_space<vmem>>, vector<128x128xf32>
    tpu.vector_store %arg8[%c0_6, %c0_7], %7 {strides = array<i32>} : memref<128x128xf32, #tpu.memory_space<vmem>>, vector<128x128xf32>,
    %c0_i32_8 = arith.constant 0 : i32
    %9 = arith.cmpi eq, %arg2, %c0_i32_8 : i32
    %10 = arith.extui %9 : i1 to i32
    %c0_i32_9 = arith.constant 0 : i32
    %11 = arith.cmpi ne, %10, %c0_i32_9 : i32
    scf.if %11 {
      %c0_10 = arith.constant 0 : index
      %c0_11 = arith.constant 0 : index
      %12 = vector.load %arg8[%c0_10, %c0_11] : memref<128x128xf32, #tpu.memory_space<vmem>>, vector<128x128xf32>
      %c0_12 = arith.constant 0 : index
      %c0_13 = arith.constant 0 : index
      %13 = vector.load %arg5[%c0_12, %c0_13] : memref<1x128xf32, #tpu.memory_space<vmem>>, vector<1x128xf32>
      %14 = vector.broadcast %13 : vector<1x128xf32> to vector<128x128xf32>
      %15 = arith.mulf %12, %14 : vector<128x128xf32>
      %c0_14 = arith.constant 0 : index
      %c0_15 = arith.constant 0 : index
      %16 = vector.load %arg6[%c0_14, %c0_15] : memref<1x128xf32, #tpu.memory_space<vmem>>, vector<1x128xf32>
      %17 = vector.broadcast %16 : vector<1x128xf32> to vector<128x128xf32>
      %18 = arith.addf %15, %17 : vector<128x128xf32>
      %cst_16 = arith.constant 0.000000e+00 : f32
      %19 = vector.broadcast %cst_16 : f32 to vector<128x128xf32>
      %20 = arith.maximumf %18, %19 : vector<128x128xf32>
      %21 = arith.truncf %20 : vector<128x128xf32> to vector<128x128xbf16>
      %c0_17 = arith.constant 0 : index
      %c0_18 = arith.constant 0 : index
      %22 = vector.load %arg7[%c0_17, %c0_18] : memref<128x128xbf16, #tpu.memory_space<vmem>>, vector<128x128xbf16>
      tpu.vector_store %arg7[%c0_17, %c0_18], %21 {strides = array<i32>} : memref<128x128xbf16, #tpu.memory_space<vmem>>, vector<128x128xbf16>,
    } else {
    }
    return
  }
  func.func @transform_0(%arg0: i32, %arg1: i32, %arg2: i32) -> (i32, i32) {
    %c0_i32 = arith.constant 0 : i32
    return %arg0, %arg2 : i32, i32
  }
  func.func @transform_1(%arg0: i32, %arg1: i32, %arg2: i32) -> (i32, i32) {
    %c0_i32 = arith.constant 0 : i32
    return %arg2, %arg1 : i32, i32
  }
  func.func @transform_2(%arg0: i32, %arg1: i32, %arg2: i32) -> (i32, i32) {
    %c0_i32 = arith.constant 0 : i32
    %c0_i32_0 = arith.constant 0 : i32
    return %c0_i32, %arg1 : i32, i32
  }
  func.func @transform_3(%arg0: i32, %arg1: i32, %arg2: i32) -> (i32, i32) {
    %c0_i32 = arith.constant 0 : i32
    %c0_i32_0 = arith.constant 0 : i32
    return %c0_i32, %arg1 : i32, i32
  }
  func.func @transform_4(%arg0: i32, %arg1: i32, %arg2: i32) -> (i32, i32) {
    %c0_i32 = arith.constant 0 : i32
    return %arg0, %arg1 : i32, i32
  }
}

module attributes {stable_mosaic.version = 11 : i64} {
  func.func @_fused_matmul_kernel(%arg0: i32, %arg1: i32, %arg2: i32, %arg3: memref<128x128xbf16, #tpu.memory_space<vmem>>, %arg4: memref<128x128xbf16, #tpu.memory_space<vmem>>, %arg5: memref<1x128xf32, #tpu.memory_space<vmem>>, %arg6: memref<1x128xf32, #tpu.memory_space<vmem>>, %arg7: memref<128x128xbf16, #tpu.memory_space<vmem>>, %arg8: memref<128x128xf32, #tpu.memory_space<vmem>>) attributes {dimension_semantics = [#tpu.dimension_semantics<parallel>, #tpu.dimension_semantics<parallel>, #tpu.dimension_semantics<arbitrary>], iteration_bounds = array<i64: 1, 1, 1>, scalar_prefetch = 0 : i64, scratch_operands = 1 : i64, tpu.core_type = #tpu.core_type<tc>, window_params = [{transform_indices = @transform_0, window_bounds = array<i64: 128, 128>}, {transform_indices = @transform_1, window_bounds = array<i64: 128, 128>}, {transform_indices = @transform_2, window_bounds = array<i64: 1, 128>}, {transform_indices = @transform_3, window_bounds = array<i64: 1, 128>}, {transform_indices = @transform_4, window_bounds = array<i64: 128, 128>}]} {
    %c0_i32 = arith.constant 0 : i32
    %0 = arith.cmpi eq, %arg2, %c0_i32 : i32
    %1 = arith.extui %0 : i1 to i32
    %c0_i32_0 = arith.constant 0 : i32
    %2 = arith.cmpi ne, %1, %c0_i32_0 : i32
    scf.if %2 {
      %cst_10 = arith.constant 0.000000e+00 : f32
      %12 = vector.broadcast %cst_10 : f32 to vector<128x128xf32>
      %c0_11 = arith.constant 0 : index
      %c0_12 = arith.constant 0 : index
      %13 = vector.load %arg8[%c0_11, %c0_12] : memref<128x128xf32, #tpu.memory_space<vmem>>, vector<128x128xf32>
      tpu.vector_store %arg8[%c0_11, %c0_12], %12 {strides = array<i32>} : memref<128x128xf32, #tpu.memory_space<vmem>>, vector<128x128xf32>,
    } else {
    }
    %c0 = arith.constant 0 : index
    %c0_1 = arith.constant 0 : index
    %3 = vector.load %arg8[%c0, %c0_1] : memref<128x128xf32, #tpu.memory_space<vmem>>, vector<128x128xf32>
    %c0_2 = arith.constant 0 : index
    %c0_3 = arith.constant 0 : index
    %4 = vector.load %arg3[%c0_2, %c0_3] : memref<128x128xbf16, #tpu.memory_space<vmem>>, vector<128x128xbf16>
    %c0_4 = arith.constant 0 : index
    %c0_5 = arith.constant 0 : index
    %5 = vector.load %arg4[%c0_4, %c0_5] : memref<128x128xbf16, #tpu.memory_space<vmem>>, vector<128x128xbf16>
    %cst = arith.constant dense<0.000000e+00> : vector<128x128xf32>
    %6 = tpu.matmul %4, %5, %cst {dimension_numbers = #tpu.dot_dimension_numbers<[1], [0], [0], [1], [0, 0, 1, 1], [], []>} : vector<128x128xbf16>, vector<128x128xbf16>, vector<128x128xf32> -> vector<128x128xf32>
    %7 = arith.addf %3, %6 : vector<128x128xf32>
    %c0_6 = arith.constant 0 : index
    %c0_7 = arith.constant 0 : index
    %8 = vector.load %arg8[%c0_6, %c0_7] : memref<128x128xf32, #tpu.memory_space<vmem>>, vector<128x128xf32>
    tpu.vector_store %arg8[%c0_6, %c0_7], %7 {strides = array<i32>} : memref<128x128xf32, #tpu.memory_space<vmem>>, vector<128x128xf32>,
    %c0_i32_8 = arith.constant 0 : i32
    %9 = arith.cmpi eq, %arg2, %c0_i32_8 : i32
    %10 = arith.extui %9 : i1 to i32
    %c0_i32_9 = arith.constant 0 : i32
    %11 = arith.cmpi ne, %10, %c0_i32_9 : i32
    scf.if %11 {
      %c0_10 = arith.constant 0 : index
      %c0_11 = arith.constant 0 : index
      %12 = vector.load %arg8[%c0_10, %c0_11] : memref<128x128xf32, #tpu.memory_space<vmem>>, vector<128x128xf32>
      %c0_12 = arith.constant 0 : index
      %c0_13 = arith.constant 0 : index
      %13 = vector.load %arg5[%c0_12, %c0_13] : memref<1x128xf32, #tpu.memory_space<vmem>>, vector<1x128xf32>
      %14 = vector.broadcast %13 : vector<1x128xf32> to vector<128x128xf32>
      %15 = arith.mulf %12, %14 : vector<128x128xf32>
      %c0_14 = arith.constant 0 : index
      %c0_15 = arith.constant 0 : index
      %16 = vector.load %arg6[%c0_14, %c0_15] : memref<1x128xf32, #tpu.memory_space<vmem>>, vector<1x128xf32>
      %17 = vector.broadcast %16 : vector<1x128xf32> to vector<128x128xf32>
      %18 = arith.addf %15, %17 : vector<128x128xf32>
      %cst_16 = arith.constant 0.000000e+00 : f32
      %19 = vector.broadcast %cst_16 : f32 to vector<128x128xf32>
      %20 = arith.maximumf %18, %19 : vector<128x128xf32>
      %21 = arith.truncf %20 : vector<128x128xf32> to vector<128x128xbf16>
      %c0_17 = arith.constant 0 : index
      %c0_18 = arith.constant 0 : index
      %22 = vector.load %arg7[%c0_17, %c0_18] : memref<128x128xbf16, #tpu.memory_space<vmem>>, vector<128x128xbf16>
      tpu.vector_store %arg7[%c0_17, %c0_18], %21 {strides = array<i32>} : memref<128x128xbf16, #tpu.memory_space<vmem>>, vector<128x128xbf16>,
    } else {
    }
    return
  }
  func.func @transform_0(%arg0: i32, %arg1: i32, %arg2: i32) -> (i32, i32) {
    %c0_i32 = arith.constant 0 : i32
    return %arg0, %arg2 : i32, i32
  }
  func.func @transform_1(%arg0: i32, %arg1: i32, %arg2: i32) -> (i32, i32) {
    %c0_i32 = arith.constant 0 : i32
    return %arg2, %arg1 : i32, i32
  }
  func.func @transform_2(%arg0: i32, %arg1: i32, %arg2: i32) -> (i32, i32) {
    %c0_i32 = arith.constant 0 : i32
    %c0_i32_0 = arith.constant 0 : i32
    return %c0_i32, %arg1 : i32, i32
  }
  func.func @transform_3(%arg0: i32, %arg1: i32, %arg2: i32) -> (i32, i32) {
    %c0_i32 = arith.constant 0 : i32
    %c0_i32_0 = arith.constant 0 : i32
    return %c0_i32, %arg1 : i32, i32
  }
  func.func @transform_4(%arg0: i32, %arg1: i32, %arg2: i32) -> (i32, i32) {
    %c0_i32 = arith.constant 0 : i32
    return %arg0, %arg1 : i32, i32
  }
}

module attributes {stable_mosaic.version = 11 : i64} {
  func.func @_fused_matmul_kernel(%arg0: i32, %arg1: i32, %arg2: i32, %arg3: memref<512x128xbf16, #tpu.memory_space<vmem>>, %arg4: memref<128x128xbf16, #tpu.memory_space<vmem>>, %arg5: memref<1x128xf32, #tpu.memory_space<vmem>>, %arg6: memref<1x128xf32, #tpu.memory_space<vmem>>, %arg7: memref<512x128xbf16, #tpu.memory_space<vmem>>, %arg8: memref<512x128xf32, #tpu.memory_space<vmem>>) attributes {dimension_semantics = [#tpu.dimension_semantics<parallel>, #tpu.dimension_semantics<parallel>, #tpu.dimension_semantics<arbitrary>], iteration_bounds = array<i64: 1, 1, 1>, scalar_prefetch = 0 : i64, scratch_operands = 1 : i64, tpu.core_type = #tpu.core_type<tc>, window_params = [{transform_indices = @transform_0, window_bounds = array<i64: 512, 128>}, {transform_indices = @transform_1, window_bounds = array<i64: 128, 128>}, {transform_indices = @transform_2, window_bounds = array<i64: 1, 128>}, {transform_indices = @transform_3, window_bounds = array<i64: 1, 128>}, {transform_indices = @transform_4, window_bounds = array<i64: 512, 128>}]} {
    %c0_i32 = arith.constant 0 : i32
    %0 = arith.cmpi eq, %arg2, %c0_i32 : i32
    %1 = arith.extui %0 : i1 to i32
    %c0_i32_0 = arith.constant 0 : i32
    %2 = arith.cmpi ne, %1, %c0_i32_0 : i32
    scf.if %2 {
      %cst_10 = arith.constant 0.000000e+00 : f32
      %12 = vector.broadcast %cst_10 : f32 to vector<512x128xf32>
      %c0_11 = arith.constant 0 : index
      %c0_12 = arith.constant 0 : index
      %13 = vector.load %arg8[%c0_11, %c0_12] : memref<512x128xf32, #tpu.memory_space<vmem>>, vector<512x128xf32>
      tpu.vector_store %arg8[%c0_11, %c0_12], %12 {strides = array<i32>} : memref<512x128xf32, #tpu.memory_space<vmem>>, vector<512x128xf32>,
    } else {
    }
    %c0 = arith.constant 0 : index
    %c0_1 = arith.constant 0 : index
    %3 = vector.load %arg8[%c0, %c0_1] : memref<512x128xf32, #tpu.memory_space<vmem>>, vector<512x128xf32>
    %c0_2 = arith.constant 0 : index
    %c0_3 = arith.constant 0 : index
    %4 = vector.load %arg3[%c0_2, %c0_3] : memref<512x128xbf16, #tpu.memory_space<vmem>>, vector<512x128xbf16>
    %c0_4 = arith.constant 0 : index
    %c0_5 = arith.constant 0 : index
    %5 = vector.load %arg4[%c0_4, %c0_5] : memref<128x128xbf16, #tpu.memory_space<vmem>>, vector<128x128xbf16>
    %cst = arith.constant dense<0.000000e+00> : vector<512x128xf32>
    %6 = tpu.matmul %4, %5, %cst {dimension_numbers = #tpu.dot_dimension_numbers<[1], [0], [0], [1], [0, 0, 1, 1], [], []>} : vector<512x128xbf16>, vector<128x128xbf16>, vector<512x128xf32> -> vector<512x128xf32>
    %7 = arith.addf %3, %6 : vector<512x128xf32>
    %c0_6 = arith.constant 0 : index
    %c0_7 = arith.constant 0 : index
    %8 = vector.load %arg8[%c0_6, %c0_7] : memref<512x128xf32, #tpu.memory_space<vmem>>, vector<512x128xf32>
    tpu.vector_store %arg8[%c0_6, %c0_7], %7 {strides = array<i32>} : memref<512x128xf32, #tpu.memory_space<vmem>>, vector<512x128xf32>,
    %c0_i32_8 = arith.constant 0 : i32
    %9 = arith.cmpi eq, %arg2, %c0_i32_8 : i32
    %10 = arith.extui %9 : i1 to i32
    %c0_i32_9 = arith.constant 0 : i32
    %11 = arith.cmpi ne, %10, %c0_i32_9 : i32
    scf.if %11 {
      %c0_10 = arith.constant 0 : index
      %c0_11 = arith.constant 0 : index
      %12 = vector.load %arg8[%c0_10, %c0_11] : memref<512x128xf32, #tpu.memory_space<vmem>>, vector<512x128xf32>
      %c0_12 = arith.constant 0 : index
      %c0_13 = arith.constant 0 : index
      %13 = vector.load %arg5[%c0_12, %c0_13] : memref<1x128xf32, #tpu.memory_space<vmem>>, vector<1x128xf32>
      %14 = vector.broadcast %13 : vector<1x128xf32> to vector<512x128xf32>
      %15 = arith.mulf %12, %14 : vector<512x128xf32>
      %c0_14 = arith.constant 0 : index
      %c0_15 = arith.constant 0 : index
      %16 = vector.load %arg6[%c0_14, %c0_15] : memref<1x128xf32, #tpu.memory_space<vmem>>, vector<1x128xf32>
      %17 = vector.broadcast %16 : vector<1x128xf32> to vector<512x128xf32>
      %18 = arith.addf %15, %17 : vector<512x128xf32>
      %cst_16 = arith.constant 0.000000e+00 : f32
      %19 = vector.broadcast %cst_16 : f32 to vector<512x128xf32>
      %20 = arith.maximumf %18, %19 : vector<512x128xf32>
      %21 = arith.truncf %20 : vector<512x128xf32> to vector<512x128xbf16>
      %c0_17 = arith.constant 0 : index
      %c0_18 = arith.constant 0 : index
      %22 = vector.load %arg7[%c0_17, %c0_18] : memref<512x128xbf16, #tpu.memory_space<vmem>>, vector<512x128xbf16>
      tpu.vector_store %arg7[%c0_17, %c0_18], %21 {strides = array<i32>} : memref<512x128xbf16, #tpu.memory_space<vmem>>, vector<512x128xbf16>,
    } else {
    }
    return
  }
  func.func @transform_0(%arg0: i32, %arg1: i32, %arg2: i32) -> (i32, i32) {
    %c0_i32 = arith.constant 0 : i32
    return %arg0, %arg2 : i32, i32
  }
  func.func @transform_1(%arg0: i32, %arg1: i32, %arg2: i32) -> (i32, i32) {
    %c0_i32 = arith.constant 0 : i32
    return %arg2, %arg1 : i32, i32
  }
  func.func @transform_2(%arg0: i32, %arg1: i32, %arg2: i32) -> (i32, i32) {
    %c0_i32 = arith.constant 0 : i32
    %c0_i32_0 = arith.constant 0 : i32
    return %c0_i32, %arg1 : i32, i32
  }
  func.func @transform_3(%arg0: i32, %arg1: i32, %arg2: i32) -> (i32, i32) {
    %c0_i32 = arith.constant 0 : i32
    %c0_i32_0 = arith.constant 0 : i32
    return %c0_i32, %arg1 : i32, i32
  }
  func.func @transform_4(%arg0: i32, %arg1: i32, %arg2: i32) -> (i32, i32) {
    %c0_i32 = arith.constant 0 : i32
    return %arg0, %arg1 : i32, i32
  }
}

module attributes {stable_mosaic.version = 11 : i64} {
  func.func @_fused_matmul_kernel(%arg0: i32, %arg1: i32, %arg2: i32, %arg3: memref<512x256xbf16, #tpu.memory_space<vmem>>, %arg4: memref<256x128xbf16, #tpu.memory_space<vmem>>, %arg5: memref<1x128xf32, #tpu.memory_space<vmem>>, %arg6: memref<1x128xf32, #tpu.memory_space<vmem>>, %arg7: memref<512x128xf32, #tpu.memory_space<vmem>>, %arg8: memref<512x128xf32, #tpu.memory_space<vmem>>) attributes {dimension_semantics = [#tpu.dimension_semantics<parallel>, #tpu.dimension_semantics<parallel>, #tpu.dimension_semantics<arbitrary>], iteration_bounds = array<i64: 1, 1, 1>, scalar_prefetch = 0 : i64, scratch_operands = 1 : i64, tpu.core_type = #tpu.core_type<tc>, window_params = [{transform_indices = @transform_0, window_bounds = array<i64: 512, 256>}, {transform_indices = @transform_1, window_bounds = array<i64: 256, 128>}, {transform_indices = @transform_2, window_bounds = array<i64: 1, 128>}, {transform_indices = @transform_3, window_bounds = array<i64: 1, 128>}, {transform_indices = @transform_4, window_bounds = array<i64: 512, 128>}]} {
    %c0_i32 = arith.constant 0 : i32
    %0 = arith.cmpi eq, %arg2, %c0_i32 : i32
    %1 = arith.extui %0 : i1 to i32
    %c0_i32_0 = arith.constant 0 : i32
    %2 = arith.cmpi ne, %1, %c0_i32_0 : i32
    scf.if %2 {
      %cst_10 = arith.constant 0.000000e+00 : f32
      %12 = vector.broadcast %cst_10 : f32 to vector<512x128xf32>
      %c0_11 = arith.constant 0 : index
      %c0_12 = arith.constant 0 : index
      %13 = vector.load %arg8[%c0_11, %c0_12] : memref<512x128xf32, #tpu.memory_space<vmem>>, vector<512x128xf32>
      tpu.vector_store %arg8[%c0_11, %c0_12], %12 {strides = array<i32>} : memref<512x128xf32, #tpu.memory_space<vmem>>, vector<512x128xf32>,
    } else {
    }
    %c0 = arith.constant 0 : index
    %c0_1 = arith.constant 0 : index
    %3 = vector.load %arg8[%c0, %c0_1] : memref<512x128xf32, #tpu.memory_space<vmem>>, vector<512x128xf32>
    %c0_2 = arith.constant 0 : index
    %c0_3 = arith.constant 0 : index
    %4 = vector.load %arg3[%c0_2, %c0_3] : memref<512x256xbf16, #tpu.memory_space<vmem>>, vector<512x256xbf16>
    %c0_4 = arith.constant 0 : index
    %c0_5 = arith.constant 0 : index
    %5 = vector.load %arg4[%c0_4, %c0_5] : memref<256x128xbf16, #tpu.memory_space<vmem>>, vector<256x128xbf16>
    %cst = arith.constant dense<0.000000e+00> : vector<512x128xf32>
    %6 = tpu.matmul %4, %5, %cst {dimension_numbers = #tpu.dot_dimension_numbers<[1], [0], [0], [1], [0, 0, 1, 1], [], []>} : vector<512x256xbf16>, vector<256x128xbf16>, vector<512x128xf32> -> vector<512x128xf32>
    %7 = arith.addf %3, %6 : vector<512x128xf32>
    %c0_6 = arith.constant 0 : index
    %c0_7 = arith.constant 0 : index
    %8 = vector.load %arg8[%c0_6, %c0_7] : memref<512x128xf32, #tpu.memory_space<vmem>>, vector<512x128xf32>
    tpu.vector_store %arg8[%c0_6, %c0_7], %7 {strides = array<i32>} : memref<512x128xf32, #tpu.memory_space<vmem>>, vector<512x128xf32>,
    %c0_i32_8 = arith.constant 0 : i32
    %9 = arith.cmpi eq, %arg2, %c0_i32_8 : i32
    %10 = arith.extui %9 : i1 to i32
    %c0_i32_9 = arith.constant 0 : i32
    %11 = arith.cmpi ne, %10, %c0_i32_9 : i32
    scf.if %11 {
      %c0_10 = arith.constant 0 : index
      %c0_11 = arith.constant 0 : index
      %12 = vector.load %arg8[%c0_10, %c0_11] : memref<512x128xf32, #tpu.memory_space<vmem>>, vector<512x128xf32>
      %c0_12 = arith.constant 0 : index
      %c0_13 = arith.constant 0 : index
      %13 = vector.load %arg5[%c0_12, %c0_13] : memref<1x128xf32, #tpu.memory_space<vmem>>, vector<1x128xf32>
      %14 = vector.broadcast %13 : vector<1x128xf32> to vector<512x128xf32>
      %15 = arith.mulf %12, %14 : vector<512x128xf32>
      %c0_14 = arith.constant 0 : index
      %c0_15 = arith.constant 0 : index
      %16 = vector.load %arg6[%c0_14, %c0_15] : memref<1x128xf32, #tpu.memory_space<vmem>>, vector<1x128xf32>
      %17 = vector.broadcast %16 : vector<1x128xf32> to vector<512x128xf32>
      %18 = arith.addf %15, %17 : vector<512x128xf32>
      %19 = math.tanh %18 : vector<512x128xf32>
      %c0_16 = arith.constant 0 : index
      %c0_17 = arith.constant 0 : index
      %20 = vector.load %arg7[%c0_16, %c0_17] : memref<512x128xf32, #tpu.memory_space<vmem>>, vector<512x128xf32>
      tpu.vector_store %arg7[%c0_16, %c0_17], %19 {strides = array<i32>} : memref<512x128xf32, #tpu.memory_space<vmem>>, vector<512x128xf32>,
    } else {
    }
    return
  }
  func.func @transform_0(%arg0: i32, %arg1: i32, %arg2: i32) -> (i32, i32) {
    %c0_i32 = arith.constant 0 : i32
    return %arg0, %arg2 : i32, i32
  }
  func.func @transform_1(%arg0: i32, %arg1: i32, %arg2: i32) -> (i32, i32) {
    %c0_i32 = arith.constant 0 : i32
    return %arg2, %arg1 : i32, i32
  }
  func.func @transform_2(%arg0: i32, %arg1: i32, %arg2: i32) -> (i32, i32) {
    %c0_i32 = arith.constant 0 : i32
    %c0_i32_0 = arith.constant 0 : i32
    return %c0_i32, %arg1 : i32, i32
  }
  func.func @transform_3(%arg0: i32, %arg1: i32, %arg2: i32) -> (i32, i32) {
    %c0_i32 = arith.constant 0 : i32
    %c0_i32_0 = arith.constant 0 : i32
    return %c0_i32, %arg1 : i32, i32
  }
  func.func @transform_4(%arg0: i32, %arg1: i32, %arg2: i32) -> (i32, i32) {
    %c0_i32 = arith.constant 0 : i32
    return %arg0, %arg1 : i32, i32
  }
}

</mosaic_0001>

<bundles_post_ra>
// kernel: fwd.30
= control target key start
LH: loop header
LB: loop body
LE: loop exit
PB: predicated region body
PF: predicated region fallthrough
CT: control target
= control target key end

     0   :  { %s2626_s1 = inlined_call_operand.vmem [shape: bf16[128,128], index: 1, kind: input, shape index: {}]   ;;  %s2627_s0 = inlined_call_operand.vmem [shape: bf16[512,128], index: 0, kind: input, shape index: {}]   ;;  %s2628_s2 = inlined_call_operand.vmem [shape: f32[1,128], index: 2, kind: input, shape index: {}]   ;;  %s2629_s3 = inlined_call_operand.vmem [shape: f32[1,128], index: 3, kind: input, shape index: {}]   ;;  %s2630_s4 = inlined_call_operand.vmem [shape: bf16[512,128], index: 4, kind: output, shape index: {}]  }
   0x1   :  { %v2109_v0 = vld [vmem:[%s2626_s1] sm:$0xff]   ;;  %v2110_v1 = vld [vmem:[%s2626_s1 + $0x8] sm:$0xff]   ;;  %v2111_v2 = vld [vmem:[%s2626_s1 + $0x10] sm:$0xff]  }
   0x2   :  { %2013 = vmatprep.subr.bf16.mxu0 %v2109_v0  ;;  %2093 = vmatprep.subr.bf16.mxu1 %v2109_v0  ;;  %v2112_v3 = vld [vmem:[%s2626_s1 + $0x18] sm:$0xff]   ;;  %v2117_v4 = vld [vmem:[%s2627_s0] sm:$0xff]   ;;  %v2114_v7 = vld [vmem:[%s2626_s1 + $0x28] sm:$0xff]  }
   0x3   :  { %2014 = vmatpush3.bf16.msra.mxu0 %v2109_v0  ;;  %2101 = vmatpush3.bf16.msra.mxu1 %v2109_v0  ;;  %v2118_v5 = vld [vmem:[%s2627_s0 + $0x80] sm:$0xff]   ;;  %v2115_v8 = vld [vmem:[%s2626_s1 + $0x30] sm:$0xff]   ;;  %v2116_v9 = vld [vmem:[%s2626_s1 + $0x38] sm:$0xff]  }
   0x4   :  { %2015 = vmatprep.subr.bf16.mxu0 %v2110_v1  ;;  %2094 = vmatprep.subr.bf16.mxu1 %v2110_v1  ;;  %v2113_v6 = vld [vmem:[%s2626_s1 + $0x20] sm:$0xff]   ;;  %v2119_v10 = vld [vmem:[%s2627_s0 + $0x8] sm:$0xff]   ;;  %v2121_v12 = vld [vmem:[%s2627_s0 + $0x10] sm:$0xff]  }
   0x5   :  { %2029 = vmatprep.mubr.bf16.mxu0 %v2117_v4  ;;  %2061 = vmatprep.mubr.bf16.mxu1 %v2118_v5  ;;  %v2120_v11 = vld [vmem:[%s2627_s0 + $0x88] sm:$0xff]   ;;  %v2122_v13 = vld [vmem:[%s2627_s0 + $0x90] sm:$0xff]   ;;  %v2123_v14 = vld [vmem:[%s2627_s0 + $0x18] sm:$0xff]  }
   0x6   :  { %v2124_v15 = vld [vmem:[%s2627_s0 + $0x98] sm:$0xff]   ;;  %v2125_v16 = vld [vmem:[%s2627_s0 + $0x20] sm:$0xff]   ;;  %v2127_v18 = vld [vmem:[%s2627_s0 + $0x28] sm:$0xff]  }
   0x7   :  { %2016 = vmatpush3.bf16.msra.mxu0 %v2110_v1  ;;  %2102 = vmatpush3.bf16.msra.mxu1 %v2110_v1  ;;  %v2126_v17 = vld [vmem:[%s2627_s0 + $0xa0] sm:$0xff]   ;;  %v2128_v19 = vld [vmem:[%s2627_s0 + $0xa8] sm:$0xff]   ;;  %v2129_v20 = vld [vmem:[%s2627_s0 + $0x30] sm:$0xff]  }
   0x8   :  { %2017 = vmatprep.subr.bf16.mxu0 %v2111_v2  ;;  %2095 = vmatprep.subr.bf16.mxu1 %v2111_v2  ;;  %v2130_v21 = vld [vmem:[%s2627_s0 + $0xb0] sm:$0xff]   ;;  %v2131_v22 = vld [vmem:[%s2627_s0 + $0x38] sm:$0xff]   ;;  %v2133_v24 = vld [vmem:[%s2627_s0 + $0x40] sm:$0xff]  }
   0x9   :  { %v2132_v23 = vld [vmem:[%s2627_s0 + $0xb8] sm:$0xff]   ;;  %v2134_v25 = vld [vmem:[%s2627_s0 + $0xc0] sm:$0xff]   ;;  %v2135_v26 = vld [vmem:[%s2627_s0 + $0x48] sm:$0xff]  }
   0xa   :  { %v2136_v27 = vld [vmem:[%s2627_s0 + $0xc8] sm:$0xff]   ;;  %v2137_v28 = vld [vmem:[%s2627_s0 + $0x50] sm:$0xff]   ;;  %v2139_v30 = vld [vmem:[%s2627_s0 + $0x58] sm:$0xff]  }
   0xb   :  { %2018 = vmatpush3.bf16.msra.mxu0 %v2111_v2  ;;  %2103 = vmatpush3.bf16.msra.mxu1 %v2111_v2  ;;  %v2138_v29 = vld [vmem:[%s2627_s0 + $0xd0] sm:$0xff]   ;;  %v2140_v31 = vld [vmem:[%s2627_s0 + $0xd8] sm:$0xff]   ;;  %v2141_v32 = vld [vmem:[%s2627_s0 + $0x60] sm:$0xff]  }
   0xc   :  { %2019 = vmatprep.subr.bf16.mxu0 %v2112_v3  ;;  %2096 = vmatprep.subr.bf16.mxu1 %v2112_v3  ;;  %v2142_v33 = vld [vmem:[%s2627_s0 + $0xe0] sm:$0xff]   ;;  %v2143_v34 = vld [vmem:[%s2627_s0 + $0x68] sm:$0xff]   ;;  %v2145_v36 = vld [vmem:[%s2627_s0 + $0x70] sm:$0xff]  }
   0xd   :  { %v2144_v35 = vld [vmem:[%s2627_s0 + $0xe8] sm:$0xff]   ;;  %v2146_v37 = vld [vmem:[%s2627_s0 + $0xf0] sm:$0xff]   ;;  %v2147_v38 = vld [vmem:[%s2627_s0 + $0x78] sm:$0xff]  }
   0xe   :  { %v2148_v39 = vld [vmem:[%s2627_s0 + $0xf8] sm:$0xff]   ;;  %v2297_v40 = vld [vmem:[%s2628_s2] ss:$0 sm:$0xff] }
   0xf   :  { %2020 = vmatpush3.bf16.msra.mxu0 %v2112_v3  ;;  %2104 = vmatpush3.bf16.msra.mxu1 %v2112_v3  ;;  %v2302_v42 = vld [vmem:[%s2629_s3] ss:$0 sm:$0xff] }
  0x10   :  { %2021 = vmatprep.subr.bf16.mxu0 %v2113_v6  ;;  %2097 = vmatprep.subr.bf16.mxu1 %v2113_v6 }
  0x13   :  { %2022 = vmatpush3.bf16.msra.mxu0 %v2113_v6  ;;  %2105 = vmatpush3.bf16.msra.mxu1 %v2113_v6 }
  0x14   :  { %2023 = vmatprep.subr.bf16.mxu0 %v2114_v7  ;;  %2098 = vmatprep.subr.bf16.mxu1 %v2114_v7 }
  0x17   :  { %2024 = vmatpush3.bf16.msra.mxu0 %v2114_v7  ;;  %2106 = vmatpush3.bf16.msra.mxu1 %v2114_v7 }
  0x18   :  { %2025 = vmatprep.subr.bf16.mxu0 %v2115_v8  ;;  %2099 = vmatprep.subr.bf16.mxu1 %v2115_v8 }
  0x1b   :  { %2026 = vmatpush3.bf16.msra.mxu0 %v2115_v8  ;;  %2107 = vmatpush3.bf16.msra.mxu1 %v2115_v8 }
  0x1c   :  { %2027 = vmatprep.subr.bf16.mxu0 %v2116_v9  ;;  %2100 = vmatprep.subr.bf16.mxu1 %v2116_v9 }
  0x1f   :  { %2028 = vmatpush3.bf16.msra.mxu0 %v2116_v9  ;;  %2108 = vmatpush3.bf16.msra.mxu1 %v2116_v9 }
  0x22   :  { %2030 = vmatmul.mubr.bf16.vlgmr.msra.gmra.mrb[0].mxu0 %v2119_v10  ;;  %2062 = vmatmul.mubr.bf16.vlgmr.msra.gmra.mrb[0].mxu1 %v2120_v11 }
  0x23   :  { %2033 = vmatprep.mubr.bf16.mxu0 %v2121_v12  ;;  %2065 = vmatprep.mubr.bf16.mxu1 %v2122_v13 }
  0x2a   :  { %2034 = vmatmul.mubr.bf16.gmra.mrb[4].mxu0 %v2123_v14  ;;  %2066 = vmatmul.mubr.bf16.gmra.mrb[4].mxu1 %v2124_v15 }
  0x2b   :  { %2037 = vmatprep.mubr.bf16.mxu0 %v2125_v16  ;;  %2069 = vmatprep.mubr.bf16.mxu1 %v2126_v17 }
  0x32   :  { %2038 = vmatmul.mubr.bf16.gmra.mrb[8].mxu0 %v2127_v18  ;;  %2070 = vmatmul.mubr.bf16.gmra.mrb[8].mxu1 %v2128_v19 }
  0x33   :  { %2041 = vmatprep.mubr.bf16.mxu0 %v2129_v20  ;;  %2073 = vmatprep.mubr.bf16.mxu1 %v2130_v21 }
  0x3a   :  { %2042 = vmatmul.mubr.bf16.gmra.mrb[12].mxu0 %v2131_v22  ;;  %2074 = vmatmul.mubr.bf16.gmra.mrb[12].mxu1 %v2132_v23 }
  0x3b   :  { %2045 = vmatprep.mubr.bf16.mxu0 %v2133_v24  ;;  %2077 = vmatprep.mubr.bf16.mxu1 %v2134_v25 }
  0x42   :  { %2046 = vmatmul.mubr.bf16.gmra.mrb[16].mxu0 %v2135_v26  ;;  %2078 = vmatmul.mubr.bf16.gmra.mrb[16].mxu1 %v2136_v27 }
  0x43   :  { %2049 = vmatprep.mubr.bf16.mxu0 %v2137_v28  ;;  %2081 = vmatprep.mubr.bf16.mxu1 %v2138_v29 }
  0x4a   :  { %2050 = vmatmul.mubr.bf16.gmra.mrb[20].mxu0 %v2139_v30  ;;  %2082 = vmatmul.mubr.bf16.gmra.mrb[20].mxu1 %v2140_v31 }
  0x4b   :  { %2053 = vmatprep.mubr.bf16.mxu0 %v2141_v32  ;;  %2085 = vmatprep.mubr.bf16.mxu1 %v2142_v33 }
  0x52   :  { %2054 = vmatmul.mubr.bf16.gmra.mrb[24].mxu0 %v2143_v34  ;;  %2086 = vmatmul.mubr.bf16.gmra.mrb[24].mxu1 %v2144_v35 }
  0x53   :  { %2057 = vmatprep.mubr.bf16.mxu0 %v2145_v36  ;;  %2089 = vmatprep.mubr.bf16.mxu1 %v2146_v37 }
  0x5a   :  { %2058 = vmatmul.mubr.bf16.gmra.mrb[28].mxu0 %v2147_v38  ;;  %2090 = vmatmul.mubr.bf16.gmra.mrb[28].mxu1 %v2148_v39 }
  0xf5   :  { %v2031_v41 = vpop.f32.mrb[0].mxu0  ;;  %v2063_v43 = vpop.f32.mrb[0].mxu1 }
  0xf6   :  { %v963_v44 = vmul.f32 %v2031_v41, %v2297_v40  ;;  %v995_v45 = vmul.f32 %v2063_v43, %v2297_v40  ;;  %v504_v46 = vpop.f32.mrb[1].mxu0  ;;  %v632_v47 = vpop.f32.mrb[1].mxu1 }
  0xf7   :  { %v961_v48 = vmul.f32 %v2297_v40, %v504_v46  ;;  %v993_v49 = vmul.f32 %v2297_v40, %v632_v47  ;;  %v2032_v50 = vpop.f32.mrb[2].mxu0  ;;  %v2064_v51 = vpop.f32.mrb[2].mxu1 }
  0xf8   :  { %v1034_v52 = vadd.f32 %v2302_v42, %v963_v44  ;;  %v1066_v53 = vadd.f32 %v2302_v42, %v995_v45  ;;  %v964_v54 = vmul.f32 %v2032_v50, %v2297_v40  ;;  %v996_v55 = vmul.f32 %v2064_v51, %v2297_v40  ;;  %v507_v56 = vpop.f32.mrb[3].mxu0  ;;  %v635_v57 = vpop.f32.mrb[3].mxu1 }
  0xf9   :  { %v1032_v58 = vadd.f32 %v2302_v42, %v961_v48  ;;  %v1064_v59 = vadd.f32 %v2302_v42, %v993_v49  ;;  %v962_v60 = vmul.f32 %v2297_v40, %v507_v56  ;;  %v994_v61 = vmul.f32 %v2297_v40, %v635_v57 }
  0xfa   :  { %vm1098_vm0 = vcmp.gt.f32.partialorder %v1034_v52, 0.0  ;;  %v1162_v62 = vmul.f32 0.2, %v1034_v52  ;;  %vm1130_vm1 = vcmp.gt.f32.partialorder %v1066_v53, 0.0  ;;  %v1194_v63 = vmul.f32 0.2, %v1066_v53 }
  0xfb   :  { %vm1096_vm2 = vcmp.gt.f32.partialorder %v1032_v58, 0.0  ;;  %v1160_v0 = vmul.f32 0.2, %v1032_v58  ;;  %vm1128_vm3 = vcmp.gt.f32.partialorder %v1064_v59, 0.0  ;;  %v1192_v1 = vmul.f32 0.2, %v1064_v59 }
  0xfc   :  { %v1226_v2 = vsel %vm1098_vm0, %v1034_v52, %v1162_v62  ;;  %v1258_v3 = vsel %vm1130_vm1, %v1066_v53, %v1194_v63  ;;  %v1035_v4 = vadd.f32 %v2302_v42, %v964_v54  ;;  %v1067_v5 = vadd.f32 %v2302_v42, %v996_v55 }
  0xfd   :  { %v1224_v6 = vsel %vm1096_vm2, %v1032_v58, %v1160_v0  ;;  %v1256_v7 = vsel %vm1128_vm3, %v1064_v59, %v1192_v1  ;;  %v1033_v8 = vadd.f32 %v2302_v42, %v962_v60  ;;  %v1065_v9 = vadd.f32 %v2302_v42, %v994_v61  ;;  %v2035_v10 = vpop.f32.mrb[4].mxu0  ;;  %v2067_v11 = vpop.f32.mrb[4].mxu1 }
  0xfe   :  { %vm1099_vm4 = vcmp.gt.f32.partialorder %v1035_v4, 0.0  ;;  %v1163_v12 = vmul.f32 0.2, %v1035_v4  ;;  %vm1131_vm5 = vcmp.gt.f32.partialorder %v1067_v5, 0.0  ;;  %v1195_v13 = vmul.f32 0.2, %v1067_v5 }
  0xff   :  { %vm1097_vm6 = vcmp.gt.f32.partialorder %v1033_v8, 0.0  ;;  %v1161_v14 = vmul.f32 0.2, %v1033_v8  ;;  %vm1129_vm7 = vcmp.gt.f32.partialorder %v1065_v9, 0.0  ;;  %v1193_v15 = vmul.f32 0.2, %v1065_v9 }
 0x100   :  { %v1227_v16 = vsel %vm1099_vm4, %v1035_v4, %v1163_v12  ;;  %v1259_v17 = vsel %vm1131_vm5, %v1067_v5, %v1195_v13  ;;  %v967_v18 = vmul.f32 %v2035_v10, %v2297_v40  ;;  %v999_v19 = vmul.f32 %v2067_v11, %v2297_v40  ;;  %v520_v20 = vpop.f32.mrb[5].mxu0  ;;  %v648_v21 = vpop.f32.mrb[5].mxu1 }
 0x101   :  { %v1790_v22 = vpack.c.bf16 %v1227_v16, %v1226_v2  ;;  %v1870_v23 = vpack.c.bf16 %v1259_v17, %v1258_v3  ;;  %v1225_v24 = vsel %vm1097_vm6, %v1033_v8, %v1161_v14  ;;  %v1257_v25 = vsel %vm1129_vm7, %v1065_v9, %v1193_v15  ;;  %v2036_v26 = vpop.f32.mrb[6].mxu0  ;;  %v2068_v27 = vpop.f32.mrb[6].mxu1 }
 0x102   :  { %v1785_v28 = vpack.c.bf16 %v1225_v24, %v1224_v6  ;;  %v1865_v29 = vpack.c.bf16 %v1257_v25, %v1256_v7  ;;  %v1038_v30 = vadd.f32 %v2302_v42, %v967_v18  ;;  %v1070_v31 = vadd.f32 %v2302_v42, %v999_v19  ;;  %v523_v32 = vpop.f32.mrb[7].mxu0  ;;  %v651_v33 = vpop.f32.mrb[7].mxu1 }
 0x103   :  { %1942 = vst [vmem:[%s2630_s4 + $0x8] sm:$0xff] %v1790_v22   ;;  %1958 = vst [vmem:[%s2630_s4 + $0x88] sm:$0xff] %v1870_v23   ;;  %v965_v34 = vmul.f32 %v2297_v40, %v520_v20  ;;  %v997_v35 = vmul.f32 %v2297_v40, %v648_v21  ;;  %v968_v36 = vmul.f32 %v2036_v26, %v2297_v40 }
 0x104   :  { %v1000_v37 = vmul.f32 %v2068_v27, %v2297_v40  ;;  %1786 = vst [vmem:[%s2630_s4] sm:$0xff] %v1785_v28   ;;  %1957 = vst [vmem:[%s2630_s4 + $0x80] sm:$0xff] %v1865_v29   ;;  %vm1102_vm8 = vcmp.gt.f32.partialorder %v1038_v30, 0.0  ;;  %v1166_v38 = vmul.f32 0.2, %v1038_v30  ;;  %vm1134_vm9 = vcmp.gt.f32.partialorder %v1070_v31, 0.0 }
 0x105   :  { %v1198_v39 = vmul.f32 0.2, %v1070_v31  ;;  %v1036_v41 = vadd.f32 %v2302_v42, %v965_v34  ;;  %v1068_v43 = vadd.f32 %v2302_v42, %v997_v35  ;;  %v1039_v44 = vadd.f32 %v2302_v42, %v968_v36  ;;  %v2039_v46 = vpop.f32.mrb[8].mxu0  ;;  %v2071_v47 = vpop.f32.mrb[8].mxu1 }
 0x106   :  { %v1071_v45 = vadd.f32 %v2302_v42, %v1000_v37  ;;  %v1230_v48 = vsel %vm1102_vm8, %v1038_v30, %v1166_v38  ;;  %v966_v50 = vmul.f32 %v2297_v40, %v523_v32  ;;  %v998_v51 = vmul.f32 %v2297_v40, %v651_v33  ;;  %v536_v52 = vpop.f32.mrb[9].mxu0  ;;  %v664_v53 = vpop.f32.mrb[9].mxu1 }
 0x107   :  { %v1262_v49 = vsel %vm1134_vm9, %v1070_v31, %v1198_v39  ;;  %vm1100_vm10 = vcmp.gt.f32.partialorder %v1036_v41, 0.0  ;;  %v1164_v54 = vmul.f32 0.2, %v1036_v41  ;;  %vm1132_vm11 = vcmp.gt.f32.partialorder %v1068_v43, 0.0  ;;  %v2040_v62 = vpop.f32.mrb[10].mxu0  ;;  %v2072_v63 = vpop.f32.mrb[10].mxu1 }
 0x108   :  { %v1196_v55 = vmul.f32 0.2, %v1068_v43  ;;  %vm1103_vm12 = vcmp.gt.f32.partialorder %v1039_v44, 0.0  ;;  %v1167_v56 = vmul.f32 0.2, %v1039_v44  ;;  %vm1135_vm13 = vcmp.gt.f32.partialorder %v1071_v45, 0.0 }
 0x109   :  { %v1199_v57 = vmul.f32 0.2, %v1071_v45  ;;  %v1228_v58 = vsel %vm1100_vm10, %v1036_v41, %v1164_v54  ;;  %v1037_v60 = vadd.f32 %v2302_v42, %v966_v50  ;;  %v1069_v61 = vadd.f32 %v2302_v42, %v998_v51  ;;  %v539_v4 = vpop.f32.mrb[11].mxu0  ;;  %v667_v5 = vpop.f32.mrb[11].mxu1 }
 0x10a   :  { %v1260_v59 = vsel %vm1132_vm11, %v1068_v43, %v1196_v55  ;;  %v1231_v0 = vsel %vm1103_vm12, %v1039_v44, %v1167_v56  ;;  %v971_v2 = vmul.f32 %v2039_v46, %v2297_v40  ;;  %v1003_v3 = vmul.f32 %v2071_v47, %v2297_v40 }
 0x10b   :  { %v1263_v1 = vsel %vm1135_vm13, %v1071_v45, %v1199_v57  ;;  %v1800_v6 = vpack.c.bf16 %v1231_v0, %v1230_v48  ;;  %vm1101_vm14 = vcmp.gt.f32.partialorder %v1037_v60, 0.0  ;;  %v1165_v8 = vmul.f32 0.2, %v1037_v60 }
 0x10c   :  { %v1880_v7 = vpack.c.bf16 %v1263_v1, %v1262_v49  ;;  %vm1133_vm15 = vcmp.gt.f32.partialorder %v1069_v61, 0.0  ;;  %v1197_v9 = vmul.f32 0.2, %v1069_v61  ;;  %v1042_v10 = vadd.f32 %v2302_v42, %v971_v2 }
 0x10d   :  { %v1074_v11 = vadd.f32 %v2302_v42, %v1003_v3  ;;  %1944 = vst [vmem:[%s2630_s4 + $0x18] sm:$0xff] %v1800_v6   ;;  %v1229_v12 = vsel %vm1101_vm14, %v1037_v60, %v1165_v8  ;;  %v969_v13 = vmul.f32 %v2297_v40, %v536_v52  ;;  %v1001_v14 = vmul.f32 %v2297_v40, %v664_v53  ;;  %v2043_v16 = vpop.f32.mrb[12].mxu0  ;;  %v2075_v17 = vpop.f32.mrb[12].mxu1 }
 0x10e   :  { %1960 = vst [vmem:[%s2630_s4 + $0x98] sm:$0xff] %v1880_v7   ;;  %v972_v15 = vmul.f32 %v2040_v62, %v2297_v40  ;;  %v1795_v18 = vpack.c.bf16 %v1229_v12, %v1228_v58  ;;  %v1261_v19 = vsel %vm1133_vm15, %v1069_v61, %v1197_v9  ;;  %vm1106_vm0 = vcmp.gt.f32.partialorder %v1042_v10, 0.0  ;;  %v552_v21 = vpop.f32.mrb[13].mxu0  ;;  %v680_v22 = vpop.f32.mrb[13].mxu1 }
 0x10f   :  { %v1170_v20 = vmul.f32 0.2, %v1042_v10  ;;  %v1875_v23 = vpack.c.bf16 %v1261_v19, %v1260_v59  ;;  %vm1138_vm1 = vcmp.gt.f32.partialorder %v1074_v11, 0.0  ;;  %v1202_v24 = vmul.f32 0.2, %v1074_v11  ;;  %v2044_v26 = vpop.f32.mrb[14].mxu0 }
 0x110   :  { %v1040_v25 = vadd.f32 %v2302_v42, %v969_v13  ;;  %v2362_v27 = vpop.f32.mrb[14].mxu1  ;;  %1943 = vst [vmem:[%s2630_s4 + $0x10] sm:$0xff] %v1795_v18   ;;  %v1072_v29 = vadd.f32 %v2302_v42, %v1001_v14  ;;  %v1043_v30 = vadd.f32 %v2302_v42, %v972_v15  ;;  %v1004_v31 = vmul.f32 %v2072_v63, %v2297_v40  ;;  %v2370_v32 = vpop.f32.mrb[15].mxu0 }
 0x111   :  { %v1234_v28 = vsel %vm1106_vm0, %v1042_v10, %v1170_v20  ;;  %v2372_v33 = vpop.f32.mrb[15].mxu1  ;;  %1959 = vst [vmem:[%s2630_s4 + $0x90] sm:$0xff] %v1875_v23   ;;  %v1266_v34 = vsel %vm1138_vm1, %v1074_v11, %v1202_v24  ;;  %v970_v36 = vmul.f32 %v2297_v40, %v539_v4  ;;  %v1002_v44 = vmul.f32 %v2297_v40, %v667_v5 }
 0x112   :  { %vm1104_vm2 = vcmp.gt.f32.partialorder %v1040_v25, 0.0  ;;  %v1168_v35 = vmul.f32 0.2, %v1040_v25  ;;  %vm1136_vm3 = vcmp.gt.f32.partialorder %v1072_v29, 0.0  ;;  %v1200_v37 = vmul.f32 0.2, %v1072_v29 }
 0x113   :  { %vm1107_vm4 = vcmp.gt.f32.partialorder %v1043_v30, 0.0  ;;  %v1171_v38 = vmul.f32 0.2, %v1043_v30  ;;  %v1075_v41 = vadd.f32 %v2302_v42, %v1004_v31  ;;  %v1041_v43 = vadd.f32 %v2302_v42, %v970_v36 }
 0x114   :  { %v1232_v39 = vsel %vm1104_vm2, %v1040_v25, %v1168_v35  ;;  %v1264_v45 = vsel %vm1136_vm3, %v1072_v29, %v1200_v37  ;;  %v975_v47 = vmul.f32 %v2043_v16, %v2297_v40  ;;  %v1007_v48 = vmul.f32 %v2075_v17, %v2297_v40 }
 0x115   :  { %v1235_v46 = vsel %vm1107_vm4, %v1043_v30, %v1171_v38  ;;  %vm1139_vm5 = vcmp.gt.f32.partialorder %v1075_v41, 0.0  ;;  %v1203_v50 = vmul.f32 0.2, %v1075_v41  ;;  %vm1105_vm6 = vcmp.gt.f32.partialorder %v1041_v43, 0.0  ;;  %v2047_v51 = vpop.f32.mrb[16].mxu0  ;;  %v2383_v52 = vpop.f32.mrb[16].mxu1 }
 0x116   :  { %v1810_v49 = vpack.c.bf16 %v1235_v46, %v1234_v28  ;;  %v1169_v53 = vmul.f32 0.2, %v1041_v43  ;;  %v1073_v54 = vadd.f32 %v2302_v42, %v1002_v44  ;;  %v1046_v55 = vadd.f32 %v2302_v42, %v975_v47  ;;  %v568_v57 = vpop.f32.mrb[17].mxu0  ;;  %v696_v58 = vpop.f32.mrb[17].mxu1 }
 0x117   :  { %v1078_v56 = vadd.f32 %v2302_v42, %v1007_v48  ;;  %v1267_v59 = vsel %vm1139_vm5, %v1075_v41, %v1203_v50  ;;  %v973_v60 = vmul.f32 %v2297_v40, %v552_v21  ;;  %v1005_v61 = vmul.f32 %v2297_v40, %v680_v22  ;;  %v2394_v63 = vpop.f32.mrb[18].mxu0  ;;  %v2396_v0 = vpop.f32.mrb[18].mxu1 }
 0x118   :  { %1946 = vst [vmem:[%s2630_s4 + $0x28] sm:$0xff] %v1810_v49   ;;  %v976_v62 = vmul.f32 %v2044_v26, %v2297_v40  ;;  %v1890_v1 = vpack.c.bf16 %v1267_v59, %v1266_v34  ;;  %v1233_v2 = vsel %vm1105_vm6, %v1041_v43, %v1169_v53  ;;  %vm1137_vm7 = vcmp.gt.f32.partialorder %v1073_v54, 0.0  ;;  %v2399_v4 = vpop.f32.mrb[19].mxu0  ;;  %v2401_v5 = vpop.f32.mrb[19].mxu1 }
 0x119   :  { %v1201_v3 = vmul.f32 0.2, %v1073_v54  ;;  %v1805_v6 = vpack.c.bf16 %v1233_v2, %v1232_v39  ;;  %vm1110_vm8 = vcmp.gt.f32.partialorder %v1046_v55, 0.0  ;;  %v1174_v7 = vmul.f32 0.2, %v1046_v55 }
 0x11a   :  { %vm1142_vm9 = vcmp.gt.f32.partialorder %v1078_v56, 0.0  ;;  %1962 = vst [vmem:[%s2630_s4 + $0xa8] sm:$0xff] %v1890_v1   ;;  %v1206_v9 = vmul.f32 0.2, %v1078_v56  ;;  %v1044_v10 = vadd.f32 %v2302_v42, %v973_v60  ;;  %v1076_v11 = vadd.f32 %v2302_v42, %v1005_v61 }
 0x11b   :  { %v1265_v8 = vsel %vm1137_vm7, %v1073_v54, %v1201_v3  ;;  %1945 = vst [vmem:[%s2630_s4 + $0x20] sm:$0xff] %v1805_v6   ;;  %v1238_v13 = vsel %vm1110_vm8, %v1046_v55, %v1174_v7  ;;  %v1047_v14 = vadd.f32 %v2302_v42, %v976_v62  ;;  %v1008_v15 = vmul.f32 %v2362_v27, %v2297_v40 }
 0x11c   :  { %v1885_v12 = vpack.c.bf16 %v1265_v8, %v1264_v45  ;;  %v1270_v16 = vsel %vm1142_vm9, %v1078_v56, %v1206_v9  ;;  %vm1108_vm10 = vcmp.gt.f32.partialorder %v1044_v10, 0.0  ;;  %v1172_v17 = vmul.f32 0.2, %v1044_v10 }
 0x11d   :  { %vm1140_vm11 = vcmp.gt.f32.partialorder %v1076_v11, 0.0  ;;  %v1204_v18 = vmul.f32 0.2, %v1076_v11  ;;  %vm1111_vm12 = vcmp.gt.f32.partialorder %v1047_v14, 0.0  ;;  %v1175_v19 = vmul.f32 0.2, %v1047_v14 }
 0x11e   :  { %1961 = vst [vmem:[%s2630_s4 + $0xa0] sm:$0xff] %v1885_v12   ;;  %v1079_v20 = vadd.f32 %v2302_v42, %v1008_v15  ;;  %v2418_v21 = vpop.f32.mrb[20].mxu0  ;;  %v1236_v22 = vsel %vm1108_vm10, %v1044_v10, %v1172_v17  ;;  %v974_v23 = vmul.f32 %v2297_v40, %v2370_v32  ;;  %v1006_v24 = vmul.f32 %v2297_v40, %v2372_v33  ;;  %v2425_v26 = vpop.f32.mrb[20].mxu1 }
 0x11f   :  { %v979_v25 = vmul.f32 %v2047_v51, %v2297_v40  ;;  %v2427_v27 = vpop.f32.mrb[21].mxu0  ;;  %v1268_v28 = vsel %vm1140_vm11, %v1076_v11, %v1204_v18  ;;  %v1239_v29 = vsel %vm1111_vm12, %v1047_v14, %v1175_v19  ;;  %v2429_v31 = vpop.f32.mrb[21].mxu1  ;;  %v1011_v41 = vmul.f32 %v2383_v52, %v2297_v40 }
 0x120   :  { %vm1143_vm13 = vcmp.gt.f32.partialorder %v1079_v20, 0.0  ;;  %v1207_v30 = vmul.f32 0.2, %v1079_v20  ;;  %v2431_v34 = vpop.f32.mrb[22].mxu0  ;;  %v1820_v35 = vpack.c.bf16 %v1239_v29, %v1238_v13  ;;  %v1045_v32 = vadd.f32 %v2302_v42, %v974_v23  ;;  %v2436_v37 = vpop.f32.mrb[22].mxu1 }
 0x121   :  { %v1077_v36 = vadd.f32 %v2302_v42, %v1006_v24  ;;  %v1050_v33 = vadd.f32 %v2302_v42, %v979_v25  ;;  %v2438_v38 = vpop.f32.mrb[23].mxu0  ;;  %v977_v43 = vmul.f32 %v2297_v40, %v568_v57  ;;  %v1009_v44 = vmul.f32 %v2297_v40, %v696_v58  ;;  %v2444_v45 = vpop.f32.mrb[23].mxu1 }
 0x122   :  { %v1271_v39 = vsel %vm1143_vm13, %v1079_v20, %v1207_v30  ;;  %1948 = vst [vmem:[%s2630_s4 + $0x38] sm:$0xff] %v1820_v35   ;;  %vm1109_vm14 = vcmp.gt.f32.partialorder %v1045_v32, 0.0  ;;  %v1173_v47 = vmul.f32 0.2, %v1045_v32  ;;  %v1082_v50 = vadd.f32 %v2302_v42, %v1011_v41 }
 0x123   :  { %v1900_v46 = vpack.c.bf16 %v1271_v39, %v1270_v16  ;;  %vm1141_vm15 = vcmp.gt.f32.partialorder %v1077_v36, 0.0  ;;  %v1205_v48 = vmul.f32 0.2, %v1077_v36  ;;  %vm1114_vm0 = vcmp.gt.f32.partialorder %v1050_v33, 0.0 }
 0x124   :  { %v1178_v49 = vmul.f32 0.2, %v1050_v33  ;;  %v1237_v51 = vsel %vm1109_vm14, %v1045_v32, %v1173_v47  ;;  %v1048_v52 = vadd.f32 %v2302_v42, %v977_v43  ;;  %v1080_v53 = vadd.f32 %v2302_v42, %v1009_v44 }
 0x125   :  { %1964 = vst [vmem:[%s2630_s4 + $0xb8] sm:$0xff] %v1900_v46   ;;  %v980_v54 = vmul.f32 %v2394_v63, %v2297_v40  ;;  %v1815_v55 = vpack.c.bf16 %v1237_v51, %v1236_v22  ;;  %v1269_v56 = vsel %vm1141_vm15, %v1077_v36, %v1205_v48  ;;  %vm1146_vm1 = vcmp.gt.f32.partialorder %v1082_v50, 0.0  ;;  %v2457_v58 = vpop.f32.mrb[24].mxu0  ;;  %v2459_v59 = vpop.f32.mrb[24].mxu1 }
 0x126   :  { %v1242_v57 = vsel %vm1114_vm0, %v1050_v33, %v1178_v49  ;;  %v1895_v60 = vpack.c.bf16 %v1269_v56, %v1268_v28  ;;  %v1210_v61 = vmul.f32 0.2, %v1082_v50  ;;  %vm1112_vm2 = vcmp.gt.f32.partialorder %v1048_v52, 0.0  ;;  %v2461_v1 = vpop.f32.mrb[25].mxu0  ;;  %v2469_v6 = vpop.f32.mrb[25].mxu1 }
 0x127   :  { %v1176_v62 = vmul.f32 0.2, %v1048_v52  ;;  %1947 = vst [vmem:[%s2630_s4 + $0x30] sm:$0xff] %v1815_v55   ;;  %vm1144_vm3 = vcmp.gt.f32.partialorder %v1080_v53, 0.0  ;;  %v1208_v63 = vmul.f32 0.2, %v1080_v53  ;;  %v1051_v2 = vadd.f32 %v2302_v42, %v980_v54 }
 0x128   :  { %v1012_v3 = vmul.f32 %v2396_v0, %v2297_v40  ;;  %v2471_v7 = vpop.f32.mrb[26].mxu0  ;;  %1963 = vst [vmem:[%s2630_s4 + $0xb0] sm:$0xff] %v1895_v60   ;;  %v1274_v8 = vsel %vm1146_vm1, %v1082_v50, %v1210_v61  ;;  %v978_v10 = vmul.f32 %v2297_v40, %v2399_v4  ;;  %v1010_v11 = vmul.f32 %v2297_v40, %v2401_v5  ;;  %v2481_v12 = vpop.f32.mrb[26].mxu1 }
 0x129   :  { %v1240_v9 = vsel %vm1112_vm2, %v1048_v52, %v1176_v62  ;;  %v2483_v0 = vpop.f32.mrb[27].mxu0  ;;  %v1272_v13 = vsel %vm1144_vm3, %v1080_v53, %v1208_v63  ;;  %vm1115_vm4 = vcmp.gt.f32.partialorder %v1051_v2, 0.0  ;;  %v1179_v14 = vmul.f32 0.2, %v1051_v2  ;;  %v2486_v16 = vpop.f32.mrb[27].mxu1 }
 0x12a   :  { %v1083_v15 = vadd.f32 %v2302_v42, %v1012_v3  ;;  %v1049_v17 = vadd.f32 %v2302_v42, %v978_v10  ;;  %v1081_v18 = vadd.f32 %v2302_v42, %v1010_v11  ;;  %v983_v4 = vmul.f32 %v2418_v21, %v2297_v40 }
 0x12b   :  { %v1015_v5 = vmul.f32 %v2425_v26, %v2297_v40  ;;  %v1243_v19 = vsel %vm1115_vm4, %v1051_v2, %v1179_v14  ;;  %v981_v22 = vmul.f32 %v2297_v40, %v2427_v27  ;;  %v1013_v36 = vmul.f32 %v2297_v40, %v2429_v31 }
 0x12c   :  { %vm1147_vm5 = vcmp.gt.f32.partialorder %v1083_v15, 0.0  ;;  %v1211_v20 = vmul.f32 0.2, %v1083_v15  ;;  %v1830_v23 = vpack.c.bf16 %v1243_v19, %v1242_v57  ;;  %vm1113_vm6 = vcmp.gt.f32.partialorder %v1049_v17, 0.0 }
 0x12d   :  { %v1177_v24 = vmul.f32 0.2, %v1049_v17  ;;  %vm1145_vm7 = vcmp.gt.f32.partialorder %v1081_v18, 0.0  ;;  %v1209_v28 = vmul.f32 0.2, %v1081_v18  ;;  %v1054_v29 = vadd.f32 %v2302_v42, %v983_v4  ;;  %v2498_v21 = vpop.f32.mrb[28].mxu0 }
 0x12e   :  { %v1275_v25 = vsel %vm1147_vm5, %v1083_v15, %v1211_v20  ;;  %v1086_v30 = vadd.f32 %v2302_v42, %v1015_v5  ;;  %v2500_v35 = vpop.f32.mrb[28].mxu1  ;;  %1950 = vst [vmem:[%s2630_s4 + $0x48] sm:$0xff] %v1830_v23   ;;  %v1052_v32 = vadd.f32 %v2302_v42, %v981_v22  ;;  %v2508_v33 = vpop.f32.mrb[29].mxu0  ;;  %v1084_v53 = vadd.f32 %v2302_v42, %v1013_v36 }
 0x12f   :  { %v1910_v26 = vpack.c.bf16 %v1275_v25, %v1274_v8  ;;  %v1241_v27 = vsel %vm1113_vm6, %v1049_v17, %v1177_v24  ;;  %v2510_v39 = vpop.f32.mrb[29].mxu1  ;;  %v1273_v43 = vsel %vm1145_vm7, %v1081_v18, %v1209_v28  ;;  %vm1118_vm8 = vcmp.gt.f32.partialorder %v1054_v29, 0.0  ;;  %v2512_v46 = vpop.f32.mrb[30].mxu0 }
 0x130   :  { %v1825_v41 = vpack.c.bf16 %v1241_v27, %v1240_v9  ;;  %v1182_v44 = vmul.f32 0.2, %v1054_v29  ;;  %v2514_v47 = vpop.f32.mrb[30].mxu1  ;;  %v1905_v48 = vpack.c.bf16 %v1273_v43, %v1272_v13  ;;  %vm1150_vm9 = vcmp.gt.f32.partialorder %v1086_v30, 0.0  ;;  %v2519_v31 = vpop.f32.mrb[31].mxu0 }
 0x131   :  { %1966 = vst [vmem:[%s2630_s4 + $0xc8] sm:$0xff] %v1910_v26   ;;  %v1214_v49 = vmul.f32 0.2, %v1086_v30  ;;  %vm1116_vm10 = vcmp.gt.f32.partialorder %v1052_v32, 0.0  ;;  %v2521_v50 = vpop.f32.mrb[31].mxu1  ;;  %v984_v54 = vmul.f32 %v2431_v34, %v2297_v40  ;;  %v1016_v56 = vmul.f32 %v2436_v37, %v2297_v40 }
 0x132   :  { %1949 = vst [vmem:[%s2630_s4 + $0x40] sm:$0xff] %v1825_v41   ;;  %v1246_v51 = vsel %vm1118_vm8, %v1054_v29, %v1182_v44  ;;  %v1180_v52 = vmul.f32 0.2, %v1052_v32  ;;  %1965 = vst [vmem:[%s2630_s4 + $0xc0] sm:$0xff] %v1905_v48   ;;  %v982_v57 = vmul.f32 %v2297_v40, %v2438_v38  ;;  %v1014_v60 = vmul.f32 %v2297_v40, %v2444_v45 }
 0x133   :  { %v1278_v55 = vsel %vm1150_vm9, %v1086_v30, %v1214_v49  ;;  %vm1148_vm11 = vcmp.gt.f32.partialorder %v1084_v53, 0.0  ;;  %v1212_v62 = vmul.f32 0.2, %v1084_v53  ;;  %v1055_v63 = vadd.f32 %v2302_v42, %v984_v54 }
 0x134   :  { %v1244_v61 = vsel %vm1116_vm10, %v1052_v32, %v1180_v52  ;;  %v1087_v34 = vadd.f32 %v2302_v42, %v1016_v56  ;;  %v1053_v2 = vadd.f32 %v2302_v42, %v982_v57  ;;  %v1085_v3 = vadd.f32 %v2302_v42, %v1014_v60 }
 0x135   :  { %v987_v37 = vmul.f32 %v2457_v58, %v2297_v40  ;;  %v1276_v8 = vsel %vm1148_vm11, %v1084_v53, %v1212_v62  ;;  %vm1119_vm12 = vcmp.gt.f32.partialorder %v1055_v63, 0.0  ;;  %v1183_v38 = vmul.f32 0.2, %v1055_v63 }
 0x136   :  { %v1019_v45 = vmul.f32 %v2459_v59, %v2297_v40  ;;  %vm1151_vm13 = vcmp.gt.f32.partialorder %v1087_v34, 0.0  ;;  %v1215_v9 = vmul.f32 0.2, %v1087_v34  ;;  %vm1117_vm14 = vcmp.gt.f32.partialorder %v1053_v2, 0.0 }
 0x137   :  { %v1181_v10 = vmul.f32 0.2, %v1053_v2  ;;  %v1247_v11 = vsel %vm1119_vm12, %v1055_v63, %v1183_v38  ;;  %vm1149_vm15 = vcmp.gt.f32.partialorder %v1085_v3, 0.0  ;;  %v1213_v13 = vmul.f32 0.2, %v1085_v3 }
 0x138   :  { %v1058_v14 = vadd.f32 %v2302_v42, %v987_v37  ;;  %v1840_v15 = vpack.c.bf16 %v1247_v11, %v1246_v51  ;;  %v1279_v17 = vsel %vm1151_vm13, %v1087_v34, %v1215_v9  ;;  %v1090_v58 = vadd.f32 %v2302_v42, %v1019_v45 }
 0x139   :  { %v1245_v18 = vsel %vm1117_vm14, %v1053_v2, %v1181_v10  ;;  %v1920_v4 = vpack.c.bf16 %v1279_v17, %v1278_v55  ;;  %v1277_v19 = vsel %vm1149_vm15, %v1085_v3, %v1213_v13  ;;  %v985_v23 = vmul.f32 %v2297_v40, %v2461_v1 }
 0x13a   :  { %v1835_v5 = vpack.c.bf16 %v1245_v18, %v1244_v61  ;;  %vm1122_vm0 = vcmp.gt.f32.partialorder %v1058_v14, 0.0  ;;  %1952 = vst [vmem:[%s2630_s4 + $0x58] sm:$0xff] %v1840_v15   ;;  %v1915_v59 = vpack.c.bf16 %v1277_v19, %v1276_v8  ;;  %v1186_v20 = vmul.f32 0.2, %v1058_v14 }
 0x13b   :  { %vm1154_vm1 = vcmp.gt.f32.partialorder %v1090_v58, 0.0  ;;  %v1218_v22 = vmul.f32 0.2, %v1090_v58  ;;  %1968 = vst [vmem:[%s2630_s4 + $0xd8] sm:$0xff] %v1920_v4   ;;  %v1017_v24 = vmul.f32 %v2297_v40, %v2469_v6  ;;  %v988_v25 = vmul.f32 %v2471_v7, %v2297_v40 }
 0x13c   :  { %1951 = vst [vmem:[%s2630_s4 + $0x50] sm:$0xff] %v1835_v5   ;;  %v1020_v28 = vmul.f32 %v2481_v12, %v2297_v40  ;;  %1967 = vst [vmem:[%s2630_s4 + $0xd0] sm:$0xff] %v1915_v59   ;;  %v1250_v29 = vsel %vm1122_vm0, %v1058_v14, %v1186_v20  ;;  %v986_v26 = vmul.f32 %v2297_v40, %v2483_v0 }
 0x13d   :  { %v1282_v30 = vsel %vm1154_vm1, %v1090_v58, %v1218_v22  ;;  %v1018_v1 = vmul.f32 %v2297_v40, %v2486_v16  ;;  %v1056_v6 = vadd.f32 %v2302_v42, %v985_v23  ;;  %v1088_v27 = vadd.f32 %v2302_v42, %v1017_v24 }
 0x13e   :  { %v1059_v7 = vadd.f32 %v2302_v42, %v988_v25  ;;  %v1091_v12 = vadd.f32 %v2302_v42, %v1020_v28  ;;  %v1057_v32 = vadd.f32 %v2302_v42, %v986_v26  ;;  %v991_v41 = vmul.f32 %v2498_v21, %v2297_v40 }
 0x13f   :  { %v1089_v36 = vadd.f32 %v2302_v42, %v1018_v1  ;;  %v1023_v0 = vmul.f32 %v2500_v35, %v2297_v40  ;;  %vm1120_vm2 = vcmp.gt.f32.partialorder %v1056_v6, 0.0  ;;  %v1184_v16 = vmul.f32 0.2, %v1056_v6 }
 0x140   :  { %vm1152_vm3 = vcmp.gt.f32.partialorder %v1088_v27, 0.0  ;;  %v1216_v43 = vmul.f32 0.2, %v1088_v27  ;;  %vm1123_vm4 = vcmp.gt.f32.partialorder %v1059_v7, 0.0  ;;  %v1187_v44 = vmul.f32 0.2, %v1059_v7 }
 0x141   :  { %vm1155_vm5 = vcmp.gt.f32.partialorder %v1091_v12, 0.0  ;;  %v1219_v48 = vmul.f32 0.2, %v1091_v12  ;;  %v1248_v49 = vsel %vm1120_vm2, %v1056_v6, %v1184_v16  ;;  %vm1121_vm6 = vcmp.gt.f32.partialorder %v1057_v32, 0.0 }
 0x142   :  { %v1280_v51 = vsel %vm1152_vm3, %v1088_v27, %v1216_v43  ;;  %v1185_v52 = vmul.f32 0.2, %v1057_v32  ;;  %v1251_v53 = vsel %vm1123_vm4, %v1059_v7, %v1187_v44  ;;  %vm1153_vm7 = vcmp.gt.f32.partialorder %v1089_v36, 0.0 }
 0x143   :  { %v1283_v54 = vsel %vm1155_vm5, %v1091_v12, %v1219_v48  ;;  %v1217_v55 = vmul.f32 0.2, %v1089_v36  ;;  %v1850_v21 = vpack.c.bf16 %v1251_v53, %v1250_v29  ;;  %v1062_v35 = vadd.f32 %v2302_v42, %v991_v41 }
 0x144   :  { %v1930_v56 = vpack.c.bf16 %v1283_v54, %v1282_v30  ;;  %v1249_v57 = vsel %vm1121_vm6, %v1057_v32, %v1185_v52  ;;  %v1094_v62 = vadd.f32 %v2302_v42, %v1023_v0  ;;  %v989_v63 = vmul.f32 %v2297_v40, %v2508_v33 }
 0x145   :  { %v1845_v60 = vpack.c.bf16 %v1249_v57, %v1248_v49  ;;  %v1281_v61 = vsel %vm1153_vm7, %v1089_v36, %v1217_v55  ;;  %1954 = vst [vmem:[%s2630_s4 + $0x68] sm:$0xff] %v1850_v21   ;;  %v1190_v2 = vmul.f32 0.2, %v1062_v35  ;;  %v1021_v3 = vmul.f32 %v2297_v40, %v2510_v39 }
 0x146   :  { %1970 = vst [vmem:[%s2630_s4 + $0xe8] sm:$0xff] %v1930_v56   ;;  %v1925_v34 = vpack.c.bf16 %v1281_v61, %v1280_v51  ;;  %vm1126_vm8 = vcmp.gt.f32.partialorder %v1062_v35, 0.0  ;;  %v1060_v33 = vadd.f32 %v2302_v42, %v989_v63  ;;  %v992_v37 = vmul.f32 %v2512_v46, %v2297_v40 }
 0x147   :  { %1953 = vst [vmem:[%s2630_s4 + $0x60] sm:$0xff] %v1845_v60   ;;  %v1222_v8 = vmul.f32 0.2, %v1094_v62  ;;  %v1024_v38 = vmul.f32 %v2514_v47, %v2297_v40  ;;  %v990_v39 = vmul.f32 %v2297_v40, %v2519_v31  ;;  %vm1158_vm9 = vcmp.gt.f32.partialorder %v1094_v62, 0.0 }
 0x148   :  { %1969 = vst [vmem:[%s2630_s4 + $0xe0] sm:$0xff] %v1925_v34   ;;  %v1092_v45 = vadd.f32 %v2302_v42, %v1021_v3  ;;  %v1063_v9 = vadd.f32 %v2302_v42, %v992_v37  ;;  %v1254_v10 = vsel %vm1126_vm8, %v1062_v35, %v1190_v2  ;;  %v1188_v11 = vmul.f32 0.2, %v1060_v33 }
 0x149   :  { %v1095_v46 = vadd.f32 %v2302_v42, %v1024_v38  ;;  %v1061_v13 = vadd.f32 %v2302_v42, %v990_v39  ;;  %vm1124_vm10 = vcmp.gt.f32.partialorder %v1060_v33, 0.0  ;;  %v1022_v47 = vmul.f32 %v2297_v40, %v2521_v50 }
 0x14a   :  { %vm1127_vm11 = vcmp.gt.f32.partialorder %v1063_v9, 0.0  ;;  %v1191_v14 = vmul.f32 0.2, %v1063_v9  ;;  %v1286_v15 = vsel %vm1158_vm9, %v1094_v62, %v1222_v8  ;;  %v1220_v17 = vmul.f32 0.2, %v1092_v45 }
 0x14b   :  { %vm1159_vm12 = vcmp.gt.f32.partialorder %v1095_v46, 0.0  ;;  %v1223_v31 = vmul.f32 0.2, %v1095_v46  ;;  %vm1125_vm13 = vcmp.gt.f32.partialorder %v1061_v13, 0.0  ;;  %v1189_v58 = vmul.f32 0.2, %v1061_v13 }
 0x14c   :  { %v1255_v18 = vsel %vm1127_vm11, %v1063_v9, %v1191_v14  ;;  %v1093_v4 = vadd.f32 %v2302_v42, %v1022_v47  ;;  %v1252_v5 = vsel %vm1124_vm10, %v1060_v33, %v1188_v11  ;;  %vm1156_vm14 = vcmp.gt.f32.partialorder %v1092_v45, 0.0 }
 0x14d   :  { %v1860_v19 = vpack.c.bf16 %v1255_v18, %v1254_v10  ;;  %v1287_v59 = vsel %vm1159_vm12, %v1095_v46, %v1223_v31  ;;  %v1253_v22 = vsel %vm1125_vm13, %v1061_v13, %v1189_v58  ;;  %v1284_v50 = vsel %vm1156_vm14, %v1092_v45, %v1220_v17 }
 0x14e   :  { %v1940_v20 = vpack.c.bf16 %v1287_v59, %v1286_v15  ;;  %vm1157_vm15 = vcmp.gt.f32.partialorder %v1093_v4, 0.0  ;;  %v1221_v23 = vmul.f32 0.2, %v1093_v4  ;;  %v1855_v40 = vpack.c.bf16 %v1253_v22, %v1252_v5 }
 0x14f   :  { %1956 = vst [vmem:[%s2630_s4 + $0x78] sm:$0xff] %v1860_v19  }
 0x150   :  { %1972 = vst [vmem:[%s2630_s4 + $0xf8] sm:$0xff] %v1940_v20   ;;  %v1285_v24 = vsel %vm1157_vm15, %v1093_v4, %v1221_v23  ;;  %1955 = vst [vmem:[%s2630_s4 + $0x70] sm:$0xff] %v1855_v40  }
 0x151   :  { %v1935_v42 = vpack.c.bf16 %v1285_v24, %v1284_v50 }
 0x153   :  { %1971 = vst [vmem:[%s2630_s4 + $0xf0] sm:$0xff] %v1935_v42  }

// kernel: fwd.32
= control target key start
LH: loop header
LB: loop body
LE: loop exit
PB: predicated region body
PF: predicated region fallthrough
CT: control target
= control target key end

     0   :  { %s824_s1 = inlined_call_operand.vmem [shape: bf16[128,128], index: 1, kind: input, shape index: {}]   ;;  %s825_s0 = inlined_call_operand.vmem [shape: bf16[128,128], index: 0, kind: input, shape index: {}]   ;;  %s826_s2 = inlined_call_operand.vmem [shape: f32[1,128], index: 2, kind: input, shape index: {}]   ;;  %s827_s3 = inlined_call_operand.vmem [shape: f32[1,128], index: 3, kind: input, shape index: {}]   ;;  %s828_s4 = inlined_call_operand.vmem [shape: bf16[128,128], index: 4, kind: output, shape index: {}]  }
   0x1   :  { %v669_v0 = vld [vmem:[%s824_s1] sm:$0xff]   ;;  %v670_v1 = vld [vmem:[%s824_s1 + $0x8] sm:$0xff]   ;;  %v671_v2 = vld [vmem:[%s824_s1 + $0x10] sm:$0xff]  }
   0x2   :  { %621 = vmatprep.subr.bf16.mxu0 %v669_v0  ;;  %653 = vmatprep.subr.bf16.mxu1 %v669_v0  ;;  %v672_v3 = vld [vmem:[%s824_s1 + $0x18] sm:$0xff]   ;;  %v677_v4 = vld [vmem:[%s825_s0] sm:$0xff]   ;;  %v674_v7 = vld [vmem:[%s824_s1 + $0x28] sm:$0xff]  }
   0x3   :  { %622 = vmatpush3.bf16.msra.mxu0 %v669_v0  ;;  %661 = vmatpush3.bf16.msra.mxu1 %v669_v0  ;;  %v678_v5 = vld [vmem:[%s825_s0 + $0x20] sm:$0xff]   ;;  %v675_v8 = vld [vmem:[%s824_s1 + $0x30] sm:$0xff]   ;;  %v676_v9 = vld [vmem:[%s824_s1 + $0x38] sm:$0xff]  }
   0x4   :  { %623 = vmatprep.subr.bf16.mxu0 %v670_v1  ;;  %654 = vmatprep.subr.bf16.mxu1 %v670_v1  ;;  %v673_v6 = vld [vmem:[%s824_s1 + $0x20] sm:$0xff]   ;;  %v679_v10 = vld [vmem:[%s825_s0 + $0x8] sm:$0xff]   ;;  %v681_v12 = vld [vmem:[%s825_s0 + $0x10] sm:$0xff]  }
   0x5   :  { %637 = vmatprep.mubr.bf16.mxu0 %v677_v4  ;;  %645 = vmatprep.mubr.bf16.mxu1 %v678_v5  ;;  %v680_v11 = vld [vmem:[%s825_s0 + $0x28] sm:$0xff]   ;;  %v682_v13 = vld [vmem:[%s825_s0 + $0x30] sm:$0xff]   ;;  %v683_v14 = vld [vmem:[%s825_s0 + $0x18] sm:$0xff]  }
   0x6   :  { %v684_v15 = vld [vmem:[%s825_s0 + $0x38] sm:$0xff]   ;;  %v761_v16 = vld [vmem:[%s826_s2] ss:$0 sm:$0xff] }
   0x7   :  { %624 = vmatpush3.bf16.msra.mxu0 %v670_v1  ;;  %662 = vmatpush3.bf16.msra.mxu1 %v670_v1  ;;  %v766_v18 = vld [vmem:[%s827_s3] ss:$0 sm:$0xff] }
   0x8   :  { %625 = vmatprep.subr.bf16.mxu0 %v671_v2  ;;  %655 = vmatprep.subr.bf16.mxu1 %v671_v2 }
   0xb   :  { %626 = vmatpush3.bf16.msra.mxu0 %v671_v2  ;;  %663 = vmatpush3.bf16.msra.mxu1 %v671_v2 }
   0xc   :  { %627 = vmatprep.subr.bf16.mxu0 %v672_v3  ;;  %656 = vmatprep.subr.bf16.mxu1 %v672_v3 }
   0xf   :  { %628 = vmatpush3.bf16.msra.mxu0 %v672_v3  ;;  %664 = vmatpush3.bf16.msra.mxu1 %v672_v3 }
  0x10   :  { %629 = vmatprep.subr.bf16.mxu0 %v673_v6  ;;  %657 = vmatprep.subr.bf16.mxu1 %v673_v6 }
  0x13   :  { %630 = vmatpush3.bf16.msra.mxu0 %v673_v6  ;;  %665 = vmatpush3.bf16.msra.mxu1 %v673_v6 }
  0x14   :  { %631 = vmatprep.subr.bf16.mxu0 %v674_v7  ;;  %658 = vmatprep.subr.bf16.mxu1 %v674_v7 }
  0x17   :  { %632 = vmatpush3.bf16.msra.mxu0 %v674_v7  ;;  %666 = vmatpush3.bf16.msra.mxu1 %v674_v7 }
  0x18   :  { %633 = vmatprep.subr.bf16.mxu0 %v675_v8  ;;  %659 = vmatprep.subr.bf16.mxu1 %v675_v8 }
  0x1b   :  { %634 = vmatpush3.bf16.msra.mxu0 %v675_v8  ;;  %667 = vmatpush3.bf16.msra.mxu1 %v675_v8 }
  0x1c   :  { %635 = vmatprep.subr.bf16.mxu0 %v676_v9  ;;  %660 = vmatprep.subr.bf16.mxu1 %v676_v9 }
  0x1f   :  { %636 = vmatpush3.bf16.msra.mxu0 %v676_v9  ;;  %668 = vmatpush3.bf16.msra.mxu1 %v676_v9 }
  0x22   :  { %638 = vmatmul.mubr.bf16.vlgmr.msra.gmra.mrb[0].mxu0 %v679_v10  ;;  %646 = vmatmul.mubr.bf16.vlgmr.msra.gmra.mrb[0].mxu1 %v680_v11 }
  0x23   :  { %641 = vmatprep.mubr.bf16.mxu0 %v681_v12  ;;  %649 = vmatprep.mubr.bf16.mxu1 %v682_v13 }
  0x2a   :  { %642 = vmatmul.mubr.bf16.gmra.mrb[4].mxu0 %v683_v14  ;;  %650 = vmatmul.mubr.bf16.gmra.mrb[4].mxu1 %v684_v15 }
  0xf5   :  { %v639_v17 = vpop.f32.mrb[0].mxu0  ;;  %v647_v19 = vpop.f32.mrb[0].mxu1 }
  0xf6   :  { %v339_v20 = vmul.f32 %v639_v17, %v761_v16  ;;  %v347_v21 = vmul.f32 %v647_v19, %v761_v16  ;;  %v216_v22 = vpop.f32.mrb[1].mxu0  ;;  %v248_v23 = vpop.f32.mrb[1].mxu1 }
  0xf7   :  { %v337_v24 = vmul.f32 %v761_v16, %v216_v22  ;;  %v345_v25 = vmul.f32 %v761_v16, %v248_v23  ;;  %v640_v26 = vpop.f32.mrb[2].mxu0  ;;  %v648_v27 = vpop.f32.mrb[2].mxu1 }
  0xf8   :  { %v362_v28 = vadd.f32 %v766_v18, %v339_v20  ;;  %v370_v29 = vadd.f32 %v766_v18, %v347_v21  ;;  %v340_v30 = vmul.f32 %v640_v26, %v761_v16  ;;  %v348_v31 = vmul.f32 %v648_v27, %v761_v16  ;;  %v219_v32 = vpop.f32.mrb[3].mxu0  ;;  %v251_v33 = vpop.f32.mrb[3].mxu1 }
  0xf9   :  { %v360_v34 = vadd.f32 %v766_v18, %v337_v24  ;;  %v368_v35 = vadd.f32 %v766_v18, %v345_v25  ;;  %v338_v36 = vmul.f32 %v761_v16, %v219_v32  ;;  %v346_v37 = vmul.f32 %v761_v16, %v251_v33 }
  0xfa   :  { %vm378_vm0 = vcmp.gt.f32.partialorder %v362_v28, 0.0  ;;  %v394_v38 = vmul.f32 0.2, %v362_v28  ;;  %vm386_vm1 = vcmp.gt.f32.partialorder %v370_v29, 0.0  ;;  %v402_v39 = vmul.f32 0.2, %v370_v29 }
  0xfb   :  { %vm376_vm2 = vcmp.gt.f32.partialorder %v360_v34, 0.0  ;;  %v392_v40 = vmul.f32 0.2, %v360_v34  ;;  %vm384_vm3 = vcmp.gt.f32.partialorder %v368_v35, 0.0  ;;  %v400_v41 = vmul.f32 0.2, %v368_v35 }
  0xfc   :  { %v410_v42 = vsel %vm378_vm0, %v362_v28, %v394_v38  ;;  %v418_v43 = vsel %vm386_vm1, %v370_v29, %v402_v39  ;;  %v363_v44 = vadd.f32 %v766_v18, %v340_v30  ;;  %v371_v45 = vadd.f32 %v766_v18, %v348_v31 }
  0xfd   :  { %v408_v46 = vsel %vm376_vm2, %v360_v34, %v392_v40  ;;  %v416_v47 = vsel %vm384_vm3, %v368_v35, %v400_v41  ;;  %v361_v48 = vadd.f32 %v766_v18, %v338_v36  ;;  %v369_v49 = vadd.f32 %v766_v18, %v346_v37  ;;  %v643_v50 = vpop.f32.mrb[4].mxu0  ;;  %v651_v51 = vpop.f32.mrb[4].mxu1 }
  0xfe   :  { %vm379_vm4 = vcmp.gt.f32.partialorder %v363_v44, 0.0  ;;  %v395_v52 = vmul.f32 0.2, %v363_v44  ;;  %vm387_vm5 = vcmp.gt.f32.partialorder %v371_v45, 0.0  ;;  %v403_v53 = vmul.f32 0.2, %v371_v45 }
  0xff   :  { %vm377_vm6 = vcmp.gt.f32.partialorder %v361_v48, 0.0  ;;  %v393_v54 = vmul.f32 0.2, %v361_v48  ;;  %vm385_vm7 = vcmp.gt.f32.partialorder %v369_v49, 0.0  ;;  %v401_v55 = vmul.f32 0.2, %v369_v49 }
 0x100   :  { %v411_v56 = vsel %vm379_vm4, %v363_v44, %v395_v52  ;;  %v419_v57 = vsel %vm387_vm5, %v371_v45, %v403_v53  ;;  %v343_v58 = vmul.f32 %v643_v50, %v761_v16  ;;  %v351_v59 = vmul.f32 %v651_v51, %v761_v16  ;;  %v232_v60 = vpop.f32.mrb[5].mxu0  ;;  %v264_v61 = vpop.f32.mrb[5].mxu1 }
 0x101   :  { %v566_v62 = vpack.c.bf16 %v411_v56, %v410_v42  ;;  %v586_v63 = vpack.c.bf16 %v419_v57, %v418_v43  ;;  %v409_v0 = vsel %vm377_vm6, %v361_v48, %v393_v54  ;;  %v417_v1 = vsel %vm385_vm7, %v369_v49, %v401_v55  ;;  %v644_v2 = vpop.f32.mrb[6].mxu0  ;;  %v652_v3 = vpop.f32.mrb[6].mxu1 }
 0x102   :  { %v561_v4 = vpack.c.bf16 %v409_v0, %v408_v46  ;;  %v581_v5 = vpack.c.bf16 %v417_v1, %v416_v47  ;;  %v366_v6 = vadd.f32 %v766_v18, %v343_v58  ;;  %v374_v7 = vadd.f32 %v766_v18, %v351_v59  ;;  %v235_v8 = vpop.f32.mrb[7].mxu0  ;;  %v267_v9 = vpop.f32.mrb[7].mxu1 }
 0x103   :  { %598 = vst [vmem:[%s828_s4 + $0x8] sm:$0xff] %v566_v62   ;;  %602 = vst [vmem:[%s828_s4 + $0x28] sm:$0xff] %v586_v63   ;;  %v341_v10 = vmul.f32 %v761_v16, %v232_v60  ;;  %v349_v11 = vmul.f32 %v761_v16, %v264_v61  ;;  %v344_v12 = vmul.f32 %v644_v2, %v761_v16 }
 0x104   :  { %v352_v13 = vmul.f32 %v652_v3, %v761_v16  ;;  %562 = vst [vmem:[%s828_s4] sm:$0xff] %v561_v4   ;;  %601 = vst [vmem:[%s828_s4 + $0x20] sm:$0xff] %v581_v5   ;;  %vm382_vm8 = vcmp.gt.f32.partialorder %v366_v6, 0.0  ;;  %v398_v14 = vmul.f32 0.2, %v366_v6  ;;  %vm390_vm9 = vcmp.gt.f32.partialorder %v374_v7, 0.0 }
 0x105   :  { %v406_v15 = vmul.f32 0.2, %v374_v7  ;;  %v364_v17 = vadd.f32 %v766_v18, %v341_v10  ;;  %v367_v19 = vadd.f32 %v766_v18, %v344_v12  ;;  %v372_v21 = vadd.f32 %v766_v18, %v349_v11 }
 0x106   :  { %v375_v20 = vadd.f32 %v766_v18, %v352_v13  ;;  %v342_v22 = vmul.f32 %v761_v16, %v235_v8  ;;  %v350_v23 = vmul.f32 %v761_v16, %v267_v9  ;;  %v414_v24 = vsel %vm382_vm8, %v366_v6, %v398_v14 }
 0x107   :  { %v422_v25 = vsel %vm390_vm9, %v374_v7, %v406_v15  ;;  %vm383_vm10 = vcmp.gt.f32.partialorder %v367_v19, 0.0  ;;  %v399_v26 = vmul.f32 0.2, %v367_v19  ;;  %vm380_vm12 = vcmp.gt.f32.partialorder %v364_v17, 0.0 }
 0x108   :  { %vm391_vm11 = vcmp.gt.f32.partialorder %v375_v20, 0.0  ;;  %v407_v27 = vmul.f32 0.2, %v375_v20  ;;  %v396_v28 = vmul.f32 0.2, %v364_v17  ;;  %v365_v29 = vadd.f32 %v766_v18, %v342_v22 }
 0x109   :  { %v373_v30 = vadd.f32 %v766_v18, %v350_v23  ;;  %vm388_vm13 = vcmp.gt.f32.partialorder %v372_v21, 0.0  ;;  %v404_v31 = vmul.f32 0.2, %v372_v21  ;;  %v415_v32 = vsel %vm383_vm10, %v367_v19, %v399_v26 }
 0x10a   :  { %v423_v33 = vsel %vm391_vm11, %v375_v20, %v407_v27  ;;  %v576_v34 = vpack.c.bf16 %v415_v32, %v414_v24  ;;  %vm381_vm14 = vcmp.gt.f32.partialorder %v365_v29, 0.0  ;;  %v397_v16 = vmul.f32 0.2, %v365_v29 }
 0x10b   :  { %v596_v35 = vpack.c.bf16 %v423_v33, %v422_v25  ;;  %vm389_vm15 = vcmp.gt.f32.partialorder %v373_v30, 0.0  ;;  %v405_v36 = vmul.f32 0.2, %v373_v30  ;;  %v412_v37 = vsel %vm380_vm12, %v364_v17, %v396_v28 }
 0x10c   :  { %600 = vst [vmem:[%s828_s4 + $0x18] sm:$0xff] %v576_v34   ;;  %v413_v18 = vsel %vm381_vm14, %v365_v29, %v397_v16  ;;  %v420_v38 = vsel %vm388_vm13, %v372_v21, %v404_v31 }
 0x10d   :  { %604 = vst [vmem:[%s828_s4 + $0x38] sm:$0xff] %v596_v35   ;;  %v571_v39 = vpack.c.bf16 %v413_v18, %v412_v37  ;;  %v421_v40 = vsel %vm389_vm15, %v373_v30, %v405_v36 }
 0x10e   :  { %v591_v41 = vpack.c.bf16 %v421_v40, %v420_v38 }
 0x10f   :  { %599 = vst [vmem:[%s828_s4 + $0x10] sm:$0xff] %v571_v39  }
 0x110   :  { %603 = vst [vmem:[%s828_s4 + $0x30] sm:$0xff] %v591_v41  }

// kernel: fwd.33
= control target key start
LH: loop header
LB: loop body
LE: loop exit
PB: predicated region body
PF: predicated region fallthrough
CT: control target
= control target key end

     0   :  { %s1024_s1 = inlined_call_operand.vmem [shape: bf16[256,128], index: 1, kind: input, shape index: {}]   ;;  %s1025_s0 = inlined_call_operand.vmem [shape: bf16[128,256], index: 0, kind: input, shape index: {}]   ;;  %s1026_s2 = inlined_call_operand.vmem [shape: f32[1,128], index: 2, kind: input, shape index: {}]   ;;  %s1027_s3 = inlined_call_operand.vmem [shape: f32[1,128], index: 3, kind: input, shape index: {}]   ;;  %s1028_s4 = inlined_call_operand.vmem [shape: bf16[128,128], index: 4, kind: output, shape index: {}]  }
   0x1   :  { %v797_v0 = vld [vmem:[%s1024_s1 + $0x40] sm:$0xff]   ;;  %v799_v2 = vld [vmem:[%s1024_s1 + $0x48] sm:$0xff]   ;;  %v801_v4 = vld [vmem:[%s1024_s1 + $0x50] sm:$0xff]  }
   0x2   :  { %v798_v1 = vld [vmem:[%s1024_s1] sm:$0xff]   ;;  %717 = vmatprep.subr.bf16.mxu0 %v797_v0  ;;  %781 = vmatprep.subr.bf16.mxu1 %v797_v0  ;;  %v800_v3 = vld [vmem:[%s1024_s1 + $0x8] sm:$0xff]   ;;  %v802_v5 = vld [vmem:[%s1024_s1 + $0x10] sm:$0xff]  }
   0x3   :  { %718 = vmatpush3.bf16.msra.mxu0 %v798_v1  ;;  %789 = vmatpush3.bf16.msra.mxu1 %v798_v1  ;;  %v803_v6 = vld [vmem:[%s1024_s1 + $0x58] sm:$0xff]   ;;  %v805_v8 = vld [vmem:[%s1024_s1 + $0x60] sm:$0xff]   ;;  %v807_v10 = vld [vmem:[%s1024_s1 + $0x68] sm:$0xff]  }
   0x4   :  { %719 = vmatprep.subr.bf16.mxu0 %v799_v2  ;;  %782 = vmatprep.subr.bf16.mxu1 %v799_v2  ;;  %v804_v7 = vld [vmem:[%s1024_s1 + $0x18] sm:$0xff]   ;;  %v806_v9 = vld [vmem:[%s1024_s1 + $0x20] sm:$0xff]   ;;  %v808_v13 = vld [vmem:[%s1024_s1 + $0x28] sm:$0xff]  }
   0x5   :  { %v815_v11 = vld [vmem:[%s1025_s0 + $0x4] ss:$8 sps:$4 sm:$0xff]   ;;  %v809_v14 = vld [vmem:[%s1024_s1 + $0x70] sm:$0xff]   ;;  %v811_v16 = vld [vmem:[%s1024_s1 + $0x78] sm:$0xff]  }
   0x6   :  { %v818_v12 = vld [vmem:[%s1025_s0 + $0x44] ss:$8 sps:$4 sm:$0xff]   ;;  %310 = vmatprep.mubr.bf16.mxu0 %v815_v11  ;;  %v810_v15 = vld [vmem:[%s1024_s1 + $0x30] sm:$0xff]   ;;  %v812_v17 = vld [vmem:[%s1024_s1 + $0x38] sm:$0xff]  }
   0x7   :  { %720 = vmatpush3.bf16.msra.mxu0 %v800_v3  ;;  %790 = vmatpush3.bf16.msra.mxu1 %v800_v3  ;;  %v813_v18 = vld [vmem:[%s1025_s0] ss:$8 sps:$4 sm:$0xff]   ;;  %v819_v20 = vld [vmem:[%s1025_s0 + $0x14] ss:$8 sps:$4 sm:$0xff]   ;;  %v823_v22 = vld [vmem:[%s1025_s0 + $0x10] ss:$8 sps:$4 sm:$0xff]  }
   0x8   :  { %721 = vmatprep.subr.bf16.mxu0 %v801_v4  ;;  %783 = vmatprep.subr.bf16.mxu1 %v801_v4  ;;  %v816_v19 = vld [vmem:[%s1025_s0 + $0x40] ss:$8 sps:$4 sm:$0xff]   ;;  %v821_v21 = vld [vmem:[%s1025_s0 + $0x54] ss:$8 sps:$4 sm:$0xff]   ;;  %v824_v23 = vld [vmem:[%s1025_s0 + $0x50] ss:$8 sps:$4 sm:$0xff]  }
   0x9   :  { %342 = vmatprep.mubr.bf16.mxu1 %v818_v12  ;;  %v825_v24 = vld [vmem:[%s1025_s0 + $0x24] ss:$8 sps:$4 sm:$0xff]   ;;  %v829_v26 = vld [vmem:[%s1025_s0 + $0x20] ss:$8 sps:$4 sm:$0xff]   ;;  %v831_v28 = vld [vmem:[%s1025_s0 + $0x34] ss:$8 sps:$4 sm:$0xff]  }
   0xa   :  { %v827_v25 = vld [vmem:[%s1025_s0 + $0x64] ss:$8 sps:$4 sm:$0xff]   ;;  %v830_v27 = vld [vmem:[%s1025_s0 + $0x60] ss:$8 sps:$4 sm:$0xff]   ;;  %v833_v29 = vld [vmem:[%s1025_s0 + $0x74] ss:$8 sps:$4 sm:$0xff]  }
   0xb   :  { %722 = vmatpush3.bf16.msra.mxu0 %v802_v5  ;;  %791 = vmatpush3.bf16.msra.mxu1 %v802_v5  ;;  %v835_v30 = vld [vmem:[%s1025_s0 + $0x30] ss:$8 sps:$4 sm:$0xff]   ;;  %v961_v35 = vld [vmem:[%s1026_s2] ss:$0 sm:$0xff] }
   0xc   :  { %723 = vmatprep.subr.bf16.mxu0 %v803_v6  ;;  %784 = vmatprep.subr.bf16.mxu1 %v803_v6  ;;  %v836_v31 = vld [vmem:[%s1025_s0 + $0x70] ss:$8 sps:$4 sm:$0xff]   ;;  %v966_v41 = vld [vmem:[%s1027_s3] ss:$0 sm:$0xff] }
   0xf   :  { %724 = vmatpush3.bf16.msra.mxu0 %v804_v7  ;;  %792 = vmatpush3.bf16.msra.mxu1 %v804_v7 }
  0x10   :  { %725 = vmatprep.subr.bf16.mxu0 %v805_v8  ;;  %785 = vmatprep.subr.bf16.mxu1 %v805_v8 }
  0x13   :  { %726 = vmatpush3.bf16.msra.mxu0 %v806_v9  ;;  %793 = vmatpush3.bf16.msra.mxu1 %v806_v9 }
  0x14   :  { %727 = vmatprep.subr.bf16.mxu0 %v807_v10  ;;  %786 = vmatprep.subr.bf16.mxu1 %v807_v10 }
  0x17   :  { %728 = vmatpush3.bf16.msra.mxu0 %v808_v13  ;;  %794 = vmatpush3.bf16.msra.mxu1 %v808_v13 }
  0x18   :  { %729 = vmatprep.subr.bf16.mxu0 %v809_v14  ;;  %787 = vmatprep.subr.bf16.mxu1 %v809_v14 }
  0x1b   :  { %730 = vmatpush3.bf16.msra.mxu0 %v810_v15  ;;  %795 = vmatpush3.bf16.msra.mxu1 %v810_v15 }
  0x1c   :  { %731 = vmatprep.subr.bf16.mxu0 %v811_v16  ;;  %788 = vmatprep.subr.bf16.mxu1 %v811_v16 }
  0x1f   :  { %732 = vmatpush3.bf16.msra.mxu0 %v812_v17  ;;  %796 = vmatpush3.bf16.msra.mxu1 %v812_v17 }
  0x22   :  { %311 = vmatmul.mubr.bf16.vlgmr.msra.gmra.mrb[0].mxu0 %v813_v18  ;;  %343 = vmatmul.mubr.bf16.vlgmr.msra.gmra.mrb[0].mxu1 %v816_v19 }
  0x23   :  { %318 = vmatprep.mubr.bf16.mxu0 %v819_v20  ;;  %350 = vmatprep.mubr.bf16.mxu1 %v821_v21 }
  0x2a   :  { %319 = vmatmul.mubr.bf16.gmra.mrb[4].mxu0 %v823_v22  ;;  %351 = vmatmul.mubr.bf16.gmra.mrb[4].mxu1 %v824_v23 }
  0x2b   :  { %326 = vmatprep.mubr.bf16.mxu0 %v825_v24  ;;  %358 = vmatprep.mubr.bf16.mxu1 %v827_v25 }
  0x32   :  { %327 = vmatmul.mubr.bf16.gmra.mrb[8].mxu0 %v829_v26  ;;  %359 = vmatmul.mubr.bf16.gmra.mrb[8].mxu1 %v830_v27 }
  0x33   :  { %334 = vmatprep.mubr.bf16.mxu0 %v831_v28  ;;  %366 = vmatprep.mubr.bf16.mxu1 %v833_v29 }
  0x3a   :  { %335 = vmatmul.mubr.bf16.gmra.mrb[12].mxu0 %v835_v30  ;;  %367 = vmatmul.mubr.bf16.gmra.mrb[12].mxu1 %v836_v31 }
  0xf5   :  { %v733_v32 = vpop.f32.mrb[0].mxu0  ;;  %v757_v33 = vpop.f32.mrb[0].mxu1 }
  0xf6   :  { %v734_v34 = vpop.f32.mrb[1].mxu0  ;;  %v758_v36 = vpop.f32.mrb[1].mxu1 }
  0xf7   :  { %v735_v37 = vadd.f32 %v734_v34, %v733_v32  ;;  %v759_v38 = vadd.f32 %v758_v36, %v757_v33  ;;  %v736_v39 = vpop.f32.mrb[2].mxu0  ;;  %v760_v40 = vpop.f32.mrb[2].mxu1 }
  0xf8   :  { %v737_v42 = vpop.f32.mrb[3].mxu0  ;;  %v761_v43 = vpop.f32.mrb[3].mxu1 }
  0xf9   :  { %v433_v44 = vmul.f32 %v735_v37, %v961_v35  ;;  %v441_v45 = vmul.f32 %v759_v38, %v961_v35  ;;  %v738_v46 = vadd.f32 %v737_v42, %v736_v39  ;;  %v762_v47 = vadd.f32 %v761_v43, %v760_v40 }
  0xfb   :  { %v456_v48 = vadd.f32 %v966_v41, %v433_v44  ;;  %v464_v49 = vadd.f32 %v966_v41, %v441_v45  ;;  %v434_v50 = vmul.f32 %v738_v46, %v961_v35  ;;  %v442_v51 = vmul.f32 %v762_v47, %v961_v35 }
  0xfd   :  { %v488_v52 = vmul.f32 0.2, %v456_v48  ;;  %v496_v53 = vmul.f32 0.2, %v464_v49  ;;  %v457_v54 = vadd.f32 %v966_v41, %v434_v50  ;;  %v465_v55 = vadd.f32 %v966_v41, %v442_v51  ;;  %v739_v56 = vpop.f32.mrb[4].mxu0  ;;  %v763_v57 = vpop.f32.mrb[4].mxu1 }
  0xfe   :  { %vm472_vm0 = vcmp.gt.f32.partialorder %v456_v48, 0.0  ;;  %vm480_vm1 = vcmp.gt.f32.partialorder %v464_v49, 0.0  ;;  %v740_v58 = vpop.f32.mrb[5].mxu0  ;;  %v764_v59 = vpop.f32.mrb[5].mxu1 }
  0xff   :  { %vm473_vm2 = vcmp.gt.f32.partialorder %v457_v54, 0.0  ;;  %v489_v60 = vmul.f32 0.2, %v457_v54  ;;  %vm481_vm3 = vcmp.gt.f32.partialorder %v465_v55, 0.0  ;;  %v497_v61 = vmul.f32 0.2, %v465_v55 }
 0x100   :  { %v741_v62 = vadd.f32 %v740_v58, %v739_v56  ;;  %v765_v63 = vadd.f32 %v764_v59, %v763_v57  ;;  %v742_v0 = vpop.f32.mrb[6].mxu0  ;;  %v766_v1 = vpop.f32.mrb[6].mxu1  ;;  %v504_v2 = vsel %vm472_vm0, %v456_v48, %v488_v52  ;;  %v512_v3 = vsel %vm480_vm1, %v464_v49, %v496_v53 }
 0x101   :  { %v505_v4 = vsel %vm473_vm2, %v457_v54, %v489_v60  ;;  %v513_v5 = vsel %vm481_vm3, %v465_v55, %v497_v61  ;;  %v743_v6 = vpop.f32.mrb[7].mxu0  ;;  %v767_v7 = vpop.f32.mrb[7].mxu1 }
 0x102   :  { %v673_v8 = vpack.c.bf16 %v505_v4, %v504_v2  ;;  %v693_v9 = vpack.c.bf16 %v513_v5, %v512_v3  ;;  %v435_v10 = vmul.f32 %v741_v62, %v961_v35  ;;  %v443_v11 = vmul.f32 %v765_v63, %v961_v35 }
 0x103   :  { %v744_v12 = vadd.f32 %v743_v6, %v742_v0  ;;  %v768_v13 = vadd.f32 %v767_v7, %v766_v1 }
 0x104   :  { %674 = vst [vmem:[%s1028_s4] sm:$0xff] %v673_v8   ;;  %713 = vst [vmem:[%s1028_s4 + $0x20] sm:$0xff] %v693_v9   ;;  %v458_v14 = vadd.f32 %v966_v41, %v435_v10  ;;  %v466_v15 = vadd.f32 %v966_v41, %v443_v11 }
 0x105   :  { %v745_v16 = vpop.f32.mrb[8].mxu0  ;;  %v769_v17 = vpop.f32.mrb[8].mxu1  ;;  %v436_v18 = vmul.f32 %v744_v12, %v961_v35  ;;  %v444_v19 = vmul.f32 %v768_v13, %v961_v35 }
 0x106   :  { %v746_v20 = vpop.f32.mrb[9].mxu0  ;;  %v770_v21 = vpop.f32.mrb[9].mxu1  ;;  %v490_v22 = vmul.f32 0.2, %v458_v14  ;;  %v498_v23 = vmul.f32 0.2, %v466_v15 }
 0x107   :  { %v459_v24 = vadd.f32 %v966_v41, %v436_v18  ;;  %v467_v25 = vadd.f32 %v966_v41, %v444_v19  ;;  %v747_v26 = vadd.f32 %v746_v20, %v745_v16  ;;  %v771_v27 = vadd.f32 %v770_v21, %v769_v17  ;;  %v748_v28 = vpop.f32.mrb[10].mxu0  ;;  %v772_v29 = vpop.f32.mrb[10].mxu1 }
 0x108   :  { %vm474_vm4 = vcmp.gt.f32.partialorder %v458_v14, 0.0  ;;  %vm482_vm5 = vcmp.gt.f32.partialorder %v466_v15, 0.0  ;;  %v749_v30 = vpop.f32.mrb[11].mxu0  ;;  %v773_v31 = vpop.f32.mrb[11].mxu1 }
 0x109   :  { %vm475_vm6 = vcmp.gt.f32.partialorder %v459_v24, 0.0  ;;  %v491_v32 = vmul.f32 0.2, %v459_v24  ;;  %vm483_vm7 = vcmp.gt.f32.partialorder %v467_v25, 0.0  ;;  %v499_v33 = vmul.f32 0.2, %v467_v25 }
 0x10a   :  { %v437_v34 = vmul.f32 %v747_v26, %v961_v35  ;;  %v445_v36 = vmul.f32 %v771_v27, %v961_v35  ;;  %v750_v37 = vadd.f32 %v749_v30, %v748_v28  ;;  %v774_v38 = vadd.f32 %v773_v31, %v772_v29 }
 0x10b   :  { %v506_v39 = vsel %vm474_vm4, %v458_v14, %v490_v22  ;;  %v514_v40 = vsel %vm482_vm5, %v466_v15, %v498_v23  ;;  %v507_v42 = vsel %vm475_vm6, %v459_v24, %v491_v32  ;;  %v515_v43 = vsel %vm483_vm7, %v467_v25, %v499_v33 }
 0x10c   :  { %v678_v44 = vpack.c.bf16 %v507_v42, %v506_v39  ;;  %v698_v45 = vpack.c.bf16 %v515_v43, %v514_v40  ;;  %v460_v46 = vadd.f32 %v966_v41, %v437_v34  ;;  %v468_v47 = vadd.f32 %v966_v41, %v445_v36 }
 0x10d   :  { %v751_v48 = vpop.f32.mrb[12].mxu0  ;;  %v775_v49 = vpop.f32.mrb[12].mxu1  ;;  %v438_v50 = vmul.f32 %v750_v37, %v961_v35  ;;  %v446_v51 = vmul.f32 %v774_v38, %v961_v35 }
 0x10e   :  { %v752_v52 = vpop.f32.mrb[13].mxu0  ;;  %v776_v53 = vpop.f32.mrb[13].mxu1  ;;  %710 = vst [vmem:[%s1028_s4 + $0x8] sm:$0xff] %v678_v44   ;;  %714 = vst [vmem:[%s1028_s4 + $0x28] sm:$0xff] %v698_v45   ;;  %v492_v54 = vmul.f32 0.2, %v460_v46 }
 0x10f   :  { %v500_v55 = vmul.f32 0.2, %v468_v47  ;;  %v461_v56 = vadd.f32 %v966_v41, %v438_v50  ;;  %v469_v57 = vadd.f32 %v966_v41, %v446_v51  ;;  %v753_v58 = vadd.f32 %v752_v52, %v751_v48  ;;  %v754_v60 = vpop.f32.mrb[14].mxu0  ;;  %v778_v61 = vpop.f32.mrb[14].mxu1 }
 0x110   :  { %v777_v59 = vadd.f32 %v776_v53, %v775_v49  ;;  %vm476_vm8 = vcmp.gt.f32.partialorder %v460_v46, 0.0  ;;  %vm484_vm9 = vcmp.gt.f32.partialorder %v468_v47, 0.0  ;;  %v755_v62 = vpop.f32.mrb[15].mxu0  ;;  %v779_v63 = vpop.f32.mrb[15].mxu1 }
 0x111   :  { %vm477_vm10 = vcmp.gt.f32.partialorder %v461_v56, 0.0  ;;  %v493_v0 = vmul.f32 0.2, %v461_v56  ;;  %vm485_vm11 = vcmp.gt.f32.partialorder %v469_v57, 0.0  ;;  %v501_v1 = vmul.f32 0.2, %v469_v57 }
 0x112   :  { %v439_v2 = vmul.f32 %v753_v58, %v961_v35  ;;  %v447_v3 = vmul.f32 %v777_v59, %v961_v35  ;;  %v756_v4 = vadd.f32 %v755_v62, %v754_v60  ;;  %v780_v5 = vadd.f32 %v779_v63, %v778_v61 }
 0x113   :  { %v508_v6 = vsel %vm476_vm8, %v460_v46, %v492_v54  ;;  %v516_v7 = vsel %vm484_vm9, %v468_v47, %v500_v55  ;;  %v509_v8 = vsel %vm477_vm10, %v461_v56, %v493_v0  ;;  %v517_v9 = vsel %vm485_vm11, %v469_v57, %v501_v1 }
 0x114   :  { %v683_v10 = vpack.c.bf16 %v509_v8, %v508_v6  ;;  %v703_v11 = vpack.c.bf16 %v517_v9, %v516_v7  ;;  %v462_v12 = vadd.f32 %v966_v41, %v439_v2  ;;  %v470_v13 = vadd.f32 %v966_v41, %v447_v3 }
 0x115   :  { %v440_v14 = vmul.f32 %v756_v4, %v961_v35  ;;  %v448_v15 = vmul.f32 %v780_v5, %v961_v35 }
 0x116   :  { %711 = vst [vmem:[%s1028_s4 + $0x10] sm:$0xff] %v683_v10   ;;  %715 = vst [vmem:[%s1028_s4 + $0x30] sm:$0xff] %v703_v11   ;;  %v494_v16 = vmul.f32 0.2, %v462_v12  ;;  %v502_v17 = vmul.f32 0.2, %v470_v13 }
 0x117   :  { %v463_v18 = vadd.f32 %v966_v41, %v440_v14  ;;  %v471_v19 = vadd.f32 %v966_v41, %v448_v15  ;;  %vm478_vm12 = vcmp.gt.f32.partialorder %v462_v12, 0.0  ;;  %vm486_vm13 = vcmp.gt.f32.partialorder %v470_v13, 0.0 }
 0x118   :  { %v510_v21 = vsel %vm478_vm12, %v462_v12, %v494_v16  ;;  %v518_v22 = vsel %vm486_vm13, %v470_v13, %v502_v17 }
 0x119   :  { %vm479_vm14 = vcmp.gt.f32.partialorder %v463_v18, 0.0  ;;  %v495_v20 = vmul.f32 0.2, %v463_v18  ;;  %vm487_vm15 = vcmp.gt.f32.partialorder %v471_v19, 0.0  ;;  %v503_v35 = vmul.f32 0.2, %v471_v19 }
 0x11b   :  { %v511_v23 = vsel %vm479_vm14, %v463_v18, %v495_v20  ;;  %v519_v24 = vsel %vm487_vm15, %v471_v19, %v503_v35 }
 0x11c   :  { %v688_v25 = vpack.c.bf16 %v511_v23, %v510_v21  ;;  %v708_v26 = vpack.c.bf16 %v519_v24, %v518_v22 }
 0x11e   :  { %712 = vst [vmem:[%s1028_s4 + $0x18] sm:$0xff] %v688_v25   ;;  %716 = vst [vmem:[%s1028_s4 + $0x38] sm:$0xff] %v708_v26  }

// kernel: fwd.34
= control target key start
LH: loop header
LB: loop body
LE: loop exit
PB: predicated region body
PF: predicated region fallthrough
CT: control target
= control target key end

     0   :  { %s508_s1 = inlined_call_operand.vmem [shape: bf16[256,128], index: 1, kind: input, shape index: {}]   ;;  %s509_s0 = inlined_call_operand.vmem [shape: bf16[32,256], index: 0, kind: input, shape index: {}]   ;;  %s510_s2 = inlined_call_operand.vmem [shape: f32[1,128], index: 2, kind: input, shape index: {}]   ;;  %s511_s3 = inlined_call_operand.vmem [shape: f32[1,128], index: 3, kind: input, shape index: {}]   ;;  %s512_s4 = inlined_call_operand.vmem [shape: bf16[32,128], index: 4, kind: output, shape index: {}]  }
   0x1   :  { %v389_v0 = vld [vmem:[%s508_s1 + $0x40] sm:$0xff]   ;;  %v391_v2 = vld [vmem:[%s508_s1 + $0x48] sm:$0xff]   ;;  %v393_v4 = vld [vmem:[%s508_s1 + $0x50] sm:$0xff]  }
   0x2   :  { %v390_v1 = vld [vmem:[%s508_s1] sm:$0xff]   ;;  %345 = vmatprep.subr.bf16.mxu0 %v389_v0  ;;  %373 = vmatprep.subr.bf16.mxu1 %v389_v0  ;;  %v392_v3 = vld [vmem:[%s508_s1 + $0x8] sm:$0xff]   ;;  %v394_v5 = vld [vmem:[%s508_s1 + $0x10] sm:$0xff]  }
   0x3   :  { %346 = vmatpush3.bf16.msra.mxu0 %v390_v1  ;;  %381 = vmatpush3.bf16.msra.mxu1 %v390_v1  ;;  %v395_v6 = vld [vmem:[%s508_s1 + $0x58] sm:$0xff]   ;;  %v397_v8 = vld [vmem:[%s508_s1 + $0x60] sm:$0xff]   ;;  %v399_v10 = vld [vmem:[%s508_s1 + $0x68] sm:$0xff]  }
   0x4   :  { %347 = vmatprep.subr.bf16.mxu0 %v391_v2  ;;  %374 = vmatprep.subr.bf16.mxu1 %v391_v2  ;;  %v396_v7 = vld [vmem:[%s508_s1 + $0x18] sm:$0xff]   ;;  %v398_v9 = vld [vmem:[%s508_s1 + $0x20] sm:$0xff]   ;;  %v400_v13 = vld [vmem:[%s508_s1 + $0x28] sm:$0xff]  }
   0x5   :  { %v407_v11 = vld [vmem:[%s509_s0 + $0x4] ss:$8 sps:$4 sm:$0xff]   ;;  %v410_v12 = vld [vmem:[%s509_s0 + $0x14] ss:$8 sps:$4 sm:$0xff]   ;;  %v405_v18 = vld [vmem:[%s509_s0] ss:$8 sps:$4 sm:$0xff]  }
   0x6   :  { %v401_v14 = vld [vmem:[%s508_s1 + $0x70] sm:$0xff]   ;;  %214 = vmatprep.mubr.bf16.mxu0 %v407_v11  ;;  %222 = vmatprep.mubr.bf16.mxu1 %v410_v12  ;;  %v403_v16 = vld [vmem:[%s508_s1 + $0x78] sm:$0xff]   ;;  %v324_v23 = vld [vmem:[%s510_s2] ss:$0 sm:$0xff] }
   0x7   :  { %348 = vmatpush3.bf16.msra.mxu0 %v392_v3  ;;  %382 = vmatpush3.bf16.msra.mxu1 %v392_v3  ;;  %v402_v15 = vld [vmem:[%s508_s1 + $0x30] sm:$0xff]   ;;  %v404_v17 = vld [vmem:[%s508_s1 + $0x38] sm:$0xff]   ;;  %v325_v29 = vld [vmem:[%s511_s3] ss:$0 sm:$0xff] }
   0x8   :  { %349 = vmatprep.subr.bf16.mxu0 %v393_v4  ;;  %375 = vmatprep.subr.bf16.mxu1 %v393_v4  ;;  %v408_v19 = vld [vmem:[%s509_s0 + $0x10] ss:$8 sps:$4 sm:$0xff]  }
   0xb   :  { %350 = vmatpush3.bf16.msra.mxu0 %v394_v5  ;;  %383 = vmatpush3.bf16.msra.mxu1 %v394_v5 }
   0xc   :  { %351 = vmatprep.subr.bf16.mxu0 %v395_v6  ;;  %376 = vmatprep.subr.bf16.mxu1 %v395_v6 }
   0xf   :  { %352 = vmatpush3.bf16.msra.mxu0 %v396_v7  ;;  %384 = vmatpush3.bf16.msra.mxu1 %v396_v7 }
  0x10   :  { %353 = vmatprep.subr.bf16.mxu0 %v397_v8  ;;  %377 = vmatprep.subr.bf16.mxu1 %v397_v8 }
  0x13   :  { %354 = vmatpush3.bf16.msra.mxu0 %v398_v9  ;;  %385 = vmatpush3.bf16.msra.mxu1 %v398_v9 }
  0x14   :  { %355 = vmatprep.subr.bf16.mxu0 %v399_v10  ;;  %378 = vmatprep.subr.bf16.mxu1 %v399_v10 }
  0x17   :  { %356 = vmatpush3.bf16.msra.mxu0 %v400_v13  ;;  %386 = vmatpush3.bf16.msra.mxu1 %v400_v13 }
  0x18   :  { %357 = vmatprep.subr.bf16.mxu0 %v401_v14  ;;  %379 = vmatprep.subr.bf16.mxu1 %v401_v14 }
  0x1b   :  { %358 = vmatpush3.bf16.msra.mxu0 %v402_v15  ;;  %387 = vmatpush3.bf16.msra.mxu1 %v402_v15 }
  0x1c   :  { %359 = vmatprep.subr.bf16.mxu0 %v403_v16  ;;  %380 = vmatprep.subr.bf16.mxu1 %v403_v16 }
  0x1f   :  { %360 = vmatpush3.bf16.msra.mxu0 %v404_v17  ;;  %388 = vmatpush3.bf16.msra.mxu1 %v404_v17 }
  0x22   :  { %215 = vmatmul.mubr.bf16.vlgmr.msra.gmra.mrb[0].mxu0 %v405_v18  ;;  %223 = vmatmul.mubr.bf16.vlgmr.msra.gmra.mrb[0].mxu1 %v408_v19 }
  0xf5   :  { %v361_v20 = vpop.f32.mrb[0].mxu0  ;;  %v367_v21 = vpop.f32.mrb[0].mxu1 }
  0xf6   :  { %v362_v22 = vpop.f32.mrb[1].mxu0  ;;  %v368_v24 = vpop.f32.mrb[1].mxu1 }
  0xf7   :  { %v363_v25 = vadd.f32 %v362_v22, %v361_v20  ;;  %v369_v26 = vadd.f32 %v368_v24, %v367_v21  ;;  %v364_v27 = vpop.f32.mrb[2].mxu0  ;;  %v370_v28 = vpop.f32.mrb[2].mxu1 }
  0xf8   :  { %v365_v30 = vpop.f32.mrb[3].mxu0  ;;  %v371_v31 = vpop.f32.mrb[3].mxu1 }
  0xf9   :  { %v253_v32 = vmul.f32 %v363_v25, %v324_v23  ;;  %v255_v33 = vmul.f32 %v369_v26, %v324_v23  ;;  %v366_v34 = vadd.f32 %v365_v30, %v364_v27  ;;  %v372_v35 = vadd.f32 %v371_v31, %v370_v28 }
  0xfb   :  { %v264_v36 = vadd.f32 %v325_v29, %v253_v32  ;;  %v266_v37 = vadd.f32 %v325_v29, %v255_v33  ;;  %v254_v38 = vmul.f32 %v366_v34, %v324_v23  ;;  %v256_v39 = vmul.f32 %v372_v35, %v324_v23 }
  0xfd   :  { %v272_v40 = vmul.f32 0.2, %v264_v36  ;;  %v274_v41 = vmul.f32 0.2, %v266_v37  ;;  %v265_v42 = vadd.f32 %v325_v29, %v254_v38  ;;  %v267_v43 = vadd.f32 %v325_v29, %v256_v39 }
  0xfe   :  { %vm268_vm0 = vcmp.gt.f32.partialorder %v264_v36, 0.0  ;;  %vm270_vm1 = vcmp.gt.f32.partialorder %v266_v37, 0.0 }
  0xff   :  { %vm269_vm2 = vcmp.gt.f32.partialorder %v265_v42, 0.0  ;;  %v273_v44 = vmul.f32 0.2, %v265_v42  ;;  %vm271_vm3 = vcmp.gt.f32.partialorder %v267_v43, 0.0  ;;  %v275_v45 = vmul.f32 0.2, %v267_v43 }
 0x100   :  { %v276_v46 = vsel %vm268_vm0, %v264_v36, %v272_v40  ;;  %v278_v47 = vsel %vm270_vm1, %v266_v37, %v274_v41 }
 0x101   :  { %v277_v48 = vsel %vm269_vm2, %v265_v42, %v273_v44  ;;  %v279_v49 = vsel %vm271_vm3, %v267_v43, %v275_v45 }
 0x102   :  { %v337_v50 = vpack.c.bf16 %v277_v48, %v276_v46  ;;  %v342_v51 = vpack.c.bf16 %v279_v49, %v278_v47 }
 0x104   :  { %338 = vst [vmem:[%s512_s4] sm:$0xff] %v337_v50   ;;  %344 = vst [vmem:[%s512_s4 + $0x8] sm:$0xff] %v342_v51  }

// kernel: fwd.35
= control target key start
LH: loop header
LB: loop body
LE: loop exit
PB: predicated region body
PF: predicated region fallthrough
CT: control target
= control target key end

     0   :  { %s701_s1 = inlined_call_operand.vmem [shape: bf16[384,128], index: 1, kind: input, shape index: {}]   ;;  %s702_s0 = inlined_call_operand.vmem [shape: bf16[32,384], index: 0, kind: input, shape index: {}]   ;;  %s703_s2 = inlined_call_operand.vmem [shape: f32[1,128], index: 2, kind: input, shape index: {}]   ;;  %s704_s3 = inlined_call_operand.vmem [shape: f32[1,128], index: 3, kind: input, shape index: {}]   ;;  %s705_s4 = inlined_call_operand.vmem [shape: bf16[32,128], index: 4, kind: output, shape index: {}]  }
   0x1   :  { %v542_v0 = vld [vmem:[%s701_s1 + $0x40] sm:$0xff]   ;;  %v545_v3 = vld [vmem:[%s701_s1 + $0x48] sm:$0xff]   ;;  %v548_v6 = vld [vmem:[%s701_s1 + $0x50] sm:$0xff]  }
   0x2   :  { %v543_v1 = vld [vmem:[%s701_s1] sm:$0xff]   ;;  %484 = vmatprep.subr.bf16.mxu0 %v542_v0  ;;  %v546_v4 = vld [vmem:[%s701_s1 + $0x8] sm:$0xff]   ;;  %v549_v7 = vld [vmem:[%s701_s1 + $0x10] sm:$0xff]  }
   0x3   :  { %v544_v2 = vld [vmem:[%s701_s1 + $0x80] sm:$0xff]   ;;  %485 = vmatpush3.bf16.msra.mxu0 %v543_v1  ;;  %v547_v5 = vld [vmem:[%s701_s1 + $0x88] sm:$0xff]   ;;  %v550_v8 = vld [vmem:[%s701_s1 + $0x90] sm:$0xff]  }
   0x4   :  { %522 = vmatprep.subr.bf16.mxu1 %v544_v2  ;;  %486 = vmatprep.subr.bf16.mxu0 %v545_v3  ;;  %v551_v9 = vld [vmem:[%s701_s1 + $0x58] sm:$0xff]   ;;  %v554_v12 = vld [vmem:[%s701_s1 + $0x60] sm:$0xff]   ;;  %v557_v15 = vld [vmem:[%s701_s1 + $0x68] sm:$0xff]  }
   0x5   :  { %523 = vmatpush3.bf16.msra.mxu1 %v544_v2  ;;  %v552_v10 = vld [vmem:[%s701_s1 + $0x18] sm:$0xff]   ;;  %v556_v13 = vld [vmem:[%s701_s1 + $0xa0] sm:$0xff]   ;;  %v559_v16 = vld [vmem:[%s701_s1 + $0xa8] sm:$0xff]  }
   0x6   :  { %524 = vmatprep.subr.bf16.mxu1 %v547_v5  ;;  %v553_v11 = vld [vmem:[%s701_s1 + $0x98] sm:$0xff]   ;;  %v555_v14 = vld [vmem:[%s701_s1 + $0x20] sm:$0xff]   ;;  %v558_v17 = vld [vmem:[%s701_s1 + $0x28] sm:$0xff]  }
   0x7   :  { %487 = vmatpush3.bf16.msra.mxu0 %v546_v4  ;;  %v560_v18 = vld [vmem:[%s701_s1 + $0x70] sm:$0xff]   ;;  %v563_v21 = vld [vmem:[%s701_s1 + $0x78] sm:$0xff]   ;;  %v566_v26 = vld [vmem:[%s702_s0] ss:$12 sps:$4 sm:$0xff]  }
   0x8   :  { %488 = vmatprep.subr.bf16.mxu0 %v548_v6  ;;  %v561_v19 = vld [vmem:[%s701_s1 + $0x30] sm:$0xff]   ;;  %v565_v22 = vld [vmem:[%s701_s1 + $0xb8] sm:$0xff]   ;;  %v570_v28 = vld [vmem:[%s702_s0 + $0x20] ss:$12 sps:$4 sm:$0xff]  }
   0x9   :  { %525 = vmatpush3.bf16.msra.mxu1 %v547_v5  ;;  %v562_v20 = vld [vmem:[%s701_s1 + $0xb0] sm:$0xff]   ;;  %v564_v25 = vld [vmem:[%s701_s1 + $0x38] sm:$0xff]   ;;  %v463_v37 = vld [vmem:[%s703_s2] ss:$0 sm:$0xff] }
   0xa   :  { %526 = vmatprep.subr.bf16.mxu1 %v550_v8  ;;  %v568_v23 = vld [vmem:[%s702_s0 + $0x4] ss:$12 sps:$4 sm:$0xff]   ;;  %v569_v24 = vld [vmem:[%s702_s0 + $0x8] ss:$12 sps:$4 sm:$0xff]   ;;  %v464_v41 = vld [vmem:[%s704_s3] ss:$0 sm:$0xff] }
   0xb   :  { %489 = vmatpush3.bf16.msra.mxu0 %v549_v7  ;;  %294 = vmatprep.mubr.bf16.mxu0 %v568_v23  ;;  %v571_v27 = vld [vmem:[%s702_s0 + $0x1c] ss:$12 sps:$4 sm:$0xff]   ;;  %v573_v29 = vld [vmem:[%s702_s0 + $0x18] ss:$12 sps:$4 sm:$0xff]  }
   0xc   :  { %490 = vmatprep.subr.bf16.mxu0 %v551_v9  ;;  %538 = vmatprep.mubr.bf16.mxu1 %v569_v24 }
   0xd   :  { %527 = vmatpush3.bf16.msra.mxu1 %v550_v8 }
   0xe   :  { %528 = vmatprep.subr.bf16.mxu1 %v553_v11 }
   0xf   :  { %491 = vmatpush3.bf16.msra.mxu0 %v552_v10 }
  0x10   :  { %492 = vmatprep.subr.bf16.mxu0 %v554_v12 }
  0x11   :  { %529 = vmatpush3.bf16.msra.mxu1 %v553_v11 }
  0x12   :  { %530 = vmatprep.subr.bf16.mxu1 %v556_v13 }
  0x13   :  { %493 = vmatpush3.bf16.msra.mxu0 %v555_v14 }
  0x14   :  { %494 = vmatprep.subr.bf16.mxu0 %v557_v15 }
  0x15   :  { %531 = vmatpush3.bf16.msra.mxu1 %v556_v13 }
  0x16   :  { %532 = vmatprep.subr.bf16.mxu1 %v559_v16 }
  0x17   :  { %495 = vmatpush3.bf16.msra.mxu0 %v558_v17 }
  0x18   :  { %496 = vmatprep.subr.bf16.mxu0 %v560_v18 }
  0x19   :  { %533 = vmatpush3.bf16.msra.mxu1 %v559_v16 }
  0x1a   :  { %534 = vmatprep.subr.bf16.mxu1 %v562_v20 }
  0x1b   :  { %497 = vmatpush3.bf16.msra.mxu0 %v561_v19 }
  0x1c   :  { %498 = vmatprep.subr.bf16.mxu0 %v563_v21 }
  0x1d   :  { %535 = vmatpush3.bf16.msra.mxu1 %v562_v20 }
  0x1e   :  { %536 = vmatprep.subr.bf16.mxu1 %v565_v22 }
  0x1f   :  { %499 = vmatpush3.bf16.msra.mxu0 %v564_v25 }
  0x21   :  { %537 = vmatpush3.bf16.msra.mxu1 %v565_v22 }
  0x22   :  { %295 = vmatmul.mubr.bf16.vlgmr.msra.gmra.mrb[0].mxu0 %v566_v26 }
  0x23   :  { %302 = vmatprep.mubr.bf16.mxu0 %v571_v27 }
  0x24   :  { %539 = vmatmul.mubr.bf16.vlgmr.msra.gmra.mrb[0].mxu1 %v570_v28 }
  0x2a   :  { %303 = vmatmul.mubr.bf16.gmra.mrb[4].mxu0 %v573_v29 }
  0xf5   :  { %v500_v30 = vpop.f32.mrb[0].mxu0 }
  0xf6   :  { %v501_v31 = vpop.f32.mrb[1].mxu0 }
  0xf7   :  { %v502_v32 = vadd.f32 %v501_v31, %v500_v30  ;;  %v503_v33 = vpop.f32.mrb[2].mxu0  ;;  %v540_v34 = vpop.f32.mrb[0].mxu1 }
  0xf8   :  { %v504_v35 = vpop.f32.mrb[3].mxu0  ;;  %v345_v36 = vpop.f32.mrb[1].mxu1 }
  0xf9   :  { %v505_v38 = vadd.f32 %v504_v35, %v503_v33  ;;  %v346_v39 = vadd.f32 %v502_v32, %v345_v36  ;;  %v541_v40 = vpop.f32.mrb[2].mxu1 }
  0xfa   :  { %v348_v42 = vpop.f32.mrb[3].mxu1 }
  0xfb   :  { %v382_v43 = vmul.f32 %v463_v37, %v346_v39  ;;  %v349_v44 = vadd.f32 %v505_v38, %v348_v42 }
  0xfd   :  { %v393_v45 = vadd.f32 %v464_v41, %v382_v43  ;;  %v383_v46 = vmul.f32 %v463_v37, %v349_v44  ;;  %v506_v47 = vpop.f32.mrb[4].mxu0 }
  0xfe   :  { %v507_v48 = vpop.f32.mrb[5].mxu0 }
  0xff   :  { %v401_v49 = vmul.f32 0.2, %v393_v45  ;;  %v394_v50 = vadd.f32 %v464_v41, %v383_v46  ;;  %v508_v51 = vadd.f32 %v507_v48, %v506_v47  ;;  %v509_v52 = vpop.f32.mrb[6].mxu0  ;;  %vm397_vm0 = vcmp.gt.f32.partialorder %v393_v45, 0.0 }
 0x100   :  { %v510_v53 = vpop.f32.mrb[7].mxu0 }
 0x101   :  { %vm398_vm1 = vcmp.gt.f32.partialorder %v394_v50, 0.0  ;;  %v402_v54 = vmul.f32 0.2, %v394_v50  ;;  %v354_v55 = vadd.f32 %v540_v34, %v508_v51  ;;  %v511_v56 = vadd.f32 %v510_v53, %v509_v52 }
 0x102   :  { %v405_v57 = vsel %vm397_vm0, %v393_v45, %v401_v49 }
 0x103   :  { %v406_v58 = vsel %vm398_vm1, %v394_v50, %v402_v54  ;;  %v384_v59 = vmul.f32 %v463_v37, %v354_v55  ;;  %v357_v61 = vadd.f32 %v541_v40, %v511_v56 }
 0x104   :  { %v476_v60 = vpack.c.bf16 %v406_v58, %v405_v57 }
 0x105   :  { %v395_v62 = vadd.f32 %v464_v41, %v384_v59  ;;  %v385_v63 = vmul.f32 %v463_v37, %v357_v61 }
 0x106   :  { %477 = vst [vmem:[%s705_s4] sm:$0xff] %v476_v60  }
 0x107   :  { %v403_v0 = vmul.f32 0.2, %v395_v62  ;;  %v396_v1 = vadd.f32 %v464_v41, %v385_v63  ;;  %vm399_vm2 = vcmp.gt.f32.partialorder %v395_v62, 0.0 }
 0x109   :  { %vm400_vm3 = vcmp.gt.f32.partialorder %v396_v1, 0.0  ;;  %v404_v2 = vmul.f32 0.2, %v396_v1  ;;  %v407_v3 = vsel %vm399_vm2, %v395_v62, %v403_v0 }
 0x10b   :  { %v408_v4 = vsel %vm400_vm3, %v396_v1, %v404_v2 }
 0x10c   :  { %v481_v5 = vpack.c.bf16 %v408_v4, %v407_v3 }
 0x10e   :  { %483 = vst [vmem:[%s705_s4 + $0x8] sm:$0xff] %v481_v5  }

// kernel: fwd.36
= control target key start
LH: loop header
LB: loop body
LE: loop exit
PB: predicated region body
PF: predicated region fallthrough
CT: control target
= control target key end

     0   :  { %s706_s1 = inlined_call_operand.vmem [shape: bf16[512,128], index: 1, kind: input, shape index: {}]   ;;  %s707_s0 = inlined_call_operand.vmem [shape: bf16[16,512], index: 0, kind: input, shape index: {}]   ;;  %s708_s2 = inlined_call_operand.vmem [shape: f32[1,128], index: 2, kind: input, shape index: {}]   ;;  %s709_s3 = inlined_call_operand.vmem [shape: f32[1,128], index: 3, kind: input, shape index: {}]   ;;  %s710_s4 = inlined_call_operand.vmem [shape: bf16[16,128], index: 4, kind: output, shape index: {}]  }
   0x1   :  { %v526_v0 = vld [vmem:[%s706_s1 + $0x40] sm:$0xff]   ;;  %v530_v4 = vld [vmem:[%s706_s1 + $0x48] sm:$0xff]   ;;  %v534_v8 = vld [vmem:[%s706_s1 + $0x50] sm:$0xff]  }
   0x2   :  { %v527_v1 = vld [vmem:[%s706_s1 + $0xc0] sm:$0xff]   ;;  %482 = vmatprep.subr.bf16.mxu0 %v526_v0  ;;  %v531_v5 = vld [vmem:[%s706_s1 + $0xc8] sm:$0xff]   ;;  %v535_v9 = vld [vmem:[%s706_s1 + $0xd0] sm:$0xff]  }
   0x3   :  { %v528_v2 = vld [vmem:[%s706_s1] sm:$0xff]   ;;  %504 = vmatprep.subr.bf16.mxu1 %v527_v1  ;;  %v532_v6 = vld [vmem:[%s706_s1 + $0x8] sm:$0xff]   ;;  %v536_v10 = vld [vmem:[%s706_s1 + $0x10] sm:$0xff]  }
   0x4   :  { %v529_v3 = vld [vmem:[%s706_s1 + $0x80] sm:$0xff]   ;;  %483 = vmatpush3.bf16.msra.mxu0 %v528_v2  ;;  %v533_v7 = vld [vmem:[%s706_s1 + $0x88] sm:$0xff]   ;;  %v537_v11 = vld [vmem:[%s706_s1 + $0x90] sm:$0xff]  }
   0x5   :  { %505 = vmatpush3.bf16.msra.mxu1 %v529_v3  ;;  %484 = vmatprep.subr.bf16.mxu0 %v530_v4  ;;  %v538_v12 = vld [vmem:[%s706_s1 + $0x58] sm:$0xff]   ;;  %v542_v16 = vld [vmem:[%s706_s1 + $0x60] sm:$0xff]   ;;  %v546_v20 = vld [vmem:[%s706_s1 + $0x68] sm:$0xff]  }
   0x6   :  { %506 = vmatprep.subr.bf16.mxu1 %v531_v5  ;;  %v539_v13 = vld [vmem:[%s706_s1 + $0xd8] sm:$0xff]   ;;  %v543_v17 = vld [vmem:[%s706_s1 + $0xe0] sm:$0xff]   ;;  %v547_v21 = vld [vmem:[%s706_s1 + $0xe8] sm:$0xff]  }
   0x7   :  { %v540_v14 = vld [vmem:[%s706_s1 + $0x18] sm:$0xff]   ;;  %v544_v18 = vld [vmem:[%s706_s1 + $0x20] sm:$0xff]   ;;  %v548_v22 = vld [vmem:[%s706_s1 + $0x28] sm:$0xff]  }
   0x8   :  { %485 = vmatpush3.bf16.msra.mxu0 %v532_v6  ;;  %v541_v15 = vld [vmem:[%s706_s1 + $0x98] sm:$0xff]   ;;  %v545_v19 = vld [vmem:[%s706_s1 + $0xa0] sm:$0xff]   ;;  %v549_v23 = vld [vmem:[%s706_s1 + $0xa8] sm:$0xff]  }
   0x9   :  { %507 = vmatpush3.bf16.msra.mxu1 %v533_v7  ;;  %486 = vmatprep.subr.bf16.mxu0 %v534_v8  ;;  %v550_v24 = vld [vmem:[%s706_s1 + $0x70] sm:$0xff]   ;;  %v554_v28 = vld [vmem:[%s706_s1 + $0x78] sm:$0xff]   ;;  %v471_v45 = vld [vmem:[%s708_s2] ss:$0 sm:$0xff] }
   0xa   :  { %508 = vmatprep.subr.bf16.mxu1 %v535_v9  ;;  %v551_v25 = vld [vmem:[%s706_s1 + $0xf0] sm:$0xff]   ;;  %v555_v29 = vld [vmem:[%s706_s1 + $0xf8] sm:$0xff]   ;;  %v472_v50 = vld [vmem:[%s709_s3] ss:$0 sm:$0xff] }
   0xb   :  { %v552_v26 = vld [vmem:[%s706_s1 + $0x30] sm:$0xff]   ;;  %v556_v30 = vld [vmem:[%s706_s1 + $0x38] sm:$0xff]  }
   0xc   :  { %487 = vmatpush3.bf16.msra.mxu0 %v536_v10  ;;  %v553_v27 = vld [vmem:[%s706_s1 + $0xb0] sm:$0xff]   ;;  %v557_v31 = vld [vmem:[%s706_s1 + $0xb8] sm:$0xff]  }
   0xd   :  { %509 = vmatpush3.bf16.msra.mxu1 %v537_v11  ;;  %488 = vmatprep.subr.bf16.mxu0 %v538_v12  ;;  %v558_v32 = vld [vmem:[%s707_s0] ss:$16 sps:$4 sm:$0xff]   ;;  %v560_v33 = vld [vmem:[%s707_s0 + $0x4] ss:$16 sps:$4 sm:$0xff]   ;;  %v561_v34 = vld [vmem:[%s707_s0 + $0x8] ss:$16 sps:$4 sm:$0xff]  }
   0xe   :  { %510 = vmatprep.subr.bf16.mxu1 %v539_v13  ;;  %v563_v35 = vld [vmem:[%s707_s0 + $0xc] ss:$16 sps:$4 sm:$0xff]   ;;  %338 = vmatprep.mubr.bf16.mxu0 %v560_v33 }
   0xf   :  { %379 = vmatprep.mubr.bf16.mxu1 %v563_v35 }
  0x10   :  { %489 = vmatpush3.bf16.msra.mxu0 %v540_v14 }
  0x11   :  { %511 = vmatpush3.bf16.msra.mxu1 %v541_v15  ;;  %490 = vmatprep.subr.bf16.mxu0 %v542_v16 }
  0x12   :  { %512 = vmatprep.subr.bf16.mxu1 %v543_v17 }
  0x14   :  { %491 = vmatpush3.bf16.msra.mxu0 %v544_v18 }
  0x15   :  { %513 = vmatpush3.bf16.msra.mxu1 %v545_v19  ;;  %492 = vmatprep.subr.bf16.mxu0 %v546_v20 }
  0x16   :  { %514 = vmatprep.subr.bf16.mxu1 %v547_v21 }
  0x18   :  { %493 = vmatpush3.bf16.msra.mxu0 %v548_v22 }
  0x19   :  { %515 = vmatpush3.bf16.msra.mxu1 %v549_v23  ;;  %494 = vmatprep.subr.bf16.mxu0 %v550_v24 }
  0x1a   :  { %516 = vmatprep.subr.bf16.mxu1 %v551_v25 }
  0x1c   :  { %495 = vmatpush3.bf16.msra.mxu0 %v552_v26 }
  0x1d   :  { %517 = vmatpush3.bf16.msra.mxu1 %v553_v27  ;;  %496 = vmatprep.subr.bf16.mxu0 %v554_v28 }
  0x1e   :  { %518 = vmatprep.subr.bf16.mxu1 %v555_v29 }
  0x20   :  { %497 = vmatpush3.bf16.msra.mxu0 %v556_v30 }
  0x21   :  { %519 = vmatpush3.bf16.msra.mxu1 %v557_v31 }
  0x23   :  { %339 = vmatmul.mubr.bf16.vlgmr.msra.gmra.mrb[0].mxu0 %v558_v32 }
  0x24   :  { %380 = vmatmul.mubr.bf16.vlgmr.msra.gmra.mrb[0].mxu1 %v561_v34 }
  0xf6   :  { %v498_v36 = vpop.f32.mrb[0].mxu0 }
  0xf7   :  { %v520_v37 = vpop.f32.mrb[0].mxu1  ;;  %v499_v38 = vpop.f32.mrb[1].mxu0 }
  0xf8   :  { %v500_v39 = vadd.f32 %v499_v38, %v498_v36  ;;  %v521_v40 = vpop.f32.mrb[1].mxu1  ;;  %v501_v41 = vpop.f32.mrb[2].mxu0 }
  0xf9   :  { %v522_v42 = vadd.f32 %v521_v40, %v520_v37  ;;  %v523_v43 = vpop.f32.mrb[2].mxu1  ;;  %v502_v44 = vpop.f32.mrb[3].mxu0 }
  0xfa   :  { %v503_v46 = vadd.f32 %v502_v44, %v501_v41  ;;  %v524_v47 = vpop.f32.mrb[3].mxu1 }
  0xfb   :  { %v382_v48 = vadd.f32 %v522_v42, %v500_v39  ;;  %v525_v49 = vadd.f32 %v524_v47, %v523_v43 }
  0xfd   :  { %v404_v51 = vmul.f32 %v471_v45, %v382_v48  ;;  %v385_v52 = vadd.f32 %v525_v49, %v503_v46 }
  0xff   :  { %v413_v53 = vadd.f32 %v472_v50, %v404_v51  ;;  %v405_v54 = vmul.f32 %v471_v45, %v385_v52 }
 0x101   :  { %v417_v55 = vmul.f32 0.2, %v413_v53  ;;  %v414_v56 = vadd.f32 %v472_v50, %v405_v54  ;;  %vm415_vm0 = vcmp.gt.f32.partialorder %v413_v53, 0.0 }
 0x103   :  { %vm416_vm1 = vcmp.gt.f32.partialorder %v414_v56, 0.0  ;;  %v418_v57 = vmul.f32 0.2, %v414_v56  ;;  %v419_v58 = vsel %vm415_vm0, %v413_v53, %v417_v55 }
 0x105   :  { %v420_v59 = vsel %vm416_vm1, %v414_v56, %v418_v57 }
 0x106   :  { %v480_v60 = vpack.c.bf16 %v420_v59, %v419_v58 }
 0x108   :  { %481 = vst [vmem:[%s710_s4] sm:$0xff] %v480_v60  }

// kernel: fwd.37
= control target key start
LH: loop header
LB: loop body
LE: loop exit
PB: predicated region body
PF: predicated region fallthrough
CT: control target
= control target key end

     0   :  { %s812_s15 = smov 0   ;;  %s814_s16 = smov 0   ;;  %s903_s0 = inlined_call_operand.vmem [shape: bf16[16,640], index: 0, kind: input, shape index: {}]   ;;  %s904_s1 = inlined_call_operand.vmem [shape: bf16[640,128], index: 1, kind: input, shape index: {}]   ;;  %s905_s2 = inlined_call_operand.vmem [shape: f32[1,128], index: 2, kind: input, shape index: {}]   ;;  %s906_s3 = inlined_call_operand.vmem [shape: f32[1,128], index: 3, kind: input, shape index: {}]   ;;  %s907_s4 = inlined_call_operand.vmem [shape: bf16[16,128], index: 4, kind: output, shape index: {}]  }
   0x1   :  { %s816_s17 = smov 0   ;;  %s818_s18 = smov 0  }
   0x2   :  { %s820_s19 = smov 0  }
   0x3 LB: > { %s26_s20 = sadd.s32 1, %s778_s18  ;;  %p49_p1 = scmp.ne.s32.totalorder %s770_s16, %s766_s15  ;;  %s782_s19 = sphi %s820_s19, %s14_s19   ;;  %s778_s18 = sphi %s818_s18, %s911_s18   ;;  %s774_s17 = sphi %s816_s17, %s910_s17   ;;  %s770_s16 = sphi %s814_s16, %s909_s16   ;;  %s766_s15 = sphi %s812_s15, %s908_s15  }
   0x4   : > { %p27_p0 = scmp.ge.s32.totalorder %s26_s20, 5  ;;  %p50_p2 = scmp.eq.s32.totalorder %s782_s19, 0 }
   0x5   : > { %s42_s22 = sadd.s32 1, %s770_s16  ;;  %p630_p5 = scmp.ge.s32.totalorder %s782_s19, 5 }
   0x6   : > { %s913_s20 = smov (%p27_p0, %s26_s20), 0  ;;  %p51_p3 = por %p50_p2, %p49_p1 }
   0x7   : > { %s38_s21 = ssub.s32 %s778_s18, %s913_s20  ;;  %195 = sbr.rel (%p630_p5) target bundleno = 21 (0x15), region = 24 }
   0x8   : > { %p40_p4 = scmp.eq.s32.totalorder %s38_s21, 0 }
   0xa   : > { %s847_s23 = scalar_select %p40_p4, %s770_s16, %s42_s22  }
   0xe   : > { %198 = sbr.rel (!%p51_p3) target bundleno = 21 (0x15), region = 28  ;;  %s200_s24 = sand.u32 (%p51_p3), 1, %s770_s16  }
   0xf   : > { %s632_s25 = sshll.u32 (%p51_p3), %s778_s18, 2  ;;  %s631_s26 = sshll.u32 (%p51_p3), %s200_s24, 3 }
  0x10   : > { %s207_s29 = scalar_lea.vmem (%p51_p3), %s903_s0, %s632_s25  ;;  %s202_s30 = scalar_lea.vmem (%p51_p3), [#allocation3], %s631_s26 }
  0x11   : > { %v223_v0 = vld [vmem:[%s207_s29] sm:$0xf] (%p51_p3)  ;;  %v225_v1 = vld [vmem:[%s207_s29 + $0x14] sm:$0xf] (%p51_p3) }
  0x12   : > { %224 = vst [vmem:[%s202_s30] sm:$0xf] (%p51_p3), %v223_v0  ;;  %226 = vst [vmem:[%s202_s30 + $0x4] sm:$0xf] (%p51_p3), %v225_v1 }
  0x15 PF: > { %p633_p6 = scmp.ge.s32.totalorder %s782_s19, 1  ;;  %p264_p7 = scmp.lt.s32.totalorder %s782_s19, 6 }
  0x17   : > { %p265_p8 = pnand %p633_p6, %p264_p7 }
  0x18   : > { %s271_s5 = sand.u32 (!%p265_p8), 1, %s766_s15   ;;  %s635_s6 = sshll.u32 (!%p265_p8), %s774_s17, 4 }
  0x19   : > { %268 = sbr.rel (%p265_p8) target bundleno = 306 (0x132), region = 73  ;;  %s859_s7 = sshll.u32 (!%p265_p8), %s271_s5, 3 }
  0x1a   : > { %p315_p9 = scmp.lt.s32.totalorder (!%p265_p8), %s635_s6, 79  ;;  %s273_s12 = scalar_lea.vmem (!%p265_p8), [#allocation3], %s859_s7 }
  0x1b   : > { %p637_p10 = scmp.ne.s32.totalorder (!%p265_p8), %s774_s17, 0 }
  0x20   : > { %s915_s6 = smov (!%p315_p9, %s635_s6), 79  ;;  %342 = sbr.rel (%p637_p10) target bundleno = 39 (0x27), region = 81 }
  0x21   : > { %s636_s8 = sshll.u32 %s915_s6, 2  ;;  %v784_v2 = vmov (!%p637_p10), 0.0  }
  0x22   : > { %s864_s11 = scalar_lea.vmem %s904_s1, %s636_s8  ;;  %343 = vst [vmem:[#allocation2] sm:$0xff] (!%p637_p10), %v784_v2  ;;  %344 = vst [vmem:[#allocation2 + $0x8] sm:$0xff] (!%p637_p10), %v784_v2 }
  0x27 PF: > { %v735_v3 = vld [vmem:[%s864_s11] sm:$0xff]   ;;  %v785_v4 = vmov 0.0   ;;  %v736_v5 = vld [vmem:[%s864_s11 + $0x8] sm:$0xff]   ;;  %vm786_vm0 = vmmov 0   ;;  %v737_v6 = vld [vmem:[%s864_s11 + $0x10] sm:$0xff]   ;;  %p647_p11 = scmp.ne.s32.totalorder %s774_s17, 4 }
  0x28   : > { %672 = vmatprep.subr.bf16.mxu0 %v785_v4  ;;  %688 = vmatprep.mubr.msk.bf16.mxu0 %vm786_vm0, %v785_v4  ;;  %v738_v7 = vld [vmem:[%s864_s11 + $0x18] sm:$0xff]   ;;  %v739_v8 = vld [vmem:[%s864_s11 + $0x20] sm:$0xff]   ;;  %v740_v9 = vld [vmem:[%s864_s11 + $0x28] sm:$0xff]  }
  0x29   : > { %673 = vmatpush3.bf16.msra.mxu0 %v735_v3  ;;  %v741_v10 = vld [vmem:[%s864_s11 + $0x30] sm:$0xff]   ;;  %v742_v11 = vld [vmem:[%s864_s11 + $0x38] sm:$0xff]   ;;  %v345_v13 = vld [vmem:[#allocation2] sm:$0xff] }
  0x2a   : > { %674 = vmatprep.subr.bf16.mxu0 %v785_v4  ;;  %v743_v12 = vld [vmem:[%s273_s12] sm:$0xff]   ;;  %v346_v15 = vld [vmem:[#allocation2 + $0x8] sm:$0xff]  ;;  %v648_v23 = vld [vmem:[%s905_s2] ss:$0 sm:$0xff] (!%p647_p11) }
  0x2b   : > { %v649_v26 = vld [vmem:[%s906_s3] ss:$0 sm:$0xff] (!%p647_p11) }
  0x2d   : > { %675 = vmatpush3.bf16.msra.mxu0 %v736_v5 }
  0x2e   : > { %676 = vmatprep.subr.bf16.mxu0 %v785_v4 }
  0x31   : > { %677 = vmatpush3.bf16.msra.mxu0 %v737_v6 }
  0x32   : > { %678 = vmatprep.subr.bf16.mxu0 %v785_v4 }
  0x35   : > { %679 = vmatpush3.bf16.msra.mxu0 %v738_v7 }
  0x36   : > { %680 = vmatprep.subr.bf16.mxu0 %v785_v4 }
  0x39   : > { %681 = vmatpush3.bf16.msra.mxu0 %v739_v8 }
  0x3a   : > { %682 = vmatprep.subr.bf16.mxu0 %v785_v4 }
  0x3d   : > { %683 = vmatpush3.bf16.msra.mxu0 %v740_v9 }
  0x3e   : > { %684 = vmatprep.subr.bf16.mxu0 %v785_v4 }
  0x41   : > { %685 = vmatpush3.bf16.msra.mxu0 %v741_v10 }
  0x42   : > { %686 = vmatprep.subr.bf16.mxu0 %v785_v4 }
  0x45   : > { %687 = vmatpush3.bf16.msra.mxu0 %v742_v11 }
  0x48   : > { %689 = vmatmul.mubr.bf16.vlgmr.msra.gmra.mrb[0].mxu0 %v743_v12 }
 0x11a   : > { %467 = sbr.rel (%p647_p11) target bundleno = 306 (0x132), region = 85 }
 0x11b   : > { %v453_v14 = vpop.f32.mrb[0].mxu0 }
 0x11c   : > { %v460_v16 = vadd.f32 %v453_v14, %v345_v13  ;;  %v690_v17 = vpop.f32.mrb[1].mxu0 }
 0x11d   : > { %v456_v18 = vpop.f32.mrb[2].mxu0 }
 0x11e   : > { %462 = vst [vmem:[#allocation2] sm:$0xff] %v460_v16  ;;  %v461_v19 = vadd.f32 %v456_v18, %v346_v15  ;;  %v691_v20 = vpop.f32.mrb[3].mxu0 }
 0x120   : > { %463 = vst [vmem:[#allocation2 + $0x8] sm:$0xff] %v461_v19 }
 0x125   : > { %v468_v21 = vld [vmem:[#allocation2] sm:$0xff] }
 0x126   : > { %v477_v24 = vmul.f32 %v648_v23, %v468_v21 }
 0x127   : > { %v469_v22 = vld [vmem:[#allocation2 + $0x8] sm:$0xff] }
 0x128   : > { %v478_v25 = vmul.f32 %v648_v23, %v469_v22  ;;  %v486_v27 = vadd.f32 %v649_v26, %v477_v24 }
 0x12a   : > { %v487_v28 = vadd.f32 %v649_v26, %v478_v25  ;;  %vm488_vm1 = vcmp.gt.f32.partialorder %v486_v27, 0.0  ;;  %v490_v29 = vmul.f32 0.2, %v486_v27 }
 0x12c   : > { %vm489_vm2 = vcmp.gt.f32.partialorder %v487_v28, 0.0  ;;  %v491_v30 = vmul.f32 0.2, %v487_v28  ;;  %v492_v31 = vsel %vm488_vm1, %v486_v27, %v490_v29 }
 0x12e   : > { %v493_v32 = vsel %vm489_vm2, %v487_v28, %v491_v30 }
 0x12f   : > { %v661_v33 = vpack.c.bf16 %v493_v32, %v492_v31 }
 0x131   : > { %662 = vst [vmem:[%s907_s4] sm:$0xff] %v661_v33  }
 0x132 PF: > { %s14_s19 = sadd.s32 1, %s782_s19   ;;  %s908_s15 = smov %s770_s16 }
 0x133   : > { %p11_p12 = scmp.ge.s32.totalorder %s14_s19, 7   ;;  %s909_s16 = smov %s847_s23 }
 0x134   : > { %s910_s17 = smov %s778_s18  ;;  %s911_s18 = smov %s913_s20 }
 0x135   :  { %13 = sbr.rel (!%p11_p12) target bundleno = 3 (0x3), region = 129 }

// kernel: fwd.38
= control target key start
LH: loop header
LB: loop body
LE: loop exit
PB: predicated region body
PF: predicated region fallthrough
CT: control target
= control target key end

     0   :  { %s1113_s15 = smov 0   ;;  %s1115_s16 = smov 0   ;;  %s1229_s0 = inlined_call_operand.vmem [shape: bf16[16,1024], index: 0, kind: input, shape index: {}]   ;;  %s1230_s1 = inlined_call_operand.vmem [shape: bf16[1024,128], index: 1, kind: input, shape index: {}]   ;;  %s1231_s2 = inlined_call_operand.vmem [shape: f32[1,128], index: 2, kind: input, shape index: {}]   ;;  %s1232_s3 = inlined_call_operand.vmem [shape: f32[1,128], index: 3, kind: input, shape index: {}]   ;;  %s1233_s4 = inlined_call_operand.vmem [shape: bf16[16,128], index: 4, kind: output, shape index: {}]  }
   0x1   :  { %s1117_s17 = smov 0   ;;  %s1119_s18 = smov 0  }
   0x2   :  { %s1121_s19 = smov 0  }
   0x3 LB: > { %s26_s20 = sadd.s32 1, %s1081_s18  ;;  %p49_p1 = scmp.ne.s32.totalorder %s1073_s16, %s1069_s15  ;;  %s1085_s19 = sphi %s1121_s19, %s14_s19   ;;  %s1081_s18 = sphi %s1119_s18, %s1237_s18   ;;  %s1077_s17 = sphi %s1117_s17, %s1236_s17   ;;  %s1073_s16 = sphi %s1115_s16, %s1235_s16   ;;  %s1069_s15 = sphi %s1113_s15, %s1234_s15  }
   0x4   : > { %p27_p0 = scmp.ge.s32.totalorder %s26_s20, 2  ;;  %p50_p2 = scmp.eq.s32.totalorder %s1085_s19, 0 }
   0x5   : > { %s42_s22 = sadd.s32 1, %s1073_s16  ;;  %p862_p5 = scmp.ge.s32.totalorder %s1085_s19, 2 }
   0x6   : > { %s1239_s20 = smov (%p27_p0, %s26_s20), 0  ;;  %p51_p3 = por %p50_p2, %p49_p1 }
   0x7   : > { %s38_s21 = ssub.s32 %s1081_s18, %s1239_s20  ;;  %195 = sbr.rel (%p862_p5) target bundleno = 21 (0x15), region = 24 }
   0x8   : > { %p40_p4 = scmp.eq.s32.totalorder %s38_s21, 0 }
   0xa   : > { %s1148_s23 = scalar_select %p40_p4, %s1073_s16, %s42_s22  }
   0xe   : > { %198 = sbr.rel (!%p51_p3) target bundleno = 21 (0x15), region = 28  ;;  %s200_s24 = sand.u32 (%p51_p3), 1, %s1073_s16  }
   0xf   : > { %s916_s25 = sshll.u32 (%p51_p3), %s1081_s18, 4  ;;  %s863_s26 = sshll.u32 (%p51_p3), %s200_s24, 5 }
  0x10   : > { %s208_s29 = scalar_lea.vmem (%p51_p3), %s1229_s0, %s916_s25  ;;  %s202_s30 = scalar_lea.vmem (%p51_p3), [#allocation3], %s863_s26 }
  0x11   : > { %v221_v0 = vld [vmem:[%s208_s29] sm:$0xff] (%p51_p3)  ;;  %v223_v1 = vld [vmem:[%s208_s29 + $0x8] sm:$0xff] (%p51_p3) }
  0x12   : > { %v225_v2 = vld [vmem:[%s208_s29 + $0x20] sm:$0xff] (%p51_p3)  ;;  %222 = vst [vmem:[%s202_s30] sm:$0xff] (%p51_p3), %v221_v0  ;;  %224 = vst [vmem:[%s202_s30 + $0x8] sm:$0xff] (%p51_p3), %v223_v1  ;;  %v227_v3 = vld [vmem:[%s208_s29 + $0x28] sm:$0xff] (%p51_p3) }
  0x13   : > { %226 = vst [vmem:[%s202_s30 + $0x10] sm:$0xff] (%p51_p3), %v225_v2  ;;  %228 = vst [vmem:[%s202_s30 + $0x18] sm:$0xff] (%p51_p3), %v227_v3 }
  0x15 PF: > { %p866_p6 = scmp.ge.s32.totalorder %s1085_s19, 1  ;;  %p245_p7 = scmp.lt.s32.totalorder %s1085_s19, 3 }
  0x17   : > { %p246_p8 = pnand %p866_p6, %p245_p7 }
  0x18   : > { %s252_s5 = sand.u32 (!%p246_p8), 1, %s1069_s15   ;;  %s868_s6 = sshll.u32 (!%p246_p8), %s1077_s17, 6 }
  0x19   : > { %249 = sbr.rel (%p246_p8) target bundleno = 313 (0x139), region = 55  ;;  %s867_s7 = sshll.u32 (!%p246_p8), %s252_s5, 5 }
  0x1a   : > { %p297_p9 = scmp.lt.s32.totalorder (!%p246_p8), %s868_s6, 127  ;;  %s1165_s12 = scalar_lea.vmem (!%p246_p8), [#allocation3], %s867_s7 }
  0x1b   : > { %p870_p10 = scmp.ne.s32.totalorder (!%p246_p8), %s1077_s17, 0 }
  0x20   : > { %s1241_s6 = smov (!%p297_p9, %s868_s6), 127  ;;  %324 = sbr.rel (%p870_p10) target bundleno = 39 (0x27), region = 63 }
  0x21   : > { %s869_s8 = sshll.u32 %s1241_s6, 2  ;;  %v1087_v4 = vmov (!%p870_p10), 0.0  }
  0x22   : > { %s1163_s11 = scalar_lea.vmem %s1230_s1, %s869_s8  ;;  %325 = vst [vmem:[#allocation2] sm:$0xff] (!%p870_p10), %v1087_v4  ;;  %326 = vst [vmem:[#allocation2 + $0x8] sm:$0xff] (!%p870_p10), %v1087_v4 }
  0x27 PF: > { %v1009_v5 = vld [vmem:[%s1163_s11 + $0x40] sm:$0xff]   ;;  %v1013_v9 = vld [vmem:[%s1163_s11 + $0x48] sm:$0xff]   ;;  %v1017_v13 = vld [vmem:[%s1163_s11 + $0x50] sm:$0xff]   ;;  %p907_p11 = scmp.ne.s32.totalorder %s1077_s17, 1 }
  0x28   : > { %v1010_v6 = vld [vmem:[%s1163_s11 + $0xc0] sm:$0xff]   ;;  %924 = vmatprep.subr.bf16.mxu0 %v1009_v5  ;;  %v1014_v10 = vld [vmem:[%s1163_s11 + $0xc8] sm:$0xff]   ;;  %v1018_v14 = vld [vmem:[%s1163_s11 + $0xd0] sm:$0xff]  }
  0x29   : > { %v1011_v7 = vld [vmem:[%s1163_s11] sm:$0xff]   ;;  %946 = vmatprep.subr.bf16.mxu1 %v1010_v6  ;;  %v1015_v11 = vld [vmem:[%s1163_s11 + $0x8] sm:$0xff]   ;;  %v1019_v15 = vld [vmem:[%s1163_s11 + $0x10] sm:$0xff]  }
  0x2a   : > { %v1012_v8 = vld [vmem:[%s1163_s11 + $0x80] sm:$0xff]   ;;  %925 = vmatpush3.bf16.msra.mxu0 %v1011_v7  ;;  %v1016_v12 = vld [vmem:[%s1163_s11 + $0x88] sm:$0xff]   ;;  %v1020_v16 = vld [vmem:[%s1163_s11 + $0x90] sm:$0xff]  }
  0x2b   : > { %947 = vmatpush3.bf16.msra.mxu1 %v1012_v8  ;;  %926 = vmatprep.subr.bf16.mxu0 %v1013_v9  ;;  %v1021_v17 = vld [vmem:[%s1163_s11 + $0x58] sm:$0xff]   ;;  %v1025_v21 = vld [vmem:[%s1163_s11 + $0x60] sm:$0xff]   ;;  %v1029_v25 = vld [vmem:[%s1163_s11 + $0x68] sm:$0xff]  }
  0x2c   : > { %948 = vmatprep.subr.bf16.mxu1 %v1014_v10  ;;  %v1022_v18 = vld [vmem:[%s1163_s11 + $0xd8] sm:$0xff]   ;;  %v1026_v22 = vld [vmem:[%s1163_s11 + $0xe0] sm:$0xff]   ;;  %v1030_v26 = vld [vmem:[%s1163_s11 + $0xe8] sm:$0xff]  }
  0x2d   : > { %v1023_v19 = vld [vmem:[%s1163_s11 + $0x18] sm:$0xff]   ;;  %v1027_v23 = vld [vmem:[%s1163_s11 + $0x20] sm:$0xff]   ;;  %v1031_v27 = vld [vmem:[%s1163_s11 + $0x28] sm:$0xff]  }
  0x2e   : > { %927 = vmatpush3.bf16.msra.mxu0 %v1015_v11  ;;  %v1024_v20 = vld [vmem:[%s1163_s11 + $0x98] sm:$0xff]   ;;  %v1028_v24 = vld [vmem:[%s1163_s11 + $0xa0] sm:$0xff]   ;;  %v1032_v28 = vld [vmem:[%s1163_s11 + $0xa8] sm:$0xff]  }
  0x2f   : > { %949 = vmatpush3.bf16.msra.mxu1 %v1016_v12  ;;  %928 = vmatprep.subr.bf16.mxu0 %v1017_v13  ;;  %v1033_v29 = vld [vmem:[%s1163_s11 + $0x70] sm:$0xff]   ;;  %v1037_v33 = vld [vmem:[%s1163_s11 + $0x78] sm:$0xff]   ;;  %v327_v50 = vld [vmem:[#allocation2] sm:$0xff] }
  0x30   : > { %950 = vmatprep.subr.bf16.mxu1 %v1018_v14  ;;  %v1034_v30 = vld [vmem:[%s1163_s11 + $0xf0] sm:$0xff]   ;;  %v1038_v34 = vld [vmem:[%s1163_s11 + $0xf8] sm:$0xff]   ;;  %v328_v55 = vld [vmem:[#allocation2 + $0x8] sm:$0xff] }
  0x31   : > { %v1035_v31 = vld [vmem:[%s1163_s11 + $0x30] sm:$0xff]   ;;  %v1039_v35 = vld [vmem:[%s1163_s11 + $0x38] sm:$0xff]   ;;  %v908_v61 = vld [vmem:[%s1231_s2] ss:$0 sm:$0xff] (!%p907_p11) }
  0x32   : > { %929 = vmatpush3.bf16.msra.mxu0 %v1019_v15  ;;  %v1036_v32 = vld [vmem:[%s1163_s11 + $0xb0] sm:$0xff]   ;;  %v1040_v36 = vld [vmem:[%s1163_s11 + $0xb8] sm:$0xff]   ;;  %v909_v0 = vld [vmem:[%s1232_s3] ss:$0 sm:$0xff] (!%p907_p11) }
  0x33   : > { %951 = vmatpush3.bf16.msra.mxu1 %v1020_v16  ;;  %930 = vmatprep.subr.bf16.mxu0 %v1021_v17  ;;  %v1041_v37 = vld [vmem:[%s1165_s12] ss:$16 sps:$4 sm:$0xff]   ;;  %v1043_v38 = vld [vmem:[%s1165_s12 + $0x4] ss:$16 sps:$4 sm:$0xff]   ;;  %v1044_v39 = vld [vmem:[%s1165_s12 + $0x8] ss:$16 sps:$4 sm:$0xff]  }
  0x34   : > { %952 = vmatprep.subr.bf16.mxu1 %v1022_v18  ;;  %v1046_v40 = vld [vmem:[%s1165_s12 + $0xc] ss:$16 sps:$4 sm:$0xff]   ;;  %641 = vmatprep.mubr.bf16.mxu0 %v1043_v38 }
  0x35   : > { %682 = vmatprep.mubr.bf16.mxu1 %v1046_v40 }
  0x36   : > { %931 = vmatpush3.bf16.msra.mxu0 %v1023_v19 }
  0x37   : > { %953 = vmatpush3.bf16.msra.mxu1 %v1024_v20  ;;  %932 = vmatprep.subr.bf16.mxu0 %v1025_v21 }
  0x38   : > { %954 = vmatprep.subr.bf16.mxu1 %v1026_v22 }
  0x3a   : > { %933 = vmatpush3.bf16.msra.mxu0 %v1027_v23 }
  0x3b   : > { %955 = vmatpush3.bf16.msra.mxu1 %v1028_v24  ;;  %934 = vmatprep.subr.bf16.mxu0 %v1029_v25 }
  0x3c   : > { %956 = vmatprep.subr.bf16.mxu1 %v1030_v26 }
  0x3e   : > { %935 = vmatpush3.bf16.msra.mxu0 %v1031_v27 }
  0x3f   : > { %957 = vmatpush3.bf16.msra.mxu1 %v1032_v28  ;;  %936 = vmatprep.subr.bf16.mxu0 %v1033_v29 }
  0x40   : > { %958 = vmatprep.subr.bf16.mxu1 %v1034_v30 }
  0x42   : > { %937 = vmatpush3.bf16.msra.mxu0 %v1035_v31 }
  0x43   : > { %959 = vmatpush3.bf16.msra.mxu1 %v1036_v32  ;;  %938 = vmatprep.subr.bf16.mxu0 %v1037_v33 }
  0x44   : > { %960 = vmatprep.subr.bf16.mxu1 %v1038_v34 }
  0x46   : > { %939 = vmatpush3.bf16.msra.mxu0 %v1039_v35 }
  0x47   : > { %961 = vmatpush3.bf16.msra.mxu1 %v1040_v36 }
  0x49   : > { %642 = vmatmul.mubr.bf16.vlgmr.msra.gmra.mrb[0].mxu0 %v1041_v37 }
  0x4a   : > { %683 = vmatmul.mubr.bf16.vlgmr.msra.gmra.mrb[0].mxu1 %v1044_v39 }
 0x11c   : > { %v940_v41 = vpop.f32.mrb[0].mxu0 }
 0x11d   : > { %v962_v42 = vpop.f32.mrb[0].mxu1  ;;  %v941_v43 = vpop.f32.mrb[1].mxu0 }
 0x11e   : > { %v942_v44 = vadd.f32 %v941_v43, %v940_v41  ;;  %v963_v45 = vpop.f32.mrb[1].mxu1  ;;  %v943_v46 = vpop.f32.mrb[2].mxu0 }
 0x11f   : > { %v964_v47 = vadd.f32 %v963_v45, %v962_v42  ;;  %v965_v48 = vpop.f32.mrb[2].mxu1  ;;  %v944_v49 = vpop.f32.mrb[3].mxu0 }
 0x120   : > { %v945_v51 = vadd.f32 %v944_v49, %v943_v46  ;;  %v966_v52 = vpop.f32.mrb[3].mxu1 }
 0x121   : > { %v685_v53 = vadd.f32 %v964_v47, %v942_v44  ;;  %v967_v54 = vadd.f32 %v966_v52, %v965_v48  ;;  %698 = sbr.rel (%p907_p11) target bundleno = 313 (0x139), region = 67 }
 0x123   : > { %v691_v56 = vadd.f32 %v685_v53, %v327_v50  ;;  %v688_v57 = vadd.f32 %v967_v54, %v945_v51 }
 0x125   : > { %693 = vst [vmem:[#allocation2] sm:$0xff] %v691_v56  ;;  %v692_v58 = vadd.f32 %v688_v57, %v328_v55 }
 0x127   : > { %694 = vst [vmem:[#allocation2 + $0x8] sm:$0xff] %v692_v58 }
 0x12c   : > { %v699_v59 = vld [vmem:[#allocation2] sm:$0xff] }
 0x12d   : > { %v708_v62 = vmul.f32 %v908_v61, %v699_v59 }
 0x12e   : > { %v700_v60 = vld [vmem:[#allocation2 + $0x8] sm:$0xff] }
 0x12f   : > { %v709_v63 = vmul.f32 %v908_v61, %v700_v60  ;;  %v717_v1 = vadd.f32 %v909_v0, %v708_v62 }
 0x131   : > { %v718_v2 = vadd.f32 %v909_v0, %v709_v63  ;;  %vm719_vm0 = vcmp.gt.f32.partialorder %v717_v1, 0.0  ;;  %v721_v3 = vmul.f32 0.2, %v717_v1 }
 0x133   : > { %vm720_vm1 = vcmp.gt.f32.partialorder %v718_v2, 0.0  ;;  %v722_v4 = vmul.f32 0.2, %v718_v2  ;;  %v723_v5 = vsel %vm719_vm0, %v717_v1, %v721_v3 }
 0x135   : > { %v724_v6 = vsel %vm720_vm1, %v718_v2, %v722_v4 }
 0x136   : > { %v922_v7 = vpack.c.bf16 %v724_v6, %v723_v5 }
 0x138   : > { %923 = vst [vmem:[%s1233_s4] sm:$0xff] %v922_v7  }
 0x139 PF: > { %s14_s19 = sadd.s32 1, %s1085_s19   ;;  %s1234_s15 = smov %s1073_s16 }
 0x13a   : > { %p11_p12 = scmp.ge.s32.totalorder %s14_s19, 4   ;;  %s1235_s16 = smov %s1148_s23 }
 0x13b   : > { %s1236_s17 = smov %s1081_s18  ;;  %s1237_s18 = smov %s1239_s20 }
 0x13c   :  { %13 = sbr.rel (!%p11_p12) target bundleno = 3 (0x3), region = 111 }

// kernel: fwd.40
= control target key start
LH: loop header
LB: loop body
LE: loop exit
PB: predicated region body
PF: predicated region fallthrough
CT: control target
= control target key end

     0   :  { %s408_s1 = inlined_call_operand.vmem [shape: bf16[256,128], index: 1, kind: input, shape index: {}]   ;;  %s409_s0 = inlined_call_operand.vmem [shape: bf16[16,256], index: 0, kind: input, shape index: {}]   ;;  %s410_s2 = inlined_call_operand.vmem [shape: f32[1,128], index: 2, kind: input, shape index: {}]   ;;  %s411_s3 = inlined_call_operand.vmem [shape: f32[1,128], index: 3, kind: input, shape index: {}]   ;;  %s412_s4 = inlined_call_operand.vmem [shape: bf16[16,128], index: 4, kind: output, shape index: {}]  }
   0x1   :  { %v301_v0 = vld [vmem:[%s408_s1 + $0x40] sm:$0xff]   ;;  %v303_v2 = vld [vmem:[%s408_s1 + $0x48] sm:$0xff]   ;;  %v305_v4 = vld [vmem:[%s408_s1 + $0x50] sm:$0xff]  }
   0x2   :  { %v302_v1 = vld [vmem:[%s408_s1] sm:$0xff]   ;;  %279 = vmatprep.subr.bf16.mxu0 %v301_v0  ;;  %v304_v3 = vld [vmem:[%s408_s1 + $0x8] sm:$0xff]   ;;  %v306_v5 = vld [vmem:[%s408_s1 + $0x10] sm:$0xff]  }
   0x3   :  { %280 = vmatpush3.bf16.msra.mxu0 %v302_v1  ;;  %v307_v6 = vld [vmem:[%s408_s1 + $0x58] sm:$0xff]   ;;  %v309_v8 = vld [vmem:[%s408_s1 + $0x60] sm:$0xff]   ;;  %v311_v10 = vld [vmem:[%s408_s1 + $0x68] sm:$0xff]  }
   0x4   :  { %281 = vmatprep.subr.bf16.mxu0 %v303_v2  ;;  %v308_v7 = vld [vmem:[%s408_s1 + $0x18] sm:$0xff]   ;;  %v310_v9 = vld [vmem:[%s408_s1 + $0x20] sm:$0xff]   ;;  %v312_v12 = vld [vmem:[%s408_s1 + $0x28] sm:$0xff]  }
   0x5   :  { %v319_v11 = vld [vmem:[%s409_s0 + $0x4] ss:$8 sps:$4 sm:$0xff]   ;;  %v313_v13 = vld [vmem:[%s408_s1 + $0x70] sm:$0xff]   ;;  %v315_v15 = vld [vmem:[%s408_s1 + $0x78] sm:$0xff]  }
   0x6   :  { %198 = vmatprep.mubr.bf16.mxu0 %v319_v11  ;;  %v314_v14 = vld [vmem:[%s408_s1 + $0x30] sm:$0xff]   ;;  %v316_v16 = vld [vmem:[%s408_s1 + $0x38] sm:$0xff]   ;;  %v317_v17 = vld [vmem:[%s409_s0] ss:$8 sps:$4 sm:$0xff]  }
   0x7   :  { %282 = vmatpush3.bf16.msra.mxu0 %v304_v3  ;;  %v268_v20 = vld [vmem:[%s410_s2] ss:$0 sm:$0xff] }
   0x8   :  { %283 = vmatprep.subr.bf16.mxu0 %v305_v4  ;;  %v269_v23 = vld [vmem:[%s411_s3] ss:$0 sm:$0xff] }
   0xb   :  { %284 = vmatpush3.bf16.msra.mxu0 %v306_v5 }
   0xc   :  { %285 = vmatprep.subr.bf16.mxu0 %v307_v6 }
   0xf   :  { %286 = vmatpush3.bf16.msra.mxu0 %v308_v7 }
  0x10   :  { %287 = vmatprep.subr.bf16.mxu0 %v309_v8 }
  0x13   :  { %288 = vmatpush3.bf16.msra.mxu0 %v310_v9 }
  0x14   :  { %289 = vmatprep.subr.bf16.mxu0 %v311_v10 }
  0x17   :  { %290 = vmatpush3.bf16.msra.mxu0 %v312_v12 }
  0x18   :  { %291 = vmatprep.subr.bf16.mxu0 %v313_v13 }
  0x1b   :  { %292 = vmatpush3.bf16.msra.mxu0 %v314_v14 }
  0x1c   :  { %293 = vmatprep.subr.bf16.mxu0 %v315_v15 }
  0x1f   :  { %294 = vmatpush3.bf16.msra.mxu0 %v316_v16 }
  0x22   :  { %199 = vmatmul.mubr.bf16.vlgmr.msra.gmra.mrb[0].mxu0 %v317_v17 }
  0xf5   :  { %v295_v18 = vpop.f32.mrb[0].mxu0 }
  0xf6   :  { %v296_v19 = vpop.f32.mrb[1].mxu0 }
  0xf7   :  { %v297_v21 = vadd.f32 %v296_v19, %v295_v18  ;;  %v298_v22 = vpop.f32.mrb[2].mxu0 }
  0xf8   :  { %v299_v24 = vpop.f32.mrb[3].mxu0 }
  0xf9   :  { %v223_v25 = vmul.f32 %v297_v21, %v268_v20  ;;  %v300_v26 = vadd.f32 %v299_v24, %v298_v22 }
  0xfb   :  { %v232_v27 = vadd.f32 %v269_v23, %v223_v25  ;;  %v224_v28 = vmul.f32 %v300_v26, %v268_v20 }
  0xfd   :  { %v233_v29 = vadd.f32 %v269_v23, %v224_v28  ;;  %v234_v30 = vmax.f32 %v232_v27, 0.0 }
  0xff   :  { %v235_v31 = vmax.f32 %v233_v29, 0.0 }
 0x101   :  { %v277_v32 = vpack.c.bf16 %v235_v31, %v234_v30 }
 0x103   :  { %278 = vst [vmem:[%s412_s4] sm:$0xff] %v277_v32  }

// kernel: fwd.43
= control target key start
LH: loop header
LB: loop body
LE: loop exit
PB: predicated region body
PF: predicated region fallthrough
CT: control target
= control target key end

     0   :  { %s808_s15 = smov 0   ;;  %s810_s16 = smov 0   ;;  %s899_s0 = inlined_call_operand.vmem [shape: bf16[16,640], index: 0, kind: input, shape index: {}]   ;;  %s900_s1 = inlined_call_operand.vmem [shape: bf16[640,128], index: 1, kind: input, shape index: {}]   ;;  %s901_s2 = inlined_call_operand.vmem [shape: f32[1,128], index: 2, kind: input, shape index: {}]   ;;  %s902_s3 = inlined_call_operand.vmem [shape: f32[1,128], index: 3, kind: input, shape index: {}]   ;;  %s903_s4 = inlined_call_operand.vmem [shape: bf16[16,128], index: 4, kind: output, shape index: {}]  }
   0x1   :  { %s812_s17 = smov 0   ;;  %s814_s18 = smov 0  }
   0x2   :  { %s816_s19 = smov 0  }
   0x3 LB: > { %s26_s20 = sadd.s32 1, %s774_s18  ;;  %p49_p1 = scmp.ne.s32.totalorder %s766_s16, %s762_s15  ;;  %s778_s19 = sphi %s816_s19, %s14_s19   ;;  %s774_s18 = sphi %s814_s18, %s907_s18   ;;  %s770_s17 = sphi %s812_s17, %s906_s17   ;;  %s766_s16 = sphi %s810_s16, %s905_s16   ;;  %s762_s15 = sphi %s808_s15, %s904_s15  }
   0x4   : > { %p27_p0 = scmp.ge.s32.totalorder %s26_s20, 5  ;;  %p50_p2 = scmp.eq.s32.totalorder %s778_s19, 0 }
   0x5   : > { %s42_s22 = sadd.s32 1, %s766_s16  ;;  %p626_p5 = scmp.ge.s32.totalorder %s778_s19, 5 }
   0x6   : > { %s909_s20 = smov (%p27_p0, %s26_s20), 0  ;;  %p51_p3 = por %p50_p2, %p49_p1 }
   0x7   : > { %s38_s21 = ssub.s32 %s774_s18, %s909_s20  ;;  %195 = sbr.rel (%p626_p5) target bundleno = 21 (0x15), region = 24 }
   0x8   : > { %p40_p4 = scmp.eq.s32.totalorder %s38_s21, 0 }
   0xa   : > { %s843_s23 = scalar_select %p40_p4, %s766_s16, %s42_s22  }
   0xe   : > { %198 = sbr.rel (!%p51_p3) target bundleno = 21 (0x15), region = 28  ;;  %s200_s24 = sand.u32 (%p51_p3), 1, %s766_s16  }
   0xf   : > { %s628_s25 = sshll.u32 (%p51_p3), %s774_s18, 2  ;;  %s627_s26 = sshll.u32 (%p51_p3), %s200_s24, 3 }
  0x10   : > { %s207_s29 = scalar_lea.vmem (%p51_p3), %s899_s0, %s628_s25  ;;  %s202_s30 = scalar_lea.vmem (%p51_p3), [#allocation3], %s627_s26 }
  0x11   : > { %v223_v0 = vld [vmem:[%s207_s29] sm:$0xf] (%p51_p3)  ;;  %v225_v1 = vld [vmem:[%s207_s29 + $0x14] sm:$0xf] (%p51_p3) }
  0x12   : > { %224 = vst [vmem:[%s202_s30] sm:$0xf] (%p51_p3), %v223_v0  ;;  %226 = vst [vmem:[%s202_s30 + $0x4] sm:$0xf] (%p51_p3), %v225_v1 }
  0x15 PF: > { %p629_p6 = scmp.ge.s32.totalorder %s778_s19, 1  ;;  %p264_p7 = scmp.lt.s32.totalorder %s778_s19, 6 }
  0x17   : > { %p265_p8 = pnand %p629_p6, %p264_p7 }
  0x18   : > { %s271_s5 = sand.u32 (!%p265_p8), 1, %s762_s15   ;;  %s631_s6 = sshll.u32 (!%p265_p8), %s770_s17, 4 }
  0x19   : > { %268 = sbr.rel (%p265_p8) target bundleno = 305 (0x131), region = 73  ;;  %s855_s7 = sshll.u32 (!%p265_p8), %s271_s5, 3 }
  0x1a   : > { %p315_p9 = scmp.lt.s32.totalorder (!%p265_p8), %s631_s6, 79  ;;  %s273_s12 = scalar_lea.vmem (!%p265_p8), [#allocation3], %s855_s7 }
  0x1b   : > { %p633_p10 = scmp.ne.s32.totalorder (!%p265_p8), %s770_s17, 0 }
  0x20   : > { %s911_s6 = smov (!%p315_p9, %s631_s6), 79  ;;  %342 = sbr.rel (%p633_p10) target bundleno = 39 (0x27), region = 81 }
  0x21   : > { %s632_s8 = sshll.u32 %s911_s6, 2  ;;  %v780_v2 = vmov (!%p633_p10), 0.0  }
  0x22   : > { %s860_s11 = scalar_lea.vmem %s900_s1, %s632_s8  ;;  %343 = vst [vmem:[#allocation2] sm:$0xff] (!%p633_p10), %v780_v2  ;;  %344 = vst [vmem:[#allocation2 + $0x8] sm:$0xff] (!%p633_p10), %v780_v2 }
  0x27 PF: > { %v731_v3 = vld [vmem:[%s860_s11] sm:$0xff]   ;;  %v781_v4 = vmov 0.0   ;;  %v732_v5 = vld [vmem:[%s860_s11 + $0x8] sm:$0xff]   ;;  %vm782_vm0 = vmmov 0   ;;  %v733_v6 = vld [vmem:[%s860_s11 + $0x10] sm:$0xff]   ;;  %p643_p11 = scmp.ne.s32.totalorder %s770_s17, 4 }
  0x28   : > { %668 = vmatprep.subr.bf16.mxu0 %v781_v4  ;;  %684 = vmatprep.mubr.msk.bf16.mxu0 %vm782_vm0, %v781_v4  ;;  %v734_v7 = vld [vmem:[%s860_s11 + $0x18] sm:$0xff]   ;;  %v735_v8 = vld [vmem:[%s860_s11 + $0x20] sm:$0xff]   ;;  %v736_v9 = vld [vmem:[%s860_s11 + $0x28] sm:$0xff]  }
  0x29   : > { %669 = vmatpush3.bf16.msra.mxu0 %v731_v3  ;;  %v737_v10 = vld [vmem:[%s860_s11 + $0x30] sm:$0xff]   ;;  %v738_v11 = vld [vmem:[%s860_s11 + $0x38] sm:$0xff]   ;;  %v345_v13 = vld [vmem:[#allocation2] sm:$0xff] }
  0x2a   : > { %670 = vmatprep.subr.bf16.mxu0 %v781_v4  ;;  %v739_v12 = vld [vmem:[%s273_s12] sm:$0xff]   ;;  %v346_v15 = vld [vmem:[#allocation2 + $0x8] sm:$0xff]  ;;  %v644_v23 = vld [vmem:[%s901_s2] ss:$0 sm:$0xff] (!%p643_p11) }
  0x2b   : > { %v645_v26 = vld [vmem:[%s902_s3] ss:$0 sm:$0xff] (!%p643_p11) }
  0x2d   : > { %671 = vmatpush3.bf16.msra.mxu0 %v732_v5 }
  0x2e   : > { %672 = vmatprep.subr.bf16.mxu0 %v781_v4 }
  0x31   : > { %673 = vmatpush3.bf16.msra.mxu0 %v733_v6 }
  0x32   : > { %674 = vmatprep.subr.bf16.mxu0 %v781_v4 }
  0x35   : > { %675 = vmatpush3.bf16.msra.mxu0 %v734_v7 }
  0x36   : > { %676 = vmatprep.subr.bf16.mxu0 %v781_v4 }
  0x39   : > { %677 = vmatpush3.bf16.msra.mxu0 %v735_v8 }
  0x3a   : > { %678 = vmatprep.subr.bf16.mxu0 %v781_v4 }
  0x3d   : > { %679 = vmatpush3.bf16.msra.mxu0 %v736_v9 }
  0x3e   : > { %680 = vmatprep.subr.bf16.mxu0 %v781_v4 }
  0x41   : > { %681 = vmatpush3.bf16.msra.mxu0 %v737_v10 }
  0x42   : > { %682 = vmatprep.subr.bf16.mxu0 %v781_v4 }
  0x45   : > { %683 = vmatpush3.bf16.msra.mxu0 %v738_v11 }
  0x48   : > { %685 = vmatmul.mubr.bf16.vlgmr.msra.gmra.mrb[0].mxu0 %v739_v12 }
 0x11a   : > { %467 = sbr.rel (%p643_p11) target bundleno = 305 (0x131), region = 85 }
 0x11b   : > { %v453_v14 = vpop.f32.mrb[0].mxu0 }
 0x11c   : > { %v460_v16 = vadd.f32 %v453_v14, %v345_v13  ;;  %v686_v17 = vpop.f32.mrb[1].mxu0 }
 0x11d   : > { %v456_v18 = vpop.f32.mrb[2].mxu0 }
 0x11e   : > { %462 = vst [vmem:[#allocation2] sm:$0xff] %v460_v16  ;;  %v461_v19 = vadd.f32 %v456_v18, %v346_v15  ;;  %v687_v20 = vpop.f32.mrb[3].mxu0 }
 0x120   : > { %463 = vst [vmem:[#allocation2 + $0x8] sm:$0xff] %v461_v19 }
 0x125   : > { %v468_v21 = vld [vmem:[#allocation2] sm:$0xff] }
 0x126   : > { %v477_v24 = vmul.f32 %v644_v23, %v468_v21 }
 0x127   : > { %v469_v22 = vld [vmem:[#allocation2 + $0x8] sm:$0xff] }
 0x128   : > { %v478_v25 = vmul.f32 %v644_v23, %v469_v22  ;;  %v486_v27 = vadd.f32 %v645_v26, %v477_v24 }
 0x12a   : > { %v487_v28 = vadd.f32 %v645_v26, %v478_v25  ;;  %v488_v29 = vmax.f32 %v486_v27, 0.0 }
 0x12c   : > { %v489_v30 = vmax.f32 %v487_v28, 0.0 }
 0x12e   : > { %v657_v31 = vpack.c.bf16 %v489_v30, %v488_v29 }
 0x130   : > { %658 = vst [vmem:[%s903_s4] sm:$0xff] %v657_v31  }
 0x131 PF: > { %s14_s19 = sadd.s32 1, %s778_s19   ;;  %s904_s15 = smov %s766_s16 }
 0x132   : > { %p11_p12 = scmp.ge.s32.totalorder %s14_s19, 7   ;;  %s905_s16 = smov %s843_s23 }
 0x133   : > { %s906_s17 = smov %s774_s18  ;;  %s907_s18 = smov %s909_s20 }
 0x134   :  { %13 = sbr.rel (!%p11_p12) target bundleno = 3 (0x3), region = 129 }

// kernel: fwd.44
= control target key start
LH: loop header
LB: loop body
LE: loop exit
PB: predicated region body
PF: predicated region fallthrough
CT: control target
= control target key end

     0   :  { %s702_s1 = inlined_call_operand.vmem [shape: bf16[512,128], index: 1, kind: input, shape index: {}]   ;;  %s703_s0 = inlined_call_operand.vmem [shape: bf16[16,512], index: 0, kind: input, shape index: {}]   ;;  %s704_s2 = inlined_call_operand.vmem [shape: f32[1,128], index: 2, kind: input, shape index: {}]   ;;  %s705_s3 = inlined_call_operand.vmem [shape: f32[1,128], index: 3, kind: input, shape index: {}]   ;;  %s706_s4 = inlined_call_operand.vmem [shape: bf16[16,128], index: 4, kind: output, shape index: {}]  }
   0x1   :  { %v522_v0 = vld [vmem:[%s702_s1 + $0x40] sm:$0xff]   ;;  %v526_v4 = vld [vmem:[%s702_s1 + $0x48] sm:$0xff]   ;;  %v530_v8 = vld [vmem:[%s702_s1 + $0x50] sm:$0xff]  }
   0x2   :  { %v523_v1 = vld [vmem:[%s702_s1 + $0xc0] sm:$0xff]   ;;  %478 = vmatprep.subr.bf16.mxu0 %v522_v0  ;;  %v527_v5 = vld [vmem:[%s702_s1 + $0xc8] sm:$0xff]   ;;  %v531_v9 = vld [vmem:[%s702_s1 + $0xd0] sm:$0xff]  }
   0x3   :  { %v524_v2 = vld [vmem:[%s702_s1] sm:$0xff]   ;;  %500 = vmatprep.subr.bf16.mxu1 %v523_v1  ;;  %v528_v6 = vld [vmem:[%s702_s1 + $0x8] sm:$0xff]   ;;  %v532_v10 = vld [vmem:[%s702_s1 + $0x10] sm:$0xff]  }
   0x4   :  { %v525_v3 = vld [vmem:[%s702_s1 + $0x80] sm:$0xff]   ;;  %479 = vmatpush3.bf16.msra.mxu0 %v524_v2  ;;  %v529_v7 = vld [vmem:[%s702_s1 + $0x88] sm:$0xff]   ;;  %v533_v11 = vld [vmem:[%s702_s1 + $0x90] sm:$0xff]  }
   0x5   :  { %501 = vmatpush3.bf16.msra.mxu1 %v525_v3  ;;  %480 = vmatprep.subr.bf16.mxu0 %v526_v4  ;;  %v534_v12 = vld [vmem:[%s702_s1 + $0x58] sm:$0xff]   ;;  %v538_v16 = vld [vmem:[%s702_s1 + $0x60] sm:$0xff]   ;;  %v542_v20 = vld [vmem:[%s702_s1 + $0x68] sm:$0xff]  }
   0x6   :  { %502 = vmatprep.subr.bf16.mxu1 %v527_v5  ;;  %v535_v13 = vld [vmem:[%s702_s1 + $0xd8] sm:$0xff]   ;;  %v539_v17 = vld [vmem:[%s702_s1 + $0xe0] sm:$0xff]   ;;  %v543_v21 = vld [vmem:[%s702_s1 + $0xe8] sm:$0xff]  }
   0x7   :  { %v536_v14 = vld [vmem:[%s702_s1 + $0x18] sm:$0xff]   ;;  %v540_v18 = vld [vmem:[%s702_s1 + $0x20] sm:$0xff]   ;;  %v544_v22 = vld [vmem:[%s702_s1 + $0x28] sm:$0xff]  }
   0x8   :  { %481 = vmatpush3.bf16.msra.mxu0 %v528_v6  ;;  %v537_v15 = vld [vmem:[%s702_s1 + $0x98] sm:$0xff]   ;;  %v541_v19 = vld [vmem:[%s702_s1 + $0xa0] sm:$0xff]   ;;  %v545_v23 = vld [vmem:[%s702_s1 + $0xa8] sm:$0xff]  }
   0x9   :  { %503 = vmatpush3.bf16.msra.mxu1 %v529_v7  ;;  %482 = vmatprep.subr.bf16.mxu0 %v530_v8  ;;  %v546_v24 = vld [vmem:[%s702_s1 + $0x70] sm:$0xff]   ;;  %v550_v28 = vld [vmem:[%s702_s1 + $0x78] sm:$0xff]   ;;  %v467_v45 = vld [vmem:[%s704_s2] ss:$0 sm:$0xff] }
   0xa   :  { %504 = vmatprep.subr.bf16.mxu1 %v531_v9  ;;  %v547_v25 = vld [vmem:[%s702_s1 + $0xf0] sm:$0xff]   ;;  %v551_v29 = vld [vmem:[%s702_s1 + $0xf8] sm:$0xff]   ;;  %v468_v50 = vld [vmem:[%s705_s3] ss:$0 sm:$0xff] }
   0xb   :  { %v548_v26 = vld [vmem:[%s702_s1 + $0x30] sm:$0xff]   ;;  %v552_v30 = vld [vmem:[%s702_s1 + $0x38] sm:$0xff]  }
   0xc   :  { %483 = vmatpush3.bf16.msra.mxu0 %v532_v10  ;;  %v549_v27 = vld [vmem:[%s702_s1 + $0xb0] sm:$0xff]   ;;  %v553_v31 = vld [vmem:[%s702_s1 + $0xb8] sm:$0xff]  }
   0xd   :  { %505 = vmatpush3.bf16.msra.mxu1 %v533_v11  ;;  %484 = vmatprep.subr.bf16.mxu0 %v534_v12  ;;  %v554_v32 = vld [vmem:[%s703_s0] ss:$16 sps:$4 sm:$0xff]   ;;  %v556_v33 = vld [vmem:[%s703_s0 + $0x4] ss:$16 sps:$4 sm:$0xff]   ;;  %v557_v34 = vld [vmem:[%s703_s0 + $0x8] ss:$16 sps:$4 sm:$0xff]  }
   0xe   :  { %506 = vmatprep.subr.bf16.mxu1 %v535_v13  ;;  %v559_v35 = vld [vmem:[%s703_s0 + $0xc] ss:$16 sps:$4 sm:$0xff]   ;;  %338 = vmatprep.mubr.bf16.mxu0 %v556_v33 }
   0xf   :  { %379 = vmatprep.mubr.bf16.mxu1 %v559_v35 }
  0x10   :  { %485 = vmatpush3.bf16.msra.mxu0 %v536_v14 }
  0x11   :  { %507 = vmatpush3.bf16.msra.mxu1 %v537_v15  ;;  %486 = vmatprep.subr.bf16.mxu0 %v538_v16 }
  0x12   :  { %508 = vmatprep.subr.bf16.mxu1 %v539_v17 }
  0x14   :  { %487 = vmatpush3.bf16.msra.mxu0 %v540_v18 }
  0x15   :  { %509 = vmatpush3.bf16.msra.mxu1 %v541_v19  ;;  %488 = vmatprep.subr.bf16.mxu0 %v542_v20 }
  0x16   :  { %510 = vmatprep.subr.bf16.mxu1 %v543_v21 }
  0x18   :  { %489 = vmatpush3.bf16.msra.mxu0 %v544_v22 }
  0x19   :  { %511 = vmatpush3.bf16.msra.mxu1 %v545_v23  ;;  %490 = vmatprep.subr.bf16.mxu0 %v546_v24 }
  0x1a   :  { %512 = vmatprep.subr.bf16.mxu1 %v547_v25 }
  0x1c   :  { %491 = vmatpush3.bf16.msra.mxu0 %v548_v26 }
  0x1d   :  { %513 = vmatpush3.bf16.msra.mxu1 %v549_v27  ;;  %492 = vmatprep.subr.bf16.mxu0 %v550_v28 }
  0x1e   :  { %514 = vmatprep.subr.bf16.mxu1 %v551_v29 }
  0x20   :  { %493 = vmatpush3.bf16.msra.mxu0 %v552_v30 }
  0x21   :  { %515 = vmatpush3.bf16.msra.mxu1 %v553_v31 }
  0x23   :  { %339 = vmatmul.mubr.bf16.vlgmr.msra.gmra.mrb[0].mxu0 %v554_v32 }
  0x24   :  { %380 = vmatmul.mubr.bf16.vlgmr.msra.gmra.mrb[0].mxu1 %v557_v34 }
  0xf6   :  { %v494_v36 = vpop.f32.mrb[0].mxu0 }
  0xf7   :  { %v516_v37 = vpop.f32.mrb[0].mxu1  ;;  %v495_v38 = vpop.f32.mrb[1].mxu0 }
  0xf8   :  { %v496_v39 = vadd.f32 %v495_v38, %v494_v36  ;;  %v517_v40 = vpop.f32.mrb[1].mxu1  ;;  %v497_v41 = vpop.f32.mrb[2].mxu0 }
  0xf9   :  { %v518_v42 = vadd.f32 %v517_v40, %v516_v37  ;;  %v519_v43 = vpop.f32.mrb[2].mxu1  ;;  %v498_v44 = vpop.f32.mrb[3].mxu0 }
  0xfa   :  { %v499_v46 = vadd.f32 %v498_v44, %v497_v41  ;;  %v520_v47 = vpop.f32.mrb[3].mxu1 }
  0xfb   :  { %v382_v48 = vadd.f32 %v518_v42, %v496_v39  ;;  %v521_v49 = vadd.f32 %v520_v47, %v519_v43 }
  0xfd   :  { %v404_v51 = vmul.f32 %v467_v45, %v382_v48  ;;  %v385_v52 = vadd.f32 %v521_v49, %v499_v46 }
  0xff   :  { %v413_v53 = vadd.f32 %v468_v50, %v404_v51  ;;  %v405_v54 = vmul.f32 %v467_v45, %v385_v52 }
 0x101   :  { %v414_v55 = vadd.f32 %v468_v50, %v405_v54  ;;  %v415_v56 = vmax.f32 %v413_v53, 0.0 }
 0x103   :  { %v416_v57 = vmax.f32 %v414_v55, 0.0 }
 0x105   :  { %v476_v58 = vpack.c.bf16 %v416_v57, %v415_v56 }
 0x107   :  { %477 = vst [vmem:[%s706_s4] sm:$0xff] %v476_v58  }

// kernel: fwd.48
= control target key start
LH: loop header
LB: loop body
LE: loop exit
PB: predicated region body
PF: predicated region fallthrough
CT: control target
= control target key end

     0   :  { %s693_s1 = inlined_call_operand.vmem [shape: bf16[384,128], index: 1, kind: input, shape index: {}]   ;;  %s694_s0 = inlined_call_operand.vmem [shape: bf16[32,384], index: 0, kind: input, shape index: {}]   ;;  %s695_s2 = inlined_call_operand.vmem [shape: f32[1,128], index: 2, kind: input, shape index: {}]   ;;  %s696_s3 = inlined_call_operand.vmem [shape: f32[1,128], index: 3, kind: input, shape index: {}]   ;;  %s697_s4 = inlined_call_operand.vmem [shape: bf16[32,128], index: 4, kind: output, shape index: {}]  }
   0x1   :  { %v534_v0 = vld [vmem:[%s693_s1 + $0x40] sm:$0xff]   ;;  %v537_v3 = vld [vmem:[%s693_s1 + $0x48] sm:$0xff]   ;;  %v540_v6 = vld [vmem:[%s693_s1 + $0x50] sm:$0xff]  }
   0x2   :  { %v535_v1 = vld [vmem:[%s693_s1] sm:$0xff]   ;;  %476 = vmatprep.subr.bf16.mxu0 %v534_v0  ;;  %v538_v4 = vld [vmem:[%s693_s1 + $0x8] sm:$0xff]   ;;  %v541_v7 = vld [vmem:[%s693_s1 + $0x10] sm:$0xff]  }
   0x3   :  { %v536_v2 = vld [vmem:[%s693_s1 + $0x80] sm:$0xff]   ;;  %477 = vmatpush3.bf16.msra.mxu0 %v535_v1  ;;  %v539_v5 = vld [vmem:[%s693_s1 + $0x88] sm:$0xff]   ;;  %v542_v8 = vld [vmem:[%s693_s1 + $0x90] sm:$0xff]  }
   0x4   :  { %514 = vmatprep.subr.bf16.mxu1 %v536_v2  ;;  %478 = vmatprep.subr.bf16.mxu0 %v537_v3  ;;  %v543_v9 = vld [vmem:[%s693_s1 + $0x58] sm:$0xff]   ;;  %v546_v12 = vld [vmem:[%s693_s1 + $0x60] sm:$0xff]   ;;  %v549_v15 = vld [vmem:[%s693_s1 + $0x68] sm:$0xff]  }
   0x5   :  { %515 = vmatpush3.bf16.msra.mxu1 %v536_v2  ;;  %v544_v10 = vld [vmem:[%s693_s1 + $0x18] sm:$0xff]   ;;  %v548_v13 = vld [vmem:[%s693_s1 + $0xa0] sm:$0xff]   ;;  %v551_v16 = vld [vmem:[%s693_s1 + $0xa8] sm:$0xff]  }
   0x6   :  { %516 = vmatprep.subr.bf16.mxu1 %v539_v5  ;;  %v545_v11 = vld [vmem:[%s693_s1 + $0x98] sm:$0xff]   ;;  %v547_v14 = vld [vmem:[%s693_s1 + $0x20] sm:$0xff]   ;;  %v550_v17 = vld [vmem:[%s693_s1 + $0x28] sm:$0xff]  }
   0x7   :  { %479 = vmatpush3.bf16.msra.mxu0 %v538_v4  ;;  %v552_v18 = vld [vmem:[%s693_s1 + $0x70] sm:$0xff]   ;;  %v555_v21 = vld [vmem:[%s693_s1 + $0x78] sm:$0xff]   ;;  %v558_v26 = vld [vmem:[%s694_s0] ss:$12 sps:$4 sm:$0xff]  }
   0x8   :  { %480 = vmatprep.subr.bf16.mxu0 %v540_v6  ;;  %v553_v19 = vld [vmem:[%s693_s1 + $0x30] sm:$0xff]   ;;  %v557_v22 = vld [vmem:[%s693_s1 + $0xb8] sm:$0xff]   ;;  %v562_v28 = vld [vmem:[%s694_s0 + $0x20] ss:$12 sps:$4 sm:$0xff]  }
   0x9   :  { %517 = vmatpush3.bf16.msra.mxu1 %v539_v5  ;;  %v554_v20 = vld [vmem:[%s693_s1 + $0xb0] sm:$0xff]   ;;  %v556_v25 = vld [vmem:[%s693_s1 + $0x38] sm:$0xff]   ;;  %v455_v37 = vld [vmem:[%s695_s2] ss:$0 sm:$0xff] }
   0xa   :  { %518 = vmatprep.subr.bf16.mxu1 %v542_v8  ;;  %v560_v23 = vld [vmem:[%s694_s0 + $0x4] ss:$12 sps:$4 sm:$0xff]   ;;  %v561_v24 = vld [vmem:[%s694_s0 + $0x8] ss:$12 sps:$4 sm:$0xff]   ;;  %v456_v41 = vld [vmem:[%s696_s3] ss:$0 sm:$0xff] }
   0xb   :  { %481 = vmatpush3.bf16.msra.mxu0 %v541_v7  ;;  %294 = vmatprep.mubr.bf16.mxu0 %v560_v23  ;;  %v563_v27 = vld [vmem:[%s694_s0 + $0x1c] ss:$12 sps:$4 sm:$0xff]   ;;  %v565_v29 = vld [vmem:[%s694_s0 + $0x18] ss:$12 sps:$4 sm:$0xff]  }
   0xc   :  { %482 = vmatprep.subr.bf16.mxu0 %v543_v9  ;;  %530 = vmatprep.mubr.bf16.mxu1 %v561_v24 }
   0xd   :  { %519 = vmatpush3.bf16.msra.mxu1 %v542_v8 }
   0xe   :  { %520 = vmatprep.subr.bf16.mxu1 %v545_v11 }
   0xf   :  { %483 = vmatpush3.bf16.msra.mxu0 %v544_v10 }
  0x10   :  { %484 = vmatprep.subr.bf16.mxu0 %v546_v12 }
  0x11   :  { %521 = vmatpush3.bf16.msra.mxu1 %v545_v11 }
  0x12   :  { %522 = vmatprep.subr.bf16.mxu1 %v548_v13 }
  0x13   :  { %485 = vmatpush3.bf16.msra.mxu0 %v547_v14 }
  0x14   :  { %486 = vmatprep.subr.bf16.mxu0 %v549_v15 }
  0x15   :  { %523 = vmatpush3.bf16.msra.mxu1 %v548_v13 }
  0x16   :  { %524 = vmatprep.subr.bf16.mxu1 %v551_v16 }
  0x17   :  { %487 = vmatpush3.bf16.msra.mxu0 %v550_v17 }
  0x18   :  { %488 = vmatprep.subr.bf16.mxu0 %v552_v18 }
  0x19   :  { %525 = vmatpush3.bf16.msra.mxu1 %v551_v16 }
  0x1a   :  { %526 = vmatprep.subr.bf16.mxu1 %v554_v20 }
  0x1b   :  { %489 = vmatpush3.bf16.msra.mxu0 %v553_v19 }
  0x1c   :  { %490 = vmatprep.subr.bf16.mxu0 %v555_v21 }
  0x1d   :  { %527 = vmatpush3.bf16.msra.mxu1 %v554_v20 }
  0x1e   :  { %528 = vmatprep.subr.bf16.mxu1 %v557_v22 }
  0x1f   :  { %491 = vmatpush3.bf16.msra.mxu0 %v556_v25 }
  0x21   :  { %529 = vmatpush3.bf16.msra.mxu1 %v557_v22 }
  0x22   :  { %295 = vmatmul.mubr.bf16.vlgmr.msra.gmra.mrb[0].mxu0 %v558_v26 }
  0x23   :  { %302 = vmatprep.mubr.bf16.mxu0 %v563_v27 }
  0x24   :  { %531 = vmatmul.mubr.bf16.vlgmr.msra.gmra.mrb[0].mxu1 %v562_v28 }
  0x2a   :  { %303 = vmatmul.mubr.bf16.gmra.mrb[4].mxu0 %v565_v29 }
  0xf5   :  { %v492_v30 = vpop.f32.mrb[0].mxu0 }
  0xf6   :  { %v493_v31 = vpop.f32.mrb[1].mxu0 }
  0xf7   :  { %v494_v32 = vadd.f32 %v493_v31, %v492_v30  ;;  %v495_v33 = vpop.f32.mrb[2].mxu0  ;;  %v532_v34 = vpop.f32.mrb[0].mxu1 }
  0xf8   :  { %v496_v35 = vpop.f32.mrb[3].mxu0  ;;  %v345_v36 = vpop.f32.mrb[1].mxu1 }
  0xf9   :  { %v497_v38 = vadd.f32 %v496_v35, %v495_v33  ;;  %v346_v39 = vadd.f32 %v494_v32, %v345_v36  ;;  %v533_v40 = vpop.f32.mrb[2].mxu1 }
  0xfa   :  { %v348_v42 = vpop.f32.mrb[3].mxu1 }
  0xfb   :  { %v382_v43 = vmul.f32 %v455_v37, %v346_v39  ;;  %v349_v44 = vadd.f32 %v497_v38, %v348_v42 }
  0xfd   :  { %v393_v45 = vadd.f32 %v456_v41, %v382_v43  ;;  %v383_v46 = vmul.f32 %v455_v37, %v349_v44  ;;  %v498_v47 = vpop.f32.mrb[4].mxu0 }
  0xfe   :  { %v499_v48 = vpop.f32.mrb[5].mxu0 }
  0xff   :  { %v394_v49 = vadd.f32 %v456_v41, %v383_v46  ;;  %v500_v50 = vadd.f32 %v499_v48, %v498_v47  ;;  %v501_v51 = vpop.f32.mrb[6].mxu0  ;;  %v397_v53 = vmax.f32 %v393_v45, 0.0 }
 0x100   :  { %v502_v52 = vpop.f32.mrb[7].mxu0 }
 0x101   :  { %v398_v54 = vmax.f32 %v394_v49, 0.0  ;;  %v354_v55 = vadd.f32 %v532_v34, %v500_v50  ;;  %v503_v56 = vadd.f32 %v502_v52, %v501_v51 }
 0x103   :  { %v468_v57 = vpack.c.bf16 %v398_v54, %v397_v53  ;;  %v384_v58 = vmul.f32 %v455_v37, %v354_v55  ;;  %v357_v59 = vadd.f32 %v533_v40, %v503_v56 }
 0x105   :  { %469 = vst [vmem:[%s697_s4] sm:$0xff] %v468_v57   ;;  %v395_v60 = vadd.f32 %v456_v41, %v384_v58  ;;  %v385_v61 = vmul.f32 %v455_v37, %v357_v59 }
 0x107   :  { %v396_v62 = vadd.f32 %v456_v41, %v385_v61  ;;  %v399_v63 = vmax.f32 %v395_v60, 0.0 }
 0x109   :  { %v400_v0 = vmax.f32 %v396_v62, 0.0 }
 0x10b   :  { %v473_v1 = vpack.c.bf16 %v400_v0, %v399_v63 }
 0x10d   :  { %475 = vst [vmem:[%s697_s4 + $0x8] sm:$0xff] %v473_v1  }

// kernel: fwd.49
= control target key start
LH: loop header
LB: loop body
LE: loop exit
PB: predicated region body
PF: predicated region fallthrough
CT: control target
= control target key end

     0   :  { %s500_s1 = inlined_call_operand.vmem [shape: bf16[256,128], index: 1, kind: input, shape index: {}]   ;;  %s501_s0 = inlined_call_operand.vmem [shape: bf16[32,256], index: 0, kind: input, shape index: {}]   ;;  %s502_s2 = inlined_call_operand.vmem [shape: f32[1,128], index: 2, kind: input, shape index: {}]   ;;  %s503_s3 = inlined_call_operand.vmem [shape: f32[1,128], index: 3, kind: input, shape index: {}]   ;;  %s504_s4 = inlined_call_operand.vmem [shape: bf16[32,128], index: 4, kind: output, shape index: {}]  }
   0x1   :  { %v381_v0 = vld [vmem:[%s500_s1 + $0x40] sm:$0xff]   ;;  %v383_v2 = vld [vmem:[%s500_s1 + $0x48] sm:$0xff]   ;;  %v385_v4 = vld [vmem:[%s500_s1 + $0x50] sm:$0xff]  }
   0x2   :  { %v382_v1 = vld [vmem:[%s500_s1] sm:$0xff]   ;;  %337 = vmatprep.subr.bf16.mxu0 %v381_v0  ;;  %365 = vmatprep.subr.bf16.mxu1 %v381_v0  ;;  %v384_v3 = vld [vmem:[%s500_s1 + $0x8] sm:$0xff]   ;;  %v386_v5 = vld [vmem:[%s500_s1 + $0x10] sm:$0xff]  }
   0x3   :  { %338 = vmatpush3.bf16.msra.mxu0 %v382_v1  ;;  %373 = vmatpush3.bf16.msra.mxu1 %v382_v1  ;;  %v387_v6 = vld [vmem:[%s500_s1 + $0x58] sm:$0xff]   ;;  %v389_v8 = vld [vmem:[%s500_s1 + $0x60] sm:$0xff]   ;;  %v391_v10 = vld [vmem:[%s500_s1 + $0x68] sm:$0xff]  }
   0x4   :  { %339 = vmatprep.subr.bf16.mxu0 %v383_v2  ;;  %366 = vmatprep.subr.bf16.mxu1 %v383_v2  ;;  %v388_v7 = vld [vmem:[%s500_s1 + $0x18] sm:$0xff]   ;;  %v390_v9 = vld [vmem:[%s500_s1 + $0x20] sm:$0xff]   ;;  %v392_v13 = vld [vmem:[%s500_s1 + $0x28] sm:$0xff]  }
   0x5   :  { %v399_v11 = vld [vmem:[%s501_s0 + $0x4] ss:$8 sps:$4 sm:$0xff]   ;;  %v402_v12 = vld [vmem:[%s501_s0 + $0x14] ss:$8 sps:$4 sm:$0xff]   ;;  %v397_v18 = vld [vmem:[%s501_s0] ss:$8 sps:$4 sm:$0xff]  }
   0x6   :  { %v393_v14 = vld [vmem:[%s500_s1 + $0x70] sm:$0xff]   ;;  %214 = vmatprep.mubr.bf16.mxu0 %v399_v11  ;;  %222 = vmatprep.mubr.bf16.mxu1 %v402_v12  ;;  %v395_v16 = vld [vmem:[%s500_s1 + $0x78] sm:$0xff]   ;;  %v316_v23 = vld [vmem:[%s502_s2] ss:$0 sm:$0xff] }
   0x7   :  { %340 = vmatpush3.bf16.msra.mxu0 %v384_v3  ;;  %374 = vmatpush3.bf16.msra.mxu1 %v384_v3  ;;  %v394_v15 = vld [vmem:[%s500_s1 + $0x30] sm:$0xff]   ;;  %v396_v17 = vld [vmem:[%s500_s1 + $0x38] sm:$0xff]   ;;  %v317_v29 = vld [vmem:[%s503_s3] ss:$0 sm:$0xff] }
   0x8   :  { %341 = vmatprep.subr.bf16.mxu0 %v385_v4  ;;  %367 = vmatprep.subr.bf16.mxu1 %v385_v4  ;;  %v400_v19 = vld [vmem:[%s501_s0 + $0x10] ss:$8 sps:$4 sm:$0xff]  }
   0xb   :  { %342 = vmatpush3.bf16.msra.mxu0 %v386_v5  ;;  %375 = vmatpush3.bf16.msra.mxu1 %v386_v5 }
   0xc   :  { %343 = vmatprep.subr.bf16.mxu0 %v387_v6  ;;  %368 = vmatprep.subr.bf16.mxu1 %v387_v6 }
   0xf   :  { %344 = vmatpush3.bf16.msra.mxu0 %v388_v7  ;;  %376 = vmatpush3.bf16.msra.mxu1 %v388_v7 }
  0x10   :  { %345 = vmatprep.subr.bf16.mxu0 %v389_v8  ;;  %369 = vmatprep.subr.bf16.mxu1 %v389_v8 }
  0x13   :  { %346 = vmatpush3.bf16.msra.mxu0 %v390_v9  ;;  %377 = vmatpush3.bf16.msra.mxu1 %v390_v9 }
  0x14   :  { %347 = vmatprep.subr.bf16.mxu0 %v391_v10  ;;  %370 = vmatprep.subr.bf16.mxu1 %v391_v10 }
  0x17   :  { %348 = vmatpush3.bf16.msra.mxu0 %v392_v13  ;;  %378 = vmatpush3.bf16.msra.mxu1 %v392_v13 }
  0x18   :  { %349 = vmatprep.subr.bf16.mxu0 %v393_v14  ;;  %371 = vmatprep.subr.bf16.mxu1 %v393_v14 }
  0x1b   :  { %350 = vmatpush3.bf16.msra.mxu0 %v394_v15  ;;  %379 = vmatpush3.bf16.msra.mxu1 %v394_v15 }
  0x1c   :  { %351 = vmatprep.subr.bf16.mxu0 %v395_v16  ;;  %372 = vmatprep.subr.bf16.mxu1 %v395_v16 }
  0x1f   :  { %352 = vmatpush3.bf16.msra.mxu0 %v396_v17  ;;  %380 = vmatpush3.bf16.msra.mxu1 %v396_v17 }
  0x22   :  { %215 = vmatmul.mubr.bf16.vlgmr.msra.gmra.mrb[0].mxu0 %v397_v18  ;;  %223 = vmatmul.mubr.bf16.vlgmr.msra.gmra.mrb[0].mxu1 %v400_v19 }
  0xf5   :  { %v353_v20 = vpop.f32.mrb[0].mxu0  ;;  %v359_v21 = vpop.f32.mrb[0].mxu1 }
  0xf6   :  { %v354_v22 = vpop.f32.mrb[1].mxu0  ;;  %v360_v24 = vpop.f32.mrb[1].mxu1 }
  0xf7   :  { %v355_v25 = vadd.f32 %v354_v22, %v353_v20  ;;  %v361_v26 = vadd.f32 %v360_v24, %v359_v21  ;;  %v356_v27 = vpop.f32.mrb[2].mxu0  ;;  %v362_v28 = vpop.f32.mrb[2].mxu1 }
  0xf8   :  { %v357_v30 = vpop.f32.mrb[3].mxu0  ;;  %v363_v31 = vpop.f32.mrb[3].mxu1 }
  0xf9   :  { %v253_v32 = vmul.f32 %v355_v25, %v316_v23  ;;  %v255_v33 = vmul.f32 %v361_v26, %v316_v23  ;;  %v358_v34 = vadd.f32 %v357_v30, %v356_v27  ;;  %v364_v35 = vadd.f32 %v363_v31, %v362_v28 }
  0xfb   :  { %v264_v36 = vadd.f32 %v317_v29, %v253_v32  ;;  %v266_v37 = vadd.f32 %v317_v29, %v255_v33  ;;  %v254_v38 = vmul.f32 %v358_v34, %v316_v23  ;;  %v256_v39 = vmul.f32 %v364_v35, %v316_v23 }
  0xfd   :  { %v265_v40 = vadd.f32 %v317_v29, %v254_v38  ;;  %v267_v41 = vadd.f32 %v317_v29, %v256_v39  ;;  %v268_v42 = vmax.f32 %v264_v36, 0.0  ;;  %v270_v43 = vmax.f32 %v266_v37, 0.0 }
  0xff   :  { %v269_v44 = vmax.f32 %v265_v40, 0.0  ;;  %v271_v45 = vmax.f32 %v267_v41, 0.0 }
 0x101   :  { %v329_v46 = vpack.c.bf16 %v269_v44, %v268_v42  ;;  %v334_v47 = vpack.c.bf16 %v271_v45, %v270_v43 }
 0x103   :  { %330 = vst [vmem:[%s504_s4] sm:$0xff] %v329_v46   ;;  %336 = vst [vmem:[%s504_s4 + $0x8] sm:$0xff] %v334_v47  }

// kernel: fwd.53
= control target key start
LH: loop header
LB: loop body
LE: loop exit
PB: predicated region body
PF: predicated region fallthrough
CT: control target
= control target key end

     0   :  { %s992_s1 = inlined_call_operand.vmem [shape: bf16[256,128], index: 1, kind: input, shape index: {}]   ;;  %s993_s0 = inlined_call_operand.vmem [shape: bf16[128,256], index: 0, kind: input, shape index: {}]   ;;  %s994_s2 = inlined_call_operand.vmem [shape: f32[1,128], index: 2, kind: input, shape index: {}]   ;;  %s995_s3 = inlined_call_operand.vmem [shape: f32[1,128], index: 3, kind: input, shape index: {}]   ;;  %s996_s4 = inlined_call_operand.vmem [shape: bf16[128,128], index: 4, kind: output, shape index: {}]  }
   0x1   :  { %v765_v0 = vld [vmem:[%s992_s1 + $0x40] sm:$0xff]   ;;  %v767_v2 = vld [vmem:[%s992_s1 + $0x48] sm:$0xff]   ;;  %v769_v4 = vld [vmem:[%s992_s1 + $0x50] sm:$0xff]  }
   0x2   :  { %v766_v1 = vld [vmem:[%s992_s1] sm:$0xff]   ;;  %685 = vmatprep.subr.bf16.mxu0 %v765_v0  ;;  %749 = vmatprep.subr.bf16.mxu1 %v765_v0  ;;  %v768_v3 = vld [vmem:[%s992_s1 + $0x8] sm:$0xff]   ;;  %v770_v5 = vld [vmem:[%s992_s1 + $0x10] sm:$0xff]  }
   0x3   :  { %686 = vmatpush3.bf16.msra.mxu0 %v766_v1  ;;  %757 = vmatpush3.bf16.msra.mxu1 %v766_v1  ;;  %v771_v6 = vld [vmem:[%s992_s1 + $0x58] sm:$0xff]   ;;  %v773_v8 = vld [vmem:[%s992_s1 + $0x60] sm:$0xff]   ;;  %v775_v10 = vld [vmem:[%s992_s1 + $0x68] sm:$0xff]  }
   0x4   :  { %687 = vmatprep.subr.bf16.mxu0 %v767_v2  ;;  %750 = vmatprep.subr.bf16.mxu1 %v767_v2  ;;  %v772_v7 = vld [vmem:[%s992_s1 + $0x18] sm:$0xff]   ;;  %v774_v9 = vld [vmem:[%s992_s1 + $0x20] sm:$0xff]   ;;  %v776_v13 = vld [vmem:[%s992_s1 + $0x28] sm:$0xff]  }
   0x5   :  { %v783_v11 = vld [vmem:[%s993_s0 + $0x4] ss:$8 sps:$4 sm:$0xff]   ;;  %v777_v14 = vld [vmem:[%s992_s1 + $0x70] sm:$0xff]   ;;  %v779_v16 = vld [vmem:[%s992_s1 + $0x78] sm:$0xff]  }
   0x6   :  { %v786_v12 = vld [vmem:[%s993_s0 + $0x44] ss:$8 sps:$4 sm:$0xff]   ;;  %310 = vmatprep.mubr.bf16.mxu0 %v783_v11  ;;  %v778_v15 = vld [vmem:[%s992_s1 + $0x30] sm:$0xff]   ;;  %v780_v17 = vld [vmem:[%s992_s1 + $0x38] sm:$0xff]  }
   0x7   :  { %688 = vmatpush3.bf16.msra.mxu0 %v768_v3  ;;  %758 = vmatpush3.bf16.msra.mxu1 %v768_v3  ;;  %v781_v18 = vld [vmem:[%s993_s0] ss:$8 sps:$4 sm:$0xff]   ;;  %v787_v20 = vld [vmem:[%s993_s0 + $0x14] ss:$8 sps:$4 sm:$0xff]   ;;  %v791_v22 = vld [vmem:[%s993_s0 + $0x10] ss:$8 sps:$4 sm:$0xff]  }
   0x8   :  { %689 = vmatprep.subr.bf16.mxu0 %v769_v4  ;;  %751 = vmatprep.subr.bf16.mxu1 %v769_v4  ;;  %v784_v19 = vld [vmem:[%s993_s0 + $0x40] ss:$8 sps:$4 sm:$0xff]   ;;  %v789_v21 = vld [vmem:[%s993_s0 + $0x54] ss:$8 sps:$4 sm:$0xff]   ;;  %v792_v23 = vld [vmem:[%s993_s0 + $0x50] ss:$8 sps:$4 sm:$0xff]  }
   0x9   :  { %342 = vmatprep.mubr.bf16.mxu1 %v786_v12  ;;  %v793_v24 = vld [vmem:[%s993_s0 + $0x24] ss:$8 sps:$4 sm:$0xff]   ;;  %v797_v26 = vld [vmem:[%s993_s0 + $0x20] ss:$8 sps:$4 sm:$0xff]   ;;  %v799_v28 = vld [vmem:[%s993_s0 + $0x34] ss:$8 sps:$4 sm:$0xff]  }
   0xa   :  { %v795_v25 = vld [vmem:[%s993_s0 + $0x64] ss:$8 sps:$4 sm:$0xff]   ;;  %v798_v27 = vld [vmem:[%s993_s0 + $0x60] ss:$8 sps:$4 sm:$0xff]   ;;  %v801_v29 = vld [vmem:[%s993_s0 + $0x74] ss:$8 sps:$4 sm:$0xff]  }
   0xb   :  { %690 = vmatpush3.bf16.msra.mxu0 %v770_v5  ;;  %759 = vmatpush3.bf16.msra.mxu1 %v770_v5  ;;  %v803_v30 = vld [vmem:[%s993_s0 + $0x30] ss:$8 sps:$4 sm:$0xff]   ;;  %v929_v35 = vld [vmem:[%s994_s2] ss:$0 sm:$0xff] }
   0xc   :  { %691 = vmatprep.subr.bf16.mxu0 %v771_v6  ;;  %752 = vmatprep.subr.bf16.mxu1 %v771_v6  ;;  %v804_v31 = vld [vmem:[%s993_s0 + $0x70] ss:$8 sps:$4 sm:$0xff]   ;;  %v934_v41 = vld [vmem:[%s995_s3] ss:$0 sm:$0xff] }
   0xf   :  { %692 = vmatpush3.bf16.msra.mxu0 %v772_v7  ;;  %760 = vmatpush3.bf16.msra.mxu1 %v772_v7 }
  0x10   :  { %693 = vmatprep.subr.bf16.mxu0 %v773_v8  ;;  %753 = vmatprep.subr.bf16.mxu1 %v773_v8 }
  0x13   :  { %694 = vmatpush3.bf16.msra.mxu0 %v774_v9  ;;  %761 = vmatpush3.bf16.msra.mxu1 %v774_v9 }
  0x14   :  { %695 = vmatprep.subr.bf16.mxu0 %v775_v10  ;;  %754 = vmatprep.subr.bf16.mxu1 %v775_v10 }
  0x17   :  { %696 = vmatpush3.bf16.msra.mxu0 %v776_v13  ;;  %762 = vmatpush3.bf16.msra.mxu1 %v776_v13 }
  0x18   :  { %697 = vmatprep.subr.bf16.mxu0 %v777_v14  ;;  %755 = vmatprep.subr.bf16.mxu1 %v777_v14 }
  0x1b   :  { %698 = vmatpush3.bf16.msra.mxu0 %v778_v15  ;;  %763 = vmatpush3.bf16.msra.mxu1 %v778_v15 }
  0x1c   :  { %699 = vmatprep.subr.bf16.mxu0 %v779_v16  ;;  %756 = vmatprep.subr.bf16.mxu1 %v779_v16 }
  0x1f   :  { %700 = vmatpush3.bf16.msra.mxu0 %v780_v17  ;;  %764 = vmatpush3.bf16.msra.mxu1 %v780_v17 }
  0x22   :  { %311 = vmatmul.mubr.bf16.vlgmr.msra.gmra.mrb[0].mxu0 %v781_v18  ;;  %343 = vmatmul.mubr.bf16.vlgmr.msra.gmra.mrb[0].mxu1 %v784_v19 }
  0x23   :  { %318 = vmatprep.mubr.bf16.mxu0 %v787_v20  ;;  %350 = vmatprep.mubr.bf16.mxu1 %v789_v21 }
  0x2a   :  { %319 = vmatmul.mubr.bf16.gmra.mrb[4].mxu0 %v791_v22  ;;  %351 = vmatmul.mubr.bf16.gmra.mrb[4].mxu1 %v792_v23 }
  0x2b   :  { %326 = vmatprep.mubr.bf16.mxu0 %v793_v24  ;;  %358 = vmatprep.mubr.bf16.mxu1 %v795_v25 }
  0x32   :  { %327 = vmatmul.mubr.bf16.gmra.mrb[8].mxu0 %v797_v26  ;;  %359 = vmatmul.mubr.bf16.gmra.mrb[8].mxu1 %v798_v27 }
  0x33   :  { %334 = vmatprep.mubr.bf16.mxu0 %v799_v28  ;;  %366 = vmatprep.mubr.bf16.mxu1 %v801_v29 }
  0x3a   :  { %335 = vmatmul.mubr.bf16.gmra.mrb[12].mxu0 %v803_v30  ;;  %367 = vmatmul.mubr.bf16.gmra.mrb[12].mxu1 %v804_v31 }
  0xf5   :  { %v701_v32 = vpop.f32.mrb[0].mxu0  ;;  %v725_v33 = vpop.f32.mrb[0].mxu1 }
  0xf6   :  { %v702_v34 = vpop.f32.mrb[1].mxu0  ;;  %v726_v36 = vpop.f32.mrb[1].mxu1 }
  0xf7   :  { %v703_v37 = vadd.f32 %v702_v34, %v701_v32  ;;  %v727_v38 = vadd.f32 %v726_v36, %v725_v33  ;;  %v704_v39 = vpop.f32.mrb[2].mxu0  ;;  %v728_v40 = vpop.f32.mrb[2].mxu1 }
  0xf8   :  { %v705_v42 = vpop.f32.mrb[3].mxu0  ;;  %v729_v43 = vpop.f32.mrb[3].mxu1 }
  0xf9   :  { %v433_v44 = vmul.f32 %v703_v37, %v929_v35  ;;  %v441_v45 = vmul.f32 %v727_v38, %v929_v35  ;;  %v706_v46 = vadd.f32 %v705_v42, %v704_v39  ;;  %v730_v47 = vadd.f32 %v729_v43, %v728_v40 }
  0xfb   :  { %v456_v48 = vadd.f32 %v934_v41, %v433_v44  ;;  %v464_v49 = vadd.f32 %v934_v41, %v441_v45  ;;  %v434_v50 = vmul.f32 %v706_v46, %v929_v35  ;;  %v442_v51 = vmul.f32 %v730_v47, %v929_v35 }
  0xfd   :  { %v457_v52 = vadd.f32 %v934_v41, %v434_v50  ;;  %v465_v53 = vadd.f32 %v934_v41, %v442_v51  ;;  %v707_v54 = vpop.f32.mrb[4].mxu0  ;;  %v731_v55 = vpop.f32.mrb[4].mxu1  ;;  %v472_v56 = vmax.f32 %v456_v48, 0.0  ;;  %v480_v57 = vmax.f32 %v464_v49, 0.0 }
  0xfe   :  { %v708_v58 = vpop.f32.mrb[5].mxu0  ;;  %v732_v59 = vpop.f32.mrb[5].mxu1 }
  0xff   :  { %v473_v60 = vmax.f32 %v457_v52, 0.0  ;;  %v481_v61 = vmax.f32 %v465_v53, 0.0  ;;  %v709_v62 = vadd.f32 %v708_v58, %v707_v54  ;;  %v733_v63 = vadd.f32 %v732_v59, %v731_v55  ;;  %v710_v0 = vpop.f32.mrb[6].mxu0  ;;  %v734_v1 = vpop.f32.mrb[6].mxu1 }
 0x100   :  { %v711_v2 = vpop.f32.mrb[7].mxu0  ;;  %v735_v3 = vpop.f32.mrb[7].mxu1 }
 0x101   :  { %v641_v4 = vpack.c.bf16 %v473_v60, %v472_v56  ;;  %v661_v5 = vpack.c.bf16 %v481_v61, %v480_v57  ;;  %v435_v6 = vmul.f32 %v709_v62, %v929_v35  ;;  %v443_v7 = vmul.f32 %v733_v63, %v929_v35 }
 0x102   :  { %v712_v8 = vadd.f32 %v711_v2, %v710_v0  ;;  %v736_v9 = vadd.f32 %v735_v3, %v734_v1 }
 0x103   :  { %642 = vst [vmem:[%s996_s4] sm:$0xff] %v641_v4   ;;  %681 = vst [vmem:[%s996_s4 + $0x20] sm:$0xff] %v661_v5   ;;  %v458_v10 = vadd.f32 %v934_v41, %v435_v6  ;;  %v466_v11 = vadd.f32 %v934_v41, %v443_v7 }
 0x104   :  { %v436_v12 = vmul.f32 %v712_v8, %v929_v35  ;;  %v444_v13 = vmul.f32 %v736_v9, %v929_v35 }
 0x105   :  { %v713_v14 = vpop.f32.mrb[8].mxu0  ;;  %v737_v15 = vpop.f32.mrb[8].mxu1  ;;  %v474_v24 = vmax.f32 %v458_v10, 0.0  ;;  %v482_v25 = vmax.f32 %v466_v11, 0.0 }
 0x106   :  { %v459_v16 = vadd.f32 %v934_v41, %v436_v12  ;;  %v467_v17 = vadd.f32 %v934_v41, %v444_v13  ;;  %v714_v18 = vpop.f32.mrb[9].mxu0  ;;  %v738_v19 = vpop.f32.mrb[9].mxu1 }
 0x107   :  { %v715_v20 = vadd.f32 %v714_v18, %v713_v14  ;;  %v739_v21 = vadd.f32 %v738_v19, %v737_v15  ;;  %v716_v22 = vpop.f32.mrb[10].mxu0  ;;  %v740_v23 = vpop.f32.mrb[10].mxu1 }
 0x108   :  { %v475_v26 = vmax.f32 %v459_v16, 0.0  ;;  %v483_v27 = vmax.f32 %v467_v17, 0.0  ;;  %v717_v28 = vpop.f32.mrb[11].mxu0  ;;  %v741_v29 = vpop.f32.mrb[11].mxu1 }
 0x109   :  { %v437_v30 = vmul.f32 %v715_v20, %v929_v35  ;;  %v445_v31 = vmul.f32 %v739_v21, %v929_v35  ;;  %v718_v32 = vadd.f32 %v717_v28, %v716_v22  ;;  %v742_v33 = vadd.f32 %v741_v29, %v740_v23 }
 0x10a   :  { %v646_v34 = vpack.c.bf16 %v475_v26, %v474_v24  ;;  %v666_v36 = vpack.c.bf16 %v483_v27, %v482_v25 }
 0x10b   :  { %v460_v37 = vadd.f32 %v934_v41, %v437_v30  ;;  %v468_v38 = vadd.f32 %v934_v41, %v445_v31  ;;  %v438_v39 = vmul.f32 %v718_v32, %v929_v35  ;;  %v446_v40 = vmul.f32 %v742_v33, %v929_v35 }
 0x10c   :  { %678 = vst [vmem:[%s996_s4 + $0x8] sm:$0xff] %v646_v34   ;;  %682 = vst [vmem:[%s996_s4 + $0x28] sm:$0xff] %v666_v36  }
 0x10d   :  { %v461_v42 = vadd.f32 %v934_v41, %v438_v39  ;;  %v469_v43 = vadd.f32 %v934_v41, %v446_v40  ;;  %v719_v44 = vpop.f32.mrb[12].mxu0  ;;  %v743_v45 = vpop.f32.mrb[12].mxu1  ;;  %v476_v46 = vmax.f32 %v460_v37, 0.0  ;;  %v484_v47 = vmax.f32 %v468_v38, 0.0 }
 0x10e   :  { %v720_v48 = vpop.f32.mrb[13].mxu0  ;;  %v744_v49 = vpop.f32.mrb[13].mxu1 }
 0x10f   :  { %v477_v50 = vmax.f32 %v461_v42, 0.0  ;;  %v485_v51 = vmax.f32 %v469_v43, 0.0  ;;  %v721_v52 = vadd.f32 %v720_v48, %v719_v44  ;;  %v745_v53 = vadd.f32 %v744_v49, %v743_v45  ;;  %v722_v54 = vpop.f32.mrb[14].mxu0  ;;  %v746_v55 = vpop.f32.mrb[14].mxu1 }
 0x110   :  { %v723_v56 = vpop.f32.mrb[15].mxu0  ;;  %v747_v57 = vpop.f32.mrb[15].mxu1 }
 0x111   :  { %v651_v58 = vpack.c.bf16 %v477_v50, %v476_v46  ;;  %v671_v59 = vpack.c.bf16 %v485_v51, %v484_v47  ;;  %v439_v60 = vmul.f32 %v721_v52, %v929_v35  ;;  %v447_v61 = vmul.f32 %v745_v53, %v929_v35 }
 0x112   :  { %v724_v62 = vadd.f32 %v723_v56, %v722_v54  ;;  %v748_v63 = vadd.f32 %v747_v57, %v746_v55 }
 0x113   :  { %679 = vst [vmem:[%s996_s4 + $0x10] sm:$0xff] %v651_v58   ;;  %683 = vst [vmem:[%s996_s4 + $0x30] sm:$0xff] %v671_v59   ;;  %v462_v0 = vadd.f32 %v934_v41, %v439_v60  ;;  %v470_v1 = vadd.f32 %v934_v41, %v447_v61 }
 0x114   :  { %v440_v2 = vmul.f32 %v724_v62, %v929_v35  ;;  %v448_v3 = vmul.f32 %v748_v63, %v929_v35 }
 0x115   :  { %v478_v6 = vmax.f32 %v462_v0, 0.0  ;;  %v486_v7 = vmax.f32 %v470_v1, 0.0 }
 0x116   :  { %v463_v4 = vadd.f32 %v934_v41, %v440_v2  ;;  %v471_v5 = vadd.f32 %v934_v41, %v448_v3 }
 0x118   :  { %v479_v8 = vmax.f32 %v463_v4, 0.0  ;;  %v487_v9 = vmax.f32 %v471_v5, 0.0 }
 0x11a   :  { %v656_v10 = vpack.c.bf16 %v479_v8, %v478_v6  ;;  %v676_v11 = vpack.c.bf16 %v487_v9, %v486_v7 }
 0x11c   :  { %680 = vst [vmem:[%s996_s4 + $0x18] sm:$0xff] %v656_v10   ;;  %684 = vst [vmem:[%s996_s4 + $0x38] sm:$0xff] %v676_v11  }

// kernel: fwd.54
= control target key start
LH: loop header
LB: loop body
LE: loop exit
PB: predicated region body
PF: predicated region fallthrough
CT: control target
= control target key end

     0   :  { %s774_s1 = inlined_call_operand.vmem [shape: bf16[128,128], index: 1, kind: input, shape index: {}]   ;;  %s775_s0 = inlined_call_operand.vmem [shape: bf16[128,128], index: 0, kind: input, shape index: {}]   ;;  %s776_s2 = inlined_call_operand.vmem [shape: f32[1,128], index: 2, kind: input, shape index: {}]   ;;  %s777_s3 = inlined_call_operand.vmem [shape: f32[1,128], index: 3, kind: input, shape index: {}]   ;;  %s778_s4 = inlined_call_operand.vmem [shape: bf16[128,128], index: 4, kind: output, shape index: {}]  }
   0x1   :  { %v637_v0 = vld [vmem:[%s774_s1] sm:$0xff]   ;;  %v638_v1 = vld [vmem:[%s774_s1 + $0x8] sm:$0xff]   ;;  %v639_v2 = vld [vmem:[%s774_s1 + $0x10] sm:$0xff]  }
   0x2   :  { %589 = vmatprep.subr.bf16.mxu0 %v637_v0  ;;  %621 = vmatprep.subr.bf16.mxu1 %v637_v0  ;;  %v640_v3 = vld [vmem:[%s774_s1 + $0x18] sm:$0xff]   ;;  %v645_v4 = vld [vmem:[%s775_s0] sm:$0xff]   ;;  %v642_v7 = vld [vmem:[%s774_s1 + $0x28] sm:$0xff]  }
   0x3   :  { %590 = vmatpush3.bf16.msra.mxu0 %v637_v0  ;;  %629 = vmatpush3.bf16.msra.mxu1 %v637_v0  ;;  %v646_v5 = vld [vmem:[%s775_s0 + $0x20] sm:$0xff]   ;;  %v643_v8 = vld [vmem:[%s774_s1 + $0x30] sm:$0xff]   ;;  %v644_v9 = vld [vmem:[%s774_s1 + $0x38] sm:$0xff]  }
   0x4   :  { %591 = vmatprep.subr.bf16.mxu0 %v638_v1  ;;  %622 = vmatprep.subr.bf16.mxu1 %v638_v1  ;;  %v641_v6 = vld [vmem:[%s774_s1 + $0x20] sm:$0xff]   ;;  %v647_v10 = vld [vmem:[%s775_s0 + $0x8] sm:$0xff]   ;;  %v649_v12 = vld [vmem:[%s775_s0 + $0x10] sm:$0xff]  }
   0x5   :  { %605 = vmatprep.mubr.bf16.mxu0 %v645_v4  ;;  %613 = vmatprep.mubr.bf16.mxu1 %v646_v5  ;;  %v648_v11 = vld [vmem:[%s775_s0 + $0x28] sm:$0xff]   ;;  %v650_v13 = vld [vmem:[%s775_s0 + $0x30] sm:$0xff]   ;;  %v651_v14 = vld [vmem:[%s775_s0 + $0x18] sm:$0xff]  }
   0x6   :  { %v652_v15 = vld [vmem:[%s775_s0 + $0x38] sm:$0xff]   ;;  %v492_v16 = vld [vmem:[%s776_s2] ss:$0 sm:$0xff] }
   0x7   :  { %592 = vmatpush3.bf16.msra.mxu0 %v638_v1  ;;  %630 = vmatpush3.bf16.msra.mxu1 %v638_v1  ;;  %v732_v18 = vld [vmem:[%s777_s3] ss:$0 sm:$0xff] }
   0x8   :  { %593 = vmatprep.subr.bf16.mxu0 %v639_v2  ;;  %623 = vmatprep.subr.bf16.mxu1 %v639_v2 }
   0xb   :  { %594 = vmatpush3.bf16.msra.mxu0 %v639_v2  ;;  %631 = vmatpush3.bf16.msra.mxu1 %v639_v2 }
   0xc   :  { %595 = vmatprep.subr.bf16.mxu0 %v640_v3  ;;  %624 = vmatprep.subr.bf16.mxu1 %v640_v3 }
   0xf   :  { %596 = vmatpush3.bf16.msra.mxu0 %v640_v3  ;;  %632 = vmatpush3.bf16.msra.mxu1 %v640_v3 }
  0x10   :  { %597 = vmatprep.subr.bf16.mxu0 %v641_v6  ;;  %625 = vmatprep.subr.bf16.mxu1 %v641_v6 }
  0x13   :  { %598 = vmatpush3.bf16.msra.mxu0 %v641_v6  ;;  %633 = vmatpush3.bf16.msra.mxu1 %v641_v6 }
  0x14   :  { %599 = vmatprep.subr.bf16.mxu0 %v642_v7  ;;  %626 = vmatprep.subr.bf16.mxu1 %v642_v7 }
  0x17   :  { %600 = vmatpush3.bf16.msra.mxu0 %v642_v7  ;;  %634 = vmatpush3.bf16.msra.mxu1 %v642_v7 }
  0x18   :  { %601 = vmatprep.subr.bf16.mxu0 %v643_v8  ;;  %627 = vmatprep.subr.bf16.mxu1 %v643_v8 }
  0x1b   :  { %602 = vmatpush3.bf16.msra.mxu0 %v643_v8  ;;  %635 = vmatpush3.bf16.msra.mxu1 %v643_v8 }
  0x1c   :  { %603 = vmatprep.subr.bf16.mxu0 %v644_v9  ;;  %628 = vmatprep.subr.bf16.mxu1 %v644_v9 }
  0x1f   :  { %604 = vmatpush3.bf16.msra.mxu0 %v644_v9  ;;  %636 = vmatpush3.bf16.msra.mxu1 %v644_v9 }
  0x22   :  { %606 = vmatmul.mubr.bf16.vlgmr.msra.gmra.mrb[0].mxu0 %v647_v10  ;;  %614 = vmatmul.mubr.bf16.vlgmr.msra.gmra.mrb[0].mxu1 %v648_v11 }
  0x23   :  { %609 = vmatprep.mubr.bf16.mxu0 %v649_v12  ;;  %617 = vmatprep.mubr.bf16.mxu1 %v650_v13 }
  0x2a   :  { %610 = vmatmul.mubr.bf16.gmra.mrb[4].mxu0 %v651_v14  ;;  %618 = vmatmul.mubr.bf16.gmra.mrb[4].mxu1 %v652_v15 }
  0xf5   :  { %v607_v17 = vpop.f32.mrb[0].mxu0  ;;  %v615_v19 = vpop.f32.mrb[0].mxu1 }
  0xf6   :  { %v339_v20 = vmul.f32 %v607_v17, %v492_v16  ;;  %v347_v21 = vmul.f32 %v615_v19, %v492_v16  ;;  %v216_v22 = vpop.f32.mrb[1].mxu0  ;;  %v248_v23 = vpop.f32.mrb[1].mxu1 }
  0xf7   :  { %v337_v24 = vmul.f32 %v492_v16, %v216_v22  ;;  %v345_v25 = vmul.f32 %v492_v16, %v248_v23  ;;  %v608_v26 = vpop.f32.mrb[2].mxu0  ;;  %v616_v27 = vpop.f32.mrb[2].mxu1 }
  0xf8   :  { %v362_v28 = vadd.f32 %v732_v18, %v339_v20  ;;  %v370_v29 = vadd.f32 %v732_v18, %v347_v21  ;;  %v340_v30 = vmul.f32 %v608_v26, %v492_v16  ;;  %v348_v31 = vmul.f32 %v616_v27, %v492_v16  ;;  %v219_v32 = vpop.f32.mrb[3].mxu0  ;;  %v251_v33 = vpop.f32.mrb[3].mxu1 }
  0xf9   :  { %v360_v34 = vadd.f32 %v732_v18, %v337_v24  ;;  %v368_v35 = vadd.f32 %v732_v18, %v345_v25  ;;  %v338_v36 = vmul.f32 %v492_v16, %v219_v32  ;;  %v346_v37 = vmul.f32 %v492_v16, %v251_v33 }
  0xfa   :  { %v363_v38 = vadd.f32 %v732_v18, %v340_v30  ;;  %v371_v39 = vadd.f32 %v732_v18, %v348_v31  ;;  %v378_v42 = vmax.f32 %v362_v28, 0.0  ;;  %v386_v43 = vmax.f32 %v370_v29, 0.0 }
  0xfb   :  { %v361_v40 = vadd.f32 %v732_v18, %v338_v36  ;;  %v369_v41 = vadd.f32 %v732_v18, %v346_v37  ;;  %v376_v46 = vmax.f32 %v360_v34, 0.0  ;;  %v384_v47 = vmax.f32 %v368_v35, 0.0 }
  0xfc   :  { %v379_v44 = vmax.f32 %v363_v38, 0.0  ;;  %v387_v45 = vmax.f32 %v371_v39, 0.0 }
  0xfd   :  { %v377_v48 = vmax.f32 %v361_v40, 0.0  ;;  %v385_v49 = vmax.f32 %v369_v41, 0.0  ;;  %v611_v50 = vpop.f32.mrb[4].mxu0  ;;  %v619_v51 = vpop.f32.mrb[4].mxu1 }
  0xfe   :  { %v534_v52 = vpack.c.bf16 %v379_v44, %v378_v42  ;;  %v554_v53 = vpack.c.bf16 %v387_v45, %v386_v43  ;;  %v343_v54 = vmul.f32 %v611_v50, %v492_v16  ;;  %v351_v55 = vmul.f32 %v619_v51, %v492_v16  ;;  %v232_v56 = vpop.f32.mrb[5].mxu0  ;;  %v264_v57 = vpop.f32.mrb[5].mxu1 }
  0xff   :  { %v529_v58 = vpack.c.bf16 %v377_v48, %v376_v46  ;;  %v549_v59 = vpack.c.bf16 %v385_v49, %v384_v47  ;;  %v341_v60 = vmul.f32 %v492_v16, %v232_v56  ;;  %v349_v61 = vmul.f32 %v492_v16, %v264_v57  ;;  %v612_v62 = vpop.f32.mrb[6].mxu0  ;;  %v620_v63 = vpop.f32.mrb[6].mxu1 }
 0x100   :  { %566 = vst [vmem:[%s778_s4 + $0x8] sm:$0xff] %v534_v52   ;;  %570 = vst [vmem:[%s778_s4 + $0x28] sm:$0xff] %v554_v53   ;;  %v366_v0 = vadd.f32 %v732_v18, %v343_v54  ;;  %v374_v1 = vadd.f32 %v732_v18, %v351_v55  ;;  %v344_v2 = vmul.f32 %v612_v62, %v492_v16  ;;  %v235_v4 = vpop.f32.mrb[7].mxu0  ;;  %v267_v5 = vpop.f32.mrb[7].mxu1 }
 0x101   :  { %v352_v3 = vmul.f32 %v620_v63, %v492_v16  ;;  %530 = vst [vmem:[%s778_s4] sm:$0xff] %v529_v58   ;;  %569 = vst [vmem:[%s778_s4 + $0x20] sm:$0xff] %v549_v59   ;;  %v364_v6 = vadd.f32 %v732_v18, %v341_v60  ;;  %v372_v7 = vadd.f32 %v732_v18, %v349_v61 }
 0x102   :  { %v342_v8 = vmul.f32 %v492_v16, %v235_v4  ;;  %v350_v9 = vmul.f32 %v492_v16, %v267_v5  ;;  %v367_v10 = vadd.f32 %v732_v18, %v344_v2  ;;  %v382_v14 = vmax.f32 %v366_v0, 0.0 }
 0x103   :  { %v375_v11 = vadd.f32 %v732_v18, %v352_v3  ;;  %v390_v15 = vmax.f32 %v374_v1, 0.0  ;;  %v380_v20 = vmax.f32 %v364_v6, 0.0  ;;  %v388_v21 = vmax.f32 %v372_v7, 0.0 }
 0x104   :  { %v365_v12 = vadd.f32 %v732_v18, %v342_v8  ;;  %v373_v13 = vadd.f32 %v732_v18, %v350_v9  ;;  %v383_v17 = vmax.f32 %v367_v10, 0.0 }
 0x105   :  { %v391_v19 = vmax.f32 %v375_v11, 0.0 }
 0x106   :  { %v381_v22 = vmax.f32 %v365_v12, 0.0  ;;  %v389_v23 = vmax.f32 %v373_v13, 0.0  ;;  %v544_v24 = vpack.c.bf16 %v383_v17, %v382_v14 }
 0x107   :  { %v564_v25 = vpack.c.bf16 %v391_v19, %v390_v15 }
 0x108   :  { %v539_v26 = vpack.c.bf16 %v381_v22, %v380_v20  ;;  %v559_v16 = vpack.c.bf16 %v389_v23, %v388_v21  ;;  %568 = vst [vmem:[%s778_s4 + $0x18] sm:$0xff] %v544_v24  }
 0x109   :  { %572 = vst [vmem:[%s778_s4 + $0x38] sm:$0xff] %v564_v25  }
 0x10a   :  { %567 = vst [vmem:[%s778_s4 + $0x10] sm:$0xff] %v539_v26   ;;  %571 = vst [vmem:[%s778_s4 + $0x30] sm:$0xff] %v559_v16  }

// kernel: fwd.58
= control target key start
LH: loop header
LB: loop body
LE: loop exit
PB: predicated region body
PF: predicated region fallthrough
CT: control target
= control target key end

     0   :  { %s2400_s1 = inlined_call_operand.vmem [shape: bf16[128,128], index: 1, kind: input, shape index: {}]   ;;  %s2401_s0 = inlined_call_operand.vmem [shape: bf16[512,128], index: 0, kind: input, shape index: {}]   ;;  %s2402_s2 = inlined_call_operand.vmem [shape: f32[1,128], index: 2, kind: input, shape index: {}]   ;;  %s2403_s3 = inlined_call_operand.vmem [shape: f32[1,128], index: 3, kind: input, shape index: {}]   ;;  %s2404_s4 = inlined_call_operand.vmem [shape: bf16[512,128], index: 4, kind: output, shape index: {}]  }
   0x1   :  { %v1981_v0 = vld [vmem:[%s2400_s1] sm:$0xff]   ;;  %v1982_v1 = vld [vmem:[%s2400_s1 + $0x8] sm:$0xff]   ;;  %v1983_v2 = vld [vmem:[%s2400_s1 + $0x10] sm:$0xff]  }
   0x2   :  { %1885 = vmatprep.subr.bf16.mxu0 %v1981_v0  ;;  %1965 = vmatprep.subr.bf16.mxu1 %v1981_v0  ;;  %v1984_v3 = vld [vmem:[%s2400_s1 + $0x18] sm:$0xff]   ;;  %v1989_v4 = vld [vmem:[%s2401_s0] sm:$0xff]   ;;  %v1986_v7 = vld [vmem:[%s2400_s1 + $0x28] sm:$0xff]  }
   0x3   :  { %1886 = vmatpush3.bf16.msra.mxu0 %v1981_v0  ;;  %1973 = vmatpush3.bf16.msra.mxu1 %v1981_v0  ;;  %v1990_v5 = vld [vmem:[%s2401_s0 + $0x80] sm:$0xff]   ;;  %v1987_v8 = vld [vmem:[%s2400_s1 + $0x30] sm:$0xff]   ;;  %v1988_v9 = vld [vmem:[%s2400_s1 + $0x38] sm:$0xff]  }
   0x4   :  { %1887 = vmatprep.subr.bf16.mxu0 %v1982_v1  ;;  %1966 = vmatprep.subr.bf16.mxu1 %v1982_v1  ;;  %v1985_v6 = vld [vmem:[%s2400_s1 + $0x20] sm:$0xff]   ;;  %v1991_v10 = vld [vmem:[%s2401_s0 + $0x8] sm:$0xff]   ;;  %v1993_v12 = vld [vmem:[%s2401_s0 + $0x10] sm:$0xff]  }
   0x5   :  { %1901 = vmatprep.mubr.bf16.mxu0 %v1989_v4  ;;  %1933 = vmatprep.mubr.bf16.mxu1 %v1990_v5  ;;  %v1992_v11 = vld [vmem:[%s2401_s0 + $0x88] sm:$0xff]   ;;  %v1994_v13 = vld [vmem:[%s2401_s0 + $0x90] sm:$0xff]   ;;  %v1995_v14 = vld [vmem:[%s2401_s0 + $0x18] sm:$0xff]  }
   0x6   :  { %v1996_v15 = vld [vmem:[%s2401_s0 + $0x98] sm:$0xff]   ;;  %v1997_v16 = vld [vmem:[%s2401_s0 + $0x20] sm:$0xff]   ;;  %v1999_v18 = vld [vmem:[%s2401_s0 + $0x28] sm:$0xff]  }
   0x7   :  { %1888 = vmatpush3.bf16.msra.mxu0 %v1982_v1  ;;  %1974 = vmatpush3.bf16.msra.mxu1 %v1982_v1  ;;  %v1998_v17 = vld [vmem:[%s2401_s0 + $0xa0] sm:$0xff]   ;;  %v2000_v19 = vld [vmem:[%s2401_s0 + $0xa8] sm:$0xff]   ;;  %v2001_v20 = vld [vmem:[%s2401_s0 + $0x30] sm:$0xff]  }
   0x8   :  { %1889 = vmatprep.subr.bf16.mxu0 %v1983_v2  ;;  %1967 = vmatprep.subr.bf16.mxu1 %v1983_v2  ;;  %v2002_v21 = vld [vmem:[%s2401_s0 + $0xb0] sm:$0xff]   ;;  %v2003_v22 = vld [vmem:[%s2401_s0 + $0x38] sm:$0xff]   ;;  %v2005_v24 = vld [vmem:[%s2401_s0 + $0x40] sm:$0xff]  }
   0x9   :  { %v2004_v23 = vld [vmem:[%s2401_s0 + $0xb8] sm:$0xff]   ;;  %v2006_v25 = vld [vmem:[%s2401_s0 + $0xc0] sm:$0xff]   ;;  %v2007_v26 = vld [vmem:[%s2401_s0 + $0x48] sm:$0xff]  }
   0xa   :  { %v2008_v27 = vld [vmem:[%s2401_s0 + $0xc8] sm:$0xff]   ;;  %v2009_v28 = vld [vmem:[%s2401_s0 + $0x50] sm:$0xff]   ;;  %v2011_v30 = vld [vmem:[%s2401_s0 + $0x58] sm:$0xff]  }
   0xb   :  { %1890 = vmatpush3.bf16.msra.mxu0 %v1983_v2  ;;  %1975 = vmatpush3.bf16.msra.mxu1 %v1983_v2  ;;  %v2010_v29 = vld [vmem:[%s2401_s0 + $0xd0] sm:$0xff]   ;;  %v2012_v31 = vld [vmem:[%s2401_s0 + $0xd8] sm:$0xff]   ;;  %v2013_v32 = vld [vmem:[%s2401_s0 + $0x60] sm:$0xff]  }
   0xc   :  { %1891 = vmatprep.subr.bf16.mxu0 %v1984_v3  ;;  %1968 = vmatprep.subr.bf16.mxu1 %v1984_v3  ;;  %v2014_v33 = vld [vmem:[%s2401_s0 + $0xe0] sm:$0xff]   ;;  %v2015_v34 = vld [vmem:[%s2401_s0 + $0x68] sm:$0xff]   ;;  %v2017_v36 = vld [vmem:[%s2401_s0 + $0x70] sm:$0xff]  }
   0xd   :  { %v2016_v35 = vld [vmem:[%s2401_s0 + $0xe8] sm:$0xff]   ;;  %v2018_v37 = vld [vmem:[%s2401_s0 + $0xf0] sm:$0xff]   ;;  %v2019_v38 = vld [vmem:[%s2401_s0 + $0x78] sm:$0xff]  }
   0xe   :  { %v2020_v39 = vld [vmem:[%s2401_s0 + $0xf8] sm:$0xff]   ;;  %v2169_v40 = vld [vmem:[%s2402_s2] ss:$0 sm:$0xff] }
   0xf   :  { %1892 = vmatpush3.bf16.msra.mxu0 %v1984_v3  ;;  %1976 = vmatpush3.bf16.msra.mxu1 %v1984_v3  ;;  %v2174_v42 = vld [vmem:[%s2403_s3] ss:$0 sm:$0xff] }
  0x10   :  { %1893 = vmatprep.subr.bf16.mxu0 %v1985_v6  ;;  %1969 = vmatprep.subr.bf16.mxu1 %v1985_v6 }
  0x13   :  { %1894 = vmatpush3.bf16.msra.mxu0 %v1985_v6  ;;  %1977 = vmatpush3.bf16.msra.mxu1 %v1985_v6 }
  0x14   :  { %1895 = vmatprep.subr.bf16.mxu0 %v1986_v7  ;;  %1970 = vmatprep.subr.bf16.mxu1 %v1986_v7 }
  0x17   :  { %1896 = vmatpush3.bf16.msra.mxu0 %v1986_v7  ;;  %1978 = vmatpush3.bf16.msra.mxu1 %v1986_v7 }
  0x18   :  { %1897 = vmatprep.subr.bf16.mxu0 %v1987_v8  ;;  %1971 = vmatprep.subr.bf16.mxu1 %v1987_v8 }
  0x1b   :  { %1898 = vmatpush3.bf16.msra.mxu0 %v1987_v8  ;;  %1979 = vmatpush3.bf16.msra.mxu1 %v1987_v8 }
  0x1c   :  { %1899 = vmatprep.subr.bf16.mxu0 %v1988_v9  ;;  %1972 = vmatprep.subr.bf16.mxu1 %v1988_v9 }
  0x1f   :  { %1900 = vmatpush3.bf16.msra.mxu0 %v1988_v9  ;;  %1980 = vmatpush3.bf16.msra.mxu1 %v1988_v9 }
  0x22   :  { %1902 = vmatmul.mubr.bf16.vlgmr.msra.gmra.mrb[0].mxu0 %v1991_v10  ;;  %1934 = vmatmul.mubr.bf16.vlgmr.msra.gmra.mrb[0].mxu1 %v1992_v11 }
  0x23   :  { %1905 = vmatprep.mubr.bf16.mxu0 %v1993_v12  ;;  %1937 = vmatprep.mubr.bf16.mxu1 %v1994_v13 }
  0x2a   :  { %1906 = vmatmul.mubr.bf16.gmra.mrb[4].mxu0 %v1995_v14  ;;  %1938 = vmatmul.mubr.bf16.gmra.mrb[4].mxu1 %v1996_v15 }
  0x2b   :  { %1909 = vmatprep.mubr.bf16.mxu0 %v1997_v16  ;;  %1941 = vmatprep.mubr.bf16.mxu1 %v1998_v17 }
  0x32   :  { %1910 = vmatmul.mubr.bf16.gmra.mrb[8].mxu0 %v1999_v18  ;;  %1942 = vmatmul.mubr.bf16.gmra.mrb[8].mxu1 %v2000_v19 }
  0x33   :  { %1913 = vmatprep.mubr.bf16.mxu0 %v2001_v20  ;;  %1945 = vmatprep.mubr.bf16.mxu1 %v2002_v21 }
  0x3a   :  { %1914 = vmatmul.mubr.bf16.gmra.mrb[12].mxu0 %v2003_v22  ;;  %1946 = vmatmul.mubr.bf16.gmra.mrb[12].mxu1 %v2004_v23 }
  0x3b   :  { %1917 = vmatprep.mubr.bf16.mxu0 %v2005_v24  ;;  %1949 = vmatprep.mubr.bf16.mxu1 %v2006_v25 }
  0x42   :  { %1918 = vmatmul.mubr.bf16.gmra.mrb[16].mxu0 %v2007_v26  ;;  %1950 = vmatmul.mubr.bf16.gmra.mrb[16].mxu1 %v2008_v27 }
  0x43   :  { %1921 = vmatprep.mubr.bf16.mxu0 %v2009_v28  ;;  %1953 = vmatprep.mubr.bf16.mxu1 %v2010_v29 }
  0x4a   :  { %1922 = vmatmul.mubr.bf16.gmra.mrb[20].mxu0 %v2011_v30  ;;  %1954 = vmatmul.mubr.bf16.gmra.mrb[20].mxu1 %v2012_v31 }
  0x4b   :  { %1925 = vmatprep.mubr.bf16.mxu0 %v2013_v32  ;;  %1957 = vmatprep.mubr.bf16.mxu1 %v2014_v33 }
  0x52   :  { %1926 = vmatmul.mubr.bf16.gmra.mrb[24].mxu0 %v2015_v34  ;;  %1958 = vmatmul.mubr.bf16.gmra.mrb[24].mxu1 %v2016_v35 }
  0x53   :  { %1929 = vmatprep.mubr.bf16.mxu0 %v2017_v36  ;;  %1961 = vmatprep.mubr.bf16.mxu1 %v2018_v37 }
  0x5a   :  { %1930 = vmatmul.mubr.bf16.gmra.mrb[28].mxu0 %v2019_v38  ;;  %1962 = vmatmul.mubr.bf16.gmra.mrb[28].mxu1 %v2020_v39 }
  0xf5   :  { %v1903_v41 = vpop.f32.mrb[0].mxu0  ;;  %v1935_v43 = vpop.f32.mrb[0].mxu1 }
  0xf6   :  { %v963_v44 = vmul.f32 %v1903_v41, %v2169_v40  ;;  %v995_v45 = vmul.f32 %v1935_v43, %v2169_v40  ;;  %v504_v46 = vpop.f32.mrb[1].mxu0  ;;  %v632_v47 = vpop.f32.mrb[1].mxu1 }
  0xf7   :  { %v961_v48 = vmul.f32 %v2169_v40, %v504_v46  ;;  %v993_v49 = vmul.f32 %v2169_v40, %v632_v47  ;;  %v1904_v50 = vpop.f32.mrb[2].mxu0  ;;  %v1936_v51 = vpop.f32.mrb[2].mxu1 }
  0xf8   :  { %v1034_v52 = vadd.f32 %v2174_v42, %v963_v44  ;;  %v1066_v53 = vadd.f32 %v2174_v42, %v995_v45  ;;  %v964_v54 = vmul.f32 %v1904_v50, %v2169_v40  ;;  %v996_v55 = vmul.f32 %v1936_v51, %v2169_v40  ;;  %v507_v56 = vpop.f32.mrb[3].mxu0  ;;  %v635_v57 = vpop.f32.mrb[3].mxu1 }
  0xf9   :  { %v1032_v58 = vadd.f32 %v2174_v42, %v961_v48  ;;  %v1064_v59 = vadd.f32 %v2174_v42, %v993_v49  ;;  %v962_v60 = vmul.f32 %v2169_v40, %v507_v56  ;;  %v994_v61 = vmul.f32 %v2169_v40, %v635_v57 }
  0xfa   :  { %v1035_v62 = vadd.f32 %v2174_v42, %v964_v54  ;;  %v1067_v63 = vadd.f32 %v2174_v42, %v996_v55  ;;  %v1098_v2 = vmax.f32 %v1034_v52, 0.0  ;;  %v1130_v3 = vmax.f32 %v1066_v53, 0.0 }
  0xfb   :  { %v1033_v0 = vadd.f32 %v2174_v42, %v962_v60  ;;  %v1065_v1 = vadd.f32 %v2174_v42, %v994_v61  ;;  %v1096_v6 = vmax.f32 %v1032_v58, 0.0  ;;  %v1128_v7 = vmax.f32 %v1064_v59, 0.0 }
  0xfc   :  { %v1099_v4 = vmax.f32 %v1035_v62, 0.0  ;;  %v1131_v5 = vmax.f32 %v1067_v63, 0.0 }
  0xfd   :  { %v1097_v8 = vmax.f32 %v1033_v0, 0.0  ;;  %v1129_v9 = vmax.f32 %v1065_v1, 0.0  ;;  %v1907_v10 = vpop.f32.mrb[4].mxu0  ;;  %v1939_v11 = vpop.f32.mrb[4].mxu1 }
  0xfe   :  { %v1662_v12 = vpack.c.bf16 %v1099_v4, %v1098_v2  ;;  %v1742_v13 = vpack.c.bf16 %v1131_v5, %v1130_v3  ;;  %v967_v14 = vmul.f32 %v1907_v10, %v2169_v40  ;;  %v999_v15 = vmul.f32 %v1939_v11, %v2169_v40  ;;  %v520_v16 = vpop.f32.mrb[5].mxu0  ;;  %v648_v17 = vpop.f32.mrb[5].mxu1 }
  0xff   :  { %v1657_v18 = vpack.c.bf16 %v1097_v8, %v1096_v6  ;;  %v1737_v19 = vpack.c.bf16 %v1129_v9, %v1128_v7  ;;  %v965_v20 = vmul.f32 %v2169_v40, %v520_v16  ;;  %v997_v21 = vmul.f32 %v2169_v40, %v648_v17  ;;  %v1908_v22 = vpop.f32.mrb[6].mxu0  ;;  %v1940_v23 = vpop.f32.mrb[6].mxu1 }
 0x100   :  { %1814 = vst [vmem:[%s2404_s4 + $0x8] sm:$0xff] %v1662_v12   ;;  %1830 = vst [vmem:[%s2404_s4 + $0x88] sm:$0xff] %v1742_v13   ;;  %v1038_v24 = vadd.f32 %v2174_v42, %v967_v14  ;;  %v1070_v25 = vadd.f32 %v2174_v42, %v999_v15  ;;  %v968_v26 = vmul.f32 %v1908_v22, %v2169_v40  ;;  %v523_v28 = vpop.f32.mrb[7].mxu0  ;;  %v651_v29 = vpop.f32.mrb[7].mxu1 }
 0x101   :  { %v1000_v27 = vmul.f32 %v1940_v23, %v2169_v40  ;;  %1658 = vst [vmem:[%s2404_s4] sm:$0xff] %v1657_v18   ;;  %1829 = vst [vmem:[%s2404_s4 + $0x80] sm:$0xff] %v1737_v19   ;;  %v1036_v30 = vadd.f32 %v2174_v42, %v965_v20  ;;  %v1068_v31 = vadd.f32 %v2174_v42, %v997_v21 }
 0x102   :  { %v966_v32 = vmul.f32 %v2169_v40, %v523_v28  ;;  %v998_v33 = vmul.f32 %v2169_v40, %v651_v29  ;;  %v1039_v34 = vadd.f32 %v2174_v42, %v968_v26  ;;  %v1102_v38 = vmax.f32 %v1038_v24, 0.0 }
 0x103   :  { %v1071_v35 = vadd.f32 %v2174_v42, %v1000_v27  ;;  %v1134_v39 = vmax.f32 %v1070_v25, 0.0  ;;  %v1100_v44 = vmax.f32 %v1036_v30, 0.0  ;;  %v1132_v45 = vmax.f32 %v1068_v31, 0.0 }
 0x104   :  { %v1037_v36 = vadd.f32 %v2174_v42, %v966_v32  ;;  %v1069_v37 = vadd.f32 %v2174_v42, %v998_v33  ;;  %v1103_v41 = vmax.f32 %v1039_v34, 0.0 }
 0x105   :  { %v1135_v43 = vmax.f32 %v1071_v35, 0.0  ;;  %v1911_v48 = vpop.f32.mrb[8].mxu0  ;;  %v1943_v49 = vpop.f32.mrb[8].mxu1 }
 0x106   :  { %v1101_v46 = vmax.f32 %v1037_v36, 0.0  ;;  %v1133_v47 = vmax.f32 %v1069_v37, 0.0  ;;  %v1672_v50 = vpack.c.bf16 %v1103_v41, %v1102_v38  ;;  %v971_v52 = vmul.f32 %v1911_v48, %v2169_v40  ;;  %v536_v54 = vpop.f32.mrb[9].mxu0  ;;  %v664_v55 = vpop.f32.mrb[9].mxu1 }
 0x107   :  { %v1752_v51 = vpack.c.bf16 %v1135_v43, %v1134_v39  ;;  %v1003_v53 = vmul.f32 %v1943_v49, %v2169_v40  ;;  %v969_v58 = vmul.f32 %v2169_v40, %v536_v54  ;;  %v1001_v59 = vmul.f32 %v2169_v40, %v664_v55  ;;  %v1912_v60 = vpop.f32.mrb[10].mxu0  ;;  %v1944_v61 = vpop.f32.mrb[10].mxu1 }
 0x108   :  { %v1667_v56 = vpack.c.bf16 %v1101_v46, %v1100_v44  ;;  %v1747_v57 = vpack.c.bf16 %v1133_v47, %v1132_v45  ;;  %1816 = vst [vmem:[%s2404_s4 + $0x18] sm:$0xff] %v1672_v50   ;;  %v1042_v62 = vadd.f32 %v2174_v42, %v971_v52  ;;  %v972_v0 = vmul.f32 %v1912_v60, %v2169_v40  ;;  %v539_v2 = vpop.f32.mrb[11].mxu0  ;;  %v667_v3 = vpop.f32.mrb[11].mxu1 }
 0x109   :  { %1832 = vst [vmem:[%s2404_s4 + $0x98] sm:$0xff] %v1752_v51   ;;  %v1074_v63 = vadd.f32 %v2174_v42, %v1003_v53  ;;  %v1004_v1 = vmul.f32 %v1944_v61, %v2169_v40  ;;  %v1040_v4 = vadd.f32 %v2174_v42, %v969_v58  ;;  %v1072_v5 = vadd.f32 %v2174_v42, %v1001_v59 }
 0x10a   :  { %1815 = vst [vmem:[%s2404_s4 + $0x10] sm:$0xff] %v1667_v56   ;;  %1831 = vst [vmem:[%s2404_s4 + $0x90] sm:$0xff] %v1747_v57   ;;  %v970_v6 = vmul.f32 %v2169_v40, %v539_v2  ;;  %v1002_v7 = vmul.f32 %v2169_v40, %v667_v3  ;;  %v1043_v8 = vadd.f32 %v2174_v42, %v972_v0  ;;  %v1106_v12 = vmax.f32 %v1042_v62, 0.0 }
 0x10b   :  { %v1075_v9 = vadd.f32 %v2174_v42, %v1004_v1  ;;  %v1138_v13 = vmax.f32 %v1074_v63, 0.0  ;;  %v1104_v16 = vmax.f32 %v1040_v4, 0.0  ;;  %v1136_v17 = vmax.f32 %v1072_v5, 0.0 }
 0x10c   :  { %v1041_v10 = vadd.f32 %v2174_v42, %v970_v6  ;;  %v1073_v11 = vadd.f32 %v2174_v42, %v1002_v7  ;;  %v1107_v14 = vmax.f32 %v1043_v8, 0.0 }
 0x10d   :  { %v1139_v15 = vmax.f32 %v1075_v9, 0.0  ;;  %v1915_v20 = vpop.f32.mrb[12].mxu0  ;;  %v1947_v21 = vpop.f32.mrb[12].mxu1 }
 0x10e   :  { %v1105_v18 = vmax.f32 %v1041_v10, 0.0  ;;  %v1137_v19 = vmax.f32 %v1073_v11, 0.0  ;;  %v1682_v22 = vpack.c.bf16 %v1107_v14, %v1106_v12  ;;  %v975_v24 = vmul.f32 %v1915_v20, %v2169_v40  ;;  %v552_v26 = vpop.f32.mrb[13].mxu0  ;;  %v680_v27 = vpop.f32.mrb[13].mxu1 }
 0x10f   :  { %v1762_v23 = vpack.c.bf16 %v1139_v15, %v1138_v13  ;;  %v1007_v25 = vmul.f32 %v1947_v21, %v2169_v40  ;;  %v973_v30 = vmul.f32 %v2169_v40, %v552_v26  ;;  %v1005_v31 = vmul.f32 %v2169_v40, %v680_v27  ;;  %v1916_v32 = vpop.f32.mrb[14].mxu0  ;;  %v1948_v33 = vpop.f32.mrb[14].mxu1 }
 0x110   :  { %v1677_v28 = vpack.c.bf16 %v1105_v18, %v1104_v16  ;;  %v1757_v29 = vpack.c.bf16 %v1137_v19, %v1136_v17  ;;  %1818 = vst [vmem:[%s2404_s4 + $0x28] sm:$0xff] %v1682_v22   ;;  %v1046_v34 = vadd.f32 %v2174_v42, %v975_v24  ;;  %v976_v36 = vmul.f32 %v1916_v32, %v2169_v40  ;;  %v555_v38 = vpop.f32.mrb[15].mxu0  ;;  %v683_v39 = vpop.f32.mrb[15].mxu1 }
 0x111   :  { %1834 = vst [vmem:[%s2404_s4 + $0xa8] sm:$0xff] %v1762_v23   ;;  %v1078_v35 = vadd.f32 %v2174_v42, %v1007_v25  ;;  %v1008_v37 = vmul.f32 %v1948_v33, %v2169_v40  ;;  %v1044_v41 = vadd.f32 %v2174_v42, %v973_v30  ;;  %v1076_v43 = vadd.f32 %v2174_v42, %v1005_v31 }
 0x112   :  { %1817 = vst [vmem:[%s2404_s4 + $0x20] sm:$0xff] %v1677_v28   ;;  %1833 = vst [vmem:[%s2404_s4 + $0xa0] sm:$0xff] %v1757_v29   ;;  %v974_v44 = vmul.f32 %v2169_v40, %v555_v38  ;;  %v1006_v45 = vmul.f32 %v2169_v40, %v683_v39  ;;  %v1047_v46 = vadd.f32 %v2174_v42, %v976_v36  ;;  %v1110_v50 = vmax.f32 %v1046_v34, 0.0 }
 0x113   :  { %v1079_v47 = vadd.f32 %v2174_v42, %v1008_v37  ;;  %v1142_v51 = vmax.f32 %v1078_v35, 0.0  ;;  %v1108_v54 = vmax.f32 %v1044_v41, 0.0  ;;  %v1140_v55 = vmax.f32 %v1076_v43, 0.0 }
 0x114   :  { %v1045_v48 = vadd.f32 %v2174_v42, %v974_v44  ;;  %v1077_v49 = vadd.f32 %v2174_v42, %v1006_v45  ;;  %v1111_v52 = vmax.f32 %v1047_v46, 0.0 }
 0x115   :  { %v1143_v53 = vmax.f32 %v1079_v47, 0.0  ;;  %v1919_v58 = vpop.f32.mrb[16].mxu0  ;;  %v1951_v59 = vpop.f32.mrb[16].mxu1 }
 0x116   :  { %v1109_v56 = vmax.f32 %v1045_v48, 0.0  ;;  %v1141_v57 = vmax.f32 %v1077_v49, 0.0  ;;  %v1692_v60 = vpack.c.bf16 %v1111_v52, %v1110_v50  ;;  %v979_v62 = vmul.f32 %v1919_v58, %v2169_v40  ;;  %v568_v0 = vpop.f32.mrb[17].mxu0  ;;  %v696_v1 = vpop.f32.mrb[17].mxu1 }
 0x117   :  { %v1772_v61 = vpack.c.bf16 %v1143_v53, %v1142_v51  ;;  %v1011_v63 = vmul.f32 %v1951_v59, %v2169_v40  ;;  %v977_v4 = vmul.f32 %v2169_v40, %v568_v0  ;;  %v1009_v5 = vmul.f32 %v2169_v40, %v696_v1  ;;  %v1920_v6 = vpop.f32.mrb[18].mxu0  ;;  %v1952_v7 = vpop.f32.mrb[18].mxu1 }
 0x118   :  { %v1687_v2 = vpack.c.bf16 %v1109_v56, %v1108_v54  ;;  %v1767_v3 = vpack.c.bf16 %v1141_v57, %v1140_v55  ;;  %1820 = vst [vmem:[%s2404_s4 + $0x38] sm:$0xff] %v1692_v60   ;;  %v1050_v8 = vadd.f32 %v2174_v42, %v979_v62  ;;  %v980_v10 = vmul.f32 %v1920_v6, %v2169_v40  ;;  %v571_v12 = vpop.f32.mrb[19].mxu0  ;;  %v699_v13 = vpop.f32.mrb[19].mxu1 }
 0x119   :  { %1836 = vst [vmem:[%s2404_s4 + $0xb8] sm:$0xff] %v1772_v61   ;;  %v1082_v9 = vadd.f32 %v2174_v42, %v1011_v63  ;;  %v1012_v11 = vmul.f32 %v1952_v7, %v2169_v40  ;;  %v1048_v14 = vadd.f32 %v2174_v42, %v977_v4  ;;  %v1080_v15 = vadd.f32 %v2174_v42, %v1009_v5 }
 0x11a   :  { %1819 = vst [vmem:[%s2404_s4 + $0x30] sm:$0xff] %v1687_v2   ;;  %1835 = vst [vmem:[%s2404_s4 + $0xb0] sm:$0xff] %v1767_v3   ;;  %v978_v16 = vmul.f32 %v2169_v40, %v571_v12  ;;  %v1010_v17 = vmul.f32 %v2169_v40, %v699_v13  ;;  %v1051_v18 = vadd.f32 %v2174_v42, %v980_v10  ;;  %v1114_v22 = vmax.f32 %v1050_v8, 0.0 }
 0x11b   :  { %v1083_v19 = vadd.f32 %v2174_v42, %v1012_v11  ;;  %v1146_v23 = vmax.f32 %v1082_v9, 0.0  ;;  %v1112_v26 = vmax.f32 %v1048_v14, 0.0  ;;  %v1144_v27 = vmax.f32 %v1080_v15, 0.0 }
 0x11c   :  { %v1049_v20 = vadd.f32 %v2174_v42, %v978_v16  ;;  %v1081_v21 = vadd.f32 %v2174_v42, %v1010_v17  ;;  %v1115_v24 = vmax.f32 %v1051_v18, 0.0 }
 0x11d   :  { %v1147_v25 = vmax.f32 %v1083_v19, 0.0  ;;  %v1923_v30 = vpop.f32.mrb[20].mxu0  ;;  %v1955_v31 = vpop.f32.mrb[20].mxu1 }
 0x11e   :  { %v1113_v28 = vmax.f32 %v1049_v20, 0.0  ;;  %v1145_v29 = vmax.f32 %v1081_v21, 0.0  ;;  %v1702_v32 = vpack.c.bf16 %v1115_v24, %v1114_v22  ;;  %v983_v34 = vmul.f32 %v1923_v30, %v2169_v40  ;;  %v584_v36 = vpop.f32.mrb[21].mxu0  ;;  %v712_v37 = vpop.f32.mrb[21].mxu1 }
 0x11f   :  { %v1782_v33 = vpack.c.bf16 %v1147_v25, %v1146_v23  ;;  %v1015_v35 = vmul.f32 %v1955_v31, %v2169_v40  ;;  %v981_v41 = vmul.f32 %v2169_v40, %v584_v36  ;;  %v1013_v43 = vmul.f32 %v2169_v40, %v712_v37  ;;  %v1924_v44 = vpop.f32.mrb[22].mxu0  ;;  %v1956_v45 = vpop.f32.mrb[22].mxu1 }
 0x120   :  { %v1697_v38 = vpack.c.bf16 %v1113_v28, %v1112_v26  ;;  %v1777_v39 = vpack.c.bf16 %v1145_v29, %v1144_v27  ;;  %1822 = vst [vmem:[%s2404_s4 + $0x48] sm:$0xff] %v1702_v32   ;;  %v1054_v46 = vadd.f32 %v2174_v42, %v983_v34  ;;  %v984_v48 = vmul.f32 %v1924_v44, %v2169_v40  ;;  %v587_v50 = vpop.f32.mrb[23].mxu0  ;;  %v715_v51 = vpop.f32.mrb[23].mxu1 }
 0x121   :  { %1838 = vst [vmem:[%s2404_s4 + $0xc8] sm:$0xff] %v1782_v33   ;;  %v1086_v47 = vadd.f32 %v2174_v42, %v1015_v35  ;;  %v1016_v49 = vmul.f32 %v1956_v45, %v2169_v40  ;;  %v1052_v52 = vadd.f32 %v2174_v42, %v981_v41  ;;  %v1084_v53 = vadd.f32 %v2174_v42, %v1013_v43 }
 0x122   :  { %1821 = vst [vmem:[%s2404_s4 + $0x40] sm:$0xff] %v1697_v38   ;;  %1837 = vst [vmem:[%s2404_s4 + $0xc0] sm:$0xff] %v1777_v39   ;;  %v982_v54 = vmul.f32 %v2169_v40, %v587_v50  ;;  %v1014_v55 = vmul.f32 %v2169_v40, %v715_v51  ;;  %v1055_v56 = vadd.f32 %v2174_v42, %v984_v48  ;;  %v1118_v60 = vmax.f32 %v1054_v46, 0.0 }
 0x123   :  { %v1087_v57 = vadd.f32 %v2174_v42, %v1016_v49  ;;  %v1150_v61 = vmax.f32 %v1086_v47, 0.0  ;;  %v1116_v0 = vmax.f32 %v1052_v52, 0.0  ;;  %v1148_v1 = vmax.f32 %v1084_v53, 0.0 }
 0x124   :  { %v1053_v58 = vadd.f32 %v2174_v42, %v982_v54  ;;  %v1085_v59 = vadd.f32 %v2174_v42, %v1014_v55  ;;  %v1119_v62 = vmax.f32 %v1055_v56, 0.0 }
 0x125   :  { %v1151_v63 = vmax.f32 %v1087_v57, 0.0  ;;  %v1927_v4 = vpop.f32.mrb[24].mxu0  ;;  %v1959_v5 = vpop.f32.mrb[24].mxu1 }
 0x126   :  { %v1117_v2 = vmax.f32 %v1053_v58, 0.0  ;;  %v1149_v3 = vmax.f32 %v1085_v59, 0.0  ;;  %v1712_v6 = vpack.c.bf16 %v1119_v62, %v1118_v60  ;;  %v987_v8 = vmul.f32 %v1927_v4, %v2169_v40  ;;  %v600_v10 = vpop.f32.mrb[25].mxu0  ;;  %v728_v11 = vpop.f32.mrb[25].mxu1 }
 0x127   :  { %v1792_v7 = vpack.c.bf16 %v1151_v63, %v1150_v61  ;;  %v1019_v9 = vmul.f32 %v1959_v5, %v2169_v40  ;;  %v985_v14 = vmul.f32 %v2169_v40, %v600_v10  ;;  %v1017_v15 = vmul.f32 %v2169_v40, %v728_v11  ;;  %v1928_v16 = vpop.f32.mrb[26].mxu0  ;;  %v1960_v17 = vpop.f32.mrb[26].mxu1 }
 0x128   :  { %v1707_v12 = vpack.c.bf16 %v1117_v2, %v1116_v0  ;;  %v1787_v13 = vpack.c.bf16 %v1149_v3, %v1148_v1  ;;  %1824 = vst [vmem:[%s2404_s4 + $0x58] sm:$0xff] %v1712_v6   ;;  %v1058_v18 = vadd.f32 %v2174_v42, %v987_v8  ;;  %v988_v20 = vmul.f32 %v1928_v16, %v2169_v40  ;;  %v603_v22 = vpop.f32.mrb[27].mxu0  ;;  %v731_v23 = vpop.f32.mrb[27].mxu1 }
 0x129   :  { %1840 = vst [vmem:[%s2404_s4 + $0xd8] sm:$0xff] %v1792_v7   ;;  %v1090_v19 = vadd.f32 %v2174_v42, %v1019_v9  ;;  %v1020_v21 = vmul.f32 %v1960_v17, %v2169_v40  ;;  %v1056_v24 = vadd.f32 %v2174_v42, %v985_v14  ;;  %v1088_v25 = vadd.f32 %v2174_v42, %v1017_v15 }
 0x12a   :  { %1823 = vst [vmem:[%s2404_s4 + $0x50] sm:$0xff] %v1707_v12   ;;  %1839 = vst [vmem:[%s2404_s4 + $0xd0] sm:$0xff] %v1787_v13   ;;  %v986_v26 = vmul.f32 %v2169_v40, %v603_v22  ;;  %v1018_v27 = vmul.f32 %v2169_v40, %v731_v23  ;;  %v1059_v28 = vadd.f32 %v2174_v42, %v988_v20  ;;  %v1122_v32 = vmax.f32 %v1058_v18, 0.0 }
 0x12b   :  { %v1091_v29 = vadd.f32 %v2174_v42, %v1020_v21  ;;  %v1154_v33 = vmax.f32 %v1090_v19, 0.0  ;;  %v1120_v36 = vmax.f32 %v1056_v24, 0.0  ;;  %v1152_v37 = vmax.f32 %v1088_v25, 0.0 }
 0x12c   :  { %v1057_v30 = vadd.f32 %v2174_v42, %v986_v26  ;;  %v1089_v31 = vadd.f32 %v2174_v42, %v1018_v27  ;;  %v1123_v34 = vmax.f32 %v1059_v28, 0.0 }
 0x12d   :  { %v1155_v35 = vmax.f32 %v1091_v29, 0.0  ;;  %v1931_v41 = vpop.f32.mrb[28].mxu0  ;;  %v1963_v43 = vpop.f32.mrb[28].mxu1 }
 0x12e   :  { %v1121_v38 = vmax.f32 %v1057_v30, 0.0  ;;  %v1153_v39 = vmax.f32 %v1089_v31, 0.0  ;;  %v1722_v44 = vpack.c.bf16 %v1123_v34, %v1122_v32  ;;  %v991_v46 = vmul.f32 %v1931_v41, %v2169_v40  ;;  %v616_v48 = vpop.f32.mrb[29].mxu0  ;;  %v744_v49 = vpop.f32.mrb[29].mxu1 }
 0x12f   :  { %v1802_v45 = vpack.c.bf16 %v1155_v35, %v1154_v33  ;;  %v1023_v47 = vmul.f32 %v1963_v43, %v2169_v40  ;;  %v989_v52 = vmul.f32 %v2169_v40, %v616_v48  ;;  %v1021_v53 = vmul.f32 %v2169_v40, %v744_v49  ;;  %v1932_v54 = vpop.f32.mrb[30].mxu0  ;;  %v1964_v55 = vpop.f32.mrb[30].mxu1 }
 0x130   :  { %v1717_v50 = vpack.c.bf16 %v1121_v38, %v1120_v36  ;;  %v1797_v51 = vpack.c.bf16 %v1153_v39, %v1152_v37  ;;  %1826 = vst [vmem:[%s2404_s4 + $0x68] sm:$0xff] %v1722_v44   ;;  %v1062_v56 = vadd.f32 %v2174_v42, %v991_v46  ;;  %v992_v58 = vmul.f32 %v1932_v54, %v2169_v40  ;;  %v619_v60 = vpop.f32.mrb[31].mxu0  ;;  %v747_v61 = vpop.f32.mrb[31].mxu1 }
 0x131   :  { %1842 = vst [vmem:[%s2404_s4 + $0xe8] sm:$0xff] %v1802_v45   ;;  %v1094_v57 = vadd.f32 %v2174_v42, %v1023_v47  ;;  %v1024_v59 = vmul.f32 %v1964_v55, %v2169_v40  ;;  %v1060_v62 = vadd.f32 %v2174_v42, %v989_v52  ;;  %v1092_v63 = vadd.f32 %v2174_v42, %v1021_v53 }
 0x132   :  { %1825 = vst [vmem:[%s2404_s4 + $0x60] sm:$0xff] %v1717_v50   ;;  %1841 = vst [vmem:[%s2404_s4 + $0xe0] sm:$0xff] %v1797_v51   ;;  %v990_v0 = vmul.f32 %v2169_v40, %v619_v60  ;;  %v1022_v1 = vmul.f32 %v2169_v40, %v747_v61  ;;  %v1063_v2 = vadd.f32 %v2174_v42, %v992_v58  ;;  %v1126_v6 = vmax.f32 %v1062_v56, 0.0 }
 0x133   :  { %v1095_v3 = vadd.f32 %v2174_v42, %v1024_v59  ;;  %v1158_v7 = vmax.f32 %v1094_v57, 0.0  ;;  %v1124_v10 = vmax.f32 %v1060_v62, 0.0  ;;  %v1156_v11 = vmax.f32 %v1092_v63, 0.0 }
 0x134   :  { %v1061_v4 = vadd.f32 %v2174_v42, %v990_v0  ;;  %v1093_v5 = vadd.f32 %v2174_v42, %v1022_v1  ;;  %v1127_v8 = vmax.f32 %v1063_v2, 0.0 }
 0x135   :  { %v1159_v9 = vmax.f32 %v1095_v3, 0.0 }
 0x136   :  { %v1125_v12 = vmax.f32 %v1061_v4, 0.0  ;;  %v1157_v13 = vmax.f32 %v1093_v5, 0.0  ;;  %v1732_v14 = vpack.c.bf16 %v1127_v8, %v1126_v6 }
 0x137   :  { %v1812_v15 = vpack.c.bf16 %v1159_v9, %v1158_v7 }
 0x138   :  { %v1727_v16 = vpack.c.bf16 %v1125_v12, %v1124_v10  ;;  %v1807_v40 = vpack.c.bf16 %v1157_v13, %v1156_v11  ;;  %1828 = vst [vmem:[%s2404_s4 + $0x78] sm:$0xff] %v1732_v14  }
 0x139   :  { %1844 = vst [vmem:[%s2404_s4 + $0xf8] sm:$0xff] %v1812_v15  }
 0x13a   :  { %1827 = vst [vmem:[%s2404_s4 + $0x70] sm:$0xff] %v1727_v16   ;;  %1843 = vst [vmem:[%s2404_s4 + $0xf0] sm:$0xff] %v1807_v40  }

// kernel: fwd.59
= control target key start
LH: loop header
LB: loop body
LE: loop exit
PB: predicated region body
PF: predicated region fallthrough
CT: control target
= control target key end

     0   :  { %v1775_v0 = vmov 0   ;;  %s2403_s1 = inlined_call_operand.vmem [shape: bf16[256,128], index: 1, kind: input, shape index: {}]   ;;  %s2404_s0 = inlined_call_operand.vmem [shape: bf16[512,256], index: 0, kind: input, shape index: {}]   ;;  %s2405_s2 = inlined_call_operand.vmem [shape: f32[1,128], index: 2, kind: input, shape index: {}]   ;;  %s2406_s3 = inlined_call_operand.vmem [shape: f32[1,128], index: 3, kind: input, shape index: {}]   ;;  %s2407_s4 = inlined_call_operand.vmem [shape: f32[512,128], index: 4, kind: output, shape index: {}]  }
   0x1   :  { %662 = vmatprep.subr.bf16.mxu0 %v1775_v0  ;;  %1502 = vmatprep.subr.bf16.mxu1 %v1775_v0  ;;  %v1535_v1 = vld [vmem:[%s2403_s1] sm:$0xff]   ;;  %v1536_v2 = vld [vmem:[%s2403_s1 + $0x8] sm:$0xff]   ;;  %v1537_v3 = vld [vmem:[%s2403_s1 + $0x10] sm:$0xff]  }
   0x2   :  { %663 = vmatpush1.bf16.msra.mxu0 %v1535_v1  ;;  %1518 = vmatpush1.bf16.msra.mxu1 %v1535_v1  ;;  %v1538_v4 = vld [vmem:[%s2403_s1 + $0x18] sm:$0xff]   ;;  %v1539_v5 = vld [vmem:[%s2403_s1 + $0x20] sm:$0xff]   ;;  %v1540_v7 = vld [vmem:[%s2403_s1 + $0x28] sm:$0xff]  }
   0x3   :  { %664 = vmatprep.subr.bf16.mxu0 %v1775_v0  ;;  %1503 = vmatprep.subr.bf16.mxu1 %v1775_v0  ;;  %v1553_v6 = vld [vmem:[%s2404_s0 + $0x4] ss:$8 sps:$4 sm:$0xff]   ;;  %v1541_v9 = vld [vmem:[%s2403_s1 + $0x30] sm:$0xff]   ;;  %v1542_v10 = vld [vmem:[%s2403_s1 + $0x38] sm:$0xff]  }
   0x4   :  { %v1556_v8 = vld [vmem:[%s2404_s0 + $0x104] ss:$8 sps:$4 sm:$0xff]   ;;  %694 = vmatprep.mubr.bf16.mxu0 %v1553_v6  ;;  %v1545_v13 = vld [vmem:[%s2403_s1 + $0x50] sm:$0xff]   ;;  %v1546_v14 = vld [vmem:[%s2403_s1 + $0x58] sm:$0xff]  }
   0x5   :  { %822 = vmatprep.mubr.bf16.mxu1 %v1556_v8  ;;  %v1543_v11 = vld [vmem:[%s2403_s1 + $0x40] sm:$0xff]   ;;  %v1544_v12 = vld [vmem:[%s2403_s1 + $0x48] sm:$0xff]   ;;  %v1549_v17 = vld [vmem:[%s2403_s1 + $0x70] sm:$0xff]  }
   0x6   :  { %665 = vmatpush1.bf16.msra.mxu0 %v1536_v2  ;;  %1519 = vmatpush1.bf16.msra.mxu1 %v1536_v2  ;;  %v1547_v15 = vld [vmem:[%s2403_s1 + $0x60] sm:$0xff]   ;;  %v1548_v16 = vld [vmem:[%s2403_s1 + $0x68] sm:$0xff]   ;;  %v1550_v18 = vld [vmem:[%s2403_s1 + $0x78] sm:$0xff]  }
   0x7   :  { %666 = vmatprep.subr.bf16.mxu0 %v1775_v0  ;;  %1504 = vmatprep.subr.bf16.mxu1 %v1775_v0  ;;  %v1551_v19 = vld [vmem:[%s2404_s0] ss:$8 sps:$4 sm:$0xff]   ;;  %v1557_v21 = vld [vmem:[%s2404_s0 + $0x14] ss:$8 sps:$4 sm:$0xff]   ;;  %v1561_v23 = vld [vmem:[%s2404_s0 + $0x10] ss:$8 sps:$4 sm:$0xff]  }
   0x8   :  { %v1554_v20 = vld [vmem:[%s2404_s0 + $0x100] ss:$8 sps:$4 sm:$0xff]   ;;  %v1559_v22 = vld [vmem:[%s2404_s0 + $0x114] ss:$8 sps:$4 sm:$0xff]   ;;  %v1562_v24 = vld [vmem:[%s2404_s0 + $0x110] ss:$8 sps:$4 sm:$0xff]  }
   0x9   :  { %v1563_v25 = vld [vmem:[%s2404_s0 + $0x24] ss:$8 sps:$4 sm:$0xff]   ;;  %v1567_v27 = vld [vmem:[%s2404_s0 + $0x20] ss:$8 sps:$4 sm:$0xff]   ;;  %v1569_v29 = vld [vmem:[%s2404_s0 + $0x34] ss:$8 sps:$4 sm:$0xff]  }
   0xa   :  { %667 = vmatpush1.bf16.msra.mxu0 %v1537_v3  ;;  %1520 = vmatpush1.bf16.msra.mxu1 %v1537_v3  ;;  %v1565_v26 = vld [vmem:[%s2404_s0 + $0x124] ss:$8 sps:$4 sm:$0xff]   ;;  %v1568_v28 = vld [vmem:[%s2404_s0 + $0x120] ss:$8 sps:$4 sm:$0xff]   ;;  %v1571_v30 = vld [vmem:[%s2404_s0 + $0x134] ss:$8 sps:$4 sm:$0xff]  }
   0xb   :  { %668 = vmatprep.subr.bf16.mxu0 %v1775_v0  ;;  %1505 = vmatprep.subr.bf16.mxu1 %v1775_v0  ;;  %v1573_v31 = vld [vmem:[%s2404_s0 + $0x30] ss:$8 sps:$4 sm:$0xff]   ;;  %v1575_v33 = vld [vmem:[%s2404_s0 + $0x44] ss:$8 sps:$4 sm:$0xff]   ;;  %v1579_v35 = vld [vmem:[%s2404_s0 + $0x40] ss:$8 sps:$4 sm:$0xff]  }
   0xc   :  { %v1574_v32 = vld [vmem:[%s2404_s0 + $0x130] ss:$8 sps:$4 sm:$0xff]   ;;  %v1577_v34 = vld [vmem:[%s2404_s0 + $0x144] ss:$8 sps:$4 sm:$0xff]   ;;  %v1580_v36 = vld [vmem:[%s2404_s0 + $0x140] ss:$8 sps:$4 sm:$0xff]  }
   0xd   :  { %v1581_v37 = vld [vmem:[%s2404_s0 + $0x54] ss:$8 sps:$4 sm:$0xff]   ;;  %v1585_v39 = vld [vmem:[%s2404_s0 + $0x50] ss:$8 sps:$4 sm:$0xff]   ;;  %v1587_v41 = vld [vmem:[%s2404_s0 + $0x64] ss:$8 sps:$4 sm:$0xff]  }
   0xe   :  { %669 = vmatpush1.bf16.msra.mxu0 %v1538_v4  ;;  %1521 = vmatpush1.bf16.msra.mxu1 %v1538_v4  ;;  %v1583_v38 = vld [vmem:[%s2404_s0 + $0x154] ss:$8 sps:$4 sm:$0xff]   ;;  %v1586_v40 = vld [vmem:[%s2404_s0 + $0x150] ss:$8 sps:$4 sm:$0xff]   ;;  %v1589_v42 = vld [vmem:[%s2404_s0 + $0x164] ss:$8 sps:$4 sm:$0xff]  }
   0xf   :  { %670 = vmatprep.subr.bf16.mxu0 %v1775_v0  ;;  %1506 = vmatprep.subr.bf16.mxu1 %v1775_v0  ;;  %v1591_v43 = vld [vmem:[%s2404_s0 + $0x60] ss:$8 sps:$4 sm:$0xff]   ;;  %v1593_v45 = vld [vmem:[%s2404_s0 + $0x74] ss:$8 sps:$4 sm:$0xff]   ;;  %v1597_v47 = vld [vmem:[%s2404_s0 + $0x70] ss:$8 sps:$4 sm:$0xff]  }
  0x10   :  { %v1592_v44 = vld [vmem:[%s2404_s0 + $0x160] ss:$8 sps:$4 sm:$0xff]   ;;  %v1595_v46 = vld [vmem:[%s2404_s0 + $0x174] ss:$8 sps:$4 sm:$0xff]   ;;  %v1598_v48 = vld [vmem:[%s2404_s0 + $0x170] ss:$8 sps:$4 sm:$0xff]  }
  0x11   :  { %v1599_v49 = vld [vmem:[%s2404_s0 + $0x84] ss:$8 sps:$4 sm:$0xff]   ;;  %v1603_v51 = vld [vmem:[%s2404_s0 + $0x80] ss:$8 sps:$4 sm:$0xff]   ;;  %v1605_v53 = vld [vmem:[%s2404_s0 + $0x94] ss:$8 sps:$4 sm:$0xff]  }
  0x12   :  { %671 = vmatpush1.bf16.msra.mxu0 %v1539_v5  ;;  %1522 = vmatpush1.bf16.msra.mxu1 %v1539_v5  ;;  %v1601_v50 = vld [vmem:[%s2404_s0 + $0x184] ss:$8 sps:$4 sm:$0xff]   ;;  %v1604_v52 = vld [vmem:[%s2404_s0 + $0x180] ss:$8 sps:$4 sm:$0xff]   ;;  %v1607_v54 = vld [vmem:[%s2404_s0 + $0x194] ss:$8 sps:$4 sm:$0xff]  }
  0x13   :  { %672 = vmatprep.subr.bf16.mxu0 %v1775_v0  ;;  %1507 = vmatprep.subr.bf16.mxu1 %v1775_v0  ;;  %v1609_v55 = vld [vmem:[%s2404_s0 + $0x90] ss:$8 sps:$4 sm:$0xff]   ;;  %v1611_v57 = vld [vmem:[%s2404_s0 + $0xa4] ss:$8 sps:$4 sm:$0xff]   ;;  %v1615_v59 = vld [vmem:[%s2404_s0 + $0xa0] ss:$8 sps:$4 sm:$0xff]  }
  0x14   :  { %v1610_v56 = vld [vmem:[%s2404_s0 + $0x190] ss:$8 sps:$4 sm:$0xff]   ;;  %v1613_v58 = vld [vmem:[%s2404_s0 + $0x1a4] ss:$8 sps:$4 sm:$0xff]   ;;  %v1616_v60 = vld [vmem:[%s2404_s0 + $0x1a0] ss:$8 sps:$4 sm:$0xff]  }
  0x15   :  { %v1617_v61 = vld [vmem:[%s2404_s0 + $0xb4] ss:$8 sps:$4 sm:$0xff]   ;;  %v1621_v63 = vld [vmem:[%s2404_s0 + $0xb0] ss:$8 sps:$4 sm:$0xff]   ;;  %v1623_v1 = vld [vmem:[%s2404_s0 + $0xc4] ss:$8 sps:$4 sm:$0xff]  }
  0x16   :  { %673 = vmatpush1.bf16.msra.mxu0 %v1540_v7  ;;  %1523 = vmatpush1.bf16.msra.mxu1 %v1540_v7  ;;  %v1619_v62 = vld [vmem:[%s2404_s0 + $0x1b4] ss:$8 sps:$4 sm:$0xff]   ;;  %v1625_v2 = vld [vmem:[%s2404_s0 + $0x1c4] ss:$8 sps:$4 sm:$0xff]   ;;  %v1627_v3 = vld [vmem:[%s2404_s0 + $0xc0] ss:$8 sps:$4 sm:$0xff]  }
  0x17   :  { %674 = vmatprep.subr.bf16.mxu0 %v1775_v0  ;;  %1508 = vmatprep.subr.bf16.mxu1 %v1775_v0  ;;  %v1628_v4 = vld [vmem:[%s2404_s0 + $0x1c0] ss:$8 sps:$4 sm:$0xff]   ;;  %v1629_v5 = vld [vmem:[%s2404_s0 + $0xd4] ss:$8 sps:$4 sm:$0xff]   ;;  %v1633_v7 = vld [vmem:[%s2404_s0 + $0xd0] ss:$8 sps:$4 sm:$0xff]  }
  0x18   :  { %v1631_v6 = vld [vmem:[%s2404_s0 + $0x1d4] ss:$8 sps:$4 sm:$0xff]   ;;  %v1634_v8 = vld [vmem:[%s2404_s0 + $0x1d0] ss:$8 sps:$4 sm:$0xff]  }
  0x1a   :  { %675 = vmatpush1.bf16.msra.mxu0 %v1541_v9  ;;  %1524 = vmatpush1.bf16.msra.mxu1 %v1541_v9  ;;  %v1635_v9 = vld [vmem:[%s2404_s0 + $0xe4] ss:$8 sps:$4 sm:$0xff]  }
  0x1b   :  { %676 = vmatprep.subr.bf16.mxu0 %v1775_v0  ;;  %1509 = vmatprep.subr.bf16.mxu1 %v1775_v0 }
  0x1e   :  { %677 = vmatpush1.bf16.msra.mxu0 %v1542_v10  ;;  %1525 = vmatpush1.bf16.msra.mxu1 %v1542_v10  ;;  %v1637_v10 = vld [vmem:[%s2404_s0 + $0x1e4] ss:$8 sps:$4 sm:$0xff]  }
  0x1f   :  { %678 = vmatprep.subr.bf16.mxu0 %v1775_v0  ;;  %1510 = vmatprep.subr.bf16.mxu1 %v1775_v0 }
  0x22   :  { %679 = vmatpush1.bf16.msra.mxu0 %v1543_v11  ;;  %1526 = vmatpush1.bf16.msra.mxu1 %v1543_v11  ;;  %v1639_v11 = vld [vmem:[%s2404_s0 + $0xe0] ss:$8 sps:$4 sm:$0xff]  }
  0x23   :  { %680 = vmatprep.subr.bf16.mxu0 %v1775_v0  ;;  %1511 = vmatprep.subr.bf16.mxu1 %v1775_v0 }
  0x26   :  { %681 = vmatpush1.bf16.msra.mxu0 %v1544_v12  ;;  %1527 = vmatpush1.bf16.msra.mxu1 %v1544_v12  ;;  %v1640_v12 = vld [vmem:[%s2404_s0 + $0x1e0] ss:$8 sps:$4 sm:$0xff]  }
  0x27   :  { %682 = vmatprep.subr.bf16.mxu0 %v1775_v0  ;;  %1512 = vmatprep.subr.bf16.mxu1 %v1775_v0 }
  0x2a   :  { %683 = vmatpush1.bf16.msra.mxu0 %v1545_v13  ;;  %1528 = vmatpush1.bf16.msra.mxu1 %v1545_v13  ;;  %v1641_v13 = vld [vmem:[%s2404_s0 + $0xf4] ss:$8 sps:$4 sm:$0xff]  }
  0x2b   :  { %684 = vmatprep.subr.bf16.mxu0 %v1775_v0  ;;  %1513 = vmatprep.subr.bf16.mxu1 %v1775_v0 }
  0x2e   :  { %685 = vmatpush1.bf16.msra.mxu0 %v1546_v14  ;;  %1529 = vmatpush1.bf16.msra.mxu1 %v1546_v14  ;;  %v1643_v14 = vld [vmem:[%s2404_s0 + $0x1f4] ss:$8 sps:$4 sm:$0xff]  }
  0x2f   :  { %686 = vmatprep.subr.bf16.mxu0 %v1775_v0  ;;  %1514 = vmatprep.subr.bf16.mxu1 %v1775_v0 }
  0x32   :  { %687 = vmatpush1.bf16.msra.mxu0 %v1547_v15  ;;  %1530 = vmatpush1.bf16.msra.mxu1 %v1547_v15  ;;  %v1645_v15 = vld [vmem:[%s2404_s0 + $0xf0] ss:$8 sps:$4 sm:$0xff]  }
  0x33   :  { %688 = vmatprep.subr.bf16.mxu0 %v1775_v0  ;;  %1515 = vmatprep.subr.bf16.mxu1 %v1775_v0 }
  0x36   :  { %689 = vmatpush1.bf16.msra.mxu0 %v1548_v16  ;;  %1531 = vmatpush1.bf16.msra.mxu1 %v1548_v16  ;;  %v1646_v16 = vld [vmem:[%s2404_s0 + $0x1f0] ss:$8 sps:$4 sm:$0xff]  }
  0x37   :  { %690 = vmatprep.subr.bf16.mxu0 %v1775_v0  ;;  %1516 = vmatprep.subr.bf16.mxu1 %v1775_v0 }
  0x3a   :  { %691 = vmatpush1.bf16.msra.mxu0 %v1549_v17  ;;  %1532 = vmatpush1.bf16.msra.mxu1 %v1549_v17  ;;  %v2076_v17 = vld [vmem:[%s2405_s2] ss:$0 sm:$0xff] }
  0x3b   :  { %692 = vmatprep.subr.bf16.mxu0 %v1775_v0  ;;  %1517 = vmatprep.subr.bf16.mxu1 %v1775_v0  ;;  %v1622_v0 = vld [vmem:[%s2404_s0 + $0x1b0] ss:$8 sps:$4 sm:$0xff]  }
  0x3e   :  { %693 = vmatpush1.bf16.msra.mxu0 %v1550_v18  ;;  %1533 = vmatpush1.bf16.msra.mxu1 %v1550_v18 }
  0x41   :  { %695 = vmatmul.mubr.bf16.vlgmr.msra.gmra.mrb[0].mxu0 %v1551_v19  ;;  %823 = vmatmul.mubr.bf16.vlgmr.msra.gmra.mrb[0].mxu1 %v1554_v20  ;;  %v2081_v19 = vld [vmem:[%s2406_s3] ss:$0 sm:$0xff] }
  0x42   :  { %702 = vmatprep.mubr.bf16.mxu0 %v1557_v21  ;;  %830 = vmatprep.mubr.bf16.mxu1 %v1559_v22 }
  0x49   :  { %703 = vmatmul.mubr.bf16.gmra.mrb[4].mxu0 %v1561_v23  ;;  %831 = vmatmul.mubr.bf16.gmra.mrb[4].mxu1 %v1562_v24 }
  0x4a   :  { %710 = vmatprep.mubr.bf16.mxu0 %v1563_v25  ;;  %838 = vmatprep.mubr.bf16.mxu1 %v1565_v26 }
  0x51   :  { %711 = vmatmul.mubr.bf16.gmra.mrb[8].mxu0 %v1567_v27  ;;  %839 = vmatmul.mubr.bf16.gmra.mrb[8].mxu1 %v1568_v28 }
  0x52   :  { %718 = vmatprep.mubr.bf16.mxu0 %v1569_v29  ;;  %846 = vmatprep.mubr.bf16.mxu1 %v1571_v30 }
  0x59   :  { %719 = vmatmul.mubr.bf16.gmra.mrb[12].mxu0 %v1573_v31  ;;  %847 = vmatmul.mubr.bf16.gmra.mrb[12].mxu1 %v1574_v32 }
  0x5a   :  { %726 = vmatprep.mubr.bf16.mxu0 %v1575_v33  ;;  %854 = vmatprep.mubr.bf16.mxu1 %v1577_v34 }
  0x61   :  { %727 = vmatmul.mubr.bf16.gmra.mrb[16].mxu0 %v1579_v35  ;;  %855 = vmatmul.mubr.bf16.gmra.mrb[16].mxu1 %v1580_v36 }
  0x62   :  { %734 = vmatprep.mubr.bf16.mxu0 %v1581_v37  ;;  %862 = vmatprep.mubr.bf16.mxu1 %v1583_v38 }
  0x69   :  { %735 = vmatmul.mubr.bf16.gmra.mrb[20].mxu0 %v1585_v39  ;;  %863 = vmatmul.mubr.bf16.gmra.mrb[20].mxu1 %v1586_v40 }
  0x6a   :  { %742 = vmatprep.mubr.bf16.mxu0 %v1587_v41  ;;  %870 = vmatprep.mubr.bf16.mxu1 %v1589_v42 }
  0x71   :  { %743 = vmatmul.mubr.bf16.gmra.mrb[24].mxu0 %v1591_v43  ;;  %871 = vmatmul.mubr.bf16.gmra.mrb[24].mxu1 %v1592_v44 }
  0x72   :  { %750 = vmatprep.mubr.bf16.mxu0 %v1593_v45  ;;  %878 = vmatprep.mubr.bf16.mxu1 %v1595_v46 }
  0x79   :  { %751 = vmatmul.mubr.bf16.gmra.mrb[28].mxu0 %v1597_v47  ;;  %879 = vmatmul.mubr.bf16.gmra.mrb[28].mxu1 %v1598_v48 }
  0x7a   :  { %758 = vmatprep.mubr.bf16.mxu0 %v1599_v49  ;;  %886 = vmatprep.mubr.bf16.mxu1 %v1601_v50 }
  0x81   :  { %759 = vmatmul.mubr.bf16.gmra.mrb[32].mxu0 %v1603_v51  ;;  %887 = vmatmul.mubr.bf16.gmra.mrb[32].mxu1 %v1604_v52 }
  0x82   :  { %766 = vmatprep.mubr.bf16.mxu0 %v1605_v53  ;;  %894 = vmatprep.mubr.bf16.mxu1 %v1607_v54 }
  0x89   :  { %767 = vmatmul.mubr.bf16.gmra.mrb[36].mxu0 %v1609_v55  ;;  %895 = vmatmul.mubr.bf16.gmra.mrb[36].mxu1 %v1610_v56 }
  0x8a   :  { %774 = vmatprep.mubr.bf16.mxu0 %v1611_v57  ;;  %902 = vmatprep.mubr.bf16.mxu1 %v1613_v58 }
  0x91   :  { %775 = vmatmul.mubr.bf16.gmra.mrb[40].mxu0 %v1615_v59  ;;  %903 = vmatmul.mubr.bf16.gmra.mrb[40].mxu1 %v1616_v60 }
  0x92   :  { %782 = vmatprep.mubr.bf16.mxu0 %v1617_v61  ;;  %910 = vmatprep.mubr.bf16.mxu1 %v1619_v62 }
  0x99   :  { %783 = vmatmul.mubr.bf16.gmra.mrb[44].mxu0 %v1621_v63  ;;  %911 = vmatmul.mubr.bf16.gmra.mrb[44].mxu1 %v1622_v0 }
  0x9a   :  { %790 = vmatprep.mubr.bf16.mxu0 %v1623_v1  ;;  %918 = vmatprep.mubr.bf16.mxu1 %v1625_v2 }
  0xa1   :  { %791 = vmatmul.mubr.bf16.gmra.mrb[48].mxu0 %v1627_v3  ;;  %919 = vmatmul.mubr.bf16.gmra.mrb[48].mxu1 %v1628_v4 }
  0xa2   :  { %798 = vmatprep.mubr.bf16.mxu0 %v1629_v5  ;;  %926 = vmatprep.mubr.bf16.mxu1 %v1631_v6 }
  0xa9   :  { %799 = vmatmul.mubr.bf16.gmra.mrb[52].mxu0 %v1633_v7  ;;  %927 = vmatmul.mubr.bf16.gmra.mrb[52].mxu1 %v1634_v8 }
  0xaa   :  { %806 = vmatprep.mubr.bf16.mxu0 %v1635_v9  ;;  %934 = vmatprep.mubr.bf16.mxu1 %v1637_v10 }
  0xb1   :  { %807 = vmatmul.mubr.bf16.gmra.mrb[56].mxu0 %v1639_v11  ;;  %935 = vmatmul.mubr.bf16.gmra.mrb[56].mxu1 %v1640_v12 }
  0xb2   :  { %814 = vmatprep.mubr.bf16.mxu0 %v1641_v13  ;;  %942 = vmatprep.mubr.bf16.mxu1 %v1643_v14 }
  0xb9   :  { %815 = vmatmul.mubr.bf16.gmra.mrb[60].mxu0 %v1645_v15  ;;  %943 = vmatmul.mubr.bf16.gmra.mrb[60].mxu1 %v1646_v16 }
 0x114   :  { %v696_v18 = vpop.f32.mrb[0].mxu0  ;;  %v824_v20 = vpop.f32.mrb[0].mxu1 }
 0x115   :  { %v1153_v21 = vmul.f32 %v2076_v17, %v696_v18  ;;  %v1185_v22 = vmul.f32 %v2076_v17, %v824_v20  ;;  %v698_v23 = vpop.f32.mrb[1].mxu0  ;;  %v826_v24 = vpop.f32.mrb[1].mxu1 }
 0x116   :  { %v699_v25 = vpop.f32.mrb[2].mxu0  ;;  %v827_v26 = vpop.f32.mrb[2].mxu1 }
 0x117   :  { %v1224_v27 = vadd.f32 %v2081_v19, %v1153_v21  ;;  %v1256_v28 = vadd.f32 %v2081_v19, %v1185_v22  ;;  %v1154_v29 = vmul.f32 %v2076_v17, %v699_v25  ;;  %v1186_v30 = vmul.f32 %v2076_v17, %v827_v26  ;;  %v701_v31 = vpop.f32.mrb[3].mxu0  ;;  %v829_v32 = vpop.f32.mrb[3].mxu1 }
 0x119   :  { %1647 = vtanh.f32 %v1224_v27  ;;  %v1225_v33 = vadd.f32 %v2081_v19, %v1154_v29  ;;  %v1257_v34 = vadd.f32 %v2081_v19, %v1186_v30 }
 0x11a   :  { %1649 = vtanh.f32 %v1256_v28 }
 0x11b   :  { %1651 = vtanh.f32 %v1225_v33 }
 0x11c   :  { %1653 = vtanh.f32 %v1257_v34  ;;  %v704_v35 = vpop.f32.mrb[4].mxu0  ;;  %v832_v36 = vpop.f32.mrb[4].mxu1 }
 0x11d   :  { %v1155_v37 = vmul.f32 %v2076_v17, %v704_v35  ;;  %v1187_v38 = vmul.f32 %v2076_v17, %v832_v36  ;;  %v706_v39 = vpop.f32.mrb[5].mxu0  ;;  %v834_v40 = vpop.f32.mrb[5].mxu1 }
 0x11e   :  { %v707_v41 = vpop.f32.mrb[6].mxu0  ;;  %v835_v42 = vpop.f32.mrb[6].mxu1 }
 0x11f   :  { %v1226_v43 = vadd.f32 %v2081_v19, %v1155_v37  ;;  %v1258_v44 = vadd.f32 %v2081_v19, %v1187_v38  ;;  %v1156_v45 = vmul.f32 %v2076_v17, %v707_v41  ;;  %v1188_v46 = vmul.f32 %v2076_v17, %v835_v42  ;;  %v709_v47 = vpop.f32.mrb[7].mxu0  ;;  %v837_v48 = vpop.f32.mrb[7].mxu1 }
 0x121   :  { %1655 = vtanh.f32 %v1226_v43  ;;  %v1227_v49 = vadd.f32 %v2081_v19, %v1156_v45  ;;  %v1259_v50 = vadd.f32 %v2081_v19, %v1188_v46 }
 0x122   :  { %1657 = vtanh.f32 %v1258_v44 }
 0x123   :  { %v1648_v51 = vpop.eup %1647  ;;  %1659 = vtanh.f32 %v1227_v49 }
 0x124   :  { %v1650_v52 = vpop.eup %1649  ;;  %1352 = vst [vmem:[%s2407_s4] sm:$0xff] %v1648_v51  ;;  %1661 = vtanh.f32 %v1259_v50  ;;  %v712_v53 = vpop.f32.mrb[8].mxu0 }
 0x125   :  { %v840_v54 = vpop.f32.mrb[8].mxu1  ;;  %v1652_v55 = vpop.eup %1651  ;;  %1384 = vst [vmem:[%s2407_s4 + $0x100] sm:$0xff] %v1650_v52  ;;  %v1157_v56 = vmul.f32 %v2076_v17, %v712_v53 }
 0x126   :  { %v1189_v57 = vmul.f32 %v2076_v17, %v840_v54  ;;  %v714_v58 = vpop.f32.mrb[9].mxu0  ;;  %v842_v59 = vpop.f32.mrb[9].mxu1  ;;  %1353 = vst [vmem:[%s2407_s4 + $0x8] sm:$0xff] %v1652_v55 }
 0x127   :  { %v1654_v60 = vpop.eup %1653  ;;  %v715_v61 = vpop.f32.mrb[10].mxu0  ;;  %v1228_v63 = vadd.f32 %v2081_v19, %v1157_v56 }
 0x128   :  { %v843_v62 = vpop.f32.mrb[10].mxu1  ;;  %1385 = vst [vmem:[%s2407_s4 + $0x108] sm:$0xff] %v1654_v60  ;;  %v1260_v0 = vadd.f32 %v2081_v19, %v1189_v57  ;;  %v1158_v1 = vmul.f32 %v2076_v17, %v715_v61  ;;  %v717_v3 = vpop.f32.mrb[11].mxu0 }
 0x129   :  { %v1190_v2 = vmul.f32 %v2076_v17, %v843_v62  ;;  %v845_v4 = vpop.f32.mrb[11].mxu1  ;;  %1663 = vtanh.f32 %v1228_v63 }
 0x12a   :  { %v1229_v5 = vadd.f32 %v2081_v19, %v1158_v1  ;;  %1665 = vtanh.f32 %v1260_v0 }
 0x12b   :  { %v1261_v6 = vadd.f32 %v2081_v19, %v1190_v2  ;;  %v1656_v7 = vpop.eup %1655 }
 0x12c   :  { %1667 = vtanh.f32 %v1229_v5  ;;  %v1658_v8 = vpop.eup %1657  ;;  %1354 = vst [vmem:[%s2407_s4 + $0x10] sm:$0xff] %v1656_v7  ;;  %v720_v9 = vpop.f32.mrb[12].mxu0 }
 0x12d   :  { %1669 = vtanh.f32 %v1261_v6  ;;  %v848_v10 = vpop.f32.mrb[12].mxu1  ;;  %v1660_v11 = vpop.eup %1659  ;;  %1386 = vst [vmem:[%s2407_s4 + $0x110] sm:$0xff] %v1658_v8  ;;  %v1159_v12 = vmul.f32 %v2076_v17, %v720_v9 }
 0x12e   :  { %v1191_v13 = vmul.f32 %v2076_v17, %v848_v10  ;;  %v722_v14 = vpop.f32.mrb[13].mxu0  ;;  %v850_v15 = vpop.f32.mrb[13].mxu1  ;;  %1355 = vst [vmem:[%s2407_s4 + $0x18] sm:$0xff] %v1660_v11 }
 0x12f   :  { %v1662_v16 = vpop.eup %1661  ;;  %v723_v18 = vpop.f32.mrb[14].mxu0  ;;  %v1230_v21 = vadd.f32 %v2081_v19, %v1159_v12 }
 0x130   :  { %v851_v20 = vpop.f32.mrb[14].mxu1  ;;  %1387 = vst [vmem:[%s2407_s4 + $0x118] sm:$0xff] %v1662_v16  ;;  %v1262_v22 = vadd.f32 %v2081_v19, %v1191_v13  ;;  %v1160_v23 = vmul.f32 %v2076_v17, %v723_v18  ;;  %v725_v25 = vpop.f32.mrb[15].mxu0 }
 0x131   :  { %v1192_v24 = vmul.f32 %v2076_v17, %v851_v20  ;;  %v853_v26 = vpop.f32.mrb[15].mxu1  ;;  %1671 = vtanh.f32 %v1230_v21 }
 0x132   :  { %v1231_v27 = vadd.f32 %v2081_v19, %v1160_v23  ;;  %1673 = vtanh.f32 %v1262_v22 }
 0x133   :  { %v1263_v28 = vadd.f32 %v2081_v19, %v1192_v24  ;;  %v1664_v29 = vpop.eup %1663 }
 0x134   :  { %1675 = vtanh.f32 %v1231_v27  ;;  %v1666_v30 = vpop.eup %1665  ;;  %1356 = vst [vmem:[%s2407_s4 + $0x20] sm:$0xff] %v1664_v29  ;;  %v728_v31 = vpop.f32.mrb[16].mxu0 }
 0x135   :  { %1677 = vtanh.f32 %v1263_v28  ;;  %v856_v32 = vpop.f32.mrb[16].mxu1  ;;  %1388 = vst [vmem:[%s2407_s4 + $0x120] sm:$0xff] %v1666_v30  ;;  %v1161_v34 = vmul.f32 %v2076_v17, %v728_v31  ;;  %v730_v36 = vpop.f32.mrb[17].mxu0 }
 0x136   :  { %v1668_v33 = vpop.eup %1667  ;;  %v1193_v35 = vmul.f32 %v2076_v17, %v856_v32  ;;  %v858_v37 = vpop.f32.mrb[17].mxu1 }
 0x137   :  { %v1670_v38 = vpop.eup %1669  ;;  %1357 = vst [vmem:[%s2407_s4 + $0x28] sm:$0xff] %v1668_v33  ;;  %v731_v39 = vpop.f32.mrb[18].mxu0  ;;  %v1232_v41 = vadd.f32 %v2081_v19, %v1161_v34 }
 0x138   :  { %v859_v40 = vpop.f32.mrb[18].mxu1  ;;  %1389 = vst [vmem:[%s2407_s4 + $0x128] sm:$0xff] %v1670_v38  ;;  %v1264_v42 = vadd.f32 %v2081_v19, %v1193_v35  ;;  %v1162_v43 = vmul.f32 %v2076_v17, %v731_v39  ;;  %v733_v45 = vpop.f32.mrb[19].mxu0 }
 0x139   :  { %v1194_v44 = vmul.f32 %v2076_v17, %v859_v40  ;;  %v861_v46 = vpop.f32.mrb[19].mxu1  ;;  %1679 = vtanh.f32 %v1232_v41 }
 0x13a   :  { %v1233_v47 = vadd.f32 %v2081_v19, %v1162_v43  ;;  %1681 = vtanh.f32 %v1264_v42 }
 0x13b   :  { %v1265_v48 = vadd.f32 %v2081_v19, %v1194_v44  ;;  %v1672_v49 = vpop.eup %1671 }
 0x13c   :  { %1683 = vtanh.f32 %v1233_v47  ;;  %v1674_v50 = vpop.eup %1673  ;;  %1358 = vst [vmem:[%s2407_s4 + $0x30] sm:$0xff] %v1672_v49  ;;  %v736_v51 = vpop.f32.mrb[20].mxu0 }
 0x13d   :  { %1685 = vtanh.f32 %v1265_v48  ;;  %v864_v52 = vpop.f32.mrb[20].mxu1  ;;  %1390 = vst [vmem:[%s2407_s4 + $0x130] sm:$0xff] %v1674_v50  ;;  %v1163_v54 = vmul.f32 %v2076_v17, %v736_v51  ;;  %v738_v56 = vpop.f32.mrb[21].mxu0 }
 0x13e   :  { %v1676_v53 = vpop.eup %1675  ;;  %v1195_v55 = vmul.f32 %v2076_v17, %v864_v52  ;;  %v866_v57 = vpop.f32.mrb[21].mxu1 }
 0x13f   :  { %v1678_v58 = vpop.eup %1677  ;;  %1359 = vst [vmem:[%s2407_s4 + $0x38] sm:$0xff] %v1676_v53  ;;  %v739_v59 = vpop.f32.mrb[22].mxu0  ;;  %v1234_v61 = vadd.f32 %v2081_v19, %v1163_v54 }
 0x140   :  { %v867_v60 = vpop.f32.mrb[22].mxu1  ;;  %1391 = vst [vmem:[%s2407_s4 + $0x138] sm:$0xff] %v1678_v58  ;;  %v1266_v62 = vadd.f32 %v2081_v19, %v1195_v55  ;;  %v1164_v63 = vmul.f32 %v2076_v17, %v739_v59  ;;  %v741_v1 = vpop.f32.mrb[23].mxu0 }
 0x141   :  { %v1196_v0 = vmul.f32 %v2076_v17, %v867_v60  ;;  %v869_v2 = vpop.f32.mrb[23].mxu1  ;;  %1687 = vtanh.f32 %v1234_v61 }
 0x142   :  { %v1235_v3 = vadd.f32 %v2081_v19, %v1164_v63  ;;  %1689 = vtanh.f32 %v1266_v62 }
 0x143   :  { %v1267_v4 = vadd.f32 %v2081_v19, %v1196_v0  ;;  %v1680_v5 = vpop.eup %1679 }
 0x144   :  { %1691 = vtanh.f32 %v1235_v3  ;;  %v1682_v6 = vpop.eup %1681  ;;  %1360 = vst [vmem:[%s2407_s4 + $0x40] sm:$0xff] %v1680_v5  ;;  %v744_v7 = vpop.f32.mrb[24].mxu0 }
 0x145   :  { %1693 = vtanh.f32 %v1267_v4  ;;  %v872_v8 = vpop.f32.mrb[24].mxu1  ;;  %1392 = vst [vmem:[%s2407_s4 + $0x140] sm:$0xff] %v1682_v6  ;;  %v1165_v10 = vmul.f32 %v2076_v17, %v744_v7  ;;  %v746_v12 = vpop.f32.mrb[25].mxu0 }
 0x146   :  { %v1684_v9 = vpop.eup %1683  ;;  %v1197_v11 = vmul.f32 %v2076_v17, %v872_v8  ;;  %v874_v13 = vpop.f32.mrb[25].mxu1 }
 0x147   :  { %v1686_v14 = vpop.eup %1685  ;;  %1361 = vst [vmem:[%s2407_s4 + $0x48] sm:$0xff] %v1684_v9  ;;  %v747_v15 = vpop.f32.mrb[26].mxu0  ;;  %v1236_v18 = vadd.f32 %v2081_v19, %v1165_v10 }
 0x148   :  { %v875_v16 = vpop.f32.mrb[26].mxu1  ;;  %1393 = vst [vmem:[%s2407_s4 + $0x148] sm:$0xff] %v1686_v14  ;;  %v1268_v20 = vadd.f32 %v2081_v19, %v1197_v11  ;;  %v1166_v21 = vmul.f32 %v2076_v17, %v747_v15  ;;  %v749_v23 = vpop.f32.mrb[27].mxu0 }
 0x149   :  { %v1198_v22 = vmul.f32 %v2076_v17, %v875_v16  ;;  %v877_v24 = vpop.f32.mrb[27].mxu1  ;;  %1695 = vtanh.f32 %v1236_v18 }
 0x14a   :  { %v1237_v25 = vadd.f32 %v2081_v19, %v1166_v21  ;;  %1697 = vtanh.f32 %v1268_v20 }
 0x14b   :  { %v1269_v26 = vadd.f32 %v2081_v19, %v1198_v22  ;;  %v1688_v27 = vpop.eup %1687 }
 0x14c   :  { %1699 = vtanh.f32 %v1237_v25  ;;  %v1690_v28 = vpop.eup %1689  ;;  %1362 = vst [vmem:[%s2407_s4 + $0x50] sm:$0xff] %v1688_v27  ;;  %v752_v29 = vpop.f32.mrb[28].mxu0 }
 0x14d   :  { %1701 = vtanh.f32 %v1269_v26  ;;  %v880_v30 = vpop.f32.mrb[28].mxu1  ;;  %1394 = vst [vmem:[%s2407_s4 + $0x150] sm:$0xff] %v1690_v28  ;;  %v1167_v32 = vmul.f32 %v2076_v17, %v752_v29  ;;  %v754_v34 = vpop.f32.mrb[29].mxu0 }
 0x14e   :  { %v1692_v31 = vpop.eup %1691  ;;  %v1199_v33 = vmul.f32 %v2076_v17, %v880_v30  ;;  %v882_v35 = vpop.f32.mrb[29].mxu1 }
 0x14f   :  { %v1694_v36 = vpop.eup %1693  ;;  %1363 = vst [vmem:[%s2407_s4 + $0x58] sm:$0xff] %v1692_v31  ;;  %v755_v37 = vpop.f32.mrb[30].mxu0  ;;  %v1238_v39 = vadd.f32 %v2081_v19, %v1167_v32 }
 0x150   :  { %v883_v38 = vpop.f32.mrb[30].mxu1  ;;  %1395 = vst [vmem:[%s2407_s4 + $0x158] sm:$0xff] %v1694_v36  ;;  %v1270_v40 = vadd.f32 %v2081_v19, %v1199_v33  ;;  %v1168_v41 = vmul.f32 %v2076_v17, %v755_v37  ;;  %v757_v43 = vpop.f32.mrb[31].mxu0 }
 0x151   :  { %v1200_v42 = vmul.f32 %v2076_v17, %v883_v38  ;;  %v885_v44 = vpop.f32.mrb[31].mxu1  ;;  %1703 = vtanh.f32 %v1238_v39 }
 0x152   :  { %v1239_v45 = vadd.f32 %v2081_v19, %v1168_v41  ;;  %1705 = vtanh.f32 %v1270_v40 }
 0x153   :  { %v1271_v46 = vadd.f32 %v2081_v19, %v1200_v42  ;;  %v1696_v47 = vpop.eup %1695 }
 0x154   :  { %1707 = vtanh.f32 %v1239_v45  ;;  %v1698_v48 = vpop.eup %1697  ;;  %1364 = vst [vmem:[%s2407_s4 + $0x60] sm:$0xff] %v1696_v47  ;;  %v760_v49 = vpop.f32.mrb[32].mxu0 }
 0x155   :  { %1709 = vtanh.f32 %v1271_v46  ;;  %v888_v50 = vpop.f32.mrb[32].mxu1  ;;  %1396 = vst [vmem:[%s2407_s4 + $0x160] sm:$0xff] %v1698_v48  ;;  %v1169_v52 = vmul.f32 %v2076_v17, %v760_v49  ;;  %v762_v54 = vpop.f32.mrb[33].mxu0 }
 0x156   :  { %v1700_v51 = vpop.eup %1699  ;;  %v1201_v53 = vmul.f32 %v2076_v17, %v888_v50  ;;  %v890_v55 = vpop.f32.mrb[33].mxu1 }
 0x157   :  { %v1702_v56 = vpop.eup %1701  ;;  %1365 = vst [vmem:[%s2407_s4 + $0x68] sm:$0xff] %v1700_v51  ;;  %v763_v57 = vpop.f32.mrb[34].mxu0  ;;  %v1240_v59 = vadd.f32 %v2081_v19, %v1169_v52 }
 0x158   :  { %v891_v58 = vpop.f32.mrb[34].mxu1  ;;  %1397 = vst [vmem:[%s2407_s4 + $0x168] sm:$0xff] %v1702_v56  ;;  %v1272_v60 = vadd.f32 %v2081_v19, %v1201_v53  ;;  %v1170_v61 = vmul.f32 %v2076_v17, %v763_v57  ;;  %v765_v63 = vpop.f32.mrb[35].mxu0 }
 0x159   :  { %v1202_v62 = vmul.f32 %v2076_v17, %v891_v58  ;;  %v893_v0 = vpop.f32.mrb[35].mxu1  ;;  %1711 = vtanh.f32 %v1240_v59 }
 0x15a   :  { %v1241_v1 = vadd.f32 %v2081_v19, %v1170_v61  ;;  %1713 = vtanh.f32 %v1272_v60 }
 0x15b   :  { %v1273_v2 = vadd.f32 %v2081_v19, %v1202_v62  ;;  %v1704_v3 = vpop.eup %1703 }
 0x15c   :  { %1715 = vtanh.f32 %v1241_v1  ;;  %v1706_v4 = vpop.eup %1705  ;;  %1366 = vst [vmem:[%s2407_s4 + $0x70] sm:$0xff] %v1704_v3  ;;  %v768_v5 = vpop.f32.mrb[36].mxu0 }
 0x15d   :  { %1717 = vtanh.f32 %v1273_v2  ;;  %v896_v6 = vpop.f32.mrb[36].mxu1  ;;  %1398 = vst [vmem:[%s2407_s4 + $0x170] sm:$0xff] %v1706_v4  ;;  %v1171_v8 = vmul.f32 %v2076_v17, %v768_v5  ;;  %v770_v10 = vpop.f32.mrb[37].mxu0 }
 0x15e   :  { %v1708_v7 = vpop.eup %1707  ;;  %v1203_v9 = vmul.f32 %v2076_v17, %v896_v6  ;;  %v898_v11 = vpop.f32.mrb[37].mxu1 }
 0x15f   :  { %v1710_v12 = vpop.eup %1709  ;;  %1367 = vst [vmem:[%s2407_s4 + $0x78] sm:$0xff] %v1708_v7  ;;  %v771_v13 = vpop.f32.mrb[38].mxu0  ;;  %v1242_v15 = vadd.f32 %v2081_v19, %v1171_v8 }
 0x160   :  { %v899_v14 = vpop.f32.mrb[38].mxu1  ;;  %1399 = vst [vmem:[%s2407_s4 + $0x178] sm:$0xff] %v1710_v12  ;;  %v1274_v16 = vadd.f32 %v2081_v19, %v1203_v9  ;;  %v1172_v18 = vmul.f32 %v2076_v17, %v771_v13  ;;  %v773_v21 = vpop.f32.mrb[39].mxu0 }
 0x161   :  { %v1204_v20 = vmul.f32 %v2076_v17, %v899_v14  ;;  %v901_v22 = vpop.f32.mrb[39].mxu1  ;;  %1719 = vtanh.f32 %v1242_v15 }
 0x162   :  { %v1243_v23 = vadd.f32 %v2081_v19, %v1172_v18  ;;  %1721 = vtanh.f32 %v1274_v16 }
 0x163   :  { %v1275_v24 = vadd.f32 %v2081_v19, %v1204_v20  ;;  %v1712_v25 = vpop.eup %1711 }
 0x164   :  { %1723 = vtanh.f32 %v1243_v23  ;;  %v1714_v26 = vpop.eup %1713  ;;  %1368 = vst [vmem:[%s2407_s4 + $0x80] sm:$0xff] %v1712_v25  ;;  %v776_v27 = vpop.f32.mrb[40].mxu0 }
 0x165   :  { %1725 = vtanh.f32 %v1275_v24  ;;  %v904_v28 = vpop.f32.mrb[40].mxu1  ;;  %1400 = vst [vmem:[%s2407_s4 + $0x180] sm:$0xff] %v1714_v26  ;;  %v1173_v30 = vmul.f32 %v2076_v17, %v776_v27  ;;  %v778_v32 = vpop.f32.mrb[41].mxu0 }
 0x166   :  { %v1716_v29 = vpop.eup %1715  ;;  %v1205_v31 = vmul.f32 %v2076_v17, %v904_v28  ;;  %v906_v33 = vpop.f32.mrb[41].mxu1 }
 0x167   :  { %v1718_v34 = vpop.eup %1717  ;;  %1369 = vst [vmem:[%s2407_s4 + $0x88] sm:$0xff] %v1716_v29  ;;  %v779_v35 = vpop.f32.mrb[42].mxu0  ;;  %v1244_v37 = vadd.f32 %v2081_v19, %v1173_v30 }
 0x168   :  { %v907_v36 = vpop.f32.mrb[42].mxu1  ;;  %1401 = vst [vmem:[%s2407_s4 + $0x188] sm:$0xff] %v1718_v34  ;;  %v1276_v38 = vadd.f32 %v2081_v19, %v1205_v31  ;;  %v1174_v39 = vmul.f32 %v2076_v17, %v779_v35  ;;  %v781_v41 = vpop.f32.mrb[43].mxu0 }
 0x169   :  { %v1206_v40 = vmul.f32 %v2076_v17, %v907_v36  ;;  %v909_v42 = vpop.f32.mrb[43].mxu1  ;;  %1727 = vtanh.f32 %v1244_v37 }
 0x16a   :  { %v1245_v43 = vadd.f32 %v2081_v19, %v1174_v39  ;;  %1729 = vtanh.f32 %v1276_v38 }
 0x16b   :  { %v1277_v44 = vadd.f32 %v2081_v19, %v1206_v40  ;;  %v1720_v45 = vpop.eup %1719 }
 0x16c   :  { %1731 = vtanh.f32 %v1245_v43  ;;  %v1722_v46 = vpop.eup %1721  ;;  %1370 = vst [vmem:[%s2407_s4 + $0x90] sm:$0xff] %v1720_v45  ;;  %v784_v47 = vpop.f32.mrb[44].mxu0 }
 0x16d   :  { %1733 = vtanh.f32 %v1277_v44  ;;  %v912_v48 = vpop.f32.mrb[44].mxu1  ;;  %1402 = vst [vmem:[%s2407_s4 + $0x190] sm:$0xff] %v1722_v46  ;;  %v1175_v50 = vmul.f32 %v2076_v17, %v784_v47  ;;  %v786_v52 = vpop.f32.mrb[45].mxu0 }
 0x16e   :  { %v1724_v49 = vpop.eup %1723  ;;  %v1207_v51 = vmul.f32 %v2076_v17, %v912_v48  ;;  %v914_v53 = vpop.f32.mrb[45].mxu1 }
 0x16f   :  { %v1726_v54 = vpop.eup %1725  ;;  %1371 = vst [vmem:[%s2407_s4 + $0x98] sm:$0xff] %v1724_v49  ;;  %v787_v55 = vpop.f32.mrb[46].mxu0  ;;  %v1246_v57 = vadd.f32 %v2081_v19, %v1175_v50 }
 0x170   :  { %v915_v56 = vpop.f32.mrb[46].mxu1  ;;  %1403 = vst [vmem:[%s2407_s4 + $0x198] sm:$0xff] %v1726_v54  ;;  %v1278_v58 = vadd.f32 %v2081_v19, %v1207_v51  ;;  %v1176_v59 = vmul.f32 %v2076_v17, %v787_v55  ;;  %v789_v61 = vpop.f32.mrb[47].mxu0 }
 0x171   :  { %v1208_v60 = vmul.f32 %v2076_v17, %v915_v56  ;;  %v917_v62 = vpop.f32.mrb[47].mxu1  ;;  %1735 = vtanh.f32 %v1246_v57 }
 0x172   :  { %v1247_v63 = vadd.f32 %v2081_v19, %v1176_v59  ;;  %1737 = vtanh.f32 %v1278_v58 }
 0x173   :  { %v1279_v0 = vadd.f32 %v2081_v19, %v1208_v60  ;;  %v1728_v1 = vpop.eup %1727 }
 0x174   :  { %1739 = vtanh.f32 %v1247_v63  ;;  %v1730_v2 = vpop.eup %1729  ;;  %1372 = vst [vmem:[%s2407_s4 + $0xa0] sm:$0xff] %v1728_v1  ;;  %v792_v3 = vpop.f32.mrb[48].mxu0 }
 0x175   :  { %1741 = vtanh.f32 %v1279_v0  ;;  %v920_v4 = vpop.f32.mrb[48].mxu1  ;;  %1404 = vst [vmem:[%s2407_s4 + $0x1a0] sm:$0xff] %v1730_v2  ;;  %v1177_v6 = vmul.f32 %v2076_v17, %v792_v3  ;;  %v794_v8 = vpop.f32.mrb[49].mxu0 }
 0x176   :  { %v1732_v5 = vpop.eup %1731  ;;  %v1209_v7 = vmul.f32 %v2076_v17, %v920_v4  ;;  %v922_v9 = vpop.f32.mrb[49].mxu1 }
 0x177   :  { %v1734_v10 = vpop.eup %1733  ;;  %1373 = vst [vmem:[%s2407_s4 + $0xa8] sm:$0xff] %v1732_v5  ;;  %v795_v11 = vpop.f32.mrb[50].mxu0  ;;  %v1248_v13 = vadd.f32 %v2081_v19, %v1177_v6 }
 0x178   :  { %v923_v12 = vpop.f32.mrb[50].mxu1  ;;  %1405 = vst [vmem:[%s2407_s4 + $0x1a8] sm:$0xff] %v1734_v10  ;;  %v1280_v14 = vadd.f32 %v2081_v19, %v1209_v7  ;;  %v1178_v15 = vmul.f32 %v2076_v17, %v795_v11  ;;  %v797_v18 = vpop.f32.mrb[51].mxu0 }
 0x179   :  { %v1210_v16 = vmul.f32 %v2076_v17, %v923_v12  ;;  %v925_v20 = vpop.f32.mrb[51].mxu1  ;;  %1743 = vtanh.f32 %v1248_v13 }
 0x17a   :  { %v1249_v21 = vadd.f32 %v2081_v19, %v1178_v15  ;;  %1745 = vtanh.f32 %v1280_v14 }
 0x17b   :  { %v1281_v22 = vadd.f32 %v2081_v19, %v1210_v16  ;;  %v1736_v23 = vpop.eup %1735 }
 0x17c   :  { %1747 = vtanh.f32 %v1249_v21  ;;  %v1738_v24 = vpop.eup %1737  ;;  %1374 = vst [vmem:[%s2407_s4 + $0xb0] sm:$0xff] %v1736_v23  ;;  %v800_v25 = vpop.f32.mrb[52].mxu0 }
 0x17d   :  { %1749 = vtanh.f32 %v1281_v22  ;;  %v928_v26 = vpop.f32.mrb[52].mxu1  ;;  %1406 = vst [vmem:[%s2407_s4 + $0x1b0] sm:$0xff] %v1738_v24  ;;  %v1179_v28 = vmul.f32 %v2076_v17, %v800_v25  ;;  %v802_v30 = vpop.f32.mrb[53].mxu0 }
 0x17e   :  { %v1740_v27 = vpop.eup %1739  ;;  %v1211_v29 = vmul.f32 %v2076_v17, %v928_v26  ;;  %v930_v31 = vpop.f32.mrb[53].mxu1 }
 0x17f   :  { %v1742_v32 = vpop.eup %1741  ;;  %1375 = vst [vmem:[%s2407_s4 + $0xb8] sm:$0xff] %v1740_v27  ;;  %v803_v33 = vpop.f32.mrb[54].mxu0  ;;  %v1250_v35 = vadd.f32 %v2081_v19, %v1179_v28 }
 0x180   :  { %v931_v34 = vpop.f32.mrb[54].mxu1  ;;  %1407 = vst [vmem:[%s2407_s4 + $0x1b8] sm:$0xff] %v1742_v32  ;;  %v1282_v36 = vadd.f32 %v2081_v19, %v1211_v29  ;;  %v1180_v37 = vmul.f32 %v2076_v17, %v803_v33  ;;  %v805_v39 = vpop.f32.mrb[55].mxu0 }
 0x181   :  { %v1212_v38 = vmul.f32 %v2076_v17, %v931_v34  ;;  %v933_v40 = vpop.f32.mrb[55].mxu1  ;;  %1751 = vtanh.f32 %v1250_v35 }
 0x182   :  { %v1251_v41 = vadd.f32 %v2081_v19, %v1180_v37  ;;  %1753 = vtanh.f32 %v1282_v36 }
 0x183   :  { %v1283_v42 = vadd.f32 %v2081_v19, %v1212_v38  ;;  %v1744_v43 = vpop.eup %1743 }
 0x184   :  { %1755 = vtanh.f32 %v1251_v41  ;;  %v1746_v44 = vpop.eup %1745  ;;  %1376 = vst [vmem:[%s2407_s4 + $0xc0] sm:$0xff] %v1744_v43  ;;  %v808_v45 = vpop.f32.mrb[56].mxu0 }
 0x185   :  { %1757 = vtanh.f32 %v1283_v42  ;;  %v936_v46 = vpop.f32.mrb[56].mxu1  ;;  %1408 = vst [vmem:[%s2407_s4 + $0x1c0] sm:$0xff] %v1746_v44  ;;  %v1181_v48 = vmul.f32 %v2076_v17, %v808_v45  ;;  %v810_v50 = vpop.f32.mrb[57].mxu0 }
 0x186   :  { %v1748_v47 = vpop.eup %1747  ;;  %v1213_v49 = vmul.f32 %v2076_v17, %v936_v46  ;;  %v938_v51 = vpop.f32.mrb[57].mxu1 }
 0x187   :  { %v1750_v52 = vpop.eup %1749  ;;  %1377 = vst [vmem:[%s2407_s4 + $0xc8] sm:$0xff] %v1748_v47  ;;  %v811_v53 = vpop.f32.mrb[58].mxu0  ;;  %v1252_v55 = vadd.f32 %v2081_v19, %v1181_v48 }
 0x188   :  { %v939_v54 = vpop.f32.mrb[58].mxu1  ;;  %1409 = vst [vmem:[%s2407_s4 + $0x1c8] sm:$0xff] %v1750_v52  ;;  %v1284_v56 = vadd.f32 %v2081_v19, %v1213_v49  ;;  %v1182_v57 = vmul.f32 %v2076_v17, %v811_v53  ;;  %v813_v59 = vpop.f32.mrb[59].mxu0 }
 0x189   :  { %v1214_v58 = vmul.f32 %v2076_v17, %v939_v54  ;;  %v941_v60 = vpop.f32.mrb[59].mxu1  ;;  %1759 = vtanh.f32 %v1252_v55 }
 0x18a   :  { %v1253_v61 = vadd.f32 %v2081_v19, %v1182_v57  ;;  %1761 = vtanh.f32 %v1284_v56 }
 0x18b   :  { %v1285_v62 = vadd.f32 %v2081_v19, %v1214_v58  ;;  %v1752_v63 = vpop.eup %1751 }
 0x18c   :  { %1763 = vtanh.f32 %v1253_v61  ;;  %v1754_v0 = vpop.eup %1753  ;;  %1378 = vst [vmem:[%s2407_s4 + $0xd0] sm:$0xff] %v1752_v63  ;;  %v816_v1 = vpop.f32.mrb[60].mxu0 }
 0x18d   :  { %1765 = vtanh.f32 %v1285_v62  ;;  %v944_v2 = vpop.f32.mrb[60].mxu1  ;;  %1410 = vst [vmem:[%s2407_s4 + $0x1d0] sm:$0xff] %v1754_v0  ;;  %v1183_v4 = vmul.f32 %v2076_v17, %v816_v1  ;;  %v818_v6 = vpop.f32.mrb[61].mxu0 }
 0x18e   :  { %v1756_v3 = vpop.eup %1755  ;;  %v1215_v5 = vmul.f32 %v2076_v17, %v944_v2  ;;  %v946_v7 = vpop.f32.mrb[61].mxu1 }
 0x18f   :  { %v1758_v8 = vpop.eup %1757  ;;  %1379 = vst [vmem:[%s2407_s4 + $0xd8] sm:$0xff] %v1756_v3  ;;  %v819_v9 = vpop.f32.mrb[62].mxu0  ;;  %v1254_v11 = vadd.f32 %v2081_v19, %v1183_v4 }
 0x190   :  { %v947_v10 = vpop.f32.mrb[62].mxu1  ;;  %1411 = vst [vmem:[%s2407_s4 + $0x1d8] sm:$0xff] %v1758_v8  ;;  %v1286_v12 = vadd.f32 %v2081_v19, %v1215_v5  ;;  %v1184_v13 = vmul.f32 %v2076_v17, %v819_v9  ;;  %v821_v15 = vpop.f32.mrb[63].mxu0 }
 0x191   :  { %v1216_v14 = vmul.f32 %v2076_v17, %v947_v10  ;;  %v949_v16 = vpop.f32.mrb[63].mxu1  ;;  %1767 = vtanh.f32 %v1254_v11 }
 0x192   :  { %v1255_v18 = vadd.f32 %v2081_v19, %v1184_v13  ;;  %1769 = vtanh.f32 %v1286_v12 }
 0x193   :  { %v1287_v20 = vadd.f32 %v2081_v19, %v1216_v14  ;;  %v1760_v21 = vpop.eup %1759 }
 0x194   :  { %1771 = vtanh.f32 %v1255_v18  ;;  %v1762_v22 = vpop.eup %1761  ;;  %1380 = vst [vmem:[%s2407_s4 + $0xe0] sm:$0xff] %v1760_v21 }
 0x195   :  { %1773 = vtanh.f32 %v1287_v20  ;;  %1412 = vst [vmem:[%s2407_s4 + $0x1e0] sm:$0xff] %v1762_v22 }
 0x196   :  { %v1764_v23 = vpop.eup %1763 }
 0x197   :  { %v1766_v17 = vpop.eup %1765  ;;  %1381 = vst [vmem:[%s2407_s4 + $0xe8] sm:$0xff] %v1764_v23 }
 0x198   :  { %1413 = vst [vmem:[%s2407_s4 + $0x1e8] sm:$0xff] %v1766_v17 }
 0x19b   :  { %v1768_v19 = vpop.eup %1767 }
 0x19c   :  { %v1770_v24 = vpop.eup %1769  ;;  %1382 = vst [vmem:[%s2407_s4 + $0xf0] sm:$0xff] %v1768_v19 }
 0x19d   :  { %1414 = vst [vmem:[%s2407_s4 + $0x1f0] sm:$0xff] %v1770_v24 }
 0x19e   :  { %v1772_v25 = vpop.eup %1771 }
 0x19f   :  { %v1774_v26 = vpop.eup %1773  ;;  %1383 = vst [vmem:[%s2407_s4 + $0xf8] sm:$0xff] %v1772_v25 }
 0x1a0   :  { %1415 = vst [vmem:[%s2407_s4 + $0x1f8] sm:$0xff] %v1774_v26 }

</bundles_post_ra>
